<compile_context>
chip_gen: v7x
topology: tpu7x:2x2x1
jax: 0.10.0
libtpu: 0.0.40
codegen_flags: <defaults>
</compile_context>

<pallas_src>
import numpy as np
import jax
import jax.numpy as jnp
from jax.experimental import pallas as pl
from jax.experimental.pallas import tpu as pltpu

F32 = jnp.float32

# ------------------------------ model dimensions ---------------------------- #
Z_DIM = 128
CH = 32                     # generator base channels
BASE = 4                    # initial spatial resolution (4x4)
HW = BASE * 2               # output spatial resolution after one up-block (8)
S_OUT = HW * HW             # 64 spatial positions
HID = CH * BASE * BASE      # 512 = linear output width
OUT_IMG_SHAPE = (3, HW, HW)
BN_EPS = 1e-5
BB = 4                      # batch elements fused per grid step
BS = BB * S_OUT             # 256 = lane width of every activation tile


# ------------------------------ fused Pallas kernel ------------------------- #

def sngan_gen_kernel(zt_ref, wlinT_ref, lT_ref, ulT_ref, rsel_ref, blinsel_ref,
                     g1_ref, b1_ref, shift_ref,
                     w1T_ref, b1c_ref, w2T_ref, b2c_ref,
                     wscT_ref, bsc_ref, woT_ref, bo_ref, out_ref):
    # "A @ B.T" dot flavor (contract last dims of both operands).
    NT = (((1,), (1,)), ((), ()))

    # ---- latents for this batch tile, channels-major: (Z_DIM, BB) ----------
    zt = zt_ref[0]
    # replicate each latent across its 64 output pixels: (Z_DIM, BS)
    zrep = jnp.dot(zt, lT_ref[...], preferred_element_type=F32)
    # linear layer (bias folded into blinsel), per output pixel: (HID, BS)
    hrep = jnp.dot(wlinT_ref[...], zrep, preferred_element_type=F32)
    # fused view(4,4,CH) + 2x nearest-neighbor upsample, channels-major: (CH, BS)
    x0t = jnp.dot(rsel_ref[...], hrep * ulT_ref[...],
                  preferred_element_type=F32) + blinsel_ref[...]

    # ---- BN1 (eval, pre-folded affine) + ReLU -------------------------------
    a1 = jnp.maximum(x0t * g1_ref[...] + b1_ref[...], 0.0)

    # ---- conv1 3x3 (BN2 folded) + ReLU: channel mix first, spatial shift second
    acc = jnp.zeros_like(a1)
    for t in range(9):                                    # static unroll: 9 taps
        m = jnp.dot(w1T_ref[t], a1, preferred_element_type=F32)        # (CH, BS)
        acc = acc + jax.lax.dot_general(m, shift_ref[t], NT,
                                        preferred_element_type=F32)
    c1 = jnp.maximum(acc + b1c_ref[...], 0.0)

    # ---- conv2 3x3 (BN3 scale/shift folded) ----------------------------------
    acc = jnp.zeros_like(c1)
    for t in range(9):
        m = jnp.dot(w2T_ref[t], c1, preferred_element_type=F32)
        acc = acc + jax.lax.dot_general(m, shift_ref[t], NT,
                                        preferred_element_type=F32)

    # ---- shortcut 1x1 conv on pre-BN upsampled input (BN3 scale folded) ------
    sk = jnp.dot(wscT_ref[...], x0t, preferred_element_type=F32) + bsc_ref[...]

    # ---- residual add (BN3 folded) + ReLU ------------------------------------
    x3 = jnp.maximum(acc + b2c_ref[...] + sk, 0.0)                      # (CH, BS)

    # ---- output 3x3 conv, channels-major, + tanh (lane-dense (3, BS) store) --
    acc_o = jnp.zeros((3, BS), F32)
    for t in range(9):
        q = jnp.dot(woT_ref[t], x3, preferred_element_type=F32)         # (3, BS)
        acc_o = acc_o + jax.lax.dot_general(q, shift_ref[t], NT,
                                            preferred_element_type=F32)
    out_ref[...] = jnp.tanh(acc_o + bo_ref[...])


# ------------------------------ parameter prep ------------------------------ #

def fold_bn(gamma, beta, mean, var, eps=BN_EPS):
    """Eval-mode BatchNorm with running stats folded to a per-channel affine."""
    scale = gamma / jnp.sqrt(var + eps)
    return scale, beta - mean * scale


def build_constants():
    """0/1 constants: block-diag 3x3 shift operators, fused reshape+upsample selectors."""
    shift = np.zeros((9, S_OUT, S_OUT), np.float32)        # (dst, src) per tap
    for dy in range(3):
        for dx in range(3):
            t = dy * 3 + dx
            for y in range(HW):
                for x in range(HW):
                    yi, xi = y + dy - 1, x + dx - 1
                    if 0 <= yi < HW and 0 <= xi < HW:
                        shift[t, y * HW + x, yi * HW + xi] = 1.0
    eye = np.eye(BB, dtype=np.float32)
    shift_bd = np.stack([np.kron(eye, shift[t]) for t in range(9)])      # (9, BS, BS)

    lT = np.kron(eye, np.ones((1, S_OUT), np.float32))                   # (BB, BS)

    # src(s): which 4x4 source cell feeds output pixel s after 2x upsample
    src = np.array([(y // 2) * BASE + (x // 2) for y in range(HW) for x in range(HW)],
                   np.int32)
    ul = np.zeros((S_OUT, HID), np.float32)                # "which source slot"
    for s in range(S_OUT):
        ul[s, src[s] * CH:(src[s] + 1) * CH] = 1.0
    ulT = np.tile(ul.T, (1, BB))                                          # (HID, BS)

    rsel = np.zeros((CH, HID), np.float32)                 # "which channel"
    for j in range(HID):
        rsel[j % CH, j] = 1.0
    return shift_bd, lT, ulT, rsel, src


def prepare_params(raw):
    """One-time: fold BN stats into conv weights, pre-transpose to matmul form."""
    s1, t1 = fold_bn(*raw["bn1"])
    s2, t2 = fold_bn(*raw["bn2"])
    s3, t3 = fold_bn(*raw["bn3"])
    shift_bd, lT, ulT, rsel, src = build_constants()

    # linear bias gathered per (channel, output pixel), tiled over the batch tile
    cols = jnp.asarray(src)[None, :] * CH + jnp.arange(CH)[:, None]       # (CH, S_OUT)
    blinsel = jnp.tile(raw["lin_b"][cols], (1, BB))                       # (CH, BS)

    p = dict(
        wlinT=raw["lin_w"].T,                            # (HID, Z_DIM)
        lT=lT, ulT=ulT, rsel=rsel, blinsel=blinsel,
        shift=shift_bd,
        g1=s1[:, None], b1=t1[:, None],
        w1T=jnp.transpose(raw["conv1_w"], (2, 3, 0, 1)).reshape(9, CH, CH)
            * s2[None, :, None],
        b1c=(raw["conv1_b"] * s2 + t2)[:, None],
        w2T=jnp.transpose(raw["conv2_w"], (2, 3, 0, 1)).reshape(9, CH, CH)
            * s3[None, :, None],
        b2c=(raw["conv2_b"] * s3 + t3)[:, None],
        wscT=raw["sc_w"].reshape(CH, CH) * s3[:, None],
        bsc=(raw["sc_b"] * s3)[:, None],
        woT=jnp.transpose(raw["out_w"], (2, 3, 0, 1)).reshape(9, 3, CH),
        bo=raw["out_b"].reshape(3, 1),
    )
    return jax.tree_util.tree_map(lambda a: jnp.asarray(a, F32), p)


# ------------------------------ pallas_call plumbing ------------------------ #

def generator_forward(params, z):
    """z: (B, Z_DIM) -> NCHW image (B, 3, HW, HW) via a single fused pallas_call."""
    B = z.shape[0]
    G = pl.cdiv(B, BB)
    bpad = G * BB
    if bpad != B:
        z = jnp.concatenate([z, jnp.zeros((bpad - B, Z_DIM), z.dtype)], axis=0)
    zg = z.reshape(G, BB, Z_DIM).transpose(0, 2, 1)          # (G, Z_DIM, BB)
    p = params

    def c2(shape):      # constant operand, resident across grid steps
        return pl.BlockSpec(shape, lambda g: (0, 0))

    def c3(shape):
        return pl.BlockSpec(shape, lambda g: (0, 0, 0))

    img_t = pl.pallas_call(
        sngan_gen_kernel,
        out_shape=jax.ShapeDtypeStruct((3, bpad * S_OUT), F32),
        grid=(G,),
        in_specs=[
            pl.BlockSpec((1, Z_DIM, BB), lambda g: (g, 0, 0)),   # z (transposed tiles)
            c2((HID, Z_DIM)),     # wlinT
            c2((BB, BS)),         # lT   (per-element column repeat)
            c2((HID, BS)),        # ulT  (upsample source selector)
            c2((CH, HID)),        # rsel (channel selector)
            c2((CH, BS)),         # blinsel (gathered linear bias)
            c2((CH, 1)),          # g1
            c2((CH, 1)),          # b1
            c3((9, BS, BS)),      # block-diag spatial shift matrices
            c3((9, CH, CH)),      # w1T taps (BN2 folded)
            c2((CH, 1)),          # b1c
            c3((9, CH, CH)),      # w2T taps (BN3 folded)
            c2((CH, 1)),          # b2c
            c2((CH, CH)),         # wscT (BN3 folded)
            c2((CH, 1)),          # bsc
            c3((9, 3, CH)),       # woT taps (output conv)
            c2((3, 1)),           # bo
        ],
        out_specs=pl.BlockSpec((3, BS), lambda g: (0, g)),
        compiler_params=pltpu.CompilerParams(
            dimension_semantics=("parallel",)),
    )(zg, p["wlinT"], p["lT"], p["ulT"], p["rsel"], p["blinsel"],
      p["g1"], p["b1"], p["shift"], p["w1T"], p["b1c"], p["w2T"], p["b2c"],
      p["wscT"], p["bsc"], p["woT"], p["bo"])

    # layout plumbing only: lane-dense kernel slab (3, B*64) -> NCHW
    img = img_t.reshape(3, bpad, S_OUT)[:, :B]
    return jnp.transpose(img, (1, 0, 2)).reshape(B, 3, HW, HW)


# ------------------------------- GenWrapper --------------------------------- #

class GenWrapperPallas:
    """JAX/Pallas equivalent of GenWrapper(model, out_img_shape, distribution)."""

    def __init__(self, raw_params, out_img_shape, latent_dim, key):
        self.raw_params = raw_params
        self.params = prepare_params(raw_params)      # BN folded, matmul-form weights
        self.out_img_shape = tuple(out_img_shape)
        self.latent_dim = latent_dim
        self._key = key
        self.force_no_grad = False                    # no-op: pure JAX forward has no grads
        self._forward = jax.jit(generator_forward)

    def __call__(self, batch_size):
        # distribution(batch_size): fresh standard-normal latents on every call
        # (stateful key splitting mirrors torch.randn's stateful RNG behaviour).
        self._key, sub = jax.random.split(self._key)
        z = jax.random.normal(sub, (batch_size, self.latent_dim), F32)
        img = self._forward(self.params, z)           # (B, 3, HW, HW) NCHW from the kernel
        # img.view(img.shape[0], *self.out_img_shape)
        return img.reshape(img.shape[0], *self.out_img_shape)


# ------------------------- raw params + pure-JAX reference ------------------ #

def init_raw_params(key):
    ks = iter(jax.random.split(key, 32))
    s = 0.05

    def nrm(shape):
        return s * jax.random.normal(next(ks), shape, F32)

    def bn_params():
        return (1.0 + nrm((CH,)),                                   # gamma
                nrm((CH,)),                                         # beta
                nrm((CH,)),                                         # running_mean
                1.0 + 0.2 * jax.random.uniform(next(ks), (CH,), F32))  # running_var

    p = {}
    p["lin_w"], p["lin_b"] = nrm((Z_DIM, HID)), nrm((HID,))
    p["bn1"] = bn_params()
    p["conv1_w"], p["conv1_b"] = nrm((CH, CH, 3, 3)), nrm((CH,))
    p["bn2"] = bn_params()
    p["conv2_w"], p["conv2_b"] = nrm((CH, CH, 3, 3)), nrm((CH,))
    p["sc_w"], p["sc_b"] = nrm((CH, CH, 1, 1)), nrm((CH,))
    p["bn3"] = bn_params()
    p["out_w"], p["out_b"] = nrm((3, CH, 3, 3)), nrm((3,))
    return p


def reference_forward(raw, z):
    """Pure-JAX (no Pallas) layer-by-layer reference of the same generator."""
    P = jax.lax.Precision.HIGHEST

    def bn_relu(x, bn):
        scale, shift = fold_bn(*bn)           # eval-mode BN with running stats
        return jnp.maximum(x * scale + shift, 0.0)

    def up2(x):
        return jnp.repeat(jnp.repeat(x, 2, axis=1), 2, axis=2)

    def conv3x3(x, w, b):
        Bb, Hh, Ww, Cc = x.shape
        xp = jnp.pad(x, ((0, 0), (1, 1), (1, 1), (0, 0)))
        cols = jnp.concatenate(
            [xp[:, dy:dy + Hh, dx:dx + Ww, :] for dy in range(3) for dx in range(3)],
            axis=-1).reshape(Bb * Hh * Ww, 9 * Cc)
        wm = jnp.transpose(w, (2, 3, 1, 0)).reshape(9 * Cc, w.shape[0])
        out = jnp.dot(cols, wm, precision=P) + b
        return out.reshape(Bb, Hh, Ww, w.shape[0])

    B = z.shape[0]
    h = jnp.dot(z, raw["lin_w"], precision=P) + raw["lin_b"]
    x0 = h.reshape(B, BASE, BASE, CH)                                 # NHWC
    a = up2(bn_relu(x0, raw["bn1"]))
    c1 = bn_relu(conv3x3(a, raw["conv1_w"], raw["conv1_b"]), raw["bn2"])
    c2 = conv3x3(c1, raw["conv2_w"], raw["conv2_b"])
    sk = jnp.dot(up2(x0).reshape(-1, CH), raw["sc_w"].reshape(CH, CH).T,
                 precision=P) + raw["sc_b"]
    sk = sk.reshape(B, HW, HW, CH)
    x3 = bn_relu(c2 + sk, raw["bn3"])
    img = jnp.tanh(conv3x3(x3, raw["out_w"], raw["out_b"]))           # (B, HW, HW, 3)
    return jnp.transpose(img, (0, 3, 1, 2))                           # NCHW


# ---------------------------------- main ------------------------------------ #

if __name__ == "__main__":
    key = jax.random.PRNGKey(0)
    pkey, zkey = jax.random.split(key)
    raw = init_raw_params(pkey)

    gen = GenWrapperPallas(raw, OUT_IMG_SHAPE, Z_DIM, zkey)

    batch_size = 2
    # Reproduce the latents the wrapper will draw on its first call so that we
    # can validate against the pure-JAX reference.
    _, sub = jax.random.split(zkey)
    z = jax.random.normal(sub, (batch_size, Z_DIM), F32)

    img = gen(batch_size)
    img = jax.block_until_ready(img)

    assert img.shape == (batch_size,) + OUT_IMG_SHAPE, img.shape
    assert img.dtype == F32
    assert bool(jnp.all(jnp.isfinite(img)))
    assert bool(jnp.all(jnp.abs(img) <= 1.0))          # tanh output range

    ref = reference_forward(raw, z)
    assert bool(jnp.allclose(img, ref, rtol=2e-2, atol=2e-2)), \
        float(jnp.max(jnp.abs(img - ref)))

    print("KERNEL_OK")
</pallas_src>

<mosaic_0001>
module attributes {stable_mosaic.version = 11 : i64} {
  func.func @sngan_gen_kernel(%arg0: i32, %arg1: memref<1x128x4xf32, #tpu.memory_space<vmem>>, %arg2: memref<512x128xf32, #tpu.memory_space<vmem>>, %arg3: memref<4x256xf32, #tpu.memory_space<vmem>>, %arg4: memref<512x256xf32, #tpu.memory_space<vmem>>, %arg5: memref<32x512xf32, #tpu.memory_space<vmem>>, %arg6: memref<32x256xf32, #tpu.memory_space<vmem>>, %arg7: memref<32x1xf32, #tpu.memory_space<vmem>>, %arg8: memref<32x1xf32, #tpu.memory_space<vmem>>, %arg9: memref<9x256x256xf32, #tpu.memory_space<vmem>>, %arg10: memref<9x32x32xf32, #tpu.memory_space<vmem>>, %arg11: memref<32x1xf32, #tpu.memory_space<vmem>>, %arg12: memref<9x32x32xf32, #tpu.memory_space<vmem>>, %arg13: memref<32x1xf32, #tpu.memory_space<vmem>>, %arg14: memref<32x32xf32, #tpu.memory_space<vmem>>, %arg15: memref<32x1xf32, #tpu.memory_space<vmem>>, %arg16: memref<9x3x32xf32, #tpu.memory_space<vmem>>, %arg17: memref<3x1xf32, #tpu.memory_space<vmem>>, %arg18: memref<3x256xf32, #tpu.memory_space<vmem>>) attributes {dimension_semantics = [#tpu.dimension_semantics<parallel>], iteration_bounds = array<i64: 1>, scalar_prefetch = 0 : i64, scratch_operands = 0 : i64, tpu.core_type = #tpu.core_type<tc>, window_params = [{transform_indices = @transform_0, window_bounds = array<i64: 1, 128, 4>}, {pipeline_mode = #tpu.pipeline_mode<synchronous>, transform_indices = @transform_1, window_bounds = array<i64: 512, 128>}, {pipeline_mode = #tpu.pipeline_mode<synchronous>, transform_indices = @transform_2, window_bounds = array<i64: 4, 256>}, {pipeline_mode = #tpu.pipeline_mode<synchronous>, transform_indices = @transform_3, window_bounds = array<i64: 512, 256>}, {pipeline_mode = #tpu.pipeline_mode<synchronous>, transform_indices = @transform_4, window_bounds = array<i64: 32, 512>}, {pipeline_mode = #tpu.pipeline_mode<synchronous>, transform_indices = @transform_5, window_bounds = array<i64: 32, 256>}, {pipeline_mode = #tpu.pipeline_mode<synchronous>, transform_indices = @transform_6, window_bounds = array<i64: 32, 1>}, {pipeline_mode = #tpu.pipeline_mode<synchronous>, transform_indices = @transform_7, window_bounds = array<i64: 32, 1>}, {pipeline_mode = #tpu.pipeline_mode<synchronous>, transform_indices = @transform_8, window_bounds = array<i64: 9, 256, 256>}, {pipeline_mode = #tpu.pipeline_mode<synchronous>, transform_indices = @transform_9, window_bounds = array<i64: 9, 32, 32>}, {pipeline_mode = #tpu.pipeline_mode<synchronous>, transform_indices = @transform_10, window_bounds = array<i64: 32, 1>}, {pipeline_mode = #tpu.pipeline_mode<synchronous>, transform_indices = @transform_11, window_bounds = array<i64: 9, 32, 32>}, {pipeline_mode = #tpu.pipeline_mode<synchronous>, transform_indices = @transform_12, window_bounds = array<i64: 32, 1>}, {pipeline_mode = #tpu.pipeline_mode<synchronous>, transform_indices = @transform_13, window_bounds = array<i64: 32, 32>}, {pipeline_mode = #tpu.pipeline_mode<synchronous>, transform_indices = @transform_14, window_bounds = array<i64: 32, 1>}, {pipeline_mode = #tpu.pipeline_mode<synchronous>, transform_indices = @transform_15, window_bounds = array<i64: 9, 3, 32>}, {pipeline_mode = #tpu.pipeline_mode<synchronous>, transform_indices = @transform_16, window_bounds = array<i64: 3, 1>}, {transform_indices = @transform_17, window_bounds = array<i64: 3, 256>}]} {
    %c0 = arith.constant 0 : index
    %c0_0 = arith.constant 0 : index
    %c0_1 = arith.constant 0 : index
    %0 = vector.load %arg1[%c0, %c0_0, %c0_1] : memref<1x128x4xf32, #tpu.memory_space<vmem>>, vector<1x128x4xf32>
    %1 = vector.shape_cast %0 : vector<1x128x4xf32> to vector<128x4xf32>
    %c0_2 = arith.constant 0 : index
    %c0_3 = arith.constant 0 : index
    %2 = vector.load %arg3[%c0_2, %c0_3] : memref<4x256xf32, #tpu.memory_space<vmem>>, vector<4x256xf32>
    %cst = arith.constant dense<0.000000e+00> : vector<128x256xf32>
    %3 = tpu.matmul %1, %2, %cst {dimension_numbers = #tpu.dot_dimension_numbers<[1], [0], [0], [1], [0, 0, 1, 1], [], []>} : vector<128x4xf32>, vector<4x256xf32>, vector<128x256xf32> -> vector<128x256xf32>
    %c0_4 = arith.constant 0 : index
    %c0_5 = arith.constant 0 : index
    %4 = vector.load %arg2[%c0_4, %c0_5] : memref<512x128xf32, #tpu.memory_space<vmem>>, vector<512x128xf32>
    %cst_6 = arith.constant dense<0.000000e+00> : vector<512x256xf32>
    %5 = tpu.matmul %4, %3, %cst_6 {dimension_numbers = #tpu.dot_dimension_numbers<[1], [0], [0], [1], [0, 0, 1, 1], [], []>} : vector<512x128xf32>, vector<128x256xf32>, vector<512x256xf32> -> vector<512x256xf32>
    %c0_7 = arith.constant 0 : index
    %c0_8 = arith.constant 0 : index
    %6 = vector.load %arg5[%c0_7, %c0_8] : memref<32x512xf32, #tpu.memory_space<vmem>>, vector<32x512xf32>
    %c0_9 = arith.constant 0 : index
    %c0_10 = arith.constant 0 : index
    %7 = vector.load %arg4[%c0_9, %c0_10] : memref<512x256xf32, #tpu.memory_space<vmem>>, vector<512x256xf32>
    %8 = arith.mulf %5, %7 : vector<512x256xf32>
    %cst_11 = arith.constant dense<0.000000e+00> : vector<32x256xf32>
    %9 = tpu.matmul %6, %8, %cst_11 {dimension_numbers = #tpu.dot_dimension_numbers<[1], [0], [0], [1], [0, 0, 1, 1], [], []>} : vector<32x512xf32>, vector<512x256xf32>, vector<32x256xf32> -> vector<32x256xf32>
    %c0_12 = arith.constant 0 : index
    %c0_13 = arith.constant 0 : index
    %10 = vector.load %arg6[%c0_12, %c0_13] : memref<32x256xf32, #tpu.memory_space<vmem>>, vector<32x256xf32>
    %11 = arith.addf %9, %10 : vector<32x256xf32>
    %c0_14 = arith.constant 0 : index
    %c0_15 = arith.constant 0 : index
    %12 = vector.load %arg7[%c0_14, %c0_15] : memref<32x1xf32, #tpu.memory_space<vmem>>, vector<32x1xf32>
    %13 = vector.broadcast %12 : vector<32x1xf32> to vector<32x256xf32>
    %14 = arith.mulf %11, %13 : vector<32x256xf32>
    %c0_16 = arith.constant 0 : index
    %c0_17 = arith.constant 0 : index
    %15 = vector.load %arg8[%c0_16, %c0_17] : memref<32x1xf32, #tpu.memory_space<vmem>>, vector<32x1xf32>
    %16 = vector.broadcast %15 : vector<32x1xf32> to vector<32x256xf32>
    %17 = arith.addf %14, %16 : vector<32x256xf32>
    %cst_18 = arith.constant 0.000000e+00 : f32
    %18 = vector.broadcast %cst_18 : f32 to vector<32x256xf32>
    %19 = arith.maximumf %17, %18 : vector<32x256xf32>
    %cst_19 = arith.constant 0.000000e+00 : f32
    %20 = vector.broadcast %cst_19 : f32 to vector<32x256xf32>
    %c0_20 = arith.constant 0 : index
    %c0_21 = arith.constant 0 : index
    %c0_22 = arith.constant 0 : index
    %21 = vector.load %arg10[%c0_20, %c0_21, %c0_22] : memref<9x32x32xf32, #tpu.memory_space<vmem>>, vector<1x32x32xf32>
    %22 = vector.shape_cast %21 : vector<1x32x32xf32> to vector<32x32xf32>
    %cst_23 = arith.constant dense<0.000000e+00> : vector<32x256xf32>
    %23 = tpu.matmul %22, %19, %cst_23 {dimension_numbers = #tpu.dot_dimension_numbers<[1], [0], [0], [1], [0, 0, 1, 1], [], []>} : vector<32x32xf32>, vector<32x256xf32>, vector<32x256xf32> -> vector<32x256xf32>
    %c0_24 = arith.constant 0 : index
    %c0_25 = arith.constant 0 : index
    %c0_26 = arith.constant 0 : index
    %24 = vector.load %arg9[%c0_24, %c0_25, %c0_26] : memref<9x256x256xf32, #tpu.memory_space<vmem>>, vector<1x256x256xf32>
    %25 = vector.shape_cast %24 : vector<1x256x256xf32> to vector<256x256xf32>
    %cst_27 = arith.constant dense<0.000000e+00> : vector<32x256xf32>
    %26 = tpu.matmul %23, %25, %cst_27 {dimension_numbers = #tpu.dot_dimension_numbers<[1], [1], [0], [0], [0, 0, 1, 0], [], []>} : vector<32x256xf32>, vector<256x256xf32>, vector<32x256xf32> -> vector<32x256xf32>
    %27 = arith.addf %20, %26 : vector<32x256xf32>
    %c1 = arith.constant 1 : index
    %c0_28 = arith.constant 0 : index
    %c0_29 = arith.constant 0 : index
    %28 = vector.load %arg10[%c1, %c0_28, %c0_29] : memref<9x32x32xf32, #tpu.memory_space<vmem>>, vector<1x32x32xf32>
    %29 = vector.shape_cast %28 : vector<1x32x32xf32> to vector<32x32xf32>
    %cst_30 = arith.constant dense<0.000000e+00> : vector<32x256xf32>
    %30 = tpu.matmul %29, %19, %cst_30 {dimension_numbers = #tpu.dot_dimension_numbers<[1], [0], [0], [1], [0, 0, 1, 1], [], []>} : vector<32x32xf32>, vector<32x256xf32>, vector<32x256xf32> -> vector<32x256xf32>
    %c1_31 = arith.constant 1 : index
    %c0_32 = arith.constant 0 : index
    %c0_33 = arith.constant 0 : index
    %31 = vector.load %arg9[%c1_31, %c0_32, %c0_33] : memref<9x256x256xf32, #tpu.memory_space<vmem>>, vector<1x256x256xf32>
    %32 = vector.shape_cast %31 : vector<1x256x256xf32> to vector<256x256xf32>
    %cst_34 = arith.constant dense<0.000000e+00> : vector<32x256xf32>
    %33 = tpu.matmul %30, %32, %cst_34 {dimension_numbers = #tpu.dot_dimension_numbers<[1], [1], [0], [0], [0, 0, 1, 0], [], []>} : vector<32x256xf32>, vector<256x256xf32>, vector<32x256xf32> -> vector<32x256xf32>
    %34 = arith.addf %27, %33 : vector<32x256xf32>
    %c2 = arith.constant 2 : index
    %c0_35 = arith.constant 0 : index
    %c0_36 = arith.constant 0 : index
    %35 = vector.load %arg10[%c2, %c0_35, %c0_36] : memref<9x32x32xf32, #tpu.memory_space<vmem>>, vector<1x32x32xf32>
    %36 = vector.shape_cast %35 : vector<1x32x32xf32> to vector<32x32xf32>
    %cst_37 = arith.constant dense<0.000000e+00> : vector<32x256xf32>
    %37 = tpu.matmul %36, %19, %cst_37 {dimension_numbers = #tpu.dot_dimension_numbers<[1], [0], [0], [1], [0, 0, 1, 1], [], []>} : vector<32x32xf32>, vector<32x256xf32>, vector<32x256xf32> -> vector<32x256xf32>
    %c2_38 = arith.constant 2 : index
    %c0_39 = arith.constant 0 : index
    %c0_40 = arith.constant 0 : index
    %38 = vector.load %arg9[%c2_38, %c0_39, %c0_40] : memref<9x256x256xf32, #tpu.memory_space<vmem>>, vector<1x256x256xf32>
    %39 = vector.shape_cast %38 : vector<1x256x256xf32> to vector<256x256xf32>
    %cst_41 = arith.constant dense<0.000000e+00> : vector<32x256xf32>
    %40 = tpu.matmul %37, %39, %cst_41 {dimension_numbers = #tpu.dot_dimension_numbers<[1], [1], [0], [0], [0, 0, 1, 0], [], []>} : vector<32x256xf32>, vector<256x256xf32>, vector<32x256xf32> -> vector<32x256xf32>
    %41 = arith.addf %34, %40 : vector<32x256xf32>
    %c3 = arith.constant 3 : index
    %c0_42 = arith.constant 0 : index
    %c0_43 = arith.constant 0 : index
    %42 = vector.load %arg10[%c3, %c0_42, %c0_43] : memref<9x32x32xf32, #tpu.memory_space<vmem>>, vector<1x32x32xf32>
    %43 = vector.shape_cast %42 : vector<1x32x32xf32> to vector<32x32xf32>
    %cst_44 = arith.constant dense<0.000000e+00> : vector<32x256xf32>
    %44 = tpu.matmul %43, %19, %cst_44 {dimension_numbers = #tpu.dot_dimension_numbers<[1], [0], [0], [1], [0, 0, 1, 1], [], []>} : vector<32x32xf32>, vector<32x256xf32>, vector<32x256xf32> -> vector<32x256xf32>
    %c3_45 = arith.constant 3 : index
    %c0_46 = arith.constant 0 : index
    %c0_47 = arith.constant 0 : index
    %45 = vector.load %arg9[%c3_45, %c0_46, %c0_47] : memref<9x256x256xf32, #tpu.memory_space<vmem>>, vector<1x256x256xf32>
    %46 = vector.shape_cast %45 : vector<1x256x256xf32> to vector<256x256xf32>
    %cst_48 = arith.constant dense<0.000000e+00> : vector<32x256xf32>
    %47 = tpu.matmul %44, %46, %cst_48 {dimension_numbers = #tpu.dot_dimension_numbers<[1], [1], [0], [0], [0, 0, 1, 0], [], []>} : vector<32x256xf32>, vector<256x256xf32>, vector<32x256xf32> -> vector<32x256xf32>
    %48 = arith.addf %41, %47 : vector<32x256xf32>
    %c4 = arith.constant 4 : index
    %c0_49 = arith.constant 0 : index
    %c0_50 = arith.constant 0 : index
    %49 = vector.load %arg10[%c4, %c0_49, %c0_50] : memref<9x32x32xf32, #tpu.memory_space<vmem>>, vector<1x32x32xf32>
    %50 = vector.shape_cast %49 : vector<1x32x32xf32> to vector<32x32xf32>
    %cst_51 = arith.constant dense<0.000000e+00> : vector<32x256xf32>
    %51 = tpu.matmul %50, %19, %cst_51 {dimension_numbers = #tpu.dot_dimension_numbers<[1], [0], [0], [1], [0, 0, 1, 1], [], []>} : vector<32x32xf32>, vector<32x256xf32>, vector<32x256xf32> -> vector<32x256xf32>
    %c4_52 = arith.constant 4 : index
    %c0_53 = arith.constant 0 : index
    %c0_54 = arith.constant 0 : index
    %52 = vector.load %arg9[%c4_52, %c0_53, %c0_54] : memref<9x256x256xf32, #tpu.memory_space<vmem>>, vector<1x256x256xf32>
    %53 = vector.shape_cast %52 : vector<1x256x256xf32> to vector<256x256xf32>
    %cst_55 = arith.constant dense<0.000000e+00> : vector<32x256xf32>
    %54 = tpu.matmul %51, %53, %cst_55 {dimension_numbers = #tpu.dot_dimension_numbers<[1], [1], [0], [0], [0, 0, 1, 0], [], []>} : vector<32x256xf32>, vector<256x256xf32>, vector<32x256xf32> -> vector<32x256xf32>
    %55 = arith.addf %48, %54 : vector<32x256xf32>
    %c5 = arith.constant 5 : index
    %c0_56 = arith.constant 0 : index
    %c0_57 = arith.constant 0 : index
    %56 = vector.load %arg10[%c5, %c0_56, %c0_57] : memref<9x32x32xf32, #tpu.memory_space<vmem>>, vector<1x32x32xf32>
    %57 = vector.shape_cast %56 : vector<1x32x32xf32> to vector<32x32xf32>
    %cst_58 = arith.constant dense<0.000000e+00> : vector<32x256xf32>
    %58 = tpu.matmul %57, %19, %cst_58 {dimension_numbers = #tpu.dot_dimension_numbers<[1], [0], [0], [1], [0, 0, 1, 1], [], []>} : vector<32x32xf32>, vector<32x256xf32>, vector<32x256xf32> -> vector<32x256xf32>
    %c5_59 = arith.constant 5 : index
    %c0_60 = arith.constant 0 : index
    %c0_61 = arith.constant 0 : index
    %59 = vector.load %arg9[%c5_59, %c0_60, %c0_61] : memref<9x256x256xf32, #tpu.memory_space<vmem>>, vector<1x256x256xf32>
    %60 = vector.shape_cast %59 : vector<1x256x256xf32> to vector<256x256xf32>
    %cst_62 = arith.constant dense<0.000000e+00> : vector<32x256xf32>
    %61 = tpu.matmul %58, %60, %cst_62 {dimension_numbers = #tpu.dot_dimension_numbers<[1], [1], [0], [0], [0, 0, 1, 0], [], []>} : vector<32x256xf32>, vector<256x256xf32>, vector<32x256xf32> -> vector<32x256xf32>
    %62 = arith.addf %55, %61 : vector<32x256xf32>
    %c6 = arith.constant 6 : index
    %c0_63 = arith.constant 0 : index
    %c0_64 = arith.constant 0 : index
    %63 = vector.load %arg10[%c6, %c0_63, %c0_64] : memref<9x32x32xf32, #tpu.memory_space<vmem>>, vector<1x32x32xf32>
    %64 = vector.shape_cast %63 : vector<1x32x32xf32> to vector<32x32xf32>
    %cst_65 = arith.constant dense<0.000000e+00> : vector<32x256xf32>
    %65 = tpu.matmul %64, %19, %cst_65 {dimension_numbers = #tpu.dot_dimension_numbers<[1], [0], [0], [1], [0, 0, 1, 1], [], []>} : vector<32x32xf32>, vector<32x256xf32>, vector<32x256xf32> -> vector<32x256xf32>
    %c6_66 = arith.constant 6 : index
    %c0_67 = arith.constant 0 : index
    %c0_68 = arith.constant 0 : index
    %66 = vector.load %arg9[%c6_66, %c0_67, %c0_68] : memref<9x256x256xf32, #tpu.memory_space<vmem>>, vector<1x256x256xf32>
    %67 = vector.shape_cast %66 : vector<1x256x256xf32> to vector<256x256xf32>
    %cst_69 = arith.constant dense<0.000000e+00> : vector<32x256xf32>
    %68 = tpu.matmul %65, %67, %cst_69 {dimension_numbers = #tpu.dot_dimension_numbers<[1], [1], [0], [0], [0, 0, 1, 0], [], []>} : vector<32x256xf32>, vector<256x256xf32>, vector<32x256xf32> -> vector<32x256xf32>
    %69 = arith.addf %62, %68 : vector<32x256xf32>
    %c7 = arith.constant 7 : index
    %c0_70 = arith.constant 0 : index
    %c0_71 = arith.constant 0 : index
    %70 = vector.load %arg10[%c7, %c0_70, %c0_71] : memref<9x32x32xf32, #tpu.memory_space<vmem>>, vector<1x32x32xf32>
    %71 = vector.shape_cast %70 : vector<1x32x32xf32> to vector<32x32xf32>
    %cst_72 = arith.constant dense<0.000000e+00> : vector<32x256xf32>
    %72 = tpu.matmul %71, %19, %cst_72 {dimension_numbers = #tpu.dot_dimension_numbers<[1], [0], [0], [1], [0, 0, 1, 1], [], []>} : vector<32x32xf32>, vector<32x256xf32>, vector<32x256xf32> -> vector<32x256xf32>
    %c7_73 = arith.constant 7 : index
    %c0_74 = arith.constant 0 : index
    %c0_75 = arith.constant 0 : index
    %73 = vector.load %arg9[%c7_73, %c0_74, %c0_75] : memref<9x256x256xf32, #tpu.memory_space<vmem>>, vector<1x256x256xf32>
    %74 = vector.shape_cast %73 : vector<1x256x256xf32> to vector<256x256xf32>
    %cst_76 = arith.constant dense<0.000000e+00> : vector<32x256xf32>
    %75 = tpu.matmul %72, %74, %cst_76 {dimension_numbers = #tpu.dot_dimension_numbers<[1], [1], [0], [0], [0, 0, 1, 0], [], []>} : vector<32x256xf32>, vector<256x256xf32>, vector<32x256xf32> -> vector<32x256xf32>
    %76 = arith.addf %69, %75 : vector<32x256xf32>
    %c8 = arith.constant 8 : index
    %c0_77 = arith.constant 0 : index
    %c0_78 = arith.constant 0 : index
    %77 = vector.load %arg10[%c8, %c0_77, %c0_78] : memref<9x32x32xf32, #tpu.memory_space<vmem>>, vector<1x32x32xf32>
    %78 = vector.shape_cast %77 : vector<1x32x32xf32> to vector<32x32xf32>
    %cst_79 = arith.constant dense<0.000000e+00> : vector<32x256xf32>
    %79 = tpu.matmul %78, %19, %cst_79 {dimension_numbers = #tpu.dot_dimension_numbers<[1], [0], [0], [1], [0, 0, 1, 1], [], []>} : vector<32x32xf32>, vector<32x256xf32>, vector<32x256xf32> -> vector<32x256xf32>
    %c8_80 = arith.constant 8 : index
    %c0_81 = arith.constant 0 : index
    %c0_82 = arith.constant 0 : index
    %80 = vector.load %arg9[%c8_80, %c0_81, %c0_82] : memref<9x256x256xf32, #tpu.memory_space<vmem>>, vector<1x256x256xf32>
    %81 = vector.shape_cast %80 : vector<1x256x256xf32> to vector<256x256xf32>
    %cst_83 = arith.constant dense<0.000000e+00> : vector<32x256xf32>
    %82 = tpu.matmul %79, %81, %cst_83 {dimension_numbers = #tpu.dot_dimension_numbers<[1], [1], [0], [0], [0, 0, 1, 0], [], []>} : vector<32x256xf32>, vector<256x256xf32>, vector<32x256xf32> -> vector<32x256xf32>
    %83 = arith.addf %76, %82 : vector<32x256xf32>
    %c0_84 = arith.constant 0 : index
    %c0_85 = arith.constant 0 : index
    %84 = vector.load %arg11[%c0_84, %c0_85] : memref<32x1xf32, #tpu.memory_space<vmem>>, vector<32x1xf32>
    %85 = vector.broadcast %84 : vector<32x1xf32> to vector<32x256xf32>
    %86 = arith.addf %83, %85 : vector<32x256xf32>
    %cst_86 = arith.constant 0.000000e+00 : f32
    %87 = vector.broadcast %cst_86 : f32 to vector<32x256xf32>
    %88 = arith.maximumf %86, %87 : vector<32x256xf32>
    %cst_87 = arith.constant 0.000000e+00 : f32
    %89 = vector.broadcast %cst_87 : f32 to vector<32x256xf32>
    %c0_88 = arith.constant 0 : index
    %c0_89 = arith.constant 0 : index
    %c0_90 = arith.constant 0 : index
    %90 = vector.load %arg12[%c0_88, %c0_89, %c0_90] : memref<9x32x32xf32, #tpu.memory_space<vmem>>, vector<1x32x32xf32>
    %91 = vector.shape_cast %90 : vector<1x32x32xf32> to vector<32x32xf32>
    %cst_91 = arith.constant dense<0.000000e+00> : vector<32x256xf32>
    %92 = tpu.matmul %91, %88, %cst_91 {dimension_numbers = #tpu.dot_dimension_numbers<[1], [0], [0], [1], [0, 0, 1, 1], [], []>} : vector<32x32xf32>, vector<32x256xf32>, vector<32x256xf32> -> vector<32x256xf32>
    %c0_92 = arith.constant 0 : index
    %c0_93 = arith.constant 0 : index
    %c0_94 = arith.constant 0 : index
    %93 = vector.load %arg9[%c0_92, %c0_93, %c0_94] : memref<9x256x256xf32, #tpu.memory_space<vmem>>, vector<1x256x256xf32>
    %94 = vector.shape_cast %93 : vector<1x256x256xf32> to vector<256x256xf32>
    %cst_95 = arith.constant dense<0.000000e+00> : vector<32x256xf32>
    %95 = tpu.matmul %92, %94, %cst_95 {dimension_numbers = #tpu.dot_dimension_numbers<[1], [1], [0], [0], [0, 0, 1, 0], [], []>} : vector<32x256xf32>, vector<256x256xf32>, vector<32x256xf32> -> vector<32x256xf32>
    %96 = arith.addf %89, %95 : vector<32x256xf32>
    %c1_96 = arith.constant 1 : index
    %c0_97 = arith.constant 0 : index
    %c0_98 = arith.constant 0 : index
    %97 = vector.load %arg12[%c1_96, %c0_97, %c0_98] : memref<9x32x32xf32, #tpu.memory_space<vmem>>, vector<1x32x32xf32>
    %98 = vector.shape_cast %97 : vector<1x32x32xf32> to vector<32x32xf32>
    %cst_99 = arith.constant dense<0.000000e+00> : vector<32x256xf32>
    %99 = tpu.matmul %98, %88, %cst_99 {dimension_numbers = #tpu.dot_dimension_numbers<[1], [0], [0], [1], [0, 0, 1, 1], [], []>} : vector<32x32xf32>, vector<32x256xf32>, vector<32x256xf32> -> vector<32x256xf32>
    %c1_100 = arith.constant 1 : index
    %c0_101 = arith.constant 0 : index
    %c0_102 = arith.constant 0 : index
    %100 = vector.load %arg9[%c1_100, %c0_101, %c0_102] : memref<9x256x256xf32, #tpu.memory_space<vmem>>, vector<1x256x256xf32>
    %101 = vector.shape_cast %100 : vector<1x256x256xf32> to vector<256x256xf32>
    %cst_103 = arith.constant dense<0.000000e+00> : vector<32x256xf32>
    %102 = tpu.matmul %99, %101, %cst_103 {dimension_numbers = #tpu.dot_dimension_numbers<[1], [1], [0], [0], [0, 0, 1, 0], [], []>} : vector<32x256xf32>, vector<256x256xf32>, vector<32x256xf32> -> vector<32x256xf32>
    %103 = arith.addf %96, %102 : vector<32x256xf32>
    %c2_104 = arith.constant 2 : index
    %c0_105 = arith.constant 0 : index
    %c0_106 = arith.constant 0 : index
    %104 = vector.load %arg12[%c2_104, %c0_105, %c0_106] : memref<9x32x32xf32, #tpu.memory_space<vmem>>, vector<1x32x32xf32>
    %105 = vector.shape_cast %104 : vector<1x32x32xf32> to vector<32x32xf32>
    %cst_107 = arith.constant dense<0.000000e+00> : vector<32x256xf32>
    %106 = tpu.matmul %105, %88, %cst_107 {dimension_numbers = #tpu.dot_dimension_numbers<[1], [0], [0], [1], [0, 0, 1, 1], [], []>} : vector<32x32xf32>, vector<32x256xf32>, vector<32x256xf32> -> vector<32x256xf32>
    %c2_108 = arith.constant 2 : index
    %c0_109 = arith.constant 0 : index
    %c0_110 = arith.constant 0 : index
    %107 = vector.load %arg9[%c2_108, %c0_109, %c0_110] : memref<9x256x256xf32, #tpu.memory_space<vmem>>, vector<1x256x256xf32>
    %108 = vector.shape_cast %107 : vector<1x256x256xf32> to vector<256x256xf32>
    %cst_111 = arith.constant dense<0.000000e+00> : vector<32x256xf32>
    %109 = tpu.matmul %106, %108, %cst_111 {dimension_numbers = #tpu.dot_dimension_numbers<[1], [1], [0], [0], [0, 0, 1, 0], [], []>} : vector<32x256xf32>, vector<256x256xf32>, vector<32x256xf32> -> vector<32x256xf32>
    %110 = arith.addf %103, %109 : vector<32x256xf32>
    %c3_112 = arith.constant 3 : index
    %c0_113 = arith.constant 0 : index
    %c0_114 = arith.constant 0 : index
    %111 = vector.load %arg12[%c3_112, %c0_113, %c0_114] : memref<9x32x32xf32, #tpu.memory_space<vmem>>, vector<1x32x32xf32>
    %112 = vector.shape_cast %111 : vector<1x32x32xf32> to vector<32x32xf32>
    %cst_115 = arith.constant dense<0.000000e+00> : vector<32x256xf32>
    %113 = tpu.matmul %112, %88, %cst_115 {dimension_numbers = #tpu.dot_dimension_numbers<[1], [0], [0], [1], [0, 0, 1, 1], [], []>} : vector<32x32xf32>, vector<32x256xf32>, vector<32x256xf32> -> vector<32x256xf32>
    %c3_116 = arith.constant 3 : index
    %c0_117 = arith.constant 0 : index
    %c0_118 = arith.constant 0 : index
    %114 = vector.load %arg9[%c3_116, %c0_117, %c0_118] : memref<9x256x256xf32, #tpu.memory_space<vmem>>, vector<1x256x256xf32>
    %115 = vector.shape_cast %114 : vector<1x256x256xf32> to vector<256x256xf32>
    %cst_119 = arith.constant dense<0.000000e+00> : vector<32x256xf32>
    %116 = tpu.matmul %113, %115, %cst_119 {dimension_numbers = #tpu.dot_dimension_numbers<[1], [1], [0], [0], [0, 0, 1, 0], [], []>} : vector<32x256xf32>, vector<256x256xf32>, vector<32x256xf32> -> vector<32x256xf32>
    %117 = arith.addf %110, %116 : vector<32x256xf32>
    %c4_120 = arith.constant 4 : index
    %c0_121 = arith.constant 0 : index
    %c0_122 = arith.constant 0 : index
    %118 = vector.load %arg12[%c4_120, %c0_121, %c0_122] : memref<9x32x32xf32, #tpu.memory_space<vmem>>, vector<1x32x32xf32>
    %119 = vector.shape_cast %118 : vector<1x32x32xf32> to vector<32x32xf32>
    %cst_123 = arith.constant dense<0.000000e+00> : vector<32x256xf32>
    %120 = tpu.matmul %119, %88, %cst_123 {dimension_numbers = #tpu.dot_dimension_numbers<[1], [0], [0], [1], [0, 0, 1, 1], [], []>} : vector<32x32xf32>, vector<32x256xf32>, vector<32x256xf32> -> vector<32x256xf32>
    %c4_124 = arith.constant 4 : index
    %c0_125 = arith.constant 0 : index
    %c0_126 = arith.constant 0 : index
    %121 = vector.load %arg9[%c4_124, %c0_125, %c0_126] : memref<9x256x256xf32, #tpu.memory_space<vmem>>, vector<1x256x256xf32>
    %122 = vector.shape_cast %121 : vector<1x256x256xf32> to vector<256x256xf32>
    %cst_127 = arith.constant dense<0.000000e+00> : vector<32x256xf32>
    %123 = tpu.matmul %120, %122, %cst_127 {dimension_numbers = #tpu.dot_dimension_numbers<[1], [1], [0], [0], [0, 0, 1, 0], [], []>} : vector<32x256xf32>, vector<256x256xf32>, vector<32x256xf32> -> vector<32x256xf32>
    %124 = arith.addf %117, %123 : vector<32x256xf32>
    %c5_128 = arith.constant 5 : index
    %c0_129 = arith.constant 0 : index
    %c0_130 = arith.constant 0 : index
    %125 = vector.load %arg12[%c5_128, %c0_129, %c0_130] : memref<9x32x32xf32, #tpu.memory_space<vmem>>, vector<1x32x32xf32>
    %126 = vector.shape_cast %125 : vector<1x32x32xf32> to vector<32x32xf32>
    %cst_131 = arith.constant dense<0.000000e+00> : vector<32x256xf32>
    %127 = tpu.matmul %126, %88, %cst_131 {dimension_numbers = #tpu.dot_dimension_numbers<[1], [0], [0], [1], [0, 0, 1, 1], [], []>} : vector<32x32xf32>, vector<32x256xf32>, vector<32x256xf32> -> vector<32x256xf32>
    %c5_132 = arith.constant 5 : index
    %c0_133 = arith.constant 0 : index
    %c0_134 = arith.constant 0 : index
    %128 = vector.load %arg9[%c5_132, %c0_133, %c0_134] : memref<9x256x256xf32, #tpu.memory_space<vmem>>, vector<1x256x256xf32>
    %129 = vector.shape_cast %128 : vector<1x256x256xf32> to vector<256x256xf32>
    %cst_135 = arith.constant dense<0.000000e+00> : vector<32x256xf32>
    %130 = tpu.matmul %127, %129, %cst_135 {dimension_numbers = #tpu.dot_dimension_numbers<[1], [1], [0], [0], [0, 0, 1, 0], [], []>} : vector<32x256xf32>, vector<256x256xf32>, vector<32x256xf32> -> vector<32x256xf32>
    %131 = arith.addf %124, %130 : vector<32x256xf32>
    %c6_136 = arith.constant 6 : index
    %c0_137 = arith.constant 0 : index
    %c0_138 = arith.constant 0 : index
    %132 = vector.load %arg12[%c6_136, %c0_137, %c0_138] : memref<9x32x32xf32, #tpu.memory_space<vmem>>, vector<1x32x32xf32>
    %133 = vector.shape_cast %132 : vector<1x32x32xf32> to vector<32x32xf32>
    %cst_139 = arith.constant dense<0.000000e+00> : vector<32x256xf32>
    %134 = tpu.matmul %133, %88, %cst_139 {dimension_numbers = #tpu.dot_dimension_numbers<[1], [0], [0], [1], [0, 0, 1, 1], [], []>} : vector<32x32xf32>, vector<32x256xf32>, vector<32x256xf32> -> vector<32x256xf32>
    %c6_140 = arith.constant 6 : index
    %c0_141 = arith.constant 0 : index
    %c0_142 = arith.constant 0 : index
    %135 = vector.load %arg9[%c6_140, %c0_141, %c0_142] : memref<9x256x256xf32, #tpu.memory_space<vmem>>, vector<1x256x256xf32>
    %136 = vector.shape_cast %135 : vector<1x256x256xf32> to vector<256x256xf32>
    %cst_143 = arith.constant dense<0.000000e+00> : vector<32x256xf32>
    %137 = tpu.matmul %134, %136, %cst_143 {dimension_numbers = #tpu.dot_dimension_numbers<[1], [1], [0], [0], [0, 0, 1, 0], [], []>} : vector<32x256xf32>, vector<256x256xf32>, vector<32x256xf32> -> vector<32x256xf32>
    %138 = arith.addf %131, %137 : vector<32x256xf32>
    %c7_144 = arith.constant 7 : index
    %c0_145 = arith.constant 0 : index
    %c0_146 = arith.constant 0 : index
    %139 = vector.load %arg12[%c7_144, %c0_145, %c0_146] : memref<9x32x32xf32, #tpu.memory_space<vmem>>, vector<1x32x32xf32>
    %140 = vector.shape_cast %139 : vector<1x32x32xf32> to vector<32x32xf32>
    %cst_147 = arith.constant dense<0.000000e+00> : vector<32x256xf32>
    %141 = tpu.matmul %140, %88, %cst_147 {dimension_numbers = #tpu.dot_dimension_numbers<[1], [0], [0], [1], [0, 0, 1, 1], [], []>} : vector<32x32xf32>, vector<32x256xf32>, vector<32x256xf32> -> vector<32x256xf32>
    %c7_148 = arith.constant 7 : index
    %c0_149 = arith.constant 0 : index
    %c0_150 = arith.constant 0 : index
    %142 = vector.load %arg9[%c7_148, %c0_149, %c0_150] : memref<9x256x256xf32, #tpu.memory_space<vmem>>, vector<1x256x256xf32>
    %143 = vector.shape_cast %142 : vector<1x256x256xf32> to vector<256x256xf32>
    %cst_151 = arith.constant dense<0.000000e+00> : vector<32x256xf32>
    %144 = tpu.matmul %141, %143, %cst_151 {dimension_numbers = #tpu.dot_dimension_numbers<[1], [1], [0], [0], [0, 0, 1, 0], [], []>} : vector<32x256xf32>, vector<256x256xf32>, vector<32x256xf32> -> vector<32x256xf32>
    %145 = arith.addf %138, %144 : vector<32x256xf32>
    %c8_152 = arith.constant 8 : index
    %c0_153 = arith.constant 0 : index
    %c0_154 = arith.constant 0 : index
    %146 = vector.load %arg12[%c8_152, %c0_153, %c0_154] : memref<9x32x32xf32, #tpu.memory_space<vmem>>, vector<1x32x32xf32>
    %147 = vector.shape_cast %146 : vector<1x32x32xf32> to vector<32x32xf32>
    %cst_155 = arith.constant dense<0.000000e+00> : vector<32x256xf32>
    %148 = tpu.matmul %147, %88, %cst_155 {dimension_numbers = #tpu.dot_dimension_numbers<[1], [0], [0], [1], [0, 0, 1, 1], [], []>} : vector<32x32xf32>, vector<32x256xf32>, vector<32x256xf32> -> vector<32x256xf32>
    %c8_156 = arith.constant 8 : index
    %c0_157 = arith.constant 0 : index
    %c0_158 = arith.constant 0 : index
    %149 = vector.load %arg9[%c8_156, %c0_157, %c0_158] : memref<9x256x256xf32, #tpu.memory_space<vmem>>, vector<1x256x256xf32>
    %150 = vector.shape_cast %149 : vector<1x256x256xf32> to vector<256x256xf32>
    %cst_159 = arith.constant dense<0.000000e+00> : vector<32x256xf32>
    %151 = tpu.matmul %148, %150, %cst_159 {dimension_numbers = #tpu.dot_dimension_numbers<[1], [1], [0], [0], [0, 0, 1, 0], [], []>} : vector<32x256xf32>, vector<256x256xf32>, vector<32x256xf32> -> vector<32x256xf32>
    %152 = arith.addf %145, %151 : vector<32x256xf32>
    %c0_160 = arith.constant 0 : index
    %c0_161 = arith.constant 0 : index
    %153 = vector.load %arg14[%c0_160, %c0_161] : memref<32x32xf32, #tpu.memory_space<vmem>>, vector<32x32xf32>
    %cst_162 = arith.constant dense<0.000000e+00> : vector<32x256xf32>
    %154 = tpu.matmul %153, %11, %cst_162 {dimension_numbers = #tpu.dot_dimension_numbers<[1], [0], [0], [1], [0, 0, 1, 1], [], []>} : vector<32x32xf32>, vector<32x256xf32>, vector<32x256xf32> -> vector<32x256xf32>
    %c0_163 = arith.constant 0 : index
    %c0_164 = arith.constant 0 : index
    %155 = vector.load %arg15[%c0_163, %c0_164] : memref<32x1xf32, #tpu.memory_space<vmem>>, vector<32x1xf32>
    %156 = vector.broadcast %155 : vector<32x1xf32> to vector<32x256xf32>
    %157 = arith.addf %154, %156 : vector<32x256xf32>
    %c0_165 = arith.constant 0 : index
    %c0_166 = arith.constant 0 : index
    %158 = vector.load %arg13[%c0_165, %c0_166] : memref<32x1xf32, #tpu.memory_space<vmem>>, vector<32x1xf32>
    %159 = vector.broadcast %158 : vector<32x1xf32> to vector<32x256xf32>
    %160 = arith.addf %152, %159 : vector<32x256xf32>
    %161 = arith.addf %160, %157 : vector<32x256xf32>
    %cst_167 = arith.constant 0.000000e+00 : f32
    %162 = vector.broadcast %cst_167 : f32 to vector<32x256xf32>
    %163 = arith.maximumf %161, %162 : vector<32x256xf32>
    %cst_168 = arith.constant 0.000000e+00 : f32
    %164 = vector.broadcast %cst_168 : f32 to vector<3x256xf32>
    %c0_169 = arith.constant 0 : index
    %c0_170 = arith.constant 0 : index
    %c0_171 = arith.constant 0 : index
    %165 = vector.load %arg16[%c0_169, %c0_170, %c0_171] : memref<9x3x32xf32, #tpu.memory_space<vmem>>, vector<1x3x32xf32>
    %166 = vector.shape_cast %165 : vector<1x3x32xf32> to vector<3x32xf32>
    %cst_172 = arith.constant dense<0.000000e+00> : vector<3x256xf32>
    %167 = tpu.matmul %166, %163, %cst_172 {dimension_numbers = #tpu.dot_dimension_numbers<[1], [0], [0], [1], [0, 0, 1, 1], [], []>} : vector<3x32xf32>, vector<32x256xf32>, vector<3x256xf32> -> vector<3x256xf32>
    %c0_173 = arith.constant 0 : index
    %c0_174 = arith.constant 0 : index
    %c0_175 = arith.constant 0 : index
    %168 = vector.load %arg9[%c0_173, %c0_174, %c0_175] : memref<9x256x256xf32, #tpu.memory_space<vmem>>, vector<1x256x256xf32>
    %169 = vector.shape_cast %168 : vector<1x256x256xf32> to vector<256x256xf32>
    %cst_176 = arith.constant dense<0.000000e+00> : vector<3x256xf32>
    %170 = tpu.matmul %167, %169, %cst_176 {dimension_numbers = #tpu.dot_dimension_numbers<[1], [1], [0], [0], [0, 0, 1, 0], [], []>} : vector<3x256xf32>, vector<256x256xf32>, vector<3x256xf32> -> vector<3x256xf32>
    %171 = arith.addf %164, %170 : vector<3x256xf32>
    %c1_177 = arith.constant 1 : index
    %c0_178 = arith.constant 0 : index
    %c0_179 = arith.constant 0 : index
    %172 = vector.load %arg16[%c1_177, %c0_178, %c0_179] : memref<9x3x32xf32, #tpu.memory_space<vmem>>, vector<1x3x32xf32>
    %173 = vector.shape_cast %172 : vector<1x3x32xf32> to vector<3x32xf32>
    %cst_180 = arith.constant dense<0.000000e+00> : vector<3x256xf32>
    %174 = tpu.matmul %173, %163, %cst_180 {dimension_numbers = #tpu.dot_dimension_numbers<[1], [0], [0], [1], [0, 0, 1, 1], [], []>} : vector<3x32xf32>, vector<32x256xf32>, vector<3x256xf32> -> vector<3x256xf32>
    %c1_181 = arith.constant 1 : index
    %c0_182 = arith.constant 0 : index
    %c0_183 = arith.constant 0 : index
    %175 = vector.load %arg9[%c1_181, %c0_182, %c0_183] : memref<9x256x256xf32, #tpu.memory_space<vmem>>, vector<1x256x256xf32>
    %176 = vector.shape_cast %175 : vector<1x256x256xf32> to vector<256x256xf32>
    %cst_184 = arith.constant dense<0.000000e+00> : vector<3x256xf32>
    %177 = tpu.matmul %174, %176, %cst_184 {dimension_numbers = #tpu.dot_dimension_numbers<[1], [1], [0], [0], [0, 0, 1, 0], [], []>} : vector<3x256xf32>, vector<256x256xf32>, vector<3x256xf32> -> vector<3x256xf32>
    %178 = arith.addf %171, %177 : vector<3x256xf32>
    %c2_185 = arith.constant 2 : index
    %c0_186 = arith.constant 0 : index
    %c0_187 = arith.constant 0 : index
    %179 = vector.load %arg16[%c2_185, %c0_186, %c0_187] : memref<9x3x32xf32, #tpu.memory_space<vmem>>, vector<1x3x32xf32>
    %180 = vector.shape_cast %179 : vector<1x3x32xf32> to vector<3x32xf32>
    %cst_188 = arith.constant dense<0.000000e+00> : vector<3x256xf32>
    %181 = tpu.matmul %180, %163, %cst_188 {dimension_numbers = #tpu.dot_dimension_numbers<[1], [0], [0], [1], [0, 0, 1, 1], [], []>} : vector<3x32xf32>, vector<32x256xf32>, vector<3x256xf32> -> vector<3x256xf32>
    %c2_189 = arith.constant 2 : index
    %c0_190 = arith.constant 0 : index
    %c0_191 = arith.constant 0 : index
    %182 = vector.load %arg9[%c2_189, %c0_190, %c0_191] : memref<9x256x256xf32, #tpu.memory_space<vmem>>, vector<1x256x256xf32>
    %183 = vector.shape_cast %182 : vector<1x256x256xf32> to vector<256x256xf32>
    %cst_192 = arith.constant dense<0.000000e+00> : vector<3x256xf32>
    %184 = tpu.matmul %181, %183, %cst_192 {dimension_numbers = #tpu.dot_dimension_numbers<[1], [1], [0], [0], [0, 0, 1, 0], [], []>} : vector<3x256xf32>, vector<256x256xf32>, vector<3x256xf32> -> vector<3x256xf32>
    %185 = arith.addf %178, %184 : vector<3x256xf32>
    %c3_193 = arith.constant 3 : index
    %c0_194 = arith.constant 0 : index
    %c0_195 = arith.constant 0 : index
    %186 = vector.load %arg16[%c3_193, %c0_194, %c0_195] : memref<9x3x32xf32, #tpu.memory_space<vmem>>, vector<1x3x32xf32>
    %187 = vector.shape_cast %186 : vector<1x3x32xf32> to vector<3x32xf32>
    %cst_196 = arith.constant dense<0.000000e+00> : vector<3x256xf32>
    %188 = tpu.matmul %187, %163, %cst_196 {dimension_numbers = #tpu.dot_dimension_numbers<[1], [0], [0], [1], [0, 0, 1, 1], [], []>} : vector<3x32xf32>, vector<32x256xf32>, vector<3x256xf32> -> vector<3x256xf32>
    %c3_197 = arith.constant 3 : index
    %c0_198 = arith.constant 0 : index
    %c0_199 = arith.constant 0 : index
    %189 = vector.load %arg9[%c3_197, %c0_198, %c0_199] : memref<9x256x256xf32, #tpu.memory_space<vmem>>, vector<1x256x256xf32>
    %190 = vector.shape_cast %189 : vector<1x256x256xf32> to vector<256x256xf32>
    %cst_200 = arith.constant dense<0.000000e+00> : vector<3x256xf32>
    %191 = tpu.matmul %188, %190, %cst_200 {dimension_numbers = #tpu.dot_dimension_numbers<[1], [1], [0], [0], [0, 0, 1, 0], [], []>} : vector<3x256xf32>, vector<256x256xf32>, vector<3x256xf32> -> vector<3x256xf32>
    %192 = arith.addf %185, %191 : vector<3x256xf32>
    %c4_201 = arith.constant 4 : index
    %c0_202 = arith.constant 0 : index
    %c0_203 = arith.constant 0 : index
    %193 = vector.load %arg16[%c4_201, %c0_202, %c0_203] : memref<9x3x32xf32, #tpu.memory_space<vmem>>, vector<1x3x32xf32>
    %194 = vector.shape_cast %193 : vector<1x3x32xf32> to vector<3x32xf32>
    %cst_204 = arith.constant dense<0.000000e+00> : vector<3x256xf32>
    %195 = tpu.matmul %194, %163, %cst_204 {dimension_numbers = #tpu.dot_dimension_numbers<[1], [0], [0], [1], [0, 0, 1, 1], [], []>} : vector<3x32xf32>, vector<32x256xf32>, vector<3x256xf32> -> vector<3x256xf32>
    %c4_205 = arith.constant 4 : index
    %c0_206 = arith.constant 0 : index
    %c0_207 = arith.constant 0 : index
    %196 = vector.load %arg9[%c4_205, %c0_206, %c0_207] : memref<9x256x256xf32, #tpu.memory_space<vmem>>, vector<1x256x256xf32>
    %197 = vector.shape_cast %196 : vector<1x256x256xf32> to vector<256x256xf32>
    %cst_208 = arith.constant dense<0.000000e+00> : vector<3x256xf32>
    %198 = tpu.matmul %195, %197, %cst_208 {dimension_numbers = #tpu.dot_dimension_numbers<[1], [1], [0], [0], [0, 0, 1, 0], [], []>} : vector<3x256xf32>, vector<256x256xf32>, vector<3x256xf32> -> vector<3x256xf32>
    %199 = arith.addf %192, %198 : vector<3x256xf32>
    %c5_209 = arith.constant 5 : index
    %c0_210 = arith.constant 0 : index
    %c0_211 = arith.constant 0 : index
    %200 = vector.load %arg16[%c5_209, %c0_210, %c0_211] : memref<9x3x32xf32, #tpu.memory_space<vmem>>, vector<1x3x32xf32>
    %201 = vector.shape_cast %200 : vector<1x3x32xf32> to vector<3x32xf32>
    %cst_212 = arith.constant dense<0.000000e+00> : vector<3x256xf32>
    %202 = tpu.matmul %201, %163, %cst_212 {dimension_numbers = #tpu.dot_dimension_numbers<[1], [0], [0], [1], [0, 0, 1, 1], [], []>} : vector<3x32xf32>, vector<32x256xf32>, vector<3x256xf32> -> vector<3x256xf32>
    %c5_213 = arith.constant 5 : index
    %c0_214 = arith.constant 0 : index
    %c0_215 = arith.constant 0 : index
    %203 = vector.load %arg9[%c5_213, %c0_214, %c0_215] : memref<9x256x256xf32, #tpu.memory_space<vmem>>, vector<1x256x256xf32>
    %204 = vector.shape_cast %203 : vector<1x256x256xf32> to vector<256x256xf32>
    %cst_216 = arith.constant dense<0.000000e+00> : vector<3x256xf32>
    %205 = tpu.matmul %202, %204, %cst_216 {dimension_numbers = #tpu.dot_dimension_numbers<[1], [1], [0], [0], [0, 0, 1, 0], [], []>} : vector<3x256xf32>, vector<256x256xf32>, vector<3x256xf32> -> vector<3x256xf32>
    %206 = arith.addf %199, %205 : vector<3x256xf32>
    %c6_217 = arith.constant 6 : index
    %c0_218 = arith.constant 0 : index
    %c0_219 = arith.constant 0 : index
    %207 = vector.load %arg16[%c6_217, %c0_218, %c0_219] : memref<9x3x32xf32, #tpu.memory_space<vmem>>, vector<1x3x32xf32>
    %208 = vector.shape_cast %207 : vector<1x3x32xf32> to vector<3x32xf32>
    %cst_220 = arith.constant dense<0.000000e+00> : vector<3x256xf32>
    %209 = tpu.matmul %208, %163, %cst_220 {dimension_numbers = #tpu.dot_dimension_numbers<[1], [0], [0], [1], [0, 0, 1, 1], [], []>} : vector<3x32xf32>, vector<32x256xf32>, vector<3x256xf32> -> vector<3x256xf32>
    %c6_221 = arith.constant 6 : index
    %c0_222 = arith.constant 0 : index
    %c0_223 = arith.constant 0 : index
    %210 = vector.load %arg9[%c6_221, %c0_222, %c0_223] : memref<9x256x256xf32, #tpu.memory_space<vmem>>, vector<1x256x256xf32>
    %211 = vector.shape_cast %210 : vector<1x256x256xf32> to vector<256x256xf32>
    %cst_224 = arith.constant dense<0.000000e+00> : vector<3x256xf32>
    %212 = tpu.matmul %209, %211, %cst_224 {dimension_numbers = #tpu.dot_dimension_numbers<[1], [1], [0], [0], [0, 0, 1, 0], [], []>} : vector<3x256xf32>, vector<256x256xf32>, vector<3x256xf32> -> vector<3x256xf32>
    %213 = arith.addf %206, %212 : vector<3x256xf32>
    %c7_225 = arith.constant 7 : index
    %c0_226 = arith.constant 0 : index
    %c0_227 = arith.constant 0 : index
    %214 = vector.load %arg16[%c7_225, %c0_226, %c0_227] : memref<9x3x32xf32, #tpu.memory_space<vmem>>, vector<1x3x32xf32>
    %215 = vector.shape_cast %214 : vector<1x3x32xf32> to vector<3x32xf32>
    %cst_228 = arith.constant dense<0.000000e+00> : vector<3x256xf32>
    %216 = tpu.matmul %215, %163, %cst_228 {dimension_numbers = #tpu.dot_dimension_numbers<[1], [0], [0], [1], [0, 0, 1, 1], [], []>} : vector<3x32xf32>, vector<32x256xf32>, vector<3x256xf32> -> vector<3x256xf32>
    %c7_229 = arith.constant 7 : index
    %c0_230 = arith.constant 0 : index
    %c0_231 = arith.constant 0 : index
    %217 = vector.load %arg9[%c7_229, %c0_230, %c0_231] : memref<9x256x256xf32, #tpu.memory_space<vmem>>, vector<1x256x256xf32>
    %218 = vector.shape_cast %217 : vector<1x256x256xf32> to vector<256x256xf32>
    %cst_232 = arith.constant dense<0.000000e+00> : vector<3x256xf32>
    %219 = tpu.matmul %216, %218, %cst_232 {dimension_numbers = #tpu.dot_dimension_numbers<[1], [1], [0], [0], [0, 0, 1, 0], [], []>} : vector<3x256xf32>, vector<256x256xf32>, vector<3x256xf32> -> vector<3x256xf32>
    %220 = arith.addf %213, %219 : vector<3x256xf32>
    %c8_233 = arith.constant 8 : index
    %c0_234 = arith.constant 0 : index
    %c0_235 = arith.constant 0 : index
    %221 = vector.load %arg16[%c8_233, %c0_234, %c0_235] : memref<9x3x32xf32, #tpu.memory_space<vmem>>, vector<1x3x32xf32>
    %222 = vector.shape_cast %221 : vector<1x3x32xf32> to vector<3x32xf32>
    %cst_236 = arith.constant dense<0.000000e+00> : vector<3x256xf32>
    %223 = tpu.matmul %222, %163, %cst_236 {dimension_numbers = #tpu.dot_dimension_numbers<[1], [0], [0], [1], [0, 0, 1, 1], [], []>} : vector<3x32xf32>, vector<32x256xf32>, vector<3x256xf32> -> vector<3x256xf32>
    %c8_237 = arith.constant 8 : index
    %c0_238 = arith.constant 0 : index
    %c0_239 = arith.constant 0 : index
    %224 = vector.load %arg9[%c8_237, %c0_238, %c0_239] : memref<9x256x256xf32, #tpu.memory_space<vmem>>, vector<1x256x256xf32>
    %225 = vector.shape_cast %224 : vector<1x256x256xf32> to vector<256x256xf32>
    %cst_240 = arith.constant dense<0.000000e+00> : vector<3x256xf32>
    %226 = tpu.matmul %223, %225, %cst_240 {dimension_numbers = #tpu.dot_dimension_numbers<[1], [1], [0], [0], [0, 0, 1, 0], [], []>} : vector<3x256xf32>, vector<256x256xf32>, vector<3x256xf32> -> vector<3x256xf32>
    %227 = arith.addf %220, %226 : vector<3x256xf32>
    %c0_241 = arith.constant 0 : index
    %c0_242 = arith.constant 0 : index
    %228 = vector.load %arg17[%c0_241, %c0_242] : memref<3x1xf32, #tpu.memory_space<vmem>>, vector<3x1xf32>
    %229 = vector.broadcast %228 : vector<3x1xf32> to vector<3x256xf32>
    %230 = arith.addf %227, %229 : vector<3x256xf32>
    %231 = math.tanh %230 : vector<3x256xf32>
    %c0_243 = arith.constant 0 : index
    %c0_244 = arith.constant 0 : index
    %232 = vector.load %arg18[%c0_243, %c0_244] : memref<3x256xf32, #tpu.memory_space<vmem>>, vector<3x256xf32>
    tpu.vector_store %arg18[%c0_243, %c0_244], %231 {strides = array<i32>} : memref<3x256xf32, #tpu.memory_space<vmem>>, vector<3x256xf32>,
    return
  }
  func.func @transform_0(%arg0: i32) -> (i32, i32, i32) {
    %c0_i32 = arith.constant 0 : i32
    %c0_i32_0 = arith.constant 0 : i32
    %c0_i32_1 = arith.constant 0 : i32
    return %arg0, %c0_i32, %c0_i32_0 : i32, i32, i32
  }
  func.func @transform_1(%arg0: i32) -> (i32, i32) {
    %c0_i32 = arith.constant 0 : i32
    %c0_i32_0 = arith.constant 0 : i32
    %c0_i32_1 = arith.constant 0 : i32
    return %c0_i32, %c0_i32_0 : i32, i32
  }
  func.func @transform_2(%arg0: i32) -> (i32, i32) {
    %c0_i32 = arith.constant 0 : i32
    %c0_i32_0 = arith.constant 0 : i32
    %c0_i32_1 = arith.constant 0 : i32
    return %c0_i32, %c0_i32_0 : i32, i32
  }
  func.func @transform_3(%arg0: i32) -> (i32, i32) {
    %c0_i32 = arith.constant 0 : i32
    %c0_i32_0 = arith.constant 0 : i32
    %c0_i32_1 = arith.constant 0 : i32
    return %c0_i32, %c0_i32_0 : i32, i32
  }
  func.func @transform_4(%arg0: i32) -> (i32, i32) {
    %c0_i32 = arith.constant 0 : i32
    %c0_i32_0 = arith.constant 0 : i32
    %c0_i32_1 = arith.constant 0 : i32
    return %c0_i32, %c0_i32_0 : i32, i32
  }
  func.func @transform_5(%arg0: i32) -> (i32, i32) {
    %c0_i32 = arith.constant 0 : i32
    %c0_i32_0 = arith.constant 0 : i32
    %c0_i32_1 = arith.constant 0 : i32
    return %c0_i32, %c0_i32_0 : i32, i32
  }
  func.func @transform_6(%arg0: i32) -> (i32, i32) {
    %c0_i32 = arith.constant 0 : i32
    %c0_i32_0 = arith.constant 0 : i32
    %c0_i32_1 = arith.constant 0 : i32
    return %c0_i32, %c0_i32_0 : i32, i32
  }
  func.func @transform_7(%arg0: i32) -> (i32, i32) {
    %c0_i32 = arith.constant 0 : i32
    %c0_i32_0 = arith.constant 0 : i32
    %c0_i32_1 = arith.constant 0 : i32
    return %c0_i32, %c0_i32_0 : i32, i32
  }
  func.func @transform_8(%arg0: i32) -> (i32, i32, i32) {
    %c0_i32 = arith.constant 0 : i32
    %c0_i32_0 = arith.constant 0 : i32
    %c0_i32_1 = arith.constant 0 : i32
    %c0_i32_2 = arith.constant 0 : i32
    return %c0_i32, %c0_i32_0, %c0_i32_1 : i32, i32, i32
  }
  func.func @transform_9(%arg0: i32) -> (i32, i32, i32) {
    %c0_i32 = arith.constant 0 : i32
    %c0_i32_0 = arith.constant 0 : i32
    %c0_i32_1 = arith.constant 0 : i32
    %c0_i32_2 = arith.constant 0 : i32
    return %c0_i32, %c0_i32_0, %c0_i32_1 : i32, i32, i32
  }
  func.func @transform_10(%arg0: i32) -> (i32, i32) {
    %c0_i32 = arith.constant 0 : i32
    %c0_i32_0 = arith.constant 0 : i32
    %c0_i32_1 = arith.constant 0 : i32
    return %c0_i32, %c0_i32_0 : i32, i32
  }
  func.func @transform_11(%arg0: i32) -> (i32, i32, i32) {
    %c0_i32 = arith.constant 0 : i32
    %c0_i32_0 = arith.constant 0 : i32
    %c0_i32_1 = arith.constant 0 : i32
    %c0_i32_2 = arith.constant 0 : i32
    return %c0_i32, %c0_i32_0, %c0_i32_1 : i32, i32, i32
  }
  func.func @transform_12(%arg0: i32) -> (i32, i32) {
    %c0_i32 = arith.constant 0 : i32
    %c0_i32_0 = arith.constant 0 : i32
    %c0_i32_1 = arith.constant 0 : i32
    return %c0_i32, %c0_i32_0 : i32, i32
  }
  func.func @transform_13(%arg0: i32) -> (i32, i32) {
    %c0_i32 = arith.constant 0 : i32
    %c0_i32_0 = arith.constant 0 : i32
    %c0_i32_1 = arith.constant 0 : i32
    return %c0_i32, %c0_i32_0 : i32, i32
  }
  func.func @transform_14(%arg0: i32) -> (i32, i32) {
    %c0_i32 = arith.constant 0 : i32
    %c0_i32_0 = arith.constant 0 : i32
    %c0_i32_1 = arith.constant 0 : i32
    return %c0_i32, %c0_i32_0 : i32, i32
  }
  func.func @transform_15(%arg0: i32) -> (i32, i32, i32) {
    %c0_i32 = arith.constant 0 : i32
    %c0_i32_0 = arith.constant 0 : i32
    %c0_i32_1 = arith.constant 0 : i32
    %c0_i32_2 = arith.constant 0 : i32
    return %c0_i32, %c0_i32_0, %c0_i32_1 : i32, i32, i32
  }
  func.func @transform_16(%arg0: i32) -> (i32, i32) {
    %c0_i32 = arith.constant 0 : i32
    %c0_i32_0 = arith.constant 0 : i32
    %c0_i32_1 = arith.constant 0 : i32
    return %c0_i32, %c0_i32_0 : i32, i32
  }
  func.func @transform_17(%arg0: i32) -> (i32, i32) {
    %c0_i32 = arith.constant 0 : i32
    %c0_i32_0 = arith.constant 0 : i32
    return %c0_i32, %arg0 : i32, i32
  }
}

</mosaic_0001>

<bundles_post_ra>
// kernel: generator_forward.1
= control target key start
LH: loop header
LB: loop body
LE: loop exit
PB: predicated region body
PF: predicated region fallthrough
CT: control target
= control target key end

     0   :  { %s12236_s0 = inlined_call_operand.vmem [shape: f32[1,128,4], index: 0, kind: input, shape index: {}]   ;;  %s12237_s1 = inlined_call_operand.hbm [shape: f32[512,128], index: 1, kind: input, shape index: {}]   ;;  %s12238_s2 = inlined_call_operand.hbm [shape: f32[4,256], index: 2, kind: input, shape index: {}]   ;;  %s12239_s3 = inlined_call_operand.hbm [shape: f32[512,256], index: 3, kind: input, shape index: {}]   ;;  %s12240_s4 = inlined_call_operand.hbm [shape: f32[32,512], index: 4, kind: input, shape index: {}]   ;;  %s12241_s5 = inlined_call_operand.hbm [shape: f32[32,256], index: 5, kind: input, shape index: {}]   ;;  %s12242_s6 = inlined_call_operand.vmem [shape: f32[32,1], index: 6, kind: input, shape index: {}]   ;;  %s12243_s7 = inlined_call_operand.vmem [shape: f32[32,1], index: 7, kind: input, shape index: {}]   ;;  %s12244_s8 = inlined_call_operand.hbm [shape: f32[9,256,256], index: 8, kind: input, shape index: {}]   ;;  %s12245_s9 = inlined_call_operand.hbm [shape: f32[9,32,32], index: 9, kind: input, shape index: {}]   ;;  %s12246_s10 = inlined_call_operand.vmem [shape: f32[32,1], index: 10, kind: input, shape index: {}]   ;;  %s12247_s11 = inlined_call_operand.hbm [shape: f32[9,32,32], index: 11, kind: input, shape index: {}]   ;;  %s12248_s12 = inlined_call_operand.vmem [shape: f32[32,1], index: 12, kind: input, shape index: {}]   ;;  %s12249_s13 = inlined_call_operand.hbm [shape: f32[32,32], index: 13, kind: input, shape index: {}]   ;;  %s12250_s14 = inlined_call_operand.vmem [shape: f32[32,1], index: 14, kind: input, shape index: {}]   ;;  %s12251_s15 = inlined_call_operand.hbm [shape: f32[9,3,32], index: 15, kind: input, shape index: {}]   ;;  %s12252_s16 = inlined_call_operand.vmem [shape: f32[3,1], index: 16, kind: input, shape index: {}]   ;;  %s12253_s17 = inlined_call_operand.vmem [shape: f32[3,256], index: 17, kind: output, shape index: {}]  }
   0x1   :  { %12770 = sst [smem:[#allocation285_spill]] %s12236_s0 }
   0x2   :  { %12771 = sst [smem:[#allocation286_spill]] %s12237_s1 }
   0x3   :  { %22 = vsyncpa [#allocation3], 0 }
   0x4   :  { %23 = vsyncpa [#allocation5], 0 }
   0x5   :  { %24 = vsyncpa [#allocation8], 0 }
   0x6   :  { %25 = vsyncpa [#allocation11], 0 }
   0x7   :  { %26 = vsyncpa [#allocation14], 0 }
   0x8   :  { %27 = vsyncpa [#allocation17], 0  ;;  %s9912_s24 = smov [#allocation4]   ;;  %s9913_s26 = smov [#allocation7]  }
   0x9   :  { %s48_s25 = sshll.u32 %s9912_s24, 4  ;;  %s69_s27 = sshll.u32 %s9913_s26, 4  ;;  %s49_s25 = int_to_ptr.vmem [resolvable:$true] %s48_s25  ;;  %s10022_s27 = int_to_ptr.vmem [resolvable:$true] %s69_s27 }
   0xa   :  { %s9680_s0 = scalar_lea.hbm %s12238_s2, 128 }
   0xb   :  { %p9681_p0 = scmp.ne.s32.totalorder %s12238_s2, %s9680_s0  ;;  %p9684_p1 = scmp.lt.u32.totalorder %s9680_s0, %s12238_s2 }
   0xd   :  { %p9686_p2 = pnand %p9684_p1, %p9681_p0 }
   0xf   :  { %9689 = shalt.err (!%p9686_p2)
}
  0x10   :  { %s9690_s20 = scalar_lea.vmem %s49_s25, 128  ;;  %p9695_p4 = scmp.lt.s32.totalorder %s49_s25, %s49_s25 }
  0x11   :  { %p9691_p3 = scmp.ne.s32.totalorder %s49_s25, %s9690_s20  ;;  %p9696_p5 = scmp.lt.s32.totalorder %s9690_s20, %s9690_s20 }
  0x13   :  { %p9697_p6 = por %p9696_p5, %p9695_p4 }
  0x15   :  { %p9698_p7 = pnand %p9697_p6, %p9691_p3 }
  0x17   :  { %9701 = shalt.err (!%p9698_p7)
}
  0x18   :  { %51 = dma.hbm_to_vmem [thread:$0]  %s12238_s2, 128, %s49_s25, [#allocation5]  }
  0x19   :  { %s9702_s26 = scalar_lea.hbm %s12240_s4, 2048 }
  0x1a   :  { %p9703_p8 = scmp.ne.s32.totalorder %s12240_s4, %s9702_s26  ;;  %p9706_p9 = scmp.lt.u32.totalorder %s9702_s26, %s12240_s4 }
  0x1c   :  { %p9708_p10 = pnand %p9706_p9, %p9703_p8 }
  0x1e   :  { %9711 = shalt.err (!%p9708_p10)
}
  0x1f   :  { %s9712_s18 = scalar_lea.vmem %s10022_s27, 2048  ;;  %p9717_p12 = scmp.lt.s32.totalorder %s10022_s27, %s10022_s27 }
  0x20   :  { %p9713_p11 = scmp.ne.s32.totalorder %s10022_s27, %s9712_s18  ;;  %p9718_p13 = scmp.lt.s32.totalorder %s9712_s18, %s9712_s18 }
  0x22   :  { %p9719_p0 = por %p9718_p13, %p9717_p12 }
  0x24   :  { %p9720_p1 = pnand %p9719_p0, %p9713_p11 }
  0x26   :  { %9723 = shalt.err (!%p9720_p1)
}
  0x27   :  { %s9914_s2 = smov 512   ;;  %s9915_s25 = smov 32  }
  0x28   :  { %75 = dma.hbm_to_vmem [thread:$0]  %s12240_s4, 2048, %s10022_s27, [#allocation8], %s9914_s2, %s9914_s2, %s9915_s25  }
  0x29   :  { %s9916_s20 = smov [#allocation10]   ;;  %s9724_s24 = scalar_lea.hbm %s12244_s8, 73728 }
  0x2a   :  { %s97_s21 = sshll.u32 %s9916_s20, 4  ;;  %p9725_p2 = scmp.ne.s32.totalorder %s12244_s8, %s9724_s24  ;;  %s98_s21 = int_to_ptr.vmem [resolvable:$true] %s97_s21 }
  0x2b   :  { %p9728_p3 = scmp.lt.u32.totalorder %s9724_s24, %s12244_s8 }
  0x2d   :  { %p9730_p4 = pnand %p9728_p3, %p9725_p2 }
  0x2f   :  { %9733 = shalt.err (!%p9730_p4)
}
  0x30   :  { %s9734_s30 = scalar_lea.vmem %s98_s21, 73728  ;;  %p9739_p6 = scmp.lt.s32.totalorder %s98_s21, %s98_s21 }
  0x31   :  { %p9735_p5 = scmp.ne.s32.totalorder %s98_s21, %s9734_s30  ;;  %p9740_p7 = scmp.lt.s32.totalorder %s9734_s30, %s9734_s30 }
  0x33   :  { %p9741_p8 = por %p9740_p7, %p9739_p6 }
  0x35   :  { %p9742_p9 = pnand %p9741_p8, %p9735_p5 }
  0x37   :  { %9745 = shalt.err (!%p9742_p9)
}
  0x38   :  { %s9917_s4 = smov 256   ;;  %s9918_s27 = smov 16  }
  0x39   :  { %103 = dma.hbm_to_vmem [thread:$0]  %s12244_s8, 73728, %s98_s21, [#allocation11], %s9917_s4, %s9917_s4, %s9918_s27  }
  0x3a   :  { %s9919_s25 = smov [#allocation13]   ;;  %s9920_s1 = smov [#allocation2]  }
  0x3b   :  { %s123_s19 = sshll.u32 %s9919_s25, 4  ;;  %s35_s20 = sshll.u32 %s9920_s1, 4  ;;  %s124_s19 = int_to_ptr.vmem [resolvable:$true] %s123_s19  ;;  %s36_s20 = int_to_ptr.vmem [resolvable:$true] %s35_s20 }
  0x3c   :  { %s9746_s24 = scalar_lea.hbm %s12247_s11, 4608 }
  0x3d   :  { %p9747_p10 = scmp.ne.s32.totalorder %s12247_s11, %s9746_s24  ;;  %p9750_p11 = scmp.lt.u32.totalorder %s9746_s24, %s12247_s11 }
  0x3f   :  { %p9752_p12 = pnand %p9750_p11, %p9747_p10 }
  0x41   :  { %9755 = shalt.err (!%p9752_p12)
}
  0x42   :  { %s9756_s8 = scalar_lea.vmem %s124_s19, 4608  ;;  %p9761_p0 = scmp.lt.s32.totalorder %s124_s19, %s124_s19 }
  0x43   :  { %p9757_p13 = scmp.ne.s32.totalorder %s124_s19, %s9756_s8  ;;  %p9762_p1 = scmp.lt.s32.totalorder %s9756_s8, %s9756_s8 }
  0x45   :  { %p9763_p2 = por %p9762_p1, %p9761_p0 }
  0x47   :  { %p9764_p3 = pnand %p9763_p2, %p9757_p13 }
  0x49   :  { %9767 = shalt.err (!%p9764_p3)
}
  0x4a   :  { %s9921_s21 = smov 128   ;;  %s9922_s30 = smov 8  }
  0x4b   :  { %129 = dma.hbm_to_vmem [thread:$0]  %s12247_s11, 4608, %s124_s19, [#allocation14], %s9921_s21, %s9921_s21, %s9922_s30  }
  0x4c   :  { %s12772_s22 = sld [smem:[#allocation286_spill]] }
  0x52   :  { %s9768_s23 = scalar_lea.hbm %s12772_s22, 8192 }
  0x53   :  { %p9769_p4 = scmp.ne.s32.totalorder %s12772_s22, %s9768_s23  ;;  %p9772_p5 = scmp.lt.u32.totalorder %s9768_s23, %s12772_s22 }
  0x55   :  { %p9774_p6 = pnand %p9772_p5, %p9769_p4 }
  0x57   :  { %9777 = shalt.err (!%p9774_p6)
}
  0x58   :  { %s9778_s0 = scalar_lea.vmem %s36_s20, 8192  ;;  %p9783_p8 = scmp.lt.s32.totalorder %s36_s20, %s36_s20 }
  0x59   :  { %p9779_p7 = scmp.ne.s32.totalorder %s36_s20, %s9778_s0  ;;  %p9784_p9 = scmp.lt.s32.totalorder %s9778_s0, %s9778_s0 }
  0x5b   :  { %p9785_p10 = por %p9784_p9, %p9783_p8 }
  0x5d   :  { %p9786_p11 = pnand %p9785_p10, %p9779_p7 }
  0x5f   :  { %9789 = shalt.err (!%p9786_p11)
}
  0x60   :  { %41 = dma.hbm_to_vmem [thread:$0]  %s12772_s22, 8192, %s36_s20, [#allocation3], %s9921_s21, %s9921_s21, %s9922_s30  }
  0x61   :  { %s9923_s8 = smov [#allocation6]   ;;  %s9924_s2 = smov [#allocation9]  }
  0x62   :  { %s57_s18 = sshll.u32 %s9923_s8, 4  ;;  %s81_s25 = sshll.u32 %s9924_s2, 4  ;;  %s58_s18 = int_to_ptr.vmem [resolvable:$true] %s57_s18  ;;  %s82_s25 = int_to_ptr.vmem [resolvable:$true] %s81_s25 }
  0x63   :  { %s9790_s24 = scalar_lea.hbm %s12239_s3, 16384 }
  0x64   :  { %p9791_p12 = scmp.ne.s32.totalorder %s12239_s3, %s9790_s24  ;;  %p9794_p13 = scmp.lt.u32.totalorder %s9790_s24, %s12239_s3 }
  0x66   :  { %p9796_p0 = pnand %p9794_p13, %p9791_p12 }
  0x68   :  { %9799 = shalt.err (!%p9796_p0)
}
  0x69   :  { %s9800_s20 = scalar_lea.vmem %s58_s18, 16384  ;;  %p9805_p2 = scmp.lt.s32.totalorder %s58_s18, %s58_s18 }
  0x6a   :  { %p9801_p1 = scmp.ne.s32.totalorder %s58_s18, %s9800_s20  ;;  %p9806_p3 = scmp.lt.s32.totalorder %s9800_s20, %s9800_s20 }
  0x6c   :  { %p9807_p4 = por %p9806_p3, %p9805_p2 }
  0x6e   :  { %p9808_p5 = pnand %p9807_p4, %p9801_p1 }
  0x70   :  { %9811 = shalt.err (!%p9808_p5)
}
  0x71   :  { %63 = dma.hbm_to_vmem [thread:$0]  %s12239_s3, 16384, %s58_s18, [#allocation5], %s9917_s4, %s9917_s4, %s9918_s27  }
  0x72   :  { %s9812_s2 = scalar_lea.hbm %s12241_s5, 1024 }
  0x73   :  { %p9813_p6 = scmp.ne.s32.totalorder %s12241_s5, %s9812_s2  ;;  %p9816_p7 = scmp.lt.u32.totalorder %s9812_s2, %s12241_s5 }
  0x75   :  { %p9818_p8 = pnand %p9816_p7, %p9813_p6 }
  0x77   :  { %9821 = shalt.err (!%p9818_p8)
}
  0x78   :  { %s9822_s28 = scalar_lea.vmem %s82_s25, 1024  ;;  %p9827_p10 = scmp.lt.s32.totalorder %s82_s25, %s82_s25 }
  0x79   :  { %p9823_p9 = scmp.ne.s32.totalorder %s82_s25, %s9822_s28  ;;  %p9828_p11 = scmp.lt.s32.totalorder %s9822_s28, %s9822_s28 }
  0x7b   :  { %p9829_p12 = por %p9828_p11, %p9827_p10 }
  0x7d   :  { %p9830_p13 = pnand %p9829_p12, %p9823_p9 }
  0x7f   :  { %9833 = shalt.err (!%p9830_p13)
}
  0x80   :  { %87 = dma.hbm_to_vmem [thread:$0]  %s12241_s5, 1024, %s82_s25, [#allocation8], %s9917_s4, %s9917_s4, %s9918_s27  }
  0x81   :  { %s9925_s29 = smov [#allocation12]   ;;  %s9926_s20 = smov [#allocation15]  }
  0x82   :  { %s109_s0 = sshll.u32 %s9925_s29, 4  ;;  %s137_s22 = sshll.u32 %s9926_s20, 4  ;;  %s110_s0 = int_to_ptr.vmem [resolvable:$true] %s109_s0  ;;  %s138_s22 = int_to_ptr.vmem [resolvable:$true] %s137_s22 }
  0x83   :  { %s9834_s8 = scalar_lea.hbm %s12245_s9, 4608 }
  0x84   :  { %p9835_p0 = scmp.ne.s32.totalorder %s12245_s9, %s9834_s8  ;;  %p9838_p1 = scmp.lt.u32.totalorder %s9834_s8, %s12245_s9 }
  0x86   :  { %p9840_p2 = pnand %p9838_p1, %p9835_p0 }
  0x88   :  { %9843 = shalt.err (!%p9840_p2)
}
  0x89   :  { %s9844_s5 = scalar_lea.vmem %s110_s0, 4608  ;;  %p9849_p4 = scmp.lt.s32.totalorder %s110_s0, %s110_s0 }
  0x8a   :  { %p9845_p3 = scmp.ne.s32.totalorder %s110_s0, %s9844_s5  ;;  %p9850_p5 = scmp.lt.s32.totalorder %s9844_s5, %s9844_s5 }
  0x8c   :  { %p9851_p6 = por %p9850_p5, %p9849_p4 }
  0x8e   :  { %p9852_p7 = pnand %p9851_p6, %p9845_p3 }
  0x90   :  { %9855 = shalt.err (!%p9852_p7)
}
  0x91   :  { %115 = dma.hbm_to_vmem [thread:$0]  %s12245_s9, 4608, %s110_s0, [#allocation11], %s9921_s21, %s9921_s21, %s9922_s30  }
  0x92   :  { %s9856_s28 = scalar_lea.hbm %s12249_s13, 512 }
  0x93   :  { %p9857_p8 = scmp.ne.s32.totalorder %s12249_s13, %s9856_s28  ;;  %p9860_p9 = scmp.lt.u32.totalorder %s9856_s28, %s12249_s13 }
  0x95   :  { %p9862_p10 = pnand %p9860_p9, %p9857_p8 }
  0x97   :  { %9865 = shalt.err (!%p9862_p10)
}
  0x98   :  { %s9866_s11 = scalar_lea.vmem %s138_s22, 512  ;;  %p9871_p12 = scmp.lt.s32.totalorder %s138_s22, %s138_s22 }
  0x99   :  { %p9867_p11 = scmp.ne.s32.totalorder %s138_s22, %s9866_s11  ;;  %p9872_p13 = scmp.lt.s32.totalorder %s9866_s11, %s9866_s11 }
  0x9b   :  { %p9873_p0 = por %p9872_p13, %p9871_p12 }
  0x9d   :  { %p9874_p1 = pnand %p9873_p0, %p9867_p11 }
  0x9f   :  { %9877 = shalt.err (!%p9874_p1)
}
  0xa0   :  { %143 = dma.hbm_to_vmem [thread:$0]  %s12249_s13, 512, %s138_s22, [#allocation14], %s9921_s21, %s9921_s21, %s9922_s30  }
  0xa1   :  { %s9927_s19 = smov [#allocation16]   ;;  %s9878_s23 = scalar_lea.hbm %s12251_s15, 576 }
  0xa2   :  { %s151_s8 = sshll.u32 %s9927_s19, 4  ;;  %p9879_p2 = scmp.ne.s32.totalorder %s12251_s15, %s9878_s23  ;;  %s152_s8 = int_to_ptr.vmem [resolvable:$true] %s151_s8 }
  0xa3   :  { %p9882_p3 = scmp.lt.u32.totalorder %s9878_s23, %s12251_s15 }
  0xa5   :  { %p9884_p4 = pnand %p9882_p3, %p9879_p2 }
  0xa7   :  { %9887 = shalt.err (!%p9884_p4)
}
  0xa8   :  { %s9888_s25 = scalar_lea.vmem %s152_s8, 576  ;;  %p9893_p6 = scmp.lt.s32.totalorder %s152_s8, %s152_s8 }
  0xa9   :  { %p9889_p5 = scmp.ne.s32.totalorder %s152_s8, %s9888_s25  ;;  %p9894_p7 = scmp.lt.s32.totalorder %s9888_s25, %s9888_s25 }
  0xab   :  { %p9895_p8 = por %p9894_p7, %p9893_p6 }
  0xad   :  { %p9896_p9 = pnand %p9895_p8, %p9889_p5 }
  0xaf   :  { %9899 = shalt.err (!%p9896_p9)
}
  0xb0   :  { %s9928_s13 = smov 64   ;;  %s9929_s21 = smov 4  }
  0xb1   :  { %157 = dma.hbm_to_vmem [thread:$0]  %s12251_s15, 576, %s152_s8, [#allocation17], %s9928_s13, %s9928_s13, %s9929_s21  }
  0xb2   :  { %9900 = dma.done.wait [#allocation3], 8192  }
  0xb3   :  { %9901 = vsyncadd [#allocation3], 4294959104 }
  0xb4   :  { %9902 = dma.done.wait [#allocation5], 16512  }
  0xb5   :  { %9903 = vsyncadd [#allocation5], 4294950784 }
  0xb6   :  { %9904 = dma.done.wait [#allocation8], 3072  }
  0xb7   :  { %9905 = vsyncadd [#allocation8], 4294964224 }
  0xb8   :  { %9906 = dma.done.wait [#allocation11], 78336  }
  0xb9   :  { %9907 = vsyncadd [#allocation11], 4294888960 }
  0xba   :  { %9908 = dma.done.wait [#allocation14], 5120  }
  0xbb   :  { %9909 = vsyncadd [#allocation14], 4294962176 }
  0xbc   :  { %9910 = dma.done.wait [#allocation17], 576  }
  0xbd   :  { %9911 = vsyncadd [#allocation17], 4294966720  ;;  %v12256_v0 = vmov 0.0   ;;  %v206_v1 = vld [vmem:[#allocation4] sm:$0xff]  ;;  %vm258_vm0 = vcmask 1043456   ;;  %s12773_s28 = sld [smem:[#allocation285_spill]] }
  0xbe   :  { %327 = vmatprep.mubr.f32.mxu1 %v12256_v0  ;;  %552 = vmatprep.mubr.f32.mxu0 %v12256_v0  ;;  %v208_v2 = vcombine.high %v206_v1, %v206_v1  ;;  %vm209_vm1 = vcmask 31744   ;;  %vm1471_vm2 = vcmask 261120  }
  0xc0   :  { %7250 = vmatprep.subr.msk.mxu1 %vm258_vm0, %v208_v2 }
  0xc1   :  { %7251 = vmatpush1.msk.msra.mxu1 %vm258_vm0, %v206_v1 }
  0xc3   :  { %v190_v3 = vld [vmem:[%s12773_s28] sm:$0xff]  ;;  %v191_v4 = vld [vmem:[%s12773_s28 + $0x8] sm:$0xff]  ;;  %v192_v5 = vld [vmem:[%s12773_s28 + $0x10] sm:$0xff] }
  0xc4   :  { %7252 = vmatmul.mubr.msk.f32.vlgmr.msra.gmra.mrb[0].mxu1 %vm209_vm1, %v190_v3  ;;  %v193_v6 = vld [vmem:[%s12773_s28 + $0x18] sm:$0xff]  ;;  %v194_v7 = vld [vmem:[%s12773_s28 + $0x20] sm:$0xff]  ;;  %v195_v8 = vld [vmem:[%s12773_s28 + $0x28] sm:$0xff] }
  0xc5   :  { %333 = vmatprep.mubr.f32.mxu1 %v12256_v0  ;;  %v196_v9 = vld [vmem:[%s12773_s28 + $0x30] sm:$0xff]  ;;  %v197_v10 = vld [vmem:[%s12773_s28 + $0x38] sm:$0xff]  ;;  %v198_v11 = vld [vmem:[%s12773_s28 + $0x40] sm:$0xff] }
  0xc6   :  { %v199_v12 = vld [vmem:[%s12773_s28 + $0x48] sm:$0xff]  ;;  %v200_v13 = vld [vmem:[%s12773_s28 + $0x50] sm:$0xff]  ;;  %v201_v14 = vld [vmem:[%s12773_s28 + $0x58] sm:$0xff] }
  0xc7   :  { %v202_v15 = vld [vmem:[%s12773_s28 + $0x60] sm:$0xff]  ;;  %v203_v16 = vld [vmem:[%s12773_s28 + $0x68] sm:$0xff]  ;;  %v204_v17 = vld [vmem:[%s12773_s28 + $0x70] sm:$0xff] }
  0xc8   :  { %7253 = vmatmul.mubr.msk.f32.gmra.mrb[2].mxu1 %vm209_vm1, %v191_v4  ;;  %v205_v18 = vld [vmem:[%s12773_s28 + $0x78] sm:$0xff]  ;;  %v424_v4 = vld [vmem:[#allocation2] sm:$0xff] }
  0xc9   :  { %339 = vmatprep.mubr.f32.mxu1 %v12256_v0 }
  0xcc   :  { %7254 = vmatmul.mubr.msk.f32.gmra.mrb[4].mxu1 %vm209_vm1, %v192_v5  ;;  %v425_v5 = vld [vmem:[#allocation2 + $0x8] sm:$0xff] }
  0xcd   :  { %345 = vmatprep.mubr.f32.mxu1 %v12256_v0 }
  0xd0   :  { %7255 = vmatmul.mubr.msk.f32.gmra.mrb[6].mxu1 %vm209_vm1, %v193_v6  ;;  %v426_v6 = vld [vmem:[#allocation2 + $0x10] sm:$0xff] }
  0xd1   :  { %351 = vmatprep.mubr.f32.mxu1 %v12256_v0 }
  0xd4   :  { %7256 = vmatmul.mubr.msk.f32.gmra.mrb[8].mxu1 %vm209_vm1, %v194_v7  ;;  %v427_v7 = vld [vmem:[#allocation2 + $0x18] sm:$0xff] }
  0xd5   :  { %357 = vmatprep.mubr.f32.mxu1 %v12256_v0 }
  0xd8   :  { %7257 = vmatmul.mubr.msk.f32.gmra.mrb[10].mxu1 %vm209_vm1, %v195_v8  ;;  %v428_v8 = vld [vmem:[#allocation2 + $0x20] sm:$0xff] }
  0xd9   :  { %363 = vmatprep.mubr.f32.mxu1 %v12256_v0 }
  0xdc   :  { %7258 = vmatmul.mubr.msk.f32.gmra.mrb[12].mxu1 %vm209_vm1, %v196_v9  ;;  %v429_v9 = vld [vmem:[#allocation2 + $0x28] sm:$0xff] }
  0xdd   :  { %369 = vmatprep.mubr.f32.mxu1 %v12256_v0 }
  0xe0   :  { %7259 = vmatmul.mubr.msk.f32.gmra.mrb[14].mxu1 %vm209_vm1, %v197_v10  ;;  %v430_v10 = vld [vmem:[#allocation2 + $0x30] sm:$0xff] }
  0xe1   :  { %375 = vmatprep.mubr.f32.mxu1 %v12256_v0 }
  0xe4   :  { %7260 = vmatmul.mubr.msk.f32.gmra.mrb[16].mxu1 %vm209_vm1, %v198_v11  ;;  %v431_v11 = vld [vmem:[#allocation2 + $0x38] sm:$0xff] }
  0xe5   :  { %381 = vmatprep.mubr.f32.mxu1 %v12256_v0 }
  0xe8   :  { %7261 = vmatmul.mubr.msk.f32.gmra.mrb[18].mxu1 %vm209_vm1, %v199_v12  ;;  %v432_v12 = vld [vmem:[#allocation2 + $0x40] sm:$0xff] }
  0xe9   :  { %387 = vmatprep.mubr.f32.mxu1 %v12256_v0 }
  0xec   :  { %7262 = vmatmul.mubr.msk.f32.gmra.mrb[20].mxu1 %vm209_vm1, %v200_v13  ;;  %v433_v13 = vld [vmem:[#allocation2 + $0x48] sm:$0xff] }
  0xed   :  { %393 = vmatprep.mubr.f32.mxu1 %v12256_v0 }
  0xf0   :  { %7263 = vmatmul.mubr.msk.f32.gmra.mrb[22].mxu1 %vm209_vm1, %v201_v14  ;;  %v434_v14 = vld [vmem:[#allocation2 + $0x50] sm:$0xff] }
  0xf1   :  { %399 = vmatprep.mubr.f32.mxu1 %v12256_v0 }
  0xf4   :  { %7264 = vmatmul.mubr.msk.f32.gmra.mrb[24].mxu1 %vm209_vm1, %v202_v15  ;;  %v435_v15 = vld [vmem:[#allocation2 + $0x58] sm:$0xff] }
  0xf5   :  { %405 = vmatprep.mubr.f32.mxu1 %v12256_v0 }
  0xf8   :  { %7265 = vmatmul.mubr.msk.f32.gmra.mrb[26].mxu1 %vm209_vm1, %v203_v16  ;;  %v436_v16 = vld [vmem:[#allocation2 + $0x60] sm:$0xff] }
  0xf9   :  { %411 = vmatprep.mubr.f32.mxu1 %v12256_v0 }
  0xfc   :  { %7266 = vmatmul.mubr.msk.f32.gmra.mrb[28].mxu1 %vm209_vm1, %v204_v17  ;;  %v437_v17 = vld [vmem:[#allocation2 + $0x68] sm:$0xff] }
  0xfd   :  { %417 = vmatprep.mubr.f32.mxu1 %v12256_v0 }
 0x100   :  { %7267 = vmatmul.mubr.msk.f32.gmra.mrb[30].mxu1 %vm209_vm1, %v205_v18  ;;  %v438_v18 = vld [vmem:[#allocation2 + $0x70] sm:$0xff] }
 0x197   :  { %v329_v19 = vpop.f32.mrb[0].mxu1 }
 0x198   :  { %v331_v20 = vpop.f32.mrb[1].mxu1 }
 0x19b   :  { %v335_v21 = vpop.f32.mrb[2].mxu1 }
 0x19c   :  { %v7355_v22 = vpack.c.bf16 %v335_v21, %v329_v19  ;;  %v337_v23 = vpop.f32.mrb[3].mxu1  ;;  %v439_v19 = vld [vmem:[#allocation2 + $0x78] sm:$0xff]  ;;  %v441_v21 = vld [vmem:[#allocation2 + $0x88] sm:$0xff] }
 0x19d   :  { %v7353_v24 = vpack.c.bf16 %v337_v23, %v331_v20  ;;  %v440_v20 = vld [vmem:[#allocation2 + $0x80] sm:$0xff]  ;;  %v443_v23 = vld [vmem:[#allocation2 + $0x98] sm:$0xff] }
 0x19f   :  { %v341_v25 = vpop.f32.mrb[4].mxu1  ;;  %7354 = vmatprep.subr.bf16.mxu0 %v7353_v24  ;;  %v444_v24 = vld [vmem:[#allocation2 + $0xa0] sm:$0xff] }
 0x1a0   :  { %v343_v26 = vpop.f32.mrb[5].mxu1  ;;  %7356 = vmatpush1.bf16.msra.mxu0 %v7355_v22  ;;  %v442_v22 = vld [vmem:[#allocation2 + $0x90] sm:$0xff] }
 0x1a3   :  { %v347_v27 = vpop.f32.mrb[6].mxu1 }
 0x1a4   :  { %v7359_v28 = vpack.c.bf16 %v347_v27, %v341_v25  ;;  %v349_v29 = vpop.f32.mrb[7].mxu1  ;;  %v445_v25 = vld [vmem:[#allocation2 + $0xa8] sm:$0xff]  ;;  %v447_v27 = vld [vmem:[#allocation2 + $0xb8] sm:$0xff] }
 0x1a5   :  { %v7357_v30 = vpack.c.bf16 %v349_v29, %v343_v26  ;;  %v446_v26 = vld [vmem:[#allocation2 + $0xb0] sm:$0xff]  ;;  %v449_v29 = vld [vmem:[#allocation2 + $0xc8] sm:$0xff] }
 0x1a7   :  { %v353_v31 = vpop.f32.mrb[8].mxu1  ;;  %7358 = vmatprep.subr.bf16.mxu0 %v7357_v30  ;;  %v450_v30 = vld [vmem:[#allocation2 + $0xd0] sm:$0xff] }
 0x1a8   :  { %v355_v32 = vpop.f32.mrb[9].mxu1  ;;  %7360 = vmatpush1.bf16.msra.mxu0 %v7359_v28  ;;  %v448_v28 = vld [vmem:[#allocation2 + $0xc0] sm:$0xff] }
 0x1ab   :  { %v359_v33 = vpop.f32.mrb[10].mxu1 }
 0x1ac   :  { %v7363_v34 = vpack.c.bf16 %v359_v33, %v353_v31  ;;  %v361_v35 = vpop.f32.mrb[11].mxu1  ;;  %v451_v31 = vld [vmem:[#allocation2 + $0xd8] sm:$0xff]  ;;  %v453_v33 = vld [vmem:[#allocation2 + $0xe8] sm:$0xff] }
 0x1ad   :  { %v7361_v36 = vpack.c.bf16 %v361_v35, %v355_v32  ;;  %v452_v32 = vld [vmem:[#allocation2 + $0xe0] sm:$0xff]  ;;  %v455_v35 = vld [vmem:[#allocation2 + $0xf8] sm:$0xff] }
 0x1af   :  { %v365_v37 = vpop.f32.mrb[12].mxu1  ;;  %7362 = vmatprep.subr.bf16.mxu0 %v7361_v36  ;;  %v456_v36 = vld [vmem:[#allocation2 + $0x100] sm:$0xff] }
 0x1b0   :  { %v367_v38 = vpop.f32.mrb[13].mxu1  ;;  %7364 = vmatpush1.bf16.msra.mxu0 %v7363_v34  ;;  %v454_v34 = vld [vmem:[#allocation2 + $0xf0] sm:$0xff] }
 0x1b3   :  { %v371_v39 = vpop.f32.mrb[14].mxu1 }
 0x1b4   :  { %v7367_v40 = vpack.c.bf16 %v371_v39, %v365_v37  ;;  %v373_v41 = vpop.f32.mrb[15].mxu1  ;;  %v457_v37 = vld [vmem:[#allocation2 + $0x108] sm:$0xff]  ;;  %v459_v39 = vld [vmem:[#allocation2 + $0x118] sm:$0xff] }
 0x1b5   :  { %v7365_v42 = vpack.c.bf16 %v373_v41, %v367_v38  ;;  %v458_v38 = vld [vmem:[#allocation2 + $0x110] sm:$0xff]  ;;  %v461_v41 = vld [vmem:[#allocation2 + $0x128] sm:$0xff] }
 0x1b7   :  { %v377_v43 = vpop.f32.mrb[16].mxu1  ;;  %7366 = vmatprep.subr.bf16.mxu0 %v7365_v42  ;;  %v462_v42 = vld [vmem:[#allocation2 + $0x130] sm:$0xff] }
 0x1b8   :  { %v379_v44 = vpop.f32.mrb[17].mxu1  ;;  %7368 = vmatpush1.bf16.msra.mxu0 %v7367_v40  ;;  %v460_v40 = vld [vmem:[#allocation2 + $0x120] sm:$0xff] }
 0x1bb   :  { %v383_v45 = vpop.f32.mrb[18].mxu1 }
 0x1bc   :  { %v7371_v46 = vpack.c.bf16 %v383_v45, %v377_v43  ;;  %v385_v47 = vpop.f32.mrb[19].mxu1  ;;  %v463_v43 = vld [vmem:[#allocation2 + $0x138] sm:$0xff]  ;;  %v465_v45 = vld [vmem:[#allocation2 + $0x148] sm:$0xff] }
 0x1bd   :  { %v7369_v48 = vpack.c.bf16 %v385_v47, %v379_v44  ;;  %v464_v44 = vld [vmem:[#allocation2 + $0x140] sm:$0xff]  ;;  %v467_v47 = vld [vmem:[#allocation2 + $0x158] sm:$0xff] }
 0x1bf   :  { %v389_v49 = vpop.f32.mrb[20].mxu1  ;;  %7370 = vmatprep.subr.bf16.mxu0 %v7369_v48  ;;  %v468_v48 = vld [vmem:[#allocation2 + $0x160] sm:$0xff] }
 0x1c0   :  { %v391_v50 = vpop.f32.mrb[21].mxu1  ;;  %7372 = vmatpush1.bf16.msra.mxu0 %v7371_v46  ;;  %v466_v46 = vld [vmem:[#allocation2 + $0x150] sm:$0xff] }
 0x1c3   :  { %v395_v51 = vpop.f32.mrb[22].mxu1 }
 0x1c4   :  { %v7375_v52 = vpack.c.bf16 %v395_v51, %v389_v49  ;;  %v397_v53 = vpop.f32.mrb[23].mxu1  ;;  %v469_v49 = vld [vmem:[#allocation2 + $0x168] sm:$0xff]  ;;  %v471_v51 = vld [vmem:[#allocation2 + $0x178] sm:$0xff] }
 0x1c5   :  { %v7373_v54 = vpack.c.bf16 %v397_v53, %v391_v50  ;;  %v470_v50 = vld [vmem:[#allocation2 + $0x170] sm:$0xff]  ;;  %v473_v53 = vld [vmem:[#allocation2 + $0x188] sm:$0xff] }
 0x1c7   :  { %v401_v55 = vpop.f32.mrb[24].mxu1  ;;  %7374 = vmatprep.subr.bf16.mxu0 %v7373_v54  ;;  %v474_v54 = vld [vmem:[#allocation2 + $0x190] sm:$0xff] }
 0x1c8   :  { %v403_v56 = vpop.f32.mrb[25].mxu1  ;;  %7376 = vmatpush1.bf16.msra.mxu0 %v7375_v52  ;;  %v472_v52 = vld [vmem:[#allocation2 + $0x180] sm:$0xff] }
 0x1cb   :  { %v407_v57 = vpop.f32.mrb[26].mxu1 }
 0x1cc   :  { %v7379_v58 = vpack.c.bf16 %v407_v57, %v401_v55  ;;  %v409_v59 = vpop.f32.mrb[27].mxu1  ;;  %v475_v55 = vld [vmem:[#allocation2 + $0x198] sm:$0xff]  ;;  %v477_v57 = vld [vmem:[#allocation2 + $0x1a8] sm:$0xff] }
 0x1cd   :  { %v7377_v60 = vpack.c.bf16 %v409_v59, %v403_v56  ;;  %v476_v56 = vld [vmem:[#allocation2 + $0x1a0] sm:$0xff] }
 0x1cf   :  { %v413_v61 = vpop.f32.mrb[28].mxu1  ;;  %7378 = vmatprep.subr.bf16.mxu0 %v7377_v60  ;;  %v953_v60 = vld [vmem:[#allocation6] sm:$0xff] }
 0x1d0   :  { %v415_v62 = vpop.f32.mrb[29].mxu1  ;;  %7380 = vmatpush1.bf16.msra.mxu0 %v7379_v58 }
 0x1d3   :  { %v419_v63 = vpop.f32.mrb[30].mxu1 }
 0x1d4   :  { %v7383_v1 = vpack.c.bf16 %v419_v63, %v413_v61  ;;  %v421_v2 = vpop.f32.mrb[31].mxu1  ;;  %v955_v61 = vld [vmem:[#allocation6 + $0x10] sm:$0xff]  ;;  %v954_v63 = vld [vmem:[#allocation6 + $0x8] sm:$0xff] }
 0x1d5   :  { %v7381_v3 = vpack.c.bf16 %v421_v2, %v415_v62  ;;  %v478_v62 = vld [vmem:[#allocation2 + $0x1b0] sm:$0xff] }
 0x1d7   :  { %7382 = vmatprep.subr.bf16.mxu0 %v7381_v3 }
 0x1d8   :  { %7384 = vmatpush1.bf16.msra.mxu0 %v7383_v1  ;;  %v956_v1 = vld [vmem:[#allocation6 + $0x18] sm:$0xff] }
 0x1db   :  { %553 = vmatmul.mubr.f32.vlgmr.msra.gmra.mrb[0].mxu0 %v424_v4 }
 0x1dc   :  { %558 = vmatprep.mubr.f32.mxu0 %v12256_v0 }
 0x1df   :  { %559 = vmatmul.mubr.f32.gmra.mrb[2].mxu0 %v425_v5 }
 0x1e0   :  { %564 = vmatprep.mubr.f32.mxu0 %v12256_v0 }
 0x1e3   :  { %565 = vmatmul.mubr.f32.gmra.mrb[4].mxu0 %v426_v6 }
 0x1e4   :  { %570 = vmatprep.mubr.f32.mxu0 %v12256_v0 }
 0x1e7   :  { %571 = vmatmul.mubr.f32.gmra.mrb[6].mxu0 %v427_v7 }
 0x1e8   :  { %576 = vmatprep.mubr.f32.mxu0 %v12256_v0 }
 0x1eb   :  { %577 = vmatmul.mubr.f32.gmra.mrb[8].mxu0 %v428_v8  ;;  %v479_v8 = vld [vmem:[#allocation2 + $0x1b8] sm:$0xff] }
 0x1ec   :  { %582 = vmatprep.mubr.f32.mxu0 %v12256_v0 }
 0x1ef   :  { %583 = vmatmul.mubr.f32.gmra.mrb[10].mxu0 %v429_v9 }
 0x1f0   :  { %588 = vmatprep.mubr.f32.mxu0 %v12256_v0 }
 0x1f3   :  { %589 = vmatmul.mubr.f32.gmra.mrb[12].mxu0 %v430_v10 }
 0x1f4   :  { %594 = vmatprep.mubr.f32.mxu0 %v12256_v0 }
 0x1f7   :  { %595 = vmatmul.mubr.f32.gmra.mrb[14].mxu0 %v431_v11 }
 0x1f8   :  { %600 = vmatprep.mubr.f32.mxu0 %v12256_v0 }
 0x1fb   :  { %601 = vmatmul.mubr.f32.gmra.mrb[16].mxu0 %v432_v12 }
 0x1fc   :  { %606 = vmatprep.mubr.f32.mxu0 %v12256_v0 }
 0x1ff   :  { %607 = vmatmul.mubr.f32.gmra.mrb[18].mxu0 %v433_v13  ;;  %v957_v13 = vld [vmem:[#allocation6 + $0x20] sm:$0xff] }
 0x200   :  { %612 = vmatprep.mubr.f32.mxu0 %v12256_v0 }
 0x203   :  { %613 = vmatmul.mubr.f32.gmra.mrb[20].mxu0 %v434_v14  ;;  %v480_v14 = vld [vmem:[#allocation2 + $0x1c0] sm:$0xff] }
 0x204   :  { %618 = vmatprep.mubr.f32.mxu0 %v12256_v0 }
 0x207   :  { %619 = vmatmul.mubr.f32.gmra.mrb[22].mxu0 %v435_v15  ;;  %v959_v15 = vld [vmem:[#allocation6 + $0x30] sm:$0xff] }
 0x208   :  { %624 = vmatprep.mubr.f32.mxu0 %v12256_v0 }
 0x20b   :  { %625 = vmatmul.mubr.f32.gmra.mrb[24].mxu0 %v436_v16  ;;  %v958_v16 = vld [vmem:[#allocation6 + $0x28] sm:$0xff] }
 0x20c   :  { %630 = vmatprep.mubr.f32.mxu0 %v12256_v0 }
 0x20f   :  { %631 = vmatmul.mubr.f32.gmra.mrb[26].mxu0 %v437_v17  ;;  %v960_v17 = vld [vmem:[#allocation6 + $0x38] sm:$0xff] }
 0x210   :  { %636 = vmatprep.mubr.f32.mxu0 %v12256_v0 }
 0x213   :  { %637 = vmatmul.mubr.f32.gmra.mrb[28].mxu0 %v438_v18 }
 0x214   :  { %642 = vmatprep.mubr.f32.mxu0 %v12256_v0 }
 0x217   :  { %643 = vmatmul.mubr.f32.gmra.mrb[30].mxu0 %v439_v19 }
 0x218   :  { %648 = vmatprep.mubr.f32.mxu0 %v12256_v0 }
 0x21b   :  { %649 = vmatmul.mubr.f32.gmra.mrb[32].mxu0 %v440_v20 }
 0x21c   :  { %654 = vmatprep.mubr.f32.mxu0 %v12256_v0 }
 0x21f   :  { %655 = vmatmul.mubr.f32.gmra.mrb[34].mxu0 %v441_v21 }
 0x220   :  { %660 = vmatprep.mubr.f32.mxu0 %v12256_v0 }
 0x223   :  { %661 = vmatmul.mubr.f32.gmra.mrb[36].mxu0 %v442_v22 }
 0x224   :  { %666 = vmatprep.mubr.f32.mxu0 %v12256_v0 }
 0x227   :  { %667 = vmatmul.mubr.f32.gmra.mrb[38].mxu0 %v443_v23 }
 0x228   :  { %672 = vmatprep.mubr.f32.mxu0 %v12256_v0 }
 0x22b   :  { %673 = vmatmul.mubr.f32.gmra.mrb[40].mxu0 %v444_v24  ;;  %v481_v24 = vld [vmem:[#allocation2 + $0x1c8] sm:$0xff] }
 0x22c   :  { %678 = vmatprep.mubr.f32.mxu0 %v12256_v0 }
 0x22f   :  { %679 = vmatmul.mubr.f32.gmra.mrb[42].mxu0 %v445_v25 }
 0x230   :  { %684 = vmatprep.mubr.f32.mxu0 %v12256_v0 }
 0x233   :  { %685 = vmatmul.mubr.f32.gmra.mrb[44].mxu0 %v446_v26 }
 0x234   :  { %690 = vmatprep.mubr.f32.mxu0 %v12256_v0 }
 0x237   :  { %691 = vmatmul.mubr.f32.gmra.mrb[46].mxu0 %v447_v27 }
 0x238   :  { %696 = vmatprep.mubr.f32.mxu0 %v12256_v0 }
 0x23b   :  { %697 = vmatmul.mubr.f32.gmra.mrb[48].mxu0 %v448_v28 }
 0x23c   :  { %702 = vmatprep.mubr.f32.mxu0 %v12256_v0 }
 0x23f   :  { %703 = vmatmul.mubr.f32.gmra.mrb[50].mxu0 %v449_v29  ;;  %v482_v29 = vld [vmem:[#allocation2 + $0x1d0] sm:$0xff] }
 0x240   :  { %708 = vmatprep.mubr.f32.mxu0 %v12256_v0 }
 0x243   :  { %709 = vmatmul.mubr.f32.gmra.mrb[52].mxu0 %v450_v30  ;;  %v961_v30 = vld [vmem:[#allocation6 + $0x40] sm:$0xff] }
 0x244   :  { %714 = vmatprep.mubr.f32.mxu0 %v12256_v0 }
 0x247   :  { %715 = vmatmul.mubr.f32.gmra.mrb[54].mxu0 %v451_v31  ;;  %v963_v31 = vld [vmem:[#allocation6 + $0x50] sm:$0xff] }
 0x248   :  { %720 = vmatprep.mubr.f32.mxu0 %v12256_v0 }
 0x24b   :  { %721 = vmatmul.mubr.f32.gmra.mrb[56].mxu0 %v452_v32  ;;  %v962_v32 = vld [vmem:[#allocation6 + $0x48] sm:$0xff] }
 0x24c   :  { %726 = vmatprep.mubr.f32.mxu0 %v12256_v0 }
 0x24f   :  { %727 = vmatmul.mubr.f32.gmra.mrb[58].mxu0 %v453_v33  ;;  %v964_v33 = vld [vmem:[#allocation6 + $0x58] sm:$0xff] }
 0x250   :  { %732 = vmatprep.mubr.f32.mxu0 %v12256_v0 }
 0x253   :  { %733 = vmatmul.mubr.f32.gmra.mrb[60].mxu0 %v454_v34 }
 0x254   :  { %738 = vmatprep.mubr.f32.mxu0 %v12256_v0 }
 0x257   :  { %739 = vmatmul.mubr.f32.gmra.mrb[62].mxu0 %v455_v35 }
 0x258   :  { %744 = vmatprep.mubr.f32.mxu0 %v12256_v0 }
 0x25b   :  { %745 = vmatmul.mubr.f32.gmra.mrb[64].mxu0 %v456_v36 }
 0x25c   :  { %750 = vmatprep.mubr.f32.mxu0 %v12256_v0 }
 0x25f   :  { %751 = vmatmul.mubr.f32.gmra.mrb[66].mxu0 %v457_v37 }
 0x260   :  { %756 = vmatprep.mubr.f32.mxu0 %v12256_v0 }
 0x263   :  { %757 = vmatmul.mubr.f32.gmra.mrb[68].mxu0 %v458_v38  ;;  %v483_v38 = vld [vmem:[#allocation2 + $0x1d8] sm:$0xff] }
 0x264   :  { %762 = vmatprep.mubr.f32.mxu0 %v12256_v0 }
 0x267   :  { %763 = vmatmul.mubr.f32.gmra.mrb[70].mxu0 %v459_v39 }
 0x268   :  { %768 = vmatprep.mubr.f32.mxu0 %v12256_v0 }
 0x26b   :  { %769 = vmatmul.mubr.f32.gmra.mrb[72].mxu0 %v460_v40 }
 0x26c   :  { %774 = vmatprep.mubr.f32.mxu0 %v12256_v0 }
 0x26f   :  { %775 = vmatmul.mubr.f32.gmra.mrb[74].mxu0 %v461_v41 }
 0x270   :  { %780 = vmatprep.mubr.f32.mxu0 %v12256_v0 }
 0x273   :  { %781 = vmatmul.mubr.f32.gmra.mrb[76].mxu0 %v462_v42 }
 0x274   :  { %786 = vmatprep.mubr.f32.mxu0 %v12256_v0 }
 0x277   :  { %787 = vmatmul.mubr.f32.gmra.mrb[78].mxu0 %v463_v43 }
 0x278   :  { %792 = vmatprep.mubr.f32.mxu0 %v12256_v0 }
 0x27b   :  { %793 = vmatmul.mubr.f32.gmra.mrb[80].mxu0 %v464_v44 }
 0x27c   :  { %798 = vmatprep.mubr.f32.mxu0 %v12256_v0 }
 0x27f   :  { %799 = vmatmul.mubr.f32.gmra.mrb[82].mxu0 %v465_v45  ;;  %v484_v45 = vld [vmem:[#allocation2 + $0x1e0] sm:$0xff] }
 0x280   :  { %804 = vmatprep.mubr.f32.mxu0 %v12256_v0 }
 0x283   :  { %805 = vmatmul.mubr.f32.gmra.mrb[84].mxu0 %v466_v46  ;;  %v965_v46 = vld [vmem:[#allocation6 + $0x60] sm:$0xff] }
 0x284   :  { %810 = vmatprep.mubr.f32.mxu0 %v12256_v0 }
 0x287   :  { %811 = vmatmul.mubr.f32.gmra.mrb[86].mxu0 %v467_v47  ;;  %v967_v47 = vld [vmem:[#allocation6 + $0x70] sm:$0xff] }
 0x288   :  { %816 = vmatprep.mubr.f32.mxu0 %v12256_v0 }
 0x28b   :  { %817 = vmatmul.mubr.f32.gmra.mrb[88].mxu0 %v468_v48  ;;  %v966_v48 = vld [vmem:[#allocation6 + $0x68] sm:$0xff] }
 0x28c   :  { %822 = vmatprep.mubr.f32.mxu0 %v12256_v0 }
 0x28f   :  { %823 = vmatmul.mubr.f32.gmra.mrb[90].mxu0 %v469_v49  ;;  %v968_v49 = vld [vmem:[#allocation6 + $0x78] sm:$0xff] }
 0x290   :  { %828 = vmatprep.mubr.f32.mxu0 %v12256_v0 }
 0x293   :  { %829 = vmatmul.mubr.f32.gmra.mrb[92].mxu0 %v470_v50 }
 0x294   :  { %834 = vmatprep.mubr.f32.mxu0 %v12256_v0 }
 0x297   :  { %835 = vmatmul.mubr.f32.gmra.mrb[94].mxu0 %v471_v51 }
 0x298   :  { %840 = vmatprep.mubr.f32.mxu0 %v12256_v0 }
 0x29b   :  { %841 = vmatmul.mubr.f32.gmra.mrb[96].mxu0 %v472_v52 }
 0x29c   :  { %846 = vmatprep.mubr.f32.mxu0 %v12256_v0 }
 0x29f   :  { %847 = vmatmul.mubr.f32.gmra.mrb[98].mxu0 %v473_v53 }
 0x2a0   :  { %852 = vmatprep.mubr.f32.mxu0 %v12256_v0 }
 0x2a3   :  { %853 = vmatmul.mubr.f32.gmra.mrb[100].mxu0 %v474_v54  ;;  %v485_v54 = vld [vmem:[#allocation2 + $0x1e8] sm:$0xff] }
 0x2a4   :  { %858 = vmatprep.mubr.f32.mxu0 %v12256_v0 }
 0x2a7   :  { %859 = vmatmul.mubr.f32.gmra.mrb[102].mxu0 %v475_v55 }
 0x2a8   :  { %864 = vmatprep.mubr.f32.mxu0 %v12256_v0 }
 0x2ab   :  { %865 = vmatmul.mubr.f32.gmra.mrb[104].mxu0 %v476_v56 }
 0x2ac   :  { %870 = vmatprep.mubr.f32.mxu0 %v12256_v0 }
 0x2ae   :  { %v554_v58 = vpop.f32.mrb[0].mxu0 }
 0x2af   :  { %v556_v59 = vpop.f32.mrb[1].mxu0  ;;  %871 = vmatmul.mubr.f32.gmra.mrb[106].mxu0 %v477_v57  ;;  %v1081_v3 = vmul.f32 %v953_v60, %v554_v58 }
 0x2b0   :  { %876 = vmatprep.mubr.f32.mxu0 %v12256_v0  ;;  %v1082_v6 = vmul.f32 %v954_v63, %v556_v59  ;;  %v971_v63 = vld [vmem:[#allocation6 + $0x90] sm:$0xff] }
 0x2b2   :  { %v560_v2 = vpop.f32.mrb[2].mxu0 }
 0x2b3   :  { %v1083_v4 = vmul.f32 %v955_v61, %v560_v2  ;;  %v562_v5 = vpop.f32.mrb[3].mxu0  ;;  %877 = vmatmul.mubr.f32.gmra.mrb[108].mxu0 %v478_v62  ;;  %v486_v61 = vld [vmem:[#allocation2 + $0x1f0] sm:$0xff]  ;;  %v969_v62 = vld [vmem:[#allocation6 + $0x80] sm:$0xff]  ;;  %v972_v2 = vld [vmem:[#allocation6 + $0x98] sm:$0xff] }
 0x2b4   :  { %v1084_v7 = vmul.f32 %v956_v1, %v562_v5  ;;  %882 = vmatprep.mubr.f32.mxu0 %v12256_v0  ;;  %v970_v1 = vld [vmem:[#allocation6 + $0x88] sm:$0xff] }
 0x2b5   :  { %v7387_v9 = vpack.c.bf16 %v1083_v4, %v1081_v3 }
 0x2b6   :  { %v7385_v10 = vpack.c.bf16 %v1084_v7, %v1082_v6  ;;  %v566_v11 = vpop.f32.mrb[4].mxu0  ;;  %v487_v7 = vld [vmem:[#allocation2 + $0x1f8] sm:$0xff] }
 0x2b7   :  { %883 = vmatmul.mubr.f32.gmra.mrb[110].mxu0 %v479_v8  ;;  %v568_v12 = vpop.f32.mrb[5].mxu0  ;;  %v1085_v19 = vmul.f32 %v957_v13, %v566_v11  ;;  %v938_v11 = vld [vmem:[#allocation7 + $0x8] sm:$0xff] }
 0x2b8   :  { %7386 = vmatprep.subr.bf16.mxu0 %v7385_v10  ;;  %888 = vmatprep.mubr.f32.mxu0 %v12256_v0  ;;  %v1086_v22 = vmul.f32 %v958_v16, %v568_v12  ;;  %v975_v16 = vld [vmem:[#allocation6 + $0xb0] sm:$0xff] }
 0x2b9   :  { %7388 = vmatpush1.bf16.msra.mxu0 %v7387_v9 }
 0x2ba   :  { %v572_v18 = vpop.f32.mrb[6].mxu0 }
 0x2bb   :  { %889 = vmatmul.mubr.f32.gmra.mrb[112].mxu0 %v480_v14  ;;  %v1087_v20 = vmul.f32 %v959_v15, %v572_v18  ;;  %v574_v21 = vpop.f32.mrb[7].mxu0  ;;  %v973_v15 = vld [vmem:[#allocation6 + $0xa0] sm:$0xff]  ;;  %v976_v18 = vld [vmem:[#allocation6 + $0xb8] sm:$0xff] }
 0x2bc   :  { %v1088_v23 = vmul.f32 %v960_v17, %v574_v21  ;;  %894 = vmatprep.mubr.f32.mxu0 %v12256_v0  ;;  %v974_v17 = vld [vmem:[#allocation6 + $0xa8] sm:$0xff] }
 0x2bd   :  { %v7391_v25 = vpack.c.bf16 %v1087_v20, %v1085_v19 }
 0x2be   :  { %v7389_v26 = vpack.c.bf16 %v1088_v23, %v1086_v22  ;;  %v578_v27 = vpop.f32.mrb[8].mxu0 }
 0x2bf   :  { %895 = vmatmul.mubr.f32.gmra.mrb[114].mxu0 %v481_v24  ;;  %v580_v28 = vpop.f32.mrb[9].mxu0  ;;  %v1089_v35 = vmul.f32 %v961_v30, %v578_v27  ;;  %v979_v30 = vld [vmem:[#allocation6 + $0xd0] sm:$0xff] }
 0x2c0   :  { %900 = vmatprep.mubr.f32.mxu0 %v12256_v0  ;;  %7390 = vmatprep.subr.bf16.mxu0 %v7389_v26  ;;  %v1090_v39 = vmul.f32 %v962_v32, %v580_v28  ;;  %v980_v32 = vld [vmem:[#allocation6 + $0xd8] sm:$0xff] }
 0x2c1   :  { %7392 = vmatpush1.bf16.msra.mxu0 %v7391_v25 }
 0x2c2   :  { %v584_v34 = vpop.f32.mrb[10].mxu0 }
 0x2c3   :  { %901 = vmatmul.mubr.f32.gmra.mrb[116].mxu0 %v482_v29  ;;  %v1091_v36 = vmul.f32 %v963_v31, %v584_v34  ;;  %v586_v37 = vpop.f32.mrb[11].mxu0  ;;  %v977_v29 = vld [vmem:[#allocation6 + $0xc0] sm:$0xff]  ;;  %v978_v31 = vld [vmem:[#allocation6 + $0xc8] sm:$0xff] }
 0x2c4   :  { %906 = vmatprep.mubr.f32.mxu0 %v12256_v0  ;;  %v1092_v40 = vmul.f32 %v964_v33, %v586_v37 }
 0x2c5   :  { %v7395_v41 = vpack.c.bf16 %v1091_v36, %v1089_v35 }
 0x2c6   :  { %v7393_v42 = vpack.c.bf16 %v1092_v40, %v1090_v39  ;;  %v590_v43 = vpop.f32.mrb[12].mxu0 }
 0x2c7   :  { %907 = vmatmul.mubr.f32.gmra.mrb[118].mxu0 %v483_v38  ;;  %v592_v44 = vpop.f32.mrb[13].mxu0  ;;  %v1093_v51 = vmul.f32 %v965_v46, %v590_v43  ;;  %v981_v43 = vld [vmem:[#allocation6 + $0xe0] sm:$0xff]  ;;  %v984_v46 = vld [vmem:[#allocation6 + $0xf8] sm:$0xff] }
 0x2c8   :  { %912 = vmatprep.mubr.f32.mxu0 %v12256_v0  ;;  %7394 = vmatprep.subr.bf16.mxu0 %v7393_v42  ;;  %v1094_v55 = vmul.f32 %v966_v48, %v592_v44  ;;  %v983_v44 = vld [vmem:[#allocation6 + $0xf0] sm:$0xff] }
 0x2c9   :  { %7396 = vmatpush1.bf16.msra.mxu0 %v7395_v41 }
 0x2ca   :  { %v596_v50 = vpop.f32.mrb[14].mxu0 }
 0x2cb   :  { %913 = vmatmul.mubr.f32.gmra.mrb[120].mxu0 %v484_v45  ;;  %v1095_v52 = vmul.f32 %v967_v47, %v596_v50  ;;  %v598_v53 = vpop.f32.mrb[15].mxu0  ;;  %v982_v45 = vld [vmem:[#allocation6 + $0xe8] sm:$0xff] }
 0x2cc   :  { %918 = vmatprep.mubr.f32.mxu0 %v12256_v0  ;;  %v1096_v56 = vmul.f32 %v968_v49, %v598_v53 }
 0x2cd   :  { %v7399_v57 = vpack.c.bf16 %v1095_v52, %v1093_v51 }
 0x2ce   :  { %v7397_v58 = vpack.c.bf16 %v1096_v56, %v1094_v55  ;;  %v602_v59 = vpop.f32.mrb[16].mxu0 }
 0x2cf   :  { %919 = vmatmul.mubr.f32.gmra.mrb[122].mxu0 %v485_v54  ;;  %v604_v60 = vpop.f32.mrb[17].mxu0  ;;  %v1097_v4 = vmul.f32 %v969_v62, %v602_v59  ;;  %v986_v59 = vld [vmem:[#allocation6 + $0x108] sm:$0xff] }
 0x2d0   :  { %924 = vmatprep.mubr.f32.mxu0 %v12256_v0  ;;  %7398 = vmatprep.subr.bf16.mxu0 %v7397_v58  ;;  %v1098_v8 = vmul.f32 %v970_v1, %v604_v60  ;;  %v987_v58 = vld [vmem:[#allocation6 + $0x110] sm:$0xff]  ;;  %v988_v60 = vld [vmem:[#allocation6 + $0x118] sm:$0xff] }
 0x2d1   :  { %7400 = vmatpush1.bf16.msra.mxu0 %v7399_v57  ;;  %v985_v57 = vld [vmem:[#allocation6 + $0x100] sm:$0xff] }
 0x2d2   :  { %v608_v3 = vpop.f32.mrb[18].mxu0 }
 0x2d3   :  { %925 = vmatmul.mubr.f32.gmra.mrb[124].mxu0 %v486_v61  ;;  %v1099_v5 = vmul.f32 %v971_v63, %v608_v3  ;;  %v610_v6 = vpop.f32.mrb[19].mxu0 }
 0x2d4   :  { %930 = vmatprep.mubr.f32.mxu0 %v12256_v0  ;;  %v1100_v9 = vmul.f32 %v972_v2, %v610_v6 }
 0x2d5   :  { %v7403_v10 = vpack.c.bf16 %v1099_v5, %v1097_v4 }
 0x2d6   :  { %v7401_v12 = vpack.c.bf16 %v1100_v9, %v1098_v8  ;;  %v614_v13 = vpop.f32.mrb[20].mxu0  ;;  %v989_v8 = vld [vmem:[#allocation6 + $0x120] sm:$0xff]  ;;  %v991_v9 = vld [vmem:[#allocation6 + $0x130] sm:$0xff] }
 0x2d7   :  { %931 = vmatmul.mubr.f32.gmra.mrb[126].mxu0 %v487_v7  ;;  %v616_v14 = vpop.f32.mrb[21].mxu0  ;;  %v1101_v20 = vmul.f32 %v973_v15, %v614_v13 }
 0x2d8   :  { %7402 = vmatprep.subr.bf16.mxu0 %v7401_v12  ;;  %1281 = vmatprep.mubr.f32.mxu0 %v938_v11  ;;  %v1102_v23 = vmul.f32 %v974_v17, %v616_v14  ;;  %v992_v11 = vld [vmem:[#allocation6 + $0x138] sm:$0xff] }
 0x2d9   :  { %7404 = vmatpush1.bf16.msra.mxu0 %v7403_v10  ;;  %v990_v10 = vld [vmem:[#allocation6 + $0x128] sm:$0xff] }
 0x2da   :  { %v620_v19 = vpop.f32.mrb[22].mxu0 }
 0x2db   :  { %v1103_v21 = vmul.f32 %v975_v16, %v620_v19  ;;  %v622_v22 = vpop.f32.mrb[23].mxu0 }
 0x2dc   :  { %v1104_v24 = vmul.f32 %v976_v18, %v622_v22  ;;  %v993_v22 = vld [vmem:[#allocation6 + $0x140] sm:$0xff] }
 0x2dd   :  { %v7407_v25 = vpack.c.bf16 %v1103_v21, %v1101_v20 }
 0x2de   :  { %v7405_v26 = vpack.c.bf16 %v1104_v24, %v1102_v23  ;;  %v626_v27 = vpop.f32.mrb[24].mxu0  ;;  %v995_v23 = vld [vmem:[#allocation6 + $0x150] sm:$0xff]  ;;  %v994_v24 = vld [vmem:[#allocation6 + $0x148] sm:$0xff] }
 0x2df   :  { %v628_v28 = vpop.f32.mrb[25].mxu0  ;;  %v1105_v34 = vmul.f32 %v977_v29, %v626_v27 }
 0x2e0   :  { %7406 = vmatprep.subr.bf16.mxu0 %v7405_v26  ;;  %v1106_v37 = vmul.f32 %v978_v31, %v628_v28 }
 0x2e1   :  { %7408 = vmatpush1.bf16.msra.mxu0 %v7407_v25  ;;  %v996_v25 = vld [vmem:[#allocation6 + $0x158] sm:$0xff] }
 0x2e2   :  { %v632_v33 = vpop.f32.mrb[26].mxu0 }
 0x2e3   :  { %v1107_v35 = vmul.f32 %v979_v30, %v632_v33  ;;  %v634_v36 = vpop.f32.mrb[27].mxu0 }
 0x2e4   :  { %v1108_v38 = vmul.f32 %v980_v32, %v634_v36  ;;  %v997_v36 = vld [vmem:[#allocation6 + $0x160] sm:$0xff] }
 0x2e5   :  { %v7411_v39 = vpack.c.bf16 %v1107_v35, %v1105_v34 }
 0x2e6   :  { %v7409_v40 = vpack.c.bf16 %v1108_v38, %v1106_v37  ;;  %v638_v41 = vpop.f32.mrb[28].mxu0  ;;  %v999_v37 = vld [vmem:[#allocation6 + $0x170] sm:$0xff]  ;;  %v998_v38 = vld [vmem:[#allocation6 + $0x168] sm:$0xff] }
 0x2e7   :  { %v640_v42 = vpop.f32.mrb[29].mxu0  ;;  %v1109_v48 = vmul.f32 %v981_v43, %v638_v41 }
 0x2e8   :  { %7410 = vmatprep.subr.bf16.mxu0 %v7409_v40  ;;  %v1110_v51 = vmul.f32 %v982_v45, %v640_v42 }
 0x2e9   :  { %7412 = vmatpush1.bf16.msra.mxu0 %v7411_v39  ;;  %v1000_v39 = vld [vmem:[#allocation6 + $0x178] sm:$0xff] }
 0x2ea   :  { %v644_v47 = vpop.f32.mrb[30].mxu0 }
 0x2eb   :  { %v1111_v49 = vmul.f32 %v983_v44, %v644_v47  ;;  %v646_v50 = vpop.f32.mrb[31].mxu0 }
 0x2ec   :  { %v1112_v52 = vmul.f32 %v984_v46, %v646_v50  ;;  %v1001_v50 = vld [vmem:[#allocation6 + $0x180] sm:$0xff] }
 0x2ed   :  { %v7415_v53 = vpack.c.bf16 %v1111_v49, %v1109_v48 }
 0x2ee   :  { %v7413_v54 = vpack.c.bf16 %v1112_v52, %v1110_v51  ;;  %v650_v55 = vpop.f32.mrb[32].mxu0  ;;  %v1003_v51 = vld [vmem:[#allocation6 + $0x190] sm:$0xff]  ;;  %v1002_v52 = vld [vmem:[#allocation6 + $0x188] sm:$0xff] }
 0x2ef   :  { %v652_v56 = vpop.f32.mrb[33].mxu0  ;;  %v1113_v62 = vmul.f32 %v985_v57, %v650_v55 }
 0x2f0   :  { %7414 = vmatprep.subr.bf16.mxu0 %v7413_v54  ;;  %v1114_v2 = vmul.f32 %v986_v59, %v652_v56 }
 0x2f1   :  { %7416 = vmatpush1.bf16.msra.mxu0 %v7415_v53  ;;  %v1004_v53 = vld [vmem:[#allocation6 + $0x198] sm:$0xff] }
 0x2f2   :  { %v656_v61 = vpop.f32.mrb[34].mxu0 }
 0x2f3   :  { %v1115_v63 = vmul.f32 %v987_v58, %v656_v61  ;;  %v658_v1 = vpop.f32.mrb[35].mxu0 }
 0x2f4   :  { %v1116_v3 = vmul.f32 %v988_v60, %v658_v1  ;;  %v1005_v1 = vld [vmem:[#allocation6 + $0x1a0] sm:$0xff] }
 0x2f5   :  { %v7419_v4 = vpack.c.bf16 %v1115_v63, %v1113_v62 }
 0x2f6   :  { %v662_v5 = vpop.f32.mrb[36].mxu0  ;;  %v7417_v6 = vpack.c.bf16 %v1116_v3, %v1114_v2  ;;  %v1007_v2 = vld [vmem:[#allocation6 + $0x1b0] sm:$0xff]  ;;  %v1006_v3 = vld [vmem:[#allocation6 + $0x1a8] sm:$0xff] }
 0x2f7   :  { %v664_v7 = vpop.f32.mrb[37].mxu0  ;;  %v1117_v13 = vmul.f32 %v989_v8, %v662_v5 }
 0x2f8   :  { %7418 = vmatprep.subr.bf16.mxu0 %v7417_v6  ;;  %v1118_v16 = vmul.f32 %v990_v10, %v664_v7 }
 0x2f9   :  { %7420 = vmatpush1.bf16.msra.mxu0 %v7419_v4  ;;  %v1008_v4 = vld [vmem:[#allocation6 + $0x1b8] sm:$0xff] }
 0x2fa   :  { %v668_v12 = vpop.f32.mrb[38].mxu0 }
 0x2fb   :  { %v1119_v14 = vmul.f32 %v991_v9, %v668_v12  ;;  %v670_v15 = vpop.f32.mrb[39].mxu0 }
 0x2fc   :  { %v1120_v17 = vmul.f32 %v992_v11, %v670_v15  ;;  %v1009_v15 = vld [vmem:[#allocation6 + $0x1c0] sm:$0xff] }
 0x2fd   :  { %v7423_v18 = vpack.c.bf16 %v1119_v14, %v1117_v13 }
 0x2fe   :  { %v674_v19 = vpop.f32.mrb[40].mxu0  ;;  %v7421_v20 = vpack.c.bf16 %v1120_v17, %v1118_v16  ;;  %v1011_v16 = vld [vmem:[#allocation6 + $0x1d0] sm:$0xff]  ;;  %v1010_v17 = vld [vmem:[#allocation6 + $0x1c8] sm:$0xff] }
 0x2ff   :  { %v676_v21 = vpop.f32.mrb[41].mxu0  ;;  %v1121_v27 = vmul.f32 %v993_v22, %v674_v19 }
 0x300   :  { %7422 = vmatprep.subr.bf16.mxu0 %v7421_v20  ;;  %v1122_v30 = vmul.f32 %v994_v24, %v676_v21 }
 0x301   :  { %7424 = vmatpush1.bf16.msra.mxu0 %v7423_v18  ;;  %v1012_v18 = vld [vmem:[#allocation6 + $0x1d8] sm:$0xff] }
 0x302   :  { %v680_v26 = vpop.f32.mrb[42].mxu0 }
 0x303   :  { %v1123_v28 = vmul.f32 %v995_v23, %v680_v26  ;;  %v682_v29 = vpop.f32.mrb[43].mxu0 }
 0x304   :  { %v1124_v31 = vmul.f32 %v996_v25, %v682_v29  ;;  %v1013_v29 = vld [vmem:[#allocation6 + $0x1e0] sm:$0xff] }
 0x305   :  { %v7427_v32 = vpack.c.bf16 %v1123_v28, %v1121_v27 }
 0x306   :  { %v686_v33 = vpop.f32.mrb[44].mxu0  ;;  %v7425_v34 = vpack.c.bf16 %v1124_v31, %v1122_v30  ;;  %v1015_v30 = vld [vmem:[#allocation6 + $0x1f0] sm:$0xff]  ;;  %v1014_v31 = vld [vmem:[#allocation6 + $0x1e8] sm:$0xff] }
 0x307   :  { %v688_v35 = vpop.f32.mrb[45].mxu0  ;;  %v1125_v41 = vmul.f32 %v997_v36, %v686_v33 }
 0x308   :  { %7426 = vmatprep.subr.bf16.mxu0 %v7425_v34  ;;  %v1126_v44 = vmul.f32 %v998_v38, %v688_v35 }
 0x309   :  { %7428 = vmatpush1.bf16.msra.mxu0 %v7427_v32  ;;  %v1016_v32 = vld [vmem:[#allocation6 + $0x1f8] sm:$0xff] }
 0x30a   :  { %v692_v40 = vpop.f32.mrb[46].mxu0 }
 0x30b   :  { %v1127_v42 = vmul.f32 %v999_v37, %v692_v40  ;;  %v694_v43 = vpop.f32.mrb[47].mxu0 }
 0x30c   :  { %v1128_v45 = vmul.f32 %v1000_v39, %v694_v43  ;;  %v1017_v43 = vld [vmem:[#allocation6 + $0x200] sm:$0xff] }
 0x30d   :  { %v7431_v46 = vpack.c.bf16 %v1127_v42, %v1125_v41 }
 0x30e   :  { %v7429_v47 = vpack.c.bf16 %v1128_v45, %v1126_v44  ;;  %v698_v48 = vpop.f32.mrb[48].mxu0  ;;  %v1019_v44 = vld [vmem:[#allocation6 + $0x210] sm:$0xff]  ;;  %v1018_v45 = vld [vmem:[#allocation6 + $0x208] sm:$0xff] }
 0x30f   :  { %v700_v49 = vpop.f32.mrb[49].mxu0  ;;  %v1129_v55 = vmul.f32 %v1001_v50, %v698_v48 }
 0x310   :  { %7430 = vmatprep.subr.bf16.mxu0 %v7429_v47  ;;  %v1130_v58 = vmul.f32 %v1002_v52, %v700_v49  ;;  %v937_v47 = vld [vmem:[#allocation7] sm:$0xff]  ;;  %v942_v49 = vld [vmem:[#allocation7 + $0x28] sm:$0xff] }
 0x311   :  { %7432 = vmatpush1.bf16.msra.mxu0 %v7431_v46  ;;  %v1020_v46 = vld [vmem:[#allocation6 + $0x218] sm:$0xff] }
 0x312   :  { %v704_v54 = vpop.f32.mrb[50].mxu0 }
 0x313   :  { %v1131_v56 = vmul.f32 %v1003_v51, %v704_v54  ;;  %v706_v57 = vpop.f32.mrb[51].mxu0 }
 0x314   :  { %v1132_v59 = vmul.f32 %v1004_v53, %v706_v57 }
 0x315   :  { %v7435_v60 = vpack.c.bf16 %v1131_v56, %v1129_v55  ;;  %v941_v56 = vld [vmem:[#allocation7 + $0x20] sm:$0xff] }
 0x316   :  { %v7433_v61 = vpack.c.bf16 %v1132_v59, %v1130_v58  ;;  %v710_v62 = vpop.f32.mrb[52].mxu0  ;;  %v946_v59 = vld [vmem:[#allocation7 + $0x48] sm:$0xff] }
 0x317   :  { %v712_v63 = vpop.f32.mrb[53].mxu0  ;;  %v1133_v6 = vmul.f32 %v1005_v1, %v710_v62  ;;  %v1023_v62 = vld [vmem:[#allocation6 + $0x230] sm:$0xff]  ;;  %v1024_v1 = vld [vmem:[#allocation6 + $0x238] sm:$0xff] }
 0x318   :  { %7434 = vmatprep.subr.bf16.mxu0 %v7433_v61  ;;  %v1134_v9 = vmul.f32 %v1006_v3, %v712_v63  ;;  %v1021_v61 = vld [vmem:[#allocation6 + $0x220] sm:$0xff]  ;;  %v1022_v63 = vld [vmem:[#allocation6 + $0x228] sm:$0xff] }
 0x319   :  { %7436 = vmatpush1.bf16.msra.mxu0 %v7435_v60 }
 0x31a   :  { %v716_v5 = vpop.f32.mrb[54].mxu0 }
 0x31b   :  { %v1135_v7 = vmul.f32 %v1007_v2, %v716_v5  ;;  %v718_v8 = vpop.f32.mrb[55].mxu0  ;;  %v945_v2 = vld [vmem:[#allocation7 + $0x40] sm:$0xff] }
 0x31c   :  { %v1136_v10 = vmul.f32 %v1008_v4, %v718_v8  ;;  %v950_v4 = vld [vmem:[#allocation7 + $0x68] sm:$0xff] }
 0x31d   :  { %v7439_v11 = vpack.c.bf16 %v1135_v7, %v1133_v6 }
 0x31e   :  { %v7437_v12 = vpack.c.bf16 %v1136_v10, %v1134_v9  ;;  %v722_v13 = vpop.f32.mrb[56].mxu0 }
 0x31f   :  { %v724_v14 = vpop.f32.mrb[57].mxu0  ;;  %v1137_v20 = vmul.f32 %v1009_v15, %v722_v13  ;;  %v1025_v15 = vld [vmem:[#allocation6 + $0x240] sm:$0xff] }
 0x320   :  { %7438 = vmatprep.subr.bf16.mxu0 %v7437_v12  ;;  %v1138_v23 = vmul.f32 %v1010_v17, %v724_v14  ;;  %v940_v14 = vld [vmem:[#allocation7 + $0x18] sm:$0xff]  ;;  %v1027_v17 = vld [vmem:[#allocation6 + $0x250] sm:$0xff] }
 0x321   :  { %7440 = vmatpush1.bf16.msra.mxu0 %v7439_v11  ;;  %v949_v11 = vld [vmem:[#allocation7 + $0x60] sm:$0xff] }
 0x322   :  { %v728_v19 = vpop.f32.mrb[58].mxu0 }
 0x323   :  { %v1139_v21 = vmul.f32 %v1011_v16, %v728_v19  ;;  %v730_v22 = vpop.f32.mrb[59].mxu0  ;;  %v1427_v19 = vld [vmem:[%s12243_s7] sm:$0xff] }
 0x324   :  { %v1140_v24 = vmul.f32 %v1012_v18, %v730_v22  ;;  %v1395_v18 = vld [vmem:[%s12242_s6] sm:$0xff] }
 0x325   :  { %v7443_v25 = vpack.c.bf16 %v1139_v21, %v1137_v20  ;;  %v1026_v20 = vld [vmem:[#allocation6 + $0x248] sm:$0xff]  ;;  %v1028_v21 = vld [vmem:[#allocation6 + $0x258] sm:$0xff] }
 0x326   :  { %v7441_v26 = vpack.c.bf16 %v1140_v24, %v1138_v23  ;;  %v734_v27 = vpop.f32.mrb[60].mxu0  ;;  %v9931_v23 = vmov 0  }
 0x327   :  { %v736_v28 = vpop.f32.mrb[61].mxu0  ;;  %v1141_v34 = vmul.f32 %v1013_v29, %v734_v27  ;;  %9673 = vset.pattern.permute.xlu0 %v9931_v23  ;;  %9674 = vset.pattern.permute.xlu1 %v9931_v23  ;;  %v1396_v29 = vld [vmem:[%s12242_s6 + $0x8] sm:$0xff] }
 0x328   :  { %7442 = vmatprep.subr.bf16.mxu0 %v7441_v26  ;;  %v1142_v37 = vmul.f32 %v1014_v31, %v736_v28  ;;  %1401 = vperm.xlu0 %9673, %v1395_v18  }
 0x329   :  { %7444 = vmatpush1.bf16.msra.mxu0 %v7443_v25  ;;  %1433 = vperm.xlu1 %9674, %v1427_v19  }
 0x32a   :  { %v740_v33 = vpop.f32.mrb[62].mxu0 }
 0x32b   :  { %v1143_v35 = vmul.f32 %v1015_v30, %v740_v33  ;;  %v742_v36 = vpop.f32.mrb[63].mxu0  ;;  %v1428_v30 = vld [vmem:[%s12243_s7 + $0x8] sm:$0xff] }
 0x32c   :  { %v1144_v38 = vmul.f32 %v1016_v32, %v742_v36  ;;  %1406 = vperm.xlu0 %9673, %v1396_v29   ;;  %v1031_v36 = vld [vmem:[#allocation6 + $0x270] sm:$0xff] }
 0x32d   :  { %v7447_v39 = vpack.c.bf16 %v1143_v35, %v1141_v34  ;;  %v1029_v34 = vld [vmem:[#allocation6 + $0x260] sm:$0xff]  ;;  %1438 = vperm.xlu1 %9674, %v1428_v30   ;;  %v5719_v29 = vld [vmem:[%s12250_s14 + $0x18] sm:$0xff]  ;;  %v1042_v30 = vld [vmem:[#allocation6 + $0x2c8] sm:$0xff] }
 0x32e   :  { %v7445_v40 = vpack.c.bf16 %v1144_v38, %v1142_v37  ;;  %v746_v41 = vpop.f32.mrb[64].mxu0  ;;  %v1398_v37 = vld [vmem:[%s12242_s6 + $0x18] sm:$0xff]  ;;  %v1397_v38 = vld [vmem:[%s12242_s6 + $0x10] sm:$0xff] }
 0x32f   :  { %v748_v42 = vpop.f32.mrb[65].mxu0  ;;  %v1145_v50 = vmul.f32 %v1017_v43, %v746_v41 }
 0x330   :  { %7446 = vmatprep.subr.bf16.mxu0 %v7445_v40  ;;  %v1146_v53 = vmul.f32 %v1018_v45, %v748_v42  ;;  %v1032_v40 = vld [vmem:[#allocation6 + $0x278] sm:$0xff]  ;;  %1411 = vperm.xlu0 %9673, %v1397_v38   ;;  %v5843_v38 = vld [vmem:[%s12248_s12 + $0x10] sm:$0xff] }
 0x331   :  { %7448 = vmatpush1.bf16.msra.mxu0 %v7447_v39  ;;  %v1030_v39 = vld [vmem:[#allocation6 + $0x268] sm:$0xff]  ;;  %1416 = vperm.xlu1 %9674, %v1398_v37  }
 0x332   :  { %v752_v48 = vpop.f32.mrb[66].mxu0 }
 0x333   :  { %v1147_v51 = vmul.f32 %v1019_v44, %v752_v48  ;;  %v754_v52 = vpop.f32.mrb[67].mxu0  ;;  %v1429_v48 = vld [vmem:[%s12243_s7 + $0x10] sm:$0xff] }
 0x334   :  { %v1148_v54 = vmul.f32 %v1020_v46, %v754_v52  ;;  %1282 = vmatmul.mubr.f32.vlgmr.msra.gmra.mrb[128].mxu0 %v937_v47  ;;  %v1430_v47 = vld [vmem:[%s12243_s7 + $0x18] sm:$0xff]  ;;  %v1033_v52 = vld [vmem:[#allocation6 + $0x280] sm:$0xff]  ;;  %1443 = vperm.xlu0 %9673, %v1429_v48   ;;  %v1048_v48 = vld [vmem:[#allocation6 + $0x2f8] sm:$0xff] }
 0x335   :  { %v7451_v55 = vpack.c.bf16 %v1147_v51, %v1145_v50  ;;  %1287 = vmatprep.mubr.f32.mxu0 %v942_v49  ;;  %1448 = vperm.xlu1 %9674, %v1430_v47   ;;  %v1046_v47 = vld [vmem:[#allocation6 + $0x2e8] sm:$0xff] }
 0x336   :  { %v7449_v57 = vpack.c.bf16 %v1148_v54, %v1146_v53  ;;  %v758_v58 = vpop.f32.mrb[68].mxu0  ;;  %v1035_v54 = vld [vmem:[#allocation6 + $0x290] sm:$0xff] }
 0x337   :  { %v760_v60 = vpop.f32.mrb[69].mxu0  ;;  %v1149_v5 = vmul.f32 %v1021_v61, %v758_v58  ;;  %v1036_v58 = vld [vmem:[#allocation6 + $0x298] sm:$0xff] }
 0x338   :  { %7450 = vmatprep.subr.bf16.mxu0 %v7449_v57  ;;  %1288 = vmatmul.mubr.f32.gmra.mrb[130].mxu0 %v941_v56  ;;  %v1150_v8 = vmul.f32 %v1022_v63, %v760_v60  ;;  %v3863_v56 = vld [vmem:[%s12246_s10 + $0x8] sm:$0xff]  ;;  %v1034_v57 = vld [vmem:[#allocation6 + $0x288] sm:$0xff] }
 0x339   :  { %7452 = vmatpush1.bf16.msra.mxu0 %v7451_v55  ;;  %1293 = vmatprep.mubr.f32.mxu0 %v946_v59  ;;  %v3862_v55 = vld [vmem:[%s12246_s10] sm:$0xff] }
 0x33a   :  { %v764_v3 = vpop.f32.mrb[70].mxu0  ;;  %3868 = vperm.xlu0 %9673, %v3862_v55   ;;  %3873 = vperm.xlu1 %9674, %v3863_v56  }
 0x33b   :  { %v1151_v6 = vmul.f32 %v1023_v62, %v764_v3  ;;  %v766_v7 = vpop.f32.mrb[71].mxu0  ;;  %v3865_v3 = vld [vmem:[%s12246_s10 + $0x18] sm:$0xff] }
 0x33c   :  { %v1152_v9 = vmul.f32 %v1024_v1, %v766_v7  ;;  %1294 = vmatmul.mubr.f32.gmra.mrb[132].mxu0 %v945_v2  ;;  %v3864_v2 = vld [vmem:[%s12246_s10 + $0x10] sm:$0xff]  ;;  %v1037_v7 = vld [vmem:[#allocation6 + $0x2a0] sm:$0xff] }
 0x33d   :  { %v7455_v10 = vpack.c.bf16 %v1151_v6, %v1149_v5  ;;  %1299 = vmatprep.mubr.f32.mxu0 %v950_v4 }
 0x33e   :  { %v7453_v12 = vpack.c.bf16 %v1152_v9, %v1150_v8  ;;  %v770_v13 = vpop.f32.mrb[72].mxu0  ;;  %3878 = vperm.xlu0 %9673, %v3864_v2   ;;  %3883 = vperm.xlu1 %9674, %v3865_v3   ;;  %v1039_v9 = vld [vmem:[#allocation6 + $0x2b0] sm:$0xff] }
 0x33f   :  { %v772_v16 = vpop.f32.mrb[73].mxu0  ;;  %v1153_v24 = vmul.f32 %v1025_v15, %v770_v13  ;;  %v1040_v13 = vld [vmem:[#allocation6 + $0x2b8] sm:$0xff] }
 0x340   :  { %7454 = vmatprep.subr.bf16.mxu0 %v7453_v12  ;;  %1300 = vmatmul.mubr.f32.gmra.mrb[134].mxu0 %v949_v11  ;;  %v1154_v27 = vmul.f32 %v1026_v20, %v772_v16  ;;  %v5717_v11 = vld [vmem:[%s12250_s14 + $0x8] sm:$0xff]  ;;  %v1038_v12 = vld [vmem:[#allocation6 + $0x2a8] sm:$0xff]  ;;  %v5841_v20 = vld [vmem:[%s12248_s12] sm:$0xff] }
 0x341   :  { %7456 = vmatpush1.bf16.msra.mxu0 %v7455_v10  ;;  %1370 = vmatprep.mubr.f32.mxu0 %v940_v14  ;;  %v5716_v10 = vld [vmem:[%s12250_s14] sm:$0xff] }
 0x342   :  { %v776_v22 = vpop.f32.mrb[74].mxu0  ;;  %5722 = vperm.xlu0 %9673, %v5716_v10   ;;  %5727 = vperm.xlu1 %9674, %v5717_v11   ;;  %v1053_v10 = vld [vmem:[#allocation6 + $0x320] sm:$0xff]  ;;  %v1055_v11 = vld [vmem:[#allocation6 + $0x330] sm:$0xff] }
 0x343   :  { %v1155_v25 = vmul.f32 %v1027_v17, %v776_v22  ;;  %v778_v26 = vpop.f32.mrb[75].mxu0 }
 0x344   :  { %v1156_v28 = vmul.f32 %v1028_v21, %v778_v26  ;;  %v5842_v21 = vld [vmem:[%s12248_s12 + $0x8] sm:$0xff] }
 0x345   :  { %v7459_v31 = vpack.c.bf16 %v1155_v25, %v1153_v24  ;;  %v1041_v25 = vld [vmem:[#allocation6 + $0x2c0] sm:$0xff] }
 0x346   :  { %v7457_v32 = vpack.c.bf16 %v1156_v28, %v1154_v27  ;;  %v782_v33 = vpop.f32.mrb[76].mxu0  ;;  %5847 = vperm.xlu0 %9673, %v5841_v20   ;;  %5852 = vperm.xlu1 %9674, %v5842_v21   ;;  %v1043_v27 = vld [vmem:[#allocation6 + $0x2d0] sm:$0xff]  ;;  %v5718_v28 = vld [vmem:[%s12250_s14 + $0x10] sm:$0xff] }
 0x347   :  { %v784_v35 = vpop.f32.mrb[77].mxu0  ;;  %v1157_v42 = vmul.f32 %v1029_v34, %v782_v33 }
 0x348   :  { %7458 = vmatprep.subr.bf16.mxu0 %v7457_v32  ;;  %v1158_v45 = vmul.f32 %v1030_v39, %v784_v35  ;;  %v5844_v39 = vld [vmem:[%s12248_s12 + $0x18] sm:$0xff] }
 0x349   :  { %7460 = vmatpush1.bf16.msra.mxu0 %v7459_v31  ;;  %v1044_v31 = vld [vmem:[#allocation6 + $0x2d8] sm:$0xff] }
 0x34a   :  { %v788_v41 = vpop.f32.mrb[78].mxu0  ;;  %5732 = vperm.xlu0 %9673, %v5718_v28   ;;  %5737 = vperm.xlu1 %9674, %v5719_v29  }
 0x34b   :  { %v1159_v43 = vmul.f32 %v1031_v36, %v788_v41  ;;  %v790_v44 = vpop.f32.mrb[79].mxu0 }
 0x34c   :  { %v1160_v46 = vmul.f32 %v1032_v40, %v790_v44  ;;  %v1045_v44 = vld [vmem:[#allocation6 + $0x2e0] sm:$0xff] }
 0x34d   :  { %v7463_v49 = vpack.c.bf16 %v1159_v43, %v1157_v42 }
 0x34e   :  { %v7461_v50 = vpack.c.bf16 %v1160_v46, %v1158_v45  ;;  %v794_v51 = vpop.f32.mrb[80].mxu0  ;;  %5857 = vperm.xlu0 %9673, %v5843_v38   ;;  %5862 = vperm.xlu1 %9674, %v5844_v39   ;;  %v1047_v45 = vld [vmem:[#allocation6 + $0x2f0] sm:$0xff]  ;;  %v7225_v46 = vld [vmem:[%s12252_s16] sm:$0x7]  ;;  %v1061_v38 = vld [vmem:[#allocation6 + $0x360] sm:$0xff] }
 0x34f   :  { %v796_v53 = vpop.f32.mrb[81].mxu0  ;;  %v1161_v60 = vmul.f32 %v1033_v52, %v794_v51  ;;  %v1063_v39 = vld [vmem:[#allocation6 + $0x370] sm:$0xff] }
 0x350   :  { %7462 = vmatprep.subr.bf16.mxu0 %v7461_v50  ;;  %v1162_v63 = vmul.f32 %v1034_v57, %v796_v53 }
 0x351   :  { %7464 = vmatpush1.bf16.msra.mxu0 %v7463_v49 }
 0x352   :  { %v800_v59 = vpop.f32.mrb[82].mxu0  ;;  %7228 = vperm.xlu0 %9673, %v7225_v46  }
 0x353   :  { %v1163_v61 = vmul.f32 %v1035_v54, %v800_v59  ;;  %v802_v62 = vpop.f32.mrb[83].mxu0  ;;  %v1049_v59 = vld [vmem:[#allocation6 + $0x300] sm:$0xff] }
 0x354   :  { %v1164_v1 = vmul.f32 %v1036_v58, %v802_v62  ;;  %v1052_v62 = vld [vmem:[#allocation6 + $0x318] sm:$0xff] }
 0x355   :  { %v7467_v4 = vpack.c.bf16 %v1163_v61, %v1161_v60  ;;  %v1051_v60 = vld [vmem:[#allocation6 + $0x310] sm:$0xff]  ;;  %v1050_v61 = vld [vmem:[#allocation6 + $0x308] sm:$0xff] }
 0x356   :  { %v7465_v5 = vpack.c.bf16 %v1164_v1, %v1162_v63  ;;  %v806_v6 = vpop.f32.mrb[84].mxu0 }
 0x357   :  { %v808_v8 = vpop.f32.mrb[85].mxu0  ;;  %v1165_v15 = vmul.f32 %v1037_v7, %v806_v6 }
 0x358   :  { %7466 = vmatprep.subr.bf16.mxu0 %v7465_v5  ;;  %v1166_v18 = vmul.f32 %v1038_v12, %v808_v8  ;;  %v1054_v12 = vld [vmem:[#allocation6 + $0x328] sm:$0xff] }
 0x359   :  { %7468 = vmatpush1.bf16.msra.mxu0 %v7467_v4 }
 0x35a   :  { %v812_v14 = vpop.f32.mrb[86].mxu0 }
 0x35b   :  { %v1167_v16 = vmul.f32 %v1039_v9, %v812_v14  ;;  %v814_v17 = vpop.f32.mrb[87].mxu0 }
 0x35c   :  { %v1168_v19 = vmul.f32 %v1040_v13, %v814_v17  ;;  %v1056_v13 = vld [vmem:[#allocation6 + $0x338] sm:$0xff] }
 0x35d   :  { %v7471_v22 = vpack.c.bf16 %v1167_v16, %v1165_v15 }
 0x35e   :  { %v7469_v23 = vpack.c.bf16 %v1168_v19, %v1166_v18  ;;  %v818_v24 = vpop.f32.mrb[88].mxu0 }
 0x35f   :  { %v820_v26 = vpop.f32.mrb[89].mxu0  ;;  %v1169_v33 = vmul.f32 %v1041_v25, %v818_v24  ;;  %v1057_v24 = vld [vmem:[#allocation6 + $0x340] sm:$0xff]  ;;  %v1059_v25 = vld [vmem:[#allocation6 + $0x350] sm:$0xff] }
 0x360   :  { %7470 = vmatprep.subr.bf16.mxu0 %v7469_v23  ;;  %v1170_v36 = vmul.f32 %v1042_v30, %v820_v26  ;;  %v1058_v26 = vld [vmem:[#allocation6 + $0x348] sm:$0xff] }
 0x361   :  { %7472 = vmatpush1.bf16.msra.mxu0 %v7471_v22 }
 0x362   :  { %v824_v32 = vpop.f32.mrb[90].mxu0 }
 0x363   :  { %v1171_v34 = vmul.f32 %v1043_v27, %v824_v32  ;;  %v826_v35 = vpop.f32.mrb[91].mxu0  ;;  %v1060_v27 = vld [vmem:[#allocation6 + $0x358] sm:$0xff] }
 0x364   :  { %v1172_v37 = vmul.f32 %v1044_v31, %v826_v35 }
 0x365   :  { %v7475_v40 = vpack.c.bf16 %v1171_v34, %v1169_v33 }
 0x366   :  { %v7473_v41 = vpack.c.bf16 %v1172_v37, %v1170_v36  ;;  %v830_v42 = vpop.f32.mrb[92].mxu0 }
 0x367   :  { %v832_v43 = vpop.f32.mrb[93].mxu0  ;;  %v1173_v50 = vmul.f32 %v1045_v44, %v830_v42 }
 0x368   :  { %7474 = vmatprep.subr.bf16.mxu0 %v7473_v41  ;;  %v1174_v53 = vmul.f32 %v1046_v47, %v832_v43  ;;  %v1064_v41 = vld [vmem:[#allocation6 + $0x378] sm:$0xff] }
 0x369   :  { %7476 = vmatpush1.bf16.msra.mxu0 %v7475_v40  ;;  %v1062_v40 = vld [vmem:[#allocation6 + $0x368] sm:$0xff] }
 0x36a   :  { %v836_v49 = vpop.f32.mrb[94].mxu0 }
 0x36b   :  { %v1175_v51 = vmul.f32 %v1047_v45, %v836_v49  ;;  %v838_v52 = vpop.f32.mrb[95].mxu0 }
 0x36c   :  { %v1176_v54 = vmul.f32 %v1048_v48, %v838_v52  ;;  %v1065_v52 = vld [vmem:[#allocation6 + $0x380] sm:$0xff] }
 0x36d   :  { %v7479_v55 = vpack.c.bf16 %v1175_v51, %v1173_v50 }
 0x36e   :  { %v7477_v56 = vpack.c.bf16 %v1176_v54, %v1174_v53  ;;  %v842_v57 = vpop.f32.mrb[96].mxu0  ;;  %v1067_v53 = vld [vmem:[#allocation6 + $0x390] sm:$0xff]  ;;  %v1066_v54 = vld [vmem:[#allocation6 + $0x388] sm:$0xff] }
 0x36f   :  { %v844_v58 = vpop.f32.mrb[97].mxu0  ;;  %v1177_v1 = vmul.f32 %v1049_v59, %v842_v57 }
 0x370   :  { %7478 = vmatprep.subr.bf16.mxu0 %v7477_v56  ;;  %v1178_v4 = vmul.f32 %v1050_v61, %v844_v58 }
 0x371   :  { %7480 = vmatpush1.bf16.msra.mxu0 %v7479_v55  ;;  %v1068_v55 = vld [vmem:[#allocation6 + $0x398] sm:$0xff] }
 0x372   :  { %v848_v63 = vpop.f32.mrb[98].mxu0 }
 0x373   :  { %v1179_v2 = vmul.f32 %v1051_v60, %v848_v63  ;;  %v850_v3 = vpop.f32.mrb[99].mxu0 }
 0x374   :  { %v1180_v5 = vmul.f32 %v1052_v62, %v850_v3  ;;  %v1069_v3 = vld [vmem:[#allocation6 + $0x3a0] sm:$0xff] }
 0x375   :  { %v7483_v6 = vpack.c.bf16 %v1179_v2, %v1177_v1 }
 0x376   :  { %v7481_v7 = vpack.c.bf16 %v1180_v5, %v1178_v4  ;;  %v854_v8 = vpop.f32.mrb[100].mxu0  ;;  %v1071_v4 = vld [vmem:[#allocation6 + $0x3b0] sm:$0xff]  ;;  %v1070_v5 = vld [vmem:[#allocation6 + $0x3a8] sm:$0xff] }
 0x377   :  { %v856_v9 = vpop.f32.mrb[101].mxu0  ;;  %v1181_v15 = vmul.f32 %v1053_v10, %v854_v8 }
 0x378   :  { %7482 = vmatprep.subr.bf16.mxu0 %v7481_v7  ;;  %v1182_v18 = vmul.f32 %v1054_v12, %v856_v9 }
 0x379   :  { %7484 = vmatpush1.bf16.msra.mxu0 %v7483_v6  ;;  %v1072_v6 = vld [vmem:[#allocation6 + $0x3b8] sm:$0xff] }
 0x37a   :  { %v860_v14 = vpop.f32.mrb[102].mxu0 }
 0x37b   :  { %v1183_v16 = vmul.f32 %v1055_v11, %v860_v14  ;;  %v862_v17 = vpop.f32.mrb[103].mxu0 }
 0x37c   :  { %v1184_v19 = vmul.f32 %v1056_v13, %v862_v17  ;;  %v1073_v17 = vld [vmem:[#allocation6 + $0x3c0] sm:$0xff] }
 0x37d   :  { %v7487_v20 = vpack.c.bf16 %v1183_v16, %v1181_v15 }
 0x37e   :  { %v7485_v21 = vpack.c.bf16 %v1184_v19, %v1182_v18  ;;  %v866_v22 = vpop.f32.mrb[104].mxu0  ;;  %v1075_v18 = vld [vmem:[#allocation6 + $0x3d0] sm:$0xff]  ;;  %v1074_v19 = vld [vmem:[#allocation6 + $0x3c8] sm:$0xff] }
 0x37f   :  { %v868_v23 = vpop.f32.mrb[105].mxu0  ;;  %v1185_v29 = vmul.f32 %v1057_v24, %v866_v22 }
 0x380   :  { %7486 = vmatprep.subr.bf16.mxu0 %v7485_v21  ;;  %v1186_v32 = vmul.f32 %v1058_v26, %v868_v23 }
 0x381   :  { %7488 = vmatpush1.bf16.msra.mxu0 %v7487_v20  ;;  %v1076_v20 = vld [vmem:[#allocation6 + $0x3d8] sm:$0xff] }
 0x382   :  { %v872_v28 = vpop.f32.mrb[106].mxu0 }
 0x383   :  { %v1187_v30 = vmul.f32 %v1059_v25, %v872_v28  ;;  %v874_v31 = vpop.f32.mrb[107].mxu0 }
 0x384   :  { %v1188_v33 = vmul.f32 %v1060_v27, %v874_v31  ;;  %v1077_v31 = vld [vmem:[#allocation6 + $0x3e0] sm:$0xff] }
 0x385   :  { %v7491_v34 = vpack.c.bf16 %v1187_v30, %v1185_v29 }
 0x386   :  { %v7489_v35 = vpack.c.bf16 %v1188_v33, %v1186_v32  ;;  %v878_v36 = vpop.f32.mrb[108].mxu0  ;;  %v1079_v32 = vld [vmem:[#allocation6 + $0x3f0] sm:$0xff]  ;;  %v1078_v33 = vld [vmem:[#allocation6 + $0x3e8] sm:$0xff] }
 0x387   :  { %v880_v37 = vpop.f32.mrb[109].mxu0  ;;  %v1189_v43 = vmul.f32 %v1061_v38, %v878_v36 }
 0x388   :  { %7490 = vmatprep.subr.bf16.mxu0 %v7489_v35  ;;  %v1190_v46 = vmul.f32 %v1062_v40, %v880_v37 }
 0x389   :  { %7492 = vmatpush1.bf16.msra.mxu0 %v7491_v34  ;;  %v1080_v34 = vld [vmem:[#allocation6 + $0x3f8] sm:$0xff] }
 0x38a   :  { %v884_v42 = vpop.f32.mrb[110].mxu0 }
 0x38b   :  { %v1191_v44 = vmul.f32 %v1063_v39, %v884_v42  ;;  %v886_v45 = vpop.f32.mrb[111].mxu0 }
 0x38c   :  { %v1192_v47 = vmul.f32 %v1064_v41, %v886_v45  ;;  %v943_v45 = vld [vmem:[#allocation7 + $0x30] sm:$0xff] }
 0x38d   :  { %v7495_v48 = vpack.c.bf16 %v1191_v44, %v1189_v43  ;;  %v939_v43 = vld [vmem:[#allocation7 + $0x10] sm:$0xff]  ;;  %v944_v44 = vld [vmem:[#allocation7 + $0x38] sm:$0xff] }
 0x38e   :  { %v7493_v49 = vpack.c.bf16 %v1192_v47, %v1190_v46  ;;  %v890_v50 = vpop.f32.mrb[112].mxu0  ;;  %v948_v46 = vld [vmem:[#allocation7 + $0x58] sm:$0xff]  ;;  %v947_v47 = vld [vmem:[#allocation7 + $0x50] sm:$0xff] }
 0x38f   :  { %v892_v51 = vpop.f32.mrb[113].mxu0  ;;  %v1193_v57 = vmul.f32 %v1065_v52, %v890_v50  ;;  %v1574_v50 = vld [vmem:[#allocation10 + $0x8] sm:$0xff] }
 0x390   :  { %7494 = vmatprep.subr.bf16.mxu0 %v7493_v49  ;;  %v1194_v60 = vmul.f32 %v1066_v54, %v892_v51  ;;  %v951_v49 = vld [vmem:[#allocation7 + $0x70] sm:$0xff]  ;;  %v1576_v51 = vld [vmem:[#allocation10 + $0x18] sm:$0xff] }
 0x391   :  { %7496 = vmatpush1.bf16.msra.mxu0 %v7495_v48  ;;  %v952_v48 = vld [vmem:[#allocation7 + $0x78] sm:$0xff]  ;;  %v10378_v52 = vpack.c.bf16 %v1576_v51, %v1574_v50  ;;  %v1575_v54 = vld [vmem:[#allocation10 + $0x10] sm:$0xff] }
 0x392   :  { %v896_v56 = vpop.f32.mrb[114].mxu0 }
 0x393   :  { %v1195_v58 = vmul.f32 %v1067_v53, %v896_v56  ;;  %v898_v59 = vpop.f32.mrb[115].mxu0  ;;  %v1573_v53 = vld [vmem:[#allocation10] sm:$0xff]  ;;  %7594 = vmatprep.subr.bf16.mxu1 %v10378_v52  ;;  %v1578_v56 = vld [vmem:[#allocation10 + $0x28] sm:$0xff] }
 0x394   :  { %v1196_v61 = vmul.f32 %v1068_v55, %v898_v59  ;;  %v10380_v55 = vpack.c.bf16 %v1575_v54, %v1573_v53  ;;  %v1577_v59 = vld [vmem:[#allocation10 + $0x20] sm:$0xff] }
 0x395   :  { %v7499_v62 = vpack.c.bf16 %v1195_v58, %v1193_v57  ;;  %v1580_v57 = vld [vmem:[#allocation10 + $0x38] sm:$0xff] }
 0x396   :  { %v7497_v63 = vpack.c.bf16 %v1196_v61, %v1194_v60  ;;  %v902_v1 = vpop.f32.mrb[116].mxu0  ;;  %7596 = vmatpush1.bf16.xpose.msra.mxu1 %v10380_v55  ;;  %v10384_v58 = vpack.c.bf16 %v1580_v57, %v1578_v56  ;;  %v1579_v60 = vld [vmem:[#allocation10 + $0x30] sm:$0xff] }
 0x397   :  { %v904_v2 = vpop.f32.mrb[117].mxu0  ;;  %v1197_v8 = vmul.f32 %v1069_v3, %v902_v1  ;;  %v10386_v61 = vpack.c.bf16 %v1579_v60, %v1577_v59 }
 0x398   :  { %7498 = vmatprep.subr.bf16.mxu0 %v7497_v63  ;;  %v1198_v11 = vmul.f32 %v1070_v5, %v904_v2  ;;  %12774 = vst [vmem:[#allocation24_spill] sm:$0xff] %v10384_v58  ;;  %7598 = vmatprep.subr.bf16.mxu1 %v10384_v58  ;;  %v1209_v63 = vld [vmem:[#allocation9] sm:$0xff]  ;;  %v1210_v2 = vld [vmem:[#allocation9 + $0x8] sm:$0xff]  ;;  %v1584_v5 = vld [vmem:[#allocation10 + $0x58] sm:$0xff] }
 0x399   :  { %7500 = vmatpush1.bf16.msra.mxu0 %v7499_v62  ;;  %12775 = vst [vmem:[#allocation25_spill] sm:$0xff] %v10386_v61 }
 0x39a   :  { %v908_v7 = vpop.f32.mrb[118].mxu0 }
 0x39b   :  { %v1199_v9 = vmul.f32 %v1071_v4, %v908_v7  ;;  %v910_v10 = vpop.f32.mrb[119].mxu0  ;;  %v1582_v4 = vld [vmem:[#allocation10 + $0x48] sm:$0xff] }
 0x39c   :  { %v1200_v12 = vmul.f32 %v1072_v6, %v910_v10  ;;  %v1583_v10 = vld [vmem:[#allocation10 + $0x50] sm:$0xff] }
 0x39d   :  { %v7503_v13 = vpack.c.bf16 %v1199_v9, %v1197_v8  ;;  %v10392_v8 = vpack.c.bf16 %v1584_v5, %v1582_v4  ;;  %v1581_v9 = vld [vmem:[#allocation10 + $0x40] sm:$0xff]  ;;  %v1770_v5 = vld [vmem:[#allocation10 + $0x2d0] sm:$0xff] }
 0x39e   :  { %v7501_v14 = vpack.c.bf16 %v1200_v12, %v1198_v11  ;;  %v914_v15 = vpop.f32.mrb[120].mxu0  ;;  %7600 = vmatpush1.bf16.xpose.msra.mxu1 %v10386_v61  ;;  %v1211_v12 = vld [vmem:[#allocation9 + $0x10] sm:$0xff] }
 0x39f   :  { %v916_v16 = vpop.f32.mrb[121].mxu0  ;;  %v1201_v22 = vmul.f32 %v1073_v17, %v914_v15  ;;  %12777 = vst [vmem:[#allocation27_spill] sm:$0xff] %v10392_v8  ;;  %7602 = vmatprep.subr.bf16.mxu1 %v10392_v8 }
 0x3a0   :  { %7502 = vmatprep.subr.bf16.mxu0 %v7501_v14  ;;  %v1202_v25 = vmul.f32 %v1074_v19, %v916_v16  ;;  %v10396_v14 = vpack.c.bf16 %v1583_v10, %v1581_v9  ;;  %v1212_v16 = vld [vmem:[#allocation9 + $0x18] sm:$0xff]  ;;  %v1590_v10 = vld [vmem:[#allocation10 + $0x88] sm:$0xff] }
 0x3a1   :  { %7504 = vmatpush1.bf16.msra.mxu0 %v7503_v13 }
 0x3a2   :  { %v920_v21 = vpop.f32.mrb[122].mxu0  ;;  %12779 = vst [vmem:[#allocation29_spill] sm:$0xff] %v10396_v14 }
 0x3a3   :  { %v1203_v23 = vmul.f32 %v1075_v18, %v920_v21  ;;  %v922_v24 = vpop.f32.mrb[123].mxu0 }
 0x3a4   :  { %v1204_v26 = vmul.f32 %v1076_v20, %v922_v24 }
 0x3a5   :  { %v7507_v27 = vpack.c.bf16 %v1203_v23, %v1201_v22  ;;  %v1213_v23 = vld [vmem:[#allocation9 + $0x20] sm:$0xff] }
 0x3a6   :  { %v7505_v28 = vpack.c.bf16 %v1204_v26, %v1202_v25  ;;  %v926_v29 = vpop.f32.mrb[124].mxu0  ;;  %7604 = vmatpush1.bf16.xpose.msra.mxu1 %v10396_v14  ;;  %v2636_v14 = vld [vmem:[#allocation10 + $0x838] sm:$0xff] }
 0x3a7   :  { %v928_v30 = vpop.f32.mrb[125].mxu0  ;;  %v1205_v36 = vmul.f32 %v1077_v31, %v926_v29  ;;  %v1402_v62 = vpop.permute.xlu0 %1401 }
 0x3a8   :  { %7506 = vmatprep.subr.bf16.mxu0 %v7505_v28  ;;  %v1206_v39 = vmul.f32 %v1078_v33, %v928_v30  ;;  %v1434_v1 = vpop.permute.xlu1 %1433  ;;  %v1586_v33 = vld [vmem:[#allocation10 + $0x68] sm:$0xff] }
 0x3a9   :  { %7508 = vmatpush1.bf16.msra.mxu0 %v7507_v27  ;;  %v1214_v27 = vld [vmem:[#allocation9 + $0x28] sm:$0xff] }
 0x3aa   :  { %v932_v35 = vpop.f32.mrb[126].mxu0 }
 0x3ab   :  { %v1207_v37 = vmul.f32 %v1079_v32, %v932_v35  ;;  %v934_v38 = vpop.f32.mrb[127].mxu0  ;;  %v1407_v13 = vpop.permute.xlu0 %1406 }
 0x3ac   :  { %v1208_v40 = vmul.f32 %v1080_v34, %v934_v38  ;;  %v1439_v19 = vpop.permute.xlu1 %1438  ;;  %v1588_v34 = vld [vmem:[#allocation10 + $0x78] sm:$0xff] }
 0x3ad   :  { %v7511_v41 = vpack.c.bf16 %v1207_v37, %v1205_v36  ;;  %v10414_v38 = vpack.c.bf16 %v1588_v34, %v1586_v33  ;;  %v1593_v34 = vld [vmem:[#allocation10 + $0xa0] sm:$0xff] }
 0x3ae   :  { %v7509_v42 = vpack.c.bf16 %v1208_v40, %v1206_v39  ;;  %v1585_v39 = vld [vmem:[#allocation10 + $0x60] sm:$0xff]  ;;  %v1587_v40 = vld [vmem:[#allocation10 + $0x70] sm:$0xff] }
 0x3af   :  { %v1412_v32 = vpop.permute.xlu0 %1411  ;;  %12783 = vst [vmem:[#allocation33_spill] sm:$0xff] %v10414_v38  ;;  %7606 = vmatprep.subr.bf16.mxu1 %v10414_v38 }
 0x3b0   :  { %7510 = vmatprep.subr.bf16.mxu0 %v7509_v42 }
 0x3b1   :  { %7512 = vmatpush1.bf16.msra.mxu0 %v7511_v41 }
 0x3b4   :  { %1371 = vmatmul.mubr.f32.vlgmr.msra.gmra.mrb[128].mxu0 %v939_v43  ;;  %v1215_v43 = vld [vmem:[#allocation9 + $0x30] sm:$0xff] }
 0x3b5   :  { %1376 = vmatprep.mubr.f32.mxu0 %v944_v44  ;;  %v1417_v44 = vpop.permute.xlu1 %1416 }
 0x3b8   :  { %1377 = vmatmul.mubr.f32.gmra.mrb[130].mxu0 %v943_v45  ;;  %v10418_v45 = vpack.c.bf16 %v1587_v40, %v1585_v39  ;;  %v1745_v39 = vld [vmem:[#allocation10 + $0x208] sm:$0xff]  ;;  %v1747_v40 = vld [vmem:[#allocation10 + $0x218] sm:$0xff] }
 0x3b9   :  { %1382 = vmatprep.mubr.f32.mxu0 %v948_v46 }
 0x3ba   :  { %12785 = vst [vmem:[#allocation35_spill] sm:$0xff] %v10418_v45  ;;  %7608 = vmatpush1.bf16.xpose.msra.mxu1 %v10418_v45  ;;  %v2376_v45 = vld [vmem:[#allocation10 + $0x678] sm:$0xff] }
 0x3bc   :  { %1383 = vmatmul.mubr.f32.gmra.mrb[132].mxu0 %v947_v47 }
 0x3bd   :  { %1388 = vmatprep.mubr.f32.mxu0 %v952_v48 }
 0x3c0   :  { %1389 = vmatmul.mubr.f32.gmra.mrb[134].mxu0 %v951_v49  ;;  %v1216_v49 = vld [vmem:[#allocation9 + $0x38] sm:$0xff] }
 0x3c1   :  { %1548 = vmatprep.mubr.f32.mxu0 %v12256_v0 }
 0x487   :  { %v1372_v3 = vpop.f32.mrb[128].mxu0 }
 0x488   :  { %v10390_v6 = vadd.f32 %v1372_v3, %v1209_v63  ;;  %v1374_v7 = vpop.f32.mrb[129].mxu0  ;;  %v1444_v63 = vpop.permute.xlu0 %1443 }
 0x489   :  { %v10394_v11 = vadd.f32 %v1374_v7, %v1210_v2  ;;  %v1449_v7 = vpop.permute.xlu1 %1448 }
 0x48a   :  { %12776 = vst [vmem:[#allocation26_spill] sm:$0xff] %v10390_v6  ;;  %v1419_v15 = vmul.f32 %v10390_v6, %v1402_v62  ;;  %v1778_v6 = vld [vmem:[#allocation10 + $0x310] sm:$0xff] }
 0x48b   :  { %12778 = vst [vmem:[#allocation28_spill] sm:$0xff] %v10394_v11  ;;  %v1420_v17 = vmul.f32 %v10394_v11, %v1402_v62  ;;  %v1378_v18 = vpop.f32.mrb[130].mxu0 }
 0x48c   :  { %v10402_v20 = vadd.f32 %v1378_v18, %v1211_v12  ;;  %v1380_v21 = vpop.f32.mrb[131].mxu0  ;;  %v1451_v24 = vadd.f32 %v1434_v1, %v1419_v15  ;;  %v1592_v12 = vld [vmem:[#allocation10 + $0x98] sm:$0xff] }
 0x48d   :  { %v10404_v22 = vadd.f32 %v1380_v21, %v1212_v16  ;;  %v1452_v28 = vadd.f32 %v1434_v1, %v1420_v17  ;;  %v10440_v15 = vpack.c.bf16 %v1592_v12, %v1590_v10  ;;  %v1589_v16 = vld [vmem:[#allocation10 + $0x80] sm:$0xff]  ;;  %v1591_v17 = vld [vmem:[#allocation10 + $0x90] sm:$0xff]  ;;  %v1606_v12 = vld [vmem:[#allocation10 + $0x108] sm:$0xff] }
 0x48e   :  { %12780 = vst [vmem:[#allocation30_spill] sm:$0xff] %v10402_v20  ;;  %v1421_v26 = vmul.f32 %v10402_v20, %v1407_v13  ;;  %v1459_v46 = vmax.f32 %v1451_v24, 0.0  ;;  %v1603_v10 = vld [vmem:[#allocation10 + $0xf0] sm:$0xff]  ;;  %v1768_v1 = vld [vmem:[#allocation10 + $0x2c0] sm:$0xff] }
 0x48f   :  { %12781 = vst [vmem:[#allocation31_spill] sm:$0xff] %v10404_v22  ;;  %v1422_v30 = vmul.f32 %v10404_v22, %v1407_v13  ;;  %v1384_v31 = vpop.f32.mrb[132].mxu0  ;;  %v1460_v50 = vmax.f32 %v1452_v28, 0.0  ;;  %12788 = vst [vmem:[#allocation38_spill] sm:$0xff] %v10440_v15  ;;  %7610 = vmatprep.subr.bf16.mxu1 %v10440_v15  ;;  %v10558_v25 = vpack.c.bf16 %v1770_v5, %v1768_v1  ;;  %v1777_v1 = vld [vmem:[#allocation10 + $0x308] sm:$0xff]  ;;  %v1779_v5 = vld [vmem:[#allocation10 + $0x318] sm:$0xff] }
 0x490   :  { %v1453_v35 = vadd.f32 %v1439_v19, %v1421_v26  ;;  %v10412_v36 = vadd.f32 %v1384_v31, %v1213_v23  ;;  %v1386_v37 = vpop.f32.mrb[133].mxu0  ;;  %v1596_v31 = vld [vmem:[#allocation10 + $0xb8] sm:$0xff]  ;;  %v1780_v22 = vld [vmem:[#allocation10 + $0x320] sm:$0xff] }
 0x491   :  { %v1454_v41 = vadd.f32 %v1439_v19, %v1422_v30  ;;  %v10416_v42 = vadd.f32 %v1386_v37, %v1214_v27  ;;  %v10442_v19 = vpack.c.bf16 %v1591_v17, %v1589_v16  ;;  %v1594_v30 = vld [vmem:[#allocation10 + $0xa8] sm:$0xff]  ;;  %v1638_v17 = vld [vmem:[#allocation12 + $0x20] sm:$0xff] }
 0x492   :  { %12782 = vst [vmem:[#allocation32_spill] sm:$0xff] %v10412_v36  ;;  %v1461_v47 = vmax.f32 %v1453_v35, 0.0  ;;  %v1423_v48 = vmul.f32 %v10412_v36, %v1412_v32  ;;  %v10452_v33 = vpack.c.bf16 %v1596_v31, %v1594_v30  ;;  %v1595_v35 = vld [vmem:[#allocation10 + $0xb0] sm:$0xff]  ;;  %v1748_v31 = vld [vmem:[#allocation10 + $0x220] sm:$0xff] }
 0x493   :  { %12784 = vst [vmem:[#allocation34_spill] sm:$0xff] %v10416_v42  ;;  %v1462_v51 = vmax.f32 %v1454_v41, 0.0  ;;  %v1390_v53 = vpop.f32.mrb[134].mxu0  ;;  %v1424_v54 = vmul.f32 %v10416_v42, %v1412_v32  ;;  %12789 = vst [vmem:[#allocation39_spill] sm:$0xff] %v10442_v19  ;;  %7612 = vmatpush1.bf16.xpose.msra.mxu1 %v10442_v19  ;;  %v1467_v32 = vld [vmem:[#allocation12] sm:$0xff]  ;;  %v10455_v37 = vpack.c.bf16 %v1595_v35, %v1593_v34  ;;  %v1468_v41 = vld [vmem:[#allocation12 + $0x8] sm:$0xff] }
 0x494   :  { %v10424_v56 = vpack.c.bf16 %v1461_v47, %v1459_v46  ;;  %v10426_v57 = vadd.f32 %v1390_v53, %v1215_v43  ;;  %v1392_v59 = vpop.f32.mrb[135].mxu0  ;;  %v1455_v3 = vadd.f32 %v1444_v63, %v1423_v48  ;;  %12790 = vst [vmem:[#allocation40_spill] sm:$0xff] %v10452_v33  ;;  %7614 = vmatprep.subr.bf16.mxu1 %v10452_v33  ;;  %v1600_v46 = vld [vmem:[#allocation10 + $0xd8] sm:$0xff]  ;;  %v1469_v47 = vld [vmem:[#allocation12 + $0x10] sm:$0xff]  ;;  %v1753_v34 = vld [vmem:[#allocation10 + $0x248] sm:$0xff] }
 0x495   :  { %v10428_v60 = vpack.c.bf16 %v1462_v51, %v1460_v50  ;;  %v10430_v62 = vadd.f32 %v1392_v59, %v1216_v49  ;;  %v1456_v9 = vadd.f32 %v1444_v63, %v1424_v54  ;;  %12791 = vst [vmem:[#allocation41_spill] sm:$0xff] %v10455_v37  ;;  %v10463_v43 = vpack.c.bf16 %v1747_v40, %v1745_v39  ;;  %v1597_v49 = vld [vmem:[#allocation10 + $0xc0] sm:$0xff]  ;;  %v1599_v50 = vld [vmem:[#allocation10 + $0xd0] sm:$0xff]  ;;  %v1470_v53 = vld [vmem:[#allocation12 + $0x18] sm:$0xff] }
 0x496   :  { %12786 = vst [vmem:[#allocation36_spill] sm:$0xff] %v10426_v57  ;;  %v1425_v2 = vmul.f32 %v10426_v57, %v1417_v44  ;;  %v1463_v23 = vmax.f32 %v1455_v3, 0.0  ;;  %v10471_v51 = vpack.c.bf16 %v1599_v50, %v1597_v49  ;;  %v1744_v54 = vld [vmem:[#allocation10 + $0x200] sm:$0xff]  ;;  %v1746_v59 = vld [vmem:[#allocation10 + $0x210] sm:$0xff]  ;;  %v1749_v63 = vld [vmem:[#allocation10 + $0x228] sm:$0xff] }
 0x497   :  { %12787 = vst [vmem:[#allocation37_spill] sm:$0xff] %v10430_v62  ;;  %v1426_v4 = vmul.f32 %v10430_v62, %v1417_v44  ;;  %7514 = vmatprep.subr.bf16.mxu0 %v10428_v60  ;;  %v1464_v26 = vmax.f32 %v1456_v9, 0.0  ;;  %v1598_v44 = vld [vmem:[#allocation10 + $0xc8] sm:$0xff]  ;;  %v1607_v30 = vld [vmem:[#allocation10 + $0x110] sm:$0xff]  ;;  %v1755_v35 = vld [vmem:[#allocation10 + $0x258] sm:$0xff] }
 0x498   :  { %v1457_v13 = vadd.f32 %v1449_v7, %v1425_v2  ;;  %7516 = vmatpush1.bf16.msra.mxu0 %v10424_v56  ;;  %v10468_v48 = vpack.c.bf16 %v1600_v46, %v1598_v44  ;;  %12793 = vst [vmem:[#allocation43_spill] sm:$0xff] %v10471_v51  ;;  %v1751_v2 = vld [vmem:[#allocation10 + $0x238] sm:$0xff]  ;;  %v1602_v3 = vld [vmem:[#allocation10 + $0xe8] sm:$0xff]  ;;  %v1640_v40 = vld [vmem:[#allocation12 + $0x30] sm:$0xff]  ;;  %v10502_v44 = vpack.c.bf16 %v1755_v35, %v1753_v34 }
 0x499   :  { %v1458_v18 = vadd.f32 %v1449_v7, %v1426_v4  ;;  %v1604_v4 = vld [vmem:[#allocation10 + $0xf8] sm:$0xff]  ;;  %v1601_v7 = vld [vmem:[#allocation10 + $0xe0] sm:$0xff]  ;;  %v1754_v49 = vld [vmem:[#allocation10 + $0x250] sm:$0xff] }
 0x49a   :  { %v1465_v21 = vmax.f32 %v1457_v13, 0.0  ;;  %12792 = vst [vmem:[#allocation42_spill] sm:$0xff] %v10468_v48  ;;  %v10477_v9 = vpack.c.bf16 %v1604_v4, %v1602_v3  ;;  %v1608_v13 = vld [vmem:[#allocation10 + $0x118] sm:$0xff]  ;;  %v10480_v16 = vpack.c.bf16 %v1603_v10, %v1601_v7  ;;  %v1757_v50 = vld [vmem:[#allocation10 + $0x268] sm:$0xff]  ;;  %v1609_v3 = vld [vmem:[#allocation10 + $0x120] sm:$0xff] }
 0x49b   :  { %v1466_v24 = vmax.f32 %v1458_v18, 0.0  ;;  %7616 = vmatpush1.bf16.xpose.msra.mxu1 %v10455_v37  ;;  %v10483_v18 = vpack.c.bf16 %v1746_v59, %v1744_v54  ;;  %v1641_v46 = vld [vmem:[#allocation12 + $0x38] sm:$0xff]  ;;  %v1610_v54 = vld [vmem:[#allocation10 + $0x128] sm:$0xff]  ;;  %v1611_v4 = vld [vmem:[#allocation10 + $0x130] sm:$0xff] }
 0x49c   :  { %v10446_v27 = vpack.c.bf16 %v1465_v21, %v1463_v23  ;;  %7618 = vmatprep.subr.bf16.mxu1 %v10468_v48  ;;  %12794 = vst [vmem:[#allocation44_spill] sm:$0xff] %v10477_v9  ;;  %12795 = vst [vmem:[#allocation45_spill] sm:$0xff] %v10480_v16  ;;  %v10486_v21 = vpack.c.bf16 %v1751_v2, %v1749_v63  ;;  %v10488_v23 = vpack.c.bf16 %v1608_v13, %v1606_v12  ;;  %v1612_v59 = vld [vmem:[#allocation10 + $0x138] sm:$0xff]  ;;  %v1756_v12 = vld [vmem:[#allocation10 + $0x260] sm:$0xff] }
 0x49d   :  { %v10448_v28 = vpack.c.bf16 %v1466_v24, %v1464_v26  ;;  %v1639_v24 = vld [vmem:[#allocation12 + $0x28] sm:$0xff]  ;;  %v1605_v26 = vld [vmem:[#allocation10 + $0x100] sm:$0xff]  ;;  %v10512_v2 = vpack.c.bf16 %v1612_v59, %v1610_v54  ;;  %v10516_v10 = vpack.c.bf16 %v1611_v4, %v1609_v3  ;;  %v1758_v13 = vld [vmem:[#allocation10 + $0x270] sm:$0xff] }
 0x49e   :  { %12796 = vst [vmem:[#allocation46_spill] sm:$0xff] %v10488_v23  ;;  %v10497_v39 = vpack.c.bf16 %v1607_v30, %v1605_v26  ;;  %v1614_v26 = vld [vmem:[#allocation10 + $0x148] sm:$0xff]  ;;  %v1616_v30 = vld [vmem:[#allocation10 + $0x158] sm:$0xff]  ;;  %v1613_v34 = vld [vmem:[#allocation10 + $0x140] sm:$0xff] }
 0x49f   :  { %7518 = vmatprep.subr.bf16.mxu0 %v10448_v28  ;;  %12798 = vst [vmem:[#allocation48_spill] sm:$0xff] %v10512_v2  ;;  %12799 = vst [vmem:[#allocation49_spill] sm:$0xff] %v10516_v10  ;;  %v1615_v35 = vld [vmem:[#allocation10 + $0x150] sm:$0xff]  ;;  %v1618_v54 = vld [vmem:[#allocation10 + $0x168] sm:$0xff] }
 0x4a0   :  { %7520 = vmatpush1.bf16.msra.mxu0 %v10446_v27  ;;  %12797 = vst [vmem:[#allocation47_spill] sm:$0xff] %v10497_v39  ;;  %v1620_v59 = vld [vmem:[#allocation10 + $0x178] sm:$0xff]  ;;  %v1774_v36 = vld [vmem:[#allocation10 + $0x2f0] sm:$0xff]  ;;  %v1776_v62 = vld [vmem:[#allocation10 + $0x300] sm:$0xff] }
 0x4a1   :  { %7522 = vmatprep.subr.bf16.mxu0 %v10428_v60  ;;  %v10536_v4 = vpack.c.bf16 %v1620_v59, %v1618_v54  ;;  %v1623_v59 = vld [vmem:[#allocation10 + $0x190] sm:$0xff]  ;;  %v10582_v20 = vpack.c.bf16 %v1778_v6, %v1776_v62  ;;  %v1785_v6 = vld [vmem:[#allocation10 + $0x348] sm:$0xff]  ;;  %v1787_v62 = vld [vmem:[#allocation10 + $0x358] sm:$0xff] }
 0x4a2   :  { %v2367_v48 = vld [vmem:[#allocation10 + $0x630] sm:$0xff]  ;;  %v2370_v33 = vld [vmem:[#allocation10 + $0x648] sm:$0xff]  ;;  %v2372_v19 = vld [vmem:[#allocation10 + $0x658] sm:$0xff] }
 0x4a3   :  { %7268 = vmatmul.mubr.msk.f32.vlgmr.msra.gmra.mrb[136].mxu0 %vm1471_vm2, %v1467_v32  ;;  %7620 = vmatpush1.bf16.xpose.msra.mxu1 %v10471_v51  ;;  %v1750_v32 = vld [vmem:[#allocation10 + $0x230] sm:$0xff]  ;;  %12802 = vst [vmem:[#allocation52_spill] sm:$0xff] %v10536_v4 }
 0x4a4   :  { %7524 = vmatpush1.bf16.msra.mxu0 %v10424_v56  ;;  %1554 = vmatprep.mubr.f32.mxu0 %v12256_v0 }
 0x4a5   :  { %7526 = vmatprep.subr.bf16.mxu0 %v10448_v28  ;;  %7622 = vmatprep.subr.bf16.mxu1 %v10477_v9  ;;  %v2104_v9 = vld [vmem:[#allocation10 + $0x458] sm:$0xff] }
 0x4a7   :  { %7269 = vmatmul.mubr.msk.f32.gmra.mrb[138].mxu0 %vm1471_vm2, %v1468_v41  ;;  %v10500_v41 = vpack.c.bf16 %v1750_v32, %v1748_v31  ;;  %v10522_v31 = vpack.c.bf16 %v1758_v13, %v1756_v12  ;;  %v10524_v32 = vpack.c.bf16 %v1616_v30, %v1614_v26  ;;  %v1617_v12 = vld [vmem:[#allocation10 + $0x160] sm:$0xff]  ;;  %v1619_v13 = vld [vmem:[#allocation10 + $0x170] sm:$0xff] }
 0x4a8   :  { %1560 = vmatprep.mubr.f32.mxu0 %v12256_v0  ;;  %7528 = vmatpush1.bf16.msra.mxu0 %v10446_v27  ;;  %v1764_v26 = vld [vmem:[#allocation10 + $0x2a0] sm:$0xff]  ;;  %v1766_v30 = vld [vmem:[#allocation10 + $0x2b0] sm:$0xff] }
 0x4a9   :  { %7530 = vmatprep.subr.bf16.mxu0 %v10463_v43  ;;  %12800 = vst [vmem:[#allocation50_spill] sm:$0xff] %v10524_v32  ;;  %v10546_v54 = vpack.c.bf16 %v1766_v30, %v1764_v26  ;;  %v1773_v26 = vld [vmem:[#allocation10 + $0x2e8] sm:$0xff]  ;;  %v1775_v30 = vld [vmem:[#allocation10 + $0x2f8] sm:$0xff] }
 0x4ab   :  { %7270 = vmatmul.mubr.msk.f32.gmra.mrb[140].mxu0 %vm1471_vm2, %v1469_v47  ;;  %7624 = vmatpush1.bf16.xpose.msra.mxu1 %v10480_v16  ;;  %v1752_v47 = vld [vmem:[#allocation10 + $0x240] sm:$0xff] }
 0x4ac   :  { %1566 = vmatprep.mubr.f32.mxu0 %v12256_v0  ;;  %7626 = vmatprep.subr.bf16.mxu1 %v10488_v23  ;;  %v10510_v63 = vpack.c.bf16 %v1754_v49, %v1752_v47  ;;  %v1760_v47 = vld [vmem:[#allocation10 + $0x280] sm:$0xff]  ;;  %v1762_v49 = vld [vmem:[#allocation10 + $0x290] sm:$0xff] }
 0x4ad   :  { %v10534_v3 = vpack.c.bf16 %v1762_v49, %v1760_v47  ;;  %v1622_v47 = vld [vmem:[#allocation10 + $0x188] sm:$0xff]  ;;  %v1624_v49 = vld [vmem:[#allocation10 + $0x198] sm:$0xff] }
 0x4af   :  { %7271 = vmatmul.mubr.msk.f32.gmra.mrb[142].mxu0 %vm1471_vm2, %v1470_v53  ;;  %v1759_v53 = vld [vmem:[#allocation10 + $0x278] sm:$0xff] }
 0x4b0   :  { %1718 = vmatprep.mubr.f32.mxu0 %v12256_v0  ;;  %v10514_v7 = vpack.c.bf16 %v1759_v53, %v1757_v50  ;;  %v1765_v50 = vld [vmem:[#allocation10 + $0x2a8] sm:$0xff]  ;;  %v1767_v53 = vld [vmem:[#allocation10 + $0x2b8] sm:$0xff] }
 0x4b3   :  { %7272 = vmatmul.mubr.msk.f32.vlgmr.msra.gmra.mrb[144].mxu0 %vm1471_vm2, %v1638_v17  ;;  %7628 = vmatpush1.bf16.xpose.msra.mxu1 %v10497_v39  ;;  %v1761_v17 = vld [vmem:[#allocation10 + $0x288] sm:$0xff] }
 0x4b4   :  { %7532 = vmatpush1.bf16.xpose.msra.mxu0 %v10483_v18  ;;  %1724 = vmatprep.mubr.f32.mxu0 %v12256_v0 }
 0x4b5   :  { %7534 = vmatprep.subr.bf16.mxu0 %v10486_v21  ;;  %7630 = vmatprep.subr.bf16.mxu1 %v10512_v2 }
 0x4b7   :  { %7273 = vmatmul.mubr.msk.f32.gmra.mrb[146].mxu0 %vm1471_vm2, %v1639_v24  ;;  %v1763_v24 = vld [vmem:[#allocation10 + $0x298] sm:$0xff] }
 0x4b8   :  { %1730 = vmatprep.mubr.f32.mxu0 %v12256_v0 }
 0x4bb   :  { %7274 = vmatmul.mubr.msk.f32.gmra.mrb[148].mxu0 %vm1471_vm2, %v1640_v40  ;;  %7632 = vmatpush1.bf16.xpose.msra.mxu1 %v10516_v10  ;;  %v10526_v40 = vpack.c.bf16 %v1763_v24, %v1761_v17  ;;  %v10538_v17 = vpack.c.bf16 %v1767_v53, %v1765_v50  ;;  %v10540_v24 = vpack.c.bf16 %v1619_v13, %v1617_v12  ;;  %v1621_v53 = vld [vmem:[#allocation10 + $0x180] sm:$0xff] }
 0x4bc   :  { %7536 = vmatpush1.bf16.xpose.msra.mxu0 %v10500_v41  ;;  %1736 = vmatprep.mubr.f32.mxu0 %v12256_v0  ;;  %v10548_v50 = vpack.c.bf16 %v1624_v49, %v1622_v47  ;;  %v10552_v13 = vpack.c.bf16 %v1623_v59, %v1621_v53  ;;  %v1626_v47 = vld [vmem:[#allocation10 + $0x1a8] sm:$0xff]  ;;  %v1628_v49 = vld [vmem:[#allocation10 + $0x1b8] sm:$0xff]  ;;  %v1627_v53 = vld [vmem:[#allocation10 + $0x1b0] sm:$0xff]  ;;  %v10562_v59 = vpack.c.bf16 %v1775_v30, %v1773_v26 }
 0x4bd   :  { %7538 = vmatprep.subr.bf16.mxu0 %v10502_v44  ;;  %7634 = vmatprep.subr.bf16.mxu1 %v10524_v32  ;;  %12803 = vst [vmem:[#allocation53_spill] sm:$0xff] %v10540_v24  ;;  %v1772_v0 = vld [vmem:[#allocation10 + $0x2e0] sm:$0xff]  ;;  %v2096_v32 = vld [vmem:[#allocation10 + $0x418] sm:$0xff] }
 0x4be   :  { %12804 = vst [vmem:[#allocation54_spill] sm:$0xff] %v10548_v50  ;;  %12805 = vst [vmem:[#allocation55_spill] sm:$0xff] %v10552_v13  ;;  %v10570_v57 = vpack.c.bf16 %v1774_v36, %v1772_v0  ;;  %v1629_v30 = vld [vmem:[#allocation10 + $0x1c0] sm:$0xff]  ;;  %v1781_v0 = vld [vmem:[#allocation10 + $0x328] sm:$0xff] }
 0x4bf   :  { %7275 = vmatmul.mubr.msk.f32.gmra.mrb[150].mxu0 %vm1471_vm2, %v1641_v46  ;;  %v10528_v46 = vpack.c.bf16 %v1615_v35, %v1613_v34  ;;  %v1769_v34 = vld [vmem:[#allocation10 + $0x2c8] sm:$0xff]  ;;  %v1771_v35 = vld [vmem:[#allocation10 + $0x2d8] sm:$0xff] }
 0x4c0   :  { %v10550_v12 = vpack.c.bf16 %v1771_v35, %v1769_v34  ;;  %v10560_v34 = vpack.c.bf16 %v1628_v49, %v1626_v47  ;;  %v1625_v35 = vld [vmem:[#allocation10 + $0x1a0] sm:$0xff]  ;;  %v1630_v47 = vld [vmem:[#allocation10 + $0x1c8] sm:$0xff]  ;;  %v1632_v49 = vld [vmem:[#allocation10 + $0x1d8] sm:$0xff] }
 0x4c1   :  { %12801 = vst [vmem:[#allocation51_spill] sm:$0xff] %v10528_v46  ;;  %v10564_v29 = vpack.c.bf16 %v1627_v53, %v1625_v35  ;;  %v10572_v26 = vpack.c.bf16 %v1632_v49, %v1630_v47  ;;  %v1631_v35 = vld [vmem:[#allocation10 + $0x1d0] sm:$0xff]  ;;  %v10574_v53 = vpack.c.bf16 %v1779_v5, %v1777_v1  ;;  %v1783_v36 = vld [vmem:[#allocation10 + $0x338] sm:$0xff]  ;;  %v1634_v47 = vld [vmem:[#allocation10 + $0x1e8] sm:$0xff] }
 0x4c2   :  { %12806 = vst [vmem:[#allocation56_spill] sm:$0xff] %v10560_v34  ;;  %v10576_v42 = vpack.c.bf16 %v1631_v35, %v1629_v30  ;;  %v1636_v49 = vld [vmem:[#allocation10 + $0x1f8] sm:$0xff]  ;;  %v1633_v5 = vld [vmem:[#allocation10 + $0x1e0] sm:$0xff]  ;;  %v1635_v30 = vld [vmem:[#allocation10 + $0x1f0] sm:$0xff]  ;;  %v10586_v35 = vpack.c.bf16 %v1783_v36, %v1781_v0 }
 0x4c3   :  { %7636 = vmatpush1.bf16.xpose.msra.mxu1 %v10528_v46  ;;  %12807 = vst [vmem:[#allocation57_spill] sm:$0xff] %v10564_v29  ;;  %12808 = vst [vmem:[#allocation58_spill] sm:$0xff] %v10572_v26  ;;  %v10584_v1 = vpack.c.bf16 %v1636_v49, %v1634_v47  ;;  %v10588_v11 = vpack.c.bf16 %v1635_v30, %v1633_v5  ;;  %v10596_v49 = vpack.c.bf16 %v1787_v62, %v1785_v6  ;;  %v1784_v0 = vld [vmem:[#allocation10 + $0x340] sm:$0xff]  ;;  %v1786_v36 = vld [vmem:[#allocation10 + $0x350] sm:$0xff] }
 0x4c4   :  { %7540 = vmatpush1.bf16.xpose.msra.mxu0 %v10510_v63  ;;  %7638 = vmatprep.subr.bf16.mxu1 %v10536_v4  ;;  %12809 = vst [vmem:[#allocation59_spill] sm:$0xff] %v10576_v42  ;;  %v1789_v5 = vld [vmem:[#allocation10 + $0x368] sm:$0xff]  ;;  %v1791_v30 = vld [vmem:[#allocation10 + $0x378] sm:$0xff] }
 0x4c5   :  { %7542 = vmatprep.subr.bf16.mxu0 %v10514_v7  ;;  %12810 = vst [vmem:[#allocation60_spill] sm:$0xff] %v10584_v1  ;;  %12811 = vst [vmem:[#allocation61_spill] sm:$0xff] %v10588_v11  ;;  %v1793_v6 = vld [vmem:[#allocation10 + $0x388] sm:$0xff]  ;;  %v1795_v62 = vld [vmem:[#allocation10 + $0x398] sm:$0xff] }
 0x4cb   :  { %7640 = vmatpush1.bf16.xpose.msra.mxu1 %v10540_v24 }
 0x4cc   :  { %7544 = vmatpush1.bf16.xpose.msra.mxu0 %v10522_v31  ;;  %7642 = vmatprep.subr.bf16.mxu1 %v10548_v50 }
 0x4cd   :  { %7546 = vmatprep.subr.bf16.mxu0 %v10526_v40 }
 0x4d3   :  { %7644 = vmatpush1.bf16.xpose.msra.mxu1 %v10552_v13 }
 0x4d4   :  { %7548 = vmatpush1.bf16.xpose.msra.mxu0 %v10534_v3  ;;  %7646 = vmatprep.subr.bf16.mxu1 %v10560_v34 }
 0x4d5   :  { %7550 = vmatprep.subr.bf16.mxu0 %v10538_v17 }
 0x4db   :  { %7648 = vmatpush1.bf16.xpose.msra.mxu1 %v10564_v29  ;;  %v10608_v29 = vpack.c.bf16 %v1795_v62, %v1793_v6  ;;  %v1801_v6 = vld [vmem:[#allocation10 + $0x3c8] sm:$0xff]  ;;  %v1803_v62 = vld [vmem:[#allocation10 + $0x3d8] sm:$0xff] }
 0x4dc   :  { %7552 = vmatpush1.bf16.xpose.msra.mxu0 %v10546_v54  ;;  %7650 = vmatprep.subr.bf16.mxu1 %v10572_v26  ;;  %v10620_v24 = vpack.c.bf16 %v1803_v62, %v1801_v6  ;;  %v2094_v62 = vld [vmem:[#allocation10 + $0x408] sm:$0xff] }
 0x4dd   :  { %7554 = vmatprep.subr.bf16.mxu0 %v10550_v12  ;;  %v10634_v10 = vpack.c.bf16 %v2096_v32, %v2094_v62  ;;  %v2097_v32 = vld [vmem:[#allocation10 + $0x420] sm:$0xff]  ;;  %v2099_v62 = vld [vmem:[#allocation10 + $0x430] sm:$0xff] }
 0x4df   :  { %12812 = vst [vmem:[#allocation62_spill] sm:$0xff] %v10634_v10 }
 0x4e3   :  { %7652 = vmatpush1.bf16.xpose.msra.mxu1 %v10576_v42  ;;  %v1782_v42 = vld [vmem:[#allocation10 + $0x330] sm:$0xff] }
 0x4e4   :  { %7556 = vmatpush1.bf16.xpose.msra.mxu0 %v10558_v25  ;;  %7654 = vmatprep.subr.bf16.mxu1 %v10584_v1  ;;  %v10594_v47 = vpack.c.bf16 %v1782_v42, %v1780_v22  ;;  %v10602_v1 = vpack.c.bf16 %v1791_v30, %v1789_v5  ;;  %v1788_v22 = vld [vmem:[#allocation10 + $0x360] sm:$0xff]  ;;  %v1790_v42 = vld [vmem:[#allocation10 + $0x370] sm:$0xff]  ;;  %v1797_v5 = vld [vmem:[#allocation10 + $0x3a8] sm:$0xff] }
 0x4e5   :  { %7558 = vmatprep.subr.bf16.mxu0 %v10562_v59  ;;  %v10606_v26 = vpack.c.bf16 %v1790_v42, %v1788_v22  ;;  %v1799_v30 = vld [vmem:[#allocation10 + $0x3b8] sm:$0xff]  ;;  %v1796_v22 = vld [vmem:[#allocation10 + $0x3a0] sm:$0xff]  ;;  %v1798_v42 = vld [vmem:[#allocation10 + $0x3b0] sm:$0xff] }
 0x4e6   :  { %v10614_v13 = vpack.c.bf16 %v1799_v30, %v1797_v5  ;;  %v10618_v50 = vpack.c.bf16 %v1798_v42, %v1796_v22  ;;  %v1805_v5 = vld [vmem:[#allocation10 + $0x3e8] sm:$0xff]  ;;  %v1807_v30 = vld [vmem:[#allocation10 + $0x3f8] sm:$0xff]  ;;  %v1804_v22 = vld [vmem:[#allocation10 + $0x3e0] sm:$0xff] }
 0x4e7   :  { %v10626_v46 = vpack.c.bf16 %v1807_v30, %v1805_v5  ;;  %v1806_v42 = vld [vmem:[#allocation10 + $0x3f0] sm:$0xff]  ;;  %v2098_v5 = vld [vmem:[#allocation10 + $0x428] sm:$0xff]  ;;  %v2100_v30 = vld [vmem:[#allocation10 + $0x438] sm:$0xff] }
 0x4e8   :  { %v10630_v6 = vpack.c.bf16 %v1806_v42, %v1804_v22  ;;  %v10639_v22 = vpack.c.bf16 %v2100_v30, %v2098_v5  ;;  %v2101_v30 = vld [vmem:[#allocation10 + $0x440] sm:$0xff] }
 0x4ea   :  { %12814 = vst [vmem:[#allocation64_spill] sm:$0xff] %v10639_v22 }
 0x4eb   :  { %7656 = vmatpush1.bf16.xpose.msra.mxu1 %v10588_v11  ;;  %v10600_v11 = vpack.c.bf16 %v1786_v36, %v1784_v0  ;;  %v1792_v0 = vld [vmem:[#allocation10 + $0x380] sm:$0xff]  ;;  %v1794_v36 = vld [vmem:[#allocation10 + $0x390] sm:$0xff] }
 0x4ec   :  { %7560 = vmatpush1.bf16.xpose.msra.mxu0 %v10570_v57  ;;  %v10612_v34 = vpack.c.bf16 %v1794_v36, %v1792_v0  ;;  %v1800_v0 = vld [vmem:[#allocation10 + $0x3c0] sm:$0xff]  ;;  %v1802_v36 = vld [vmem:[#allocation10 + $0x3d0] sm:$0xff]  ;;  %7666 = vmatprep.subr.bf16.mxu1 %v10634_v10  ;;  %v2102_v10 = vld [vmem:[#allocation10 + $0x448] sm:$0xff] }
 0x4ed   :  { %7562 = vmatprep.subr.bf16.mxu0 %v10574_v53  ;;  %v10624_v4 = vpack.c.bf16 %v1802_v36, %v1800_v0  ;;  %v2093_v0 = vld [vmem:[#allocation10 + $0x400] sm:$0xff]  ;;  %v2095_v36 = vld [vmem:[#allocation10 + $0x410] sm:$0xff]  ;;  %v10645_v5 = vpack.c.bf16 %v2104_v9, %v2102_v10 }
 0x4ee   :  { %v10637_v39 = vpack.c.bf16 %v2095_v36, %v2093_v0  ;;  %v10643_v0 = vpack.c.bf16 %v2099_v62, %v2097_v32 }
 0x4ef   :  { %12816 = vst [vmem:[#allocation66_spill] sm:$0xff] %v10645_v5 }
 0x4f0   :  { %12813 = vst [vmem:[#allocation63_spill] sm:$0xff] %v10637_v39  ;;  %12815 = vst [vmem:[#allocation65_spill] sm:$0xff] %v10643_v0 }
 0x4f4   :  { %7564 = vmatpush1.bf16.xpose.msra.mxu0 %v10582_v20 }
 0x4f5   :  { %7566 = vmatprep.subr.bf16.mxu0 %v10586_v35 }
 0x4fc   :  { %7568 = vmatpush1.bf16.xpose.msra.mxu0 %v10594_v47 }
 0x4fd   :  { %7570 = vmatprep.subr.bf16.mxu0 %v10596_v49 }
 0x504   :  { %7572 = vmatpush1.bf16.xpose.msra.mxu0 %v10600_v11 }
 0x505   :  { %7574 = vmatprep.subr.bf16.mxu0 %v10602_v1 }
 0x50c   :  { %7576 = vmatpush1.bf16.xpose.msra.mxu0 %v10606_v26 }
 0x50d   :  { %7578 = vmatprep.subr.bf16.mxu0 %v10608_v29 }
 0x514   :  { %7580 = vmatpush1.bf16.xpose.msra.mxu0 %v10612_v34 }
 0x515   :  { %7582 = vmatprep.subr.bf16.mxu0 %v10614_v13 }
 0x51c   :  { %7584 = vmatpush1.bf16.xpose.msra.mxu0 %v10618_v50 }
 0x51d   :  { %7586 = vmatprep.subr.bf16.mxu0 %v10620_v24 }
 0x524   :  { %7588 = vmatpush1.bf16.xpose.msra.mxu0 %v10624_v4 }
 0x525   :  { %7590 = vmatprep.subr.bf16.mxu0 %v10626_v46 }
 0x52c   :  { %7592 = vmatpush1.bf16.xpose.msra.mxu0 %v10630_v6 }
 0x52d   :  { %7658 = vmatprep.subr.bf16.mxu0 %v10428_v60 }
 0x576   :  { %v1550_v2 = vpop.f32.mrb[136].mxu0 }
 0x577   :  { %v1552_v23 = vpop.f32.mrb[137].mxu0 }
 0x578   :  { %1961 = vmatprep.mubr.f32.mxu1 %v1552_v23 }
 0x579   :  { %1962 = vmatmul.mubr.f32.vlgmr.msra.gmra.mrb[32].mxu1 %v1550_v2 }
 0x57a   :  { %v1556_v42 = vpop.f32.mrb[138].mxu0  ;;  %7668 = vmatpush1.bf16.xpose.msra.mxu1 %v10637_v39  ;;  %v2108_v39 = vld [vmem:[#allocation10 + $0x478] sm:$0xff] }
 0x57b   :  { %v1558_v16 = vpop.f32.mrb[139].mxu0  ;;  %7670 = vmatprep.subr.bf16.mxu1 %v10639_v22  ;;  %v2103_v22 = vld [vmem:[#allocation10 + $0x450] sm:$0xff] }
 0x57c   :  { %1967 = vmatprep.mubr.f32.mxu1 %v1558_v16  ;;  %v2106_v16 = vld [vmem:[#allocation10 + $0x468] sm:$0xff]  ;;  %v10649_v32 = vpack.c.bf16 %v2103_v22, %v2101_v30 }
 0x57d   :  { %1968 = vmatmul.mubr.f32.gmra.mrb[34].mxu1 %v1556_v42  ;;  %v10651_v9 = vpack.c.bf16 %v2108_v39, %v2106_v16  ;;  %v2110_v22 = vld [vmem:[#allocation10 + $0x488] sm:$0xff] }
 0x57e   :  { %v1562_v51 = vpop.f32.mrb[140].mxu0  ;;  %12817 = vst [vmem:[#allocation67_spill] sm:$0xff] %v10649_v32 }
 0x57f   :  { %v1564_v36 = vpop.f32.mrb[141].mxu0  ;;  %12818 = vst [vmem:[#allocation68_spill] sm:$0xff] %v10651_v9 }
 0x580   :  { %1973 = vmatprep.mubr.f32.mxu1 %v1564_v36  ;;  %v2105_v36 = vld [vmem:[#allocation10 + $0x460] sm:$0xff] }
 0x581   :  { %1974 = vmatmul.mubr.f32.gmra.mrb[36].mxu1 %v1562_v51 }
 0x582   :  { %v1568_v23 = vpop.f32.mrb[142].mxu0  ;;  %7672 = vmatpush1.bf16.xpose.msra.mxu1 %v10643_v0 }
 0x583   :  { %v1570_v2 = vpop.f32.mrb[143].mxu0  ;;  %7674 = vmatprep.subr.bf16.mxu1 %v10645_v5  ;;  %v1987_v5 = vld [vmem:[#allocation12 + $0x40] sm:$0xff] }
 0x584   :  { %1979 = vmatprep.mubr.f32.mxu1 %v1570_v2  ;;  %v2112_v2 = vld [vmem:[#allocation10 + $0x498] sm:$0xff] }
 0x585   :  { %1980 = vmatmul.mubr.f32.gmra.mrb[38].mxu1 %v1568_v23  ;;  %v2107_v23 = vld [vmem:[#allocation10 + $0x470] sm:$0xff] }
 0x586   :  { %v1720_v42 = vpop.f32.mrb[144].mxu0  ;;  %v10658_v30 = vpack.c.bf16 %v2107_v23, %v2105_v36  ;;  %v2116_v36 = vld [vmem:[#allocation10 + $0x4b8] sm:$0xff]  ;;  %v12821_v23 = vmov 0.0  }
 0x587   :  { %v1722_v62 = vpop.f32.mrb[145].mxu0 }
 0x588   :  { %1872 = vmatprep.mubr.f32.mxu0 %v1722_v62  ;;  %12819 = vst [vmem:[#allocation69_spill] sm:$0xff] %v10658_v30 }
 0x589   :  { %1873 = vmatmul.mubr.f32.vlgmr.msra.gmra.mrb[152].mxu0 %v1720_v42  ;;  %v10661_v42 = vpack.c.bf16 %v2112_v2, %v2110_v22  ;;  %v1988_v2 = vld [vmem:[#allocation12 + $0x48] sm:$0xff] }
 0x58a   :  { %7660 = vmatpush1.bf16.msra.mxu0 %v10424_v56  ;;  %v1726_v51 = vpop.f32.mrb[146].mxu0  ;;  %7676 = vmatpush1.bf16.xpose.msra.mxu1 %v10649_v32  ;;  %v2114_v32 = vld [vmem:[#allocation10 + $0x4a8] sm:$0xff] }
 0x58b   :  { %7662 = vmatprep.subr.bf16.mxu0 %v10448_v28  ;;  %v1728_v10 = vpop.f32.mrb[147].mxu0  ;;  %7678 = vmatprep.subr.bf16.mxu1 %v10651_v9  ;;  %12820 = vst [vmem:[#allocation70_spill] sm:$0xff] %v10661_v42  ;;  %v10668_v22 = vpack.c.bf16 %v2116_v36, %v2114_v32  ;;  %v2120_v32 = vld [vmem:[#allocation10 + $0x4d8] sm:$0xff]  ;;  %v2117_v36 = vld [vmem:[#allocation10 + $0x4c0] sm:$0xff] }
 0x58c   :  { %1878 = vmatprep.mubr.f32.mxu0 %v1728_v10  ;;  %v2111_v10 = vld [vmem:[#allocation10 + $0x490] sm:$0xff] }
 0x58d   :  { %1879 = vmatmul.mubr.f32.gmra.mrb[154].mxu0 %v1726_v51  ;;  %v2109_v51 = vld [vmem:[#allocation10 + $0x480] sm:$0xff]  ;;  %12823 = vst [vmem:[#allocation72_spill] sm:$0xff] %v10668_v22 }
 0x58e   :  { %7664 = vmatpush1.bf16.msra.mxu0 %v10446_v27  ;;  %v1732_v39 = vpop.f32.mrb[148].mxu0  ;;  %v10666_v0 = vpack.c.bf16 %v2111_v10, %v2109_v51  ;;  %v1990_v10 = vld [vmem:[#allocation12 + $0x58] sm:$0xff] }
 0x58f   :  { %7730 = vmatprep.subr.bf16.mxu0 %v10428_v60  ;;  %v1734_v16 = vpop.f32.mrb[149].mxu0 }
 0x590   :  { %1884 = vmatprep.mubr.f32.mxu0 %v1734_v16  ;;  %12822 = vst [vmem:[#allocation71_spill] sm:$0xff] %v10666_v0  ;;  %v2118_v16 = vld [vmem:[#allocation10 + $0x4c8] sm:$0xff] }
 0x591   :  { %1885 = vmatmul.mubr.f32.gmra.mrb[156].mxu0 %v1732_v39  ;;  %v2115_v39 = vld [vmem:[#allocation10 + $0x4b0] sm:$0xff]  ;;  %v10682_v51 = vpack.c.bf16 %v2120_v32, %v2118_v16  ;;  %v2256_v32 = vld [vmem:[#allocation12 + $0x68] sm:$0xff] }
 0x592   :  { %v1738_v62 = vpop.f32.mrb[150].mxu0  ;;  %7680 = vmatpush1.bf16.xpose.msra.mxu1 %v10658_v30  ;;  %v2365_v30 = vld [vmem:[#allocation10 + $0x620] sm:$0xff] }
 0x593   :  { %v1740_v9 = vpop.f32.mrb[151].mxu0  ;;  %7682 = vmatprep.subr.bf16.mxu1 %v10661_v42  ;;  %12825 = vst [vmem:[#allocation74_spill] sm:$0xff] %v10682_v51  ;;  %v10825_v15 = vpack.c.bf16 %v2367_v48, %v2365_v30  ;;  %v2373_v30 = vld [vmem:[#allocation10 + $0x660] sm:$0xff] }
 0x594   :  { %1890 = vmatprep.mubr.f32.mxu0 %v1740_v9  ;;  %v2113_v9 = vld [vmem:[#allocation10 + $0x4a0] sm:$0xff] }
 0x595   :  { %1891 = vmatmul.mubr.f32.gmra.mrb[158].mxu0 %v1738_v62  ;;  %v10680_v62 = vpack.c.bf16 %v2115_v39, %v2113_v9  ;;  %v2255_v9 = vld [vmem:[#allocation12 + $0x60] sm:$0xff]  ;;  %12848 = vst [vmem:[#allocation97_spill] sm:$0xff] %v10825_v15 }
 0x596   :  { %2067 = vmatprep.mubr.f32.mxu0 %v12821_v23 }
 0x597   :  { %12824 = vst [vmem:[#allocation73_spill] sm:$0xff] %v10680_v62 }
 0x599   :  { %7276 = vmatmul.mubr.msk.f32.vlgmr.msra.gmra.mrb[160].mxu0 %vm1471_vm2, %v1987_v5  ;;  %v1989_v5 = vld [vmem:[#allocation12 + $0x50] sm:$0xff] }
 0x59a   :  { %7732 = vmatpush1.bf16.msra.mxu0 %v10424_v56  ;;  %2073 = vmatprep.mubr.f32.mxu0 %v12821_v23 }
 0x59b   :  { %7734 = vmatprep.subr.bf16.mxu0 %v10448_v28  ;;  %7684 = vmatpush1.bf16.xpose.msra.mxu1 %v10666_v0  ;;  %v2124_v0 = vld [vmem:[#allocation10 + $0x4f8] sm:$0xff] }
 0x59c   :  { %7686 = vmatprep.subr.bf16.mxu1 %v10668_v22  ;;  %v2122_v22 = vld [vmem:[#allocation10 + $0x4e8] sm:$0xff] }
 0x59d   :  { %7277 = vmatmul.mubr.msk.f32.gmra.mrb[162].mxu0 %vm1471_vm2, %v1988_v2  ;;  %v2119_v2 = vld [vmem:[#allocation10 + $0x4d0] sm:$0xff]  ;;  %v10692_v16 = vpack.c.bf16 %v2124_v0, %v2122_v22  ;;  %v2128_v0 = vld [vmem:[#allocation10 + $0x518] sm:$0xff] }
 0x59e   :  { %7736 = vmatpush1.bf16.msra.mxu0 %v10446_v27  ;;  %2079 = vmatprep.mubr.f32.mxu0 %v12821_v23  ;;  %v10690_v39 = vpack.c.bf16 %v2119_v2, %v2117_v36  ;;  %v2126_v36 = vld [vmem:[#allocation10 + $0x508] sm:$0xff]  ;;  %v2257_v22 = vld [vmem:[#allocation12 + $0x70] sm:$0xff] }
 0x59f   :  { %7802 = vmatprep.subr.bf16.mxu0 %v10428_v60  ;;  %12827 = vst [vmem:[#allocation76_spill] sm:$0xff] %v10692_v16 }
 0x5a0   :  { %12826 = vst [vmem:[#allocation75_spill] sm:$0xff] %v10690_v39 }
 0x5a1   :  { %7278 = vmatmul.mubr.msk.f32.gmra.mrb[164].mxu0 %vm1471_vm2, %v1989_v5  ;;  %v2121_v5 = vld [vmem:[#allocation10 + $0x4e0] sm:$0xff] }
 0x5a2   :  { %2085 = vmatprep.mubr.f32.mxu0 %v12821_v23 }
 0x5a3   :  { %7688 = vmatpush1.bf16.xpose.msra.mxu1 %v10680_v62  ;;  %v2132_v62 = vld [vmem:[#allocation10 + $0x538] sm:$0xff] }
 0x5a4   :  { %7690 = vmatprep.subr.bf16.mxu1 %v10682_v51  ;;  %v2130_v51 = vld [vmem:[#allocation10 + $0x528] sm:$0xff] }
 0x5a5   :  { %7279 = vmatmul.mubr.msk.f32.gmra.mrb[166].mxu0 %vm1471_vm2, %v1990_v10  ;;  %v2123_v10 = vld [vmem:[#allocation10 + $0x4f0] sm:$0xff] }
 0x5a6   :  { %2335 = vmatprep.mubr.f32.mxu0 %v12821_v23  ;;  %v10704_v2 = vpack.c.bf16 %v2123_v10, %v2121_v5  ;;  %v2523_v5 = vld [vmem:[#allocation12 + $0x80] sm:$0xff] }
 0x5a8   :  { %12828 = vst [vmem:[#allocation77_spill] sm:$0xff] %v10704_v2 }
 0x5a9   :  { %7280 = vmatmul.mubr.msk.f32.vlgmr.msra.gmra.mrb[168].mxu0 %vm1471_vm2, %v2255_v9  ;;  %v10706_v9 = vpack.c.bf16 %v2128_v0, %v2126_v36  ;;  %v10716_v36 = vpack.c.bf16 %v2132_v62, %v2130_v51  ;;  %v2524_v0 = vld [vmem:[#allocation12 + $0x88] sm:$0xff]  ;;  %v2136_v62 = vld [vmem:[#allocation10 + $0x558] sm:$0xff]  ;;  %v2525_v51 = vld [vmem:[#allocation12 + $0x90] sm:$0xff] }
 0x5aa   :  { %7804 = vmatpush1.bf16.msra.mxu0 %v10424_v56  ;;  %2341 = vmatprep.mubr.f32.mxu0 %v12821_v23 }
 0x5ab   :  { %7806 = vmatprep.subr.bf16.mxu0 %v10448_v28  ;;  %7692 = vmatpush1.bf16.xpose.msra.mxu1 %v10690_v39  ;;  %12829 = vst [vmem:[#allocation78_spill] sm:$0xff] %v10706_v9  ;;  %v2127_v39 = vld [vmem:[#allocation10 + $0x510] sm:$0xff]  ;;  %12831 = vst [vmem:[#allocation80_spill] sm:$0xff] %v10716_v36 }
 0x5ac   :  { %7694 = vmatprep.subr.bf16.mxu1 %v10692_v16  ;;  %v2258_v16 = vld [vmem:[#allocation12 + $0x78] sm:$0xff] }
 0x5ad   :  { %7281 = vmatmul.mubr.msk.f32.gmra.mrb[170].mxu0 %vm1471_vm2, %v2256_v32  ;;  %v2125_v32 = vld [vmem:[#allocation10 + $0x500] sm:$0xff] }
 0x5ae   :  { %7808 = vmatpush1.bf16.msra.mxu0 %v10446_v27  ;;  %2347 = vmatprep.mubr.f32.mxu0 %v12821_v23  ;;  %v10714_v10 = vpack.c.bf16 %v2127_v39, %v2125_v32  ;;  %v2134_v39 = vld [vmem:[#allocation10 + $0x548] sm:$0xff] }
 0x5af   :  { %7874 = vmatprep.subr.bf16.mxu0 %v10428_v60 }
 0x5b0   :  { %12830 = vst [vmem:[#allocation79_spill] sm:$0xff] %v10714_v10 }
 0x5b1   :  { %7282 = vmatmul.mubr.msk.f32.gmra.mrb[172].mxu0 %vm1471_vm2, %v2257_v22  ;;  %v2131_v22 = vld [vmem:[#allocation10 + $0x530] sm:$0xff] }
 0x5b2   :  { %2353 = vmatprep.mubr.f32.mxu0 %v12821_v23 }
 0x5b3   :  { %7696 = vmatpush1.bf16.xpose.msra.mxu1 %v10704_v2  ;;  %v2140_v2 = vld [vmem:[#allocation10 + $0x578] sm:$0xff] }
 0x5b4   :  { %7698 = vmatprep.subr.bf16.mxu1 %v10706_v9  ;;  %v2138_v9 = vld [vmem:[#allocation10 + $0x568] sm:$0xff] }
 0x5b5   :  { %7283 = vmatmul.mubr.msk.f32.gmra.mrb[174].mxu0 %vm1471_vm2, %v2258_v16  ;;  %v2129_v16 = vld [vmem:[#allocation10 + $0x520] sm:$0xff] }
 0x5b6   :  { %2603 = vmatprep.mubr.f32.mxu0 %v12821_v23  ;;  %v10728_v32 = vpack.c.bf16 %v2131_v22, %v2129_v16  ;;  %v2791_v16 = vld [vmem:[#allocation12 + $0xa0] sm:$0xff] }
 0x5b8   :  { %12832 = vst [vmem:[#allocation81_spill] sm:$0xff] %v10728_v32 }
 0x5b9   :  { %7284 = vmatmul.mubr.msk.f32.vlgmr.msra.gmra.mrb[176].mxu0 %vm1471_vm2, %v2523_v5  ;;  %v10730_v5 = vpack.c.bf16 %v2136_v62, %v2134_v39  ;;  %v10740_v39 = vpack.c.bf16 %v2140_v2, %v2138_v9  ;;  %v2792_v62 = vld [vmem:[#allocation12 + $0xa8] sm:$0xff]  ;;  %v2144_v2 = vld [vmem:[#allocation10 + $0x598] sm:$0xff]  ;;  %v2793_v9 = vld [vmem:[#allocation12 + $0xb0] sm:$0xff] }
 0x5ba   :  { %7876 = vmatpush1.bf16.msra.mxu0 %v10424_v56  ;;  %2609 = vmatprep.mubr.f32.mxu0 %v12821_v23 }
 0x5bb   :  { %7878 = vmatprep.subr.bf16.mxu0 %v10448_v28  ;;  %7700 = vmatpush1.bf16.xpose.msra.mxu1 %v10714_v10  ;;  %12833 = vst [vmem:[#allocation82_spill] sm:$0xff] %v10730_v5  ;;  %v2135_v10 = vld [vmem:[#allocation10 + $0x550] sm:$0xff]  ;;  %12835 = vst [vmem:[#allocation84_spill] sm:$0xff] %v10740_v39 }
 0x5bc   :  { %7702 = vmatprep.subr.bf16.mxu1 %v10716_v36  ;;  %v2526_v36 = vld [vmem:[#allocation12 + $0x98] sm:$0xff] }
 0x5bd   :  { %7285 = vmatmul.mubr.msk.f32.gmra.mrb[178].mxu0 %vm1471_vm2, %v2524_v0  ;;  %v2133_v0 = vld [vmem:[#allocation10 + $0x540] sm:$0xff] }
 0x5be   :  { %7880 = vmatpush1.bf16.msra.mxu0 %v10446_v27  ;;  %2615 = vmatprep.mubr.f32.mxu0 %v12821_v23  ;;  %v10738_v22 = vpack.c.bf16 %v2135_v10, %v2133_v0  ;;  %v2142_v10 = vld [vmem:[#allocation10 + $0x588] sm:$0xff] }
 0x5bf   :  { %7946 = vmatprep.subr.bf16.mxu0 %v10428_v60 }
 0x5c0   :  { %12834 = vst [vmem:[#allocation83_spill] sm:$0xff] %v10738_v22 }
 0x5c1   :  { %7286 = vmatmul.mubr.msk.f32.gmra.mrb[180].mxu0 %vm1471_vm2, %v2525_v51  ;;  %v2139_v51 = vld [vmem:[#allocation10 + $0x570] sm:$0xff] }
 0x5c2   :  { %2621 = vmatprep.mubr.f32.mxu0 %v12821_v23 }
 0x5c3   :  { %7704 = vmatpush1.bf16.xpose.msra.mxu1 %v10728_v32  ;;  %v2148_v32 = vld [vmem:[#allocation10 + $0x5b8] sm:$0xff] }
 0x5c4   :  { %7706 = vmatprep.subr.bf16.mxu1 %v10730_v5  ;;  %v2146_v5 = vld [vmem:[#allocation10 + $0x5a8] sm:$0xff] }
 0x5c5   :  { %7287 = vmatmul.mubr.msk.f32.gmra.mrb[182].mxu0 %vm1471_vm2, %v2526_v36  ;;  %v2137_v36 = vld [vmem:[#allocation10 + $0x560] sm:$0xff] }
 0x5c6   :  { %2871 = vmatprep.mubr.f32.mxu0 %v12821_v23  ;;  %v10752_v0 = vpack.c.bf16 %v2139_v51, %v2137_v36  ;;  %v3059_v36 = vld [vmem:[#allocation12 + $0xc0] sm:$0xff] }
 0x5c8   :  { %12836 = vst [vmem:[#allocation85_spill] sm:$0xff] %v10752_v0 }
 0x5c9   :  { %7288 = vmatmul.mubr.msk.f32.vlgmr.msra.gmra.mrb[184].mxu0 %vm1471_vm2, %v2791_v16  ;;  %v10754_v16 = vpack.c.bf16 %v2144_v2, %v2142_v10  ;;  %v10764_v10 = vpack.c.bf16 %v2148_v32, %v2146_v5  ;;  %v3060_v2 = vld [vmem:[#allocation12 + $0xc8] sm:$0xff]  ;;  %v2152_v32 = vld [vmem:[#allocation10 + $0x5d8] sm:$0xff]  ;;  %v3061_v5 = vld [vmem:[#allocation12 + $0xd0] sm:$0xff] }
 0x5ca   :  { %7948 = vmatpush1.bf16.msra.mxu0 %v10424_v56  ;;  %2877 = vmatprep.mubr.f32.mxu0 %v12821_v23 }
 0x5cb   :  { %7950 = vmatprep.subr.bf16.mxu0 %v10448_v28  ;;  %7708 = vmatpush1.bf16.xpose.msra.mxu1 %v10738_v22  ;;  %12837 = vst [vmem:[#allocation86_spill] sm:$0xff] %v10754_v16  ;;  %v2143_v22 = vld [vmem:[#allocation10 + $0x590] sm:$0xff]  ;;  %12839 = vst [vmem:[#allocation88_spill] sm:$0xff] %v10764_v10 }
 0x5cc   :  { %7710 = vmatprep.subr.bf16.mxu1 %v10740_v39  ;;  %v2794_v39 = vld [vmem:[#allocation12 + $0xb8] sm:$0xff] }
 0x5cd   :  { %7289 = vmatmul.mubr.msk.f32.gmra.mrb[186].mxu0 %vm1471_vm2, %v2792_v62  ;;  %v2141_v62 = vld [vmem:[#allocation10 + $0x580] sm:$0xff] }
 0x5ce   :  { %7952 = vmatpush1.bf16.msra.mxu0 %v10446_v27  ;;  %2883 = vmatprep.mubr.f32.mxu0 %v12821_v23  ;;  %v10762_v51 = vpack.c.bf16 %v2143_v22, %v2141_v62  ;;  %v2150_v22 = vld [vmem:[#allocation10 + $0x5c8] sm:$0xff] }
 0x5cf   :  { %8018 = vmatprep.subr.bf16.mxu0 %v10428_v60 }
 0x5d0   :  { %12838 = vst [vmem:[#allocation87_spill] sm:$0xff] %v10762_v51 }
 0x5d1   :  { %7290 = vmatmul.mubr.msk.f32.gmra.mrb[188].mxu0 %vm1471_vm2, %v2793_v9  ;;  %v2147_v9 = vld [vmem:[#allocation10 + $0x5b0] sm:$0xff] }
 0x5d2   :  { %2889 = vmatprep.mubr.f32.mxu0 %v12821_v23 }
 0x5d3   :  { %7712 = vmatpush1.bf16.xpose.msra.mxu1 %v10752_v0  ;;  %v2156_v0 = vld [vmem:[#allocation10 + $0x5f8] sm:$0xff] }
 0x5d4   :  { %7714 = vmatprep.subr.bf16.mxu1 %v10754_v16  ;;  %v2154_v16 = vld [vmem:[#allocation10 + $0x5e8] sm:$0xff] }
 0x5d5   :  { %7291 = vmatmul.mubr.msk.f32.gmra.mrb[190].mxu0 %vm1471_vm2, %v2794_v39  ;;  %v2145_v39 = vld [vmem:[#allocation10 + $0x5a0] sm:$0xff] }
 0x5d6   :  { %3139 = vmatprep.mubr.f32.mxu0 %v12821_v23  ;;  %v10776_v62 = vpack.c.bf16 %v2147_v9, %v2145_v39  ;;  %v10788_v9 = vpack.c.bf16 %v2156_v0, %v2154_v16 }
 0x5d8   :  { %12840 = vst [vmem:[#allocation89_spill] sm:$0xff] %v10776_v62  ;;  %12843 = vst [vmem:[#allocation92_spill] sm:$0xff] %v10788_v9 }
 0x5d9   :  { %7292 = vmatmul.mubr.msk.f32.vlgmr.msra.gmra.mrb[192].mxu0 %vm1471_vm2, %v3059_v36  ;;  %v10778_v36 = vpack.c.bf16 %v2152_v32, %v2150_v22  ;;  %v2155_v22 = vld [vmem:[#allocation10 + $0x5f0] sm:$0xff]  ;;  %v2362_v32 = vld [vmem:[#allocation10 + $0x608] sm:$0xff] }
 0x5da   :  { %8020 = vmatpush1.bf16.msra.mxu0 %v10424_v56  ;;  %3145 = vmatprep.mubr.f32.mxu0 %v12821_v23 }
 0x5db   :  { %8022 = vmatprep.subr.bf16.mxu0 %v10448_v28  ;;  %7716 = vmatpush1.bf16.xpose.msra.mxu1 %v10762_v51  ;;  %12841 = vst [vmem:[#allocation90_spill] sm:$0xff] %v10778_v36  ;;  %v2151_v51 = vld [vmem:[#allocation10 + $0x5d0] sm:$0xff] }
 0x5dc   :  { %7718 = vmatprep.subr.bf16.mxu1 %v10764_v10  ;;  %v3062_v10 = vld [vmem:[#allocation12 + $0xd8] sm:$0xff] }
 0x5dd   :  { %7293 = vmatmul.mubr.msk.f32.gmra.mrb[194].mxu0 %vm1471_vm2, %v3060_v2  ;;  %v2149_v2 = vld [vmem:[#allocation10 + $0x5c0] sm:$0xff] }
 0x5de   :  { %8024 = vmatpush1.bf16.msra.mxu0 %v10446_v27  ;;  %3151 = vmatprep.mubr.f32.mxu0 %v12821_v23  ;;  %v10786_v39 = vpack.c.bf16 %v2151_v51, %v2149_v2 }
 0x5df   :  { %8090 = vmatprep.subr.bf16.mxu0 %v10428_v60  ;;  %v3327_v60 = vld [vmem:[#allocation12 + $0xe0] sm:$0xff] }
 0x5e0   :  { %12842 = vst [vmem:[#allocation91_spill] sm:$0xff] %v10786_v39 }
 0x5e1   :  { %7294 = vmatmul.mubr.msk.f32.gmra.mrb[196].mxu0 %vm1471_vm2, %v3061_v5  ;;  %v2364_v5 = vld [vmem:[#allocation10 + $0x618] sm:$0xff] }
 0x5e2   :  { %3157 = vmatprep.mubr.f32.mxu0 %v12821_v23  ;;  %v10799_v16 = vpack.c.bf16 %v2364_v5, %v2362_v32  ;;  %v2363_v32 = vld [vmem:[#allocation10 + $0x610] sm:$0xff]  ;;  %v2366_v5 = vld [vmem:[#allocation10 + $0x628] sm:$0xff] }
 0x5e3   :  { %7720 = vmatpush1.bf16.xpose.msra.mxu1 %v10776_v62 }
 0x5e4   :  { %7722 = vmatprep.subr.bf16.mxu1 %v10778_v36  ;;  %12845 = vst [vmem:[#allocation94_spill] sm:$0xff] %v10799_v16 }
 0x5e5   :  { %7295 = vmatmul.mubr.msk.f32.gmra.mrb[198].mxu0 %vm1471_vm2, %v3062_v10  ;;  %v2153_v10 = vld [vmem:[#allocation10 + $0x5e0] sm:$0xff] }
 0x5e6   :  { %3407 = vmatprep.mubr.f32.mxu0 %v12821_v23  ;;  %v10797_v0 = vpack.c.bf16 %v2155_v22, %v2153_v10  ;;  %v2361_v22 = vld [vmem:[#allocation10 + $0x600] sm:$0xff] }
 0x5e8   :  { %12844 = vst [vmem:[#allocation93_spill] sm:$0xff] %v10797_v0 }
 0x5e9   :  { %7296 = vmatmul.mubr.msk.f32.vlgmr.msra.gmra.mrb[200].mxu0 %vm1471_vm2, %v3327_v60 }
 0x5ea   :  { %8092 = vmatpush1.bf16.msra.mxu0 %v10424_v56  ;;  %3413 = vmatprep.mubr.f32.mxu0 %v12821_v23 }
 0x5eb   :  { %8094 = vmatprep.subr.bf16.mxu0 %v10448_v28  ;;  %7724 = vmatpush1.bf16.xpose.msra.mxu1 %v10786_v39  ;;  %v10819_v39 = vpack.c.bf16 %v2363_v32, %v2361_v22  ;;  %v10827_v32 = vpack.c.bf16 %v2372_v19, %v2370_v33 }
 0x5ec   :  { %7726 = vmatprep.subr.bf16.mxu1 %v10788_v9 }
 0x5ed   :  { %12846 = vst [vmem:[#allocation95_spill] sm:$0xff] %v10819_v39  ;;  %12849 = vst [vmem:[#allocation98_spill] sm:$0xff] %v10827_v32 }
 0x5ee   :  { %8096 = vmatpush1.bf16.msra.mxu0 %v10446_v27 }
 0x5f3   :  { %7728 = vmatpush1.bf16.xpose.msra.mxu1 %v10797_v0 }
 0x5f4   :  { %7738 = vmatprep.subr.bf16.mxu1 %v10799_v16  ;;  %v2368_v16 = vld [vmem:[#allocation10 + $0x638] sm:$0xff] }
 0x5f5   :  { %v10821_v62 = vpack.c.bf16 %v2368_v16, %v2366_v5  ;;  %v2371_v5 = vld [vmem:[#allocation10 + $0x650] sm:$0xff] }
 0x5f7   :  { %12847 = vst [vmem:[#allocation96_spill] sm:$0xff] %v10821_v62 }
 0x65c   :  { %v10803_v56 = vpop.f32.mrb[152].mxu0 }
 0x65d   :  { %v10805_v28 = vpop.f32.mrb[153].mxu0 }
 0x660   :  { %v10807_v51 = vpop.f32.mrb[154].mxu0 }
 0x661   :  { %v10809_v2 = vpop.f32.mrb[155].mxu0 }
 0x664   :  { %v10811_v60 = vpop.f32.mrb[156].mxu0 }
 0x665   :  { %v10813_v9 = vpop.f32.mrb[157].mxu0 }
 0x668   :  { %v10815_v27 = vpop.f32.mrb[158].mxu0 }
 0x669   :  { %v10817_v10 = vpop.f32.mrb[159].mxu0 }
 0x66c   :  { %v2069_v0 = vpop.f32.mrb[160].mxu0 }
 0x66d   :  { %v2071_v36 = vpop.f32.mrb[161].mxu0 }
 0x66e   :  { %2221 = vmatprep.mubr.f32.mxu1 %v2071_v36 }
 0x66f   :  { %2222 = vmatmul.mubr.f32.vlgmr.msra.gmra.mrb[32].mxu1 %v2069_v0  ;;  %v2369_v0 = vld [vmem:[#allocation10 + $0x640] sm:$0xff] }
 0x670   :  { %7740 = vmatpush1.bf16.xpose.msra.mxu1 %v10819_v39  ;;  %v2075_v42 = vpop.f32.mrb[162].mxu0  ;;  %v2374_v39 = vld [vmem:[#allocation10 + $0x668] sm:$0xff] }
 0x671   :  { %7742 = vmatprep.subr.bf16.mxu1 %v10821_v62  ;;  %v2077_v37 = vpop.f32.mrb[163].mxu0  ;;  %v10835_v19 = vpack.c.bf16 %v2376_v45, %v2374_v39  ;;  %v2377_v45 = vld [vmem:[#allocation10 + $0x680] sm:$0xff]  ;;  %v2379_v39 = vld [vmem:[#allocation10 + $0x690] sm:$0xff] }
 0x672   :  { %2227 = vmatprep.mubr.f32.mxu1 %v2077_v37  ;;  %v10831_v37 = vpack.c.bf16 %v2371_v5, %v2369_v0  ;;  %v2384_v0 = vld [vmem:[#allocation10 + $0x6b8] sm:$0xff]  ;;  %v10845_v5 = vpack.c.bf16 %v2379_v39, %v2377_v45  ;;  %v2385_v45 = vld [vmem:[#allocation10 + $0x6c0] sm:$0xff]  ;;  %v2387_v39 = vld [vmem:[#allocation10 + $0x6d0] sm:$0xff] }
 0x673   :  { %2228 = vmatmul.mubr.f32.gmra.mrb[34].mxu1 %v2075_v42  ;;  %12851 = vst [vmem:[#allocation100_spill] sm:$0xff] %v10835_v19  ;;  %v2375_v42 = vld [vmem:[#allocation10 + $0x670] sm:$0xff] }
 0x674   :  { %v2081_v22 = vpop.f32.mrb[164].mxu0  ;;  %12850 = vst [vmem:[#allocation99_spill] sm:$0xff] %v10831_v37  ;;  %12854 = vst [vmem:[#allocation103_spill] sm:$0xff] %v10845_v5 }
 0x675   :  { %v2083_v16 = vpop.f32.mrb[165].mxu0 }
 0x676   :  { %2233 = vmatprep.mubr.f32.mxu1 %v2083_v16  ;;  %v2380_v16 = vld [vmem:[#allocation10 + $0x698] sm:$0xff] }
 0x677   :  { %2234 = vmatmul.mubr.f32.gmra.mrb[36].mxu1 %v2081_v22  ;;  %v2378_v22 = vld [vmem:[#allocation10 + $0x688] sm:$0xff] }
 0x678   :  { %7744 = vmatpush1.bf16.xpose.msra.mxu1 %v10825_v15  ;;  %v2087_v36 = vpop.f32.mrb[166].mxu0 }
 0x679   :  { %7746 = vmatprep.subr.bf16.mxu1 %v10827_v32  ;;  %v2089_v62 = vpop.f32.mrb[167].mxu0  ;;  %v10839_v32 = vpack.c.bf16 %v2375_v42, %v2373_v30  ;;  %v2381_v30 = vld [vmem:[#allocation10 + $0x6a0] sm:$0xff]  ;;  %v2383_v42 = vld [vmem:[#allocation10 + $0x6b0] sm:$0xff] }
 0x67a   :  { %2239 = vmatprep.mubr.f32.mxu1 %v2089_v62  ;;  %v10841_v62 = vpack.c.bf16 %v2380_v16, %v2378_v22  ;;  %v2386_v22 = vld [vmem:[#allocation10 + $0x6c8] sm:$0xff]  ;;  %v2388_v16 = vld [vmem:[#allocation10 + $0x6d8] sm:$0xff] }
 0x67b   :  { %2240 = vmatmul.mubr.f32.gmra.mrb[38].mxu1 %v2087_v36  ;;  %12852 = vst [vmem:[#allocation101_spill] sm:$0xff] %v10839_v32  ;;  %v2382_v36 = vld [vmem:[#allocation10 + $0x6a8] sm:$0xff] }
 0x67c   :  { %v10833_v48 = vpop.f32.mrb[168].mxu0  ;;  %12853 = vst [vmem:[#allocation102_spill] sm:$0xff] %v10841_v62 }
 0x67d   :  { %v2339_v33 = vpop.f32.mrb[169].mxu0 }
 0x67e   :  { %2489 = vmatprep.mubr.f32.mxu1 %v2339_v33  ;;  %v10847_v33 = vpack.c.bf16 %v2384_v0, %v2382_v36  ;;  %v2390_v36 = vld [vmem:[#allocation10 + $0x6e8] sm:$0xff]  ;;  %v2392_v0 = vld [vmem:[#allocation10 + $0x6f8] sm:$0xff] }
 0x680   :  { %7748 = vmatpush1.bf16.xpose.msra.mxu1 %v10831_v37  ;;  %12855 = vst [vmem:[#allocation104_spill] sm:$0xff] %v10847_v33 }
 0x681   :  { %7750 = vmatprep.subr.bf16.mxu1 %v10835_v19  ;;  %v10851_v19 = vpack.c.bf16 %v2383_v42, %v2381_v30  ;;  %v2389_v30 = vld [vmem:[#allocation10 + $0x6e0] sm:$0xff]  ;;  %v2391_v42 = vld [vmem:[#allocation10 + $0x6f0] sm:$0xff] }
 0x683   :  { %12856 = vst [vmem:[#allocation105_spill] sm:$0xff] %v10851_v19 }
 0x688   :  { %7752 = vmatpush1.bf16.xpose.msra.mxu1 %v10839_v32  ;;  %v10853_v32 = vpack.c.bf16 %v2388_v16, %v2386_v22  ;;  %v2394_v22 = vld [vmem:[#allocation10 + $0x708] sm:$0xff]  ;;  %v2396_v16 = vld [vmem:[#allocation10 + $0x718] sm:$0xff] }
 0x689   :  { %7754 = vmatprep.subr.bf16.mxu1 %v10841_v62  ;;  %v10857_v62 = vpack.c.bf16 %v2387_v39, %v2385_v45  ;;  %v2393_v45 = vld [vmem:[#allocation10 + $0x700] sm:$0xff]  ;;  %v2395_v39 = vld [vmem:[#allocation10 + $0x710] sm:$0xff] }
 0x68a   :  { %12857 = vst [vmem:[#allocation106_spill] sm:$0xff] %v10853_v32 }
 0x68b   :  { %12858 = vst [vmem:[#allocation107_spill] sm:$0xff] %v10857_v62 }
 0x690   :  { %7756 = vmatpush1.bf16.xpose.msra.mxu1 %v10845_v5  ;;  %v10859_v5 = vpack.c.bf16 %v2392_v0, %v2390_v36  ;;  %v2398_v36 = vld [vmem:[#allocation10 + $0x728] sm:$0xff]  ;;  %v2400_v0 = vld [vmem:[#allocation10 + $0x738] sm:$0xff] }
 0x691   :  { %7758 = vmatprep.subr.bf16.mxu1 %v10847_v33  ;;  %v10863_v33 = vpack.c.bf16 %v2391_v42, %v2389_v30  ;;  %v2397_v30 = vld [vmem:[#allocation10 + $0x720] sm:$0xff]  ;;  %v2399_v42 = vld [vmem:[#allocation10 + $0x730] sm:$0xff] }
 0x692   :  { %12859 = vst [vmem:[#allocation108_spill] sm:$0xff] %v10859_v5 }
 0x693   :  { %12860 = vst [vmem:[#allocation109_spill] sm:$0xff] %v10863_v33 }
 0x698   :  { %7760 = vmatpush1.bf16.xpose.msra.mxu1 %v10851_v19  ;;  %v10865_v19 = vpack.c.bf16 %v2396_v16, %v2394_v22  ;;  %v2402_v22 = vld [vmem:[#allocation10 + $0x748] sm:$0xff]  ;;  %v2404_v16 = vld [vmem:[#allocation10 + $0x758] sm:$0xff] }
 0x699   :  { %7762 = vmatprep.subr.bf16.mxu1 %v10853_v32  ;;  %v10869_v32 = vpack.c.bf16 %v2395_v39, %v2393_v45  ;;  %v2401_v45 = vld [vmem:[#allocation10 + $0x740] sm:$0xff]  ;;  %v2403_v39 = vld [vmem:[#allocation10 + $0x750] sm:$0xff] }
 0x69a   :  { %12861 = vst [vmem:[#allocation110_spill] sm:$0xff] %v10865_v19 }
 0x69b   :  { %12862 = vst [vmem:[#allocation111_spill] sm:$0xff] %v10869_v32 }
 0x6a0   :  { %7764 = vmatpush1.bf16.xpose.msra.mxu1 %v10857_v62  ;;  %v10871_v62 = vpack.c.bf16 %v2400_v0, %v2398_v36  ;;  %v2406_v36 = vld [vmem:[#allocation10 + $0x768] sm:$0xff]  ;;  %v2408_v0 = vld [vmem:[#allocation10 + $0x778] sm:$0xff] }
 0x6a1   :  { %7766 = vmatprep.subr.bf16.mxu1 %v10859_v5  ;;  %v10875_v5 = vpack.c.bf16 %v2399_v42, %v2397_v30  ;;  %v2405_v30 = vld [vmem:[#allocation10 + $0x760] sm:$0xff]  ;;  %v2407_v42 = vld [vmem:[#allocation10 + $0x770] sm:$0xff] }
 0x6a2   :  { %12863 = vst [vmem:[#allocation112_spill] sm:$0xff] %v10871_v62 }
 0x6a3   :  { %12864 = vst [vmem:[#allocation113_spill] sm:$0xff] %v10875_v5 }
 0x6a8   :  { %7768 = vmatpush1.bf16.xpose.msra.mxu1 %v10863_v33  ;;  %v10877_v33 = vpack.c.bf16 %v2404_v16, %v2402_v22  ;;  %v2410_v22 = vld [vmem:[#allocation10 + $0x788] sm:$0xff]  ;;  %v2412_v16 = vld [vmem:[#allocation10 + $0x798] sm:$0xff] }
 0x6a9   :  { %7770 = vmatprep.subr.bf16.mxu1 %v10865_v19  ;;  %v10881_v19 = vpack.c.bf16 %v2403_v39, %v2401_v45  ;;  %v2409_v45 = vld [vmem:[#allocation10 + $0x780] sm:$0xff]  ;;  %v2411_v39 = vld [vmem:[#allocation10 + $0x790] sm:$0xff] }
 0x6aa   :  { %12865 = vst [vmem:[#allocation114_spill] sm:$0xff] %v10877_v33 }
 0x6ab   :  { %12866 = vst [vmem:[#allocation115_spill] sm:$0xff] %v10881_v19 }
 0x6b0   :  { %7772 = vmatpush1.bf16.xpose.msra.mxu1 %v10869_v32  ;;  %v10883_v32 = vpack.c.bf16 %v2408_v0, %v2406_v36  ;;  %v2414_v36 = vld [vmem:[#allocation10 + $0x7a8] sm:$0xff]  ;;  %v2416_v0 = vld [vmem:[#allocation10 + $0x7b8] sm:$0xff] }
 0x6b1   :  { %7774 = vmatprep.subr.bf16.mxu1 %v10871_v62  ;;  %v10887_v62 = vpack.c.bf16 %v2407_v42, %v2405_v30  ;;  %v2413_v30 = vld [vmem:[#allocation10 + $0x7a0] sm:$0xff]  ;;  %v2415_v42 = vld [vmem:[#allocation10 + $0x7b0] sm:$0xff] }
 0x6b2   :  { %12867 = vst [vmem:[#allocation116_spill] sm:$0xff] %v10883_v32 }
 0x6b3   :  { %12868 = vst [vmem:[#allocation117_spill] sm:$0xff] %v10887_v62 }
 0x6b8   :  { %7776 = vmatpush1.bf16.xpose.msra.mxu1 %v10875_v5  ;;  %v10889_v5 = vpack.c.bf16 %v2412_v16, %v2410_v22  ;;  %v2418_v22 = vld [vmem:[#allocation10 + $0x7c8] sm:$0xff]  ;;  %v2420_v16 = vld [vmem:[#allocation10 + $0x7d8] sm:$0xff] }
 0x6b9   :  { %7778 = vmatprep.subr.bf16.mxu1 %v10877_v33  ;;  %v10893_v33 = vpack.c.bf16 %v2411_v39, %v2409_v45  ;;  %v2417_v45 = vld [vmem:[#allocation10 + $0x7c0] sm:$0xff]  ;;  %v2419_v39 = vld [vmem:[#allocation10 + $0x7d0] sm:$0xff] }
 0x6ba   :  { %12869 = vst [vmem:[#allocation118_spill] sm:$0xff] %v10889_v5 }
 0x6bb   :  { %12870 = vst [vmem:[#allocation119_spill] sm:$0xff] %v10893_v33 }
 0x6c0   :  { %7780 = vmatpush1.bf16.xpose.msra.mxu1 %v10881_v19  ;;  %v10895_v19 = vpack.c.bf16 %v2416_v0, %v2414_v36  ;;  %v2422_v36 = vld [vmem:[#allocation10 + $0x7e8] sm:$0xff]  ;;  %v2424_v0 = vld [vmem:[#allocation10 + $0x7f8] sm:$0xff] }
 0x6c1   :  { %7782 = vmatprep.subr.bf16.mxu1 %v10883_v32  ;;  %v10899_v32 = vpack.c.bf16 %v2415_v42, %v2413_v30  ;;  %v2421_v30 = vld [vmem:[#allocation10 + $0x7e0] sm:$0xff]  ;;  %v2423_v42 = vld [vmem:[#allocation10 + $0x7f0] sm:$0xff] }
 0x6c2   :  { %12871 = vst [vmem:[#allocation120_spill] sm:$0xff] %v10895_v19  ;;  %v10911_v15 = vpack.c.bf16 %v2423_v42, %v2421_v30  ;;  %v2635_v30 = vld [vmem:[#allocation10 + $0x830] sm:$0xff]  ;;  %v2638_v42 = vld [vmem:[#allocation10 + $0x848] sm:$0xff] }
 0x6c3   :  { %12872 = vst [vmem:[#allocation121_spill] sm:$0xff] %v10899_v32 }
 0x6c4   :  { %12876 = vst [vmem:[#allocation125_spill] sm:$0xff] %v10911_v15 }
 0x6c8   :  { %7784 = vmatpush1.bf16.xpose.msra.mxu1 %v10887_v62  ;;  %v10901_v62 = vpack.c.bf16 %v2420_v16, %v2418_v22  ;;  %v2630_v16 = vld [vmem:[#allocation10 + $0x808] sm:$0xff] }
 0x6c9   :  { %7786 = vmatprep.subr.bf16.mxu1 %v10889_v5  ;;  %v10905_v5 = vpack.c.bf16 %v2419_v39, %v2417_v45 }
 0x6ca   :  { %12873 = vst [vmem:[#allocation122_spill] sm:$0xff] %v10901_v62 }
 0x6cb   :  { %12874 = vst [vmem:[#allocation123_spill] sm:$0xff] %v10905_v5 }
 0x6d0   :  { %7788 = vmatpush1.bf16.xpose.msra.mxu1 %v10893_v33  ;;  %v10907_v33 = vpack.c.bf16 %v2424_v0, %v2422_v36  ;;  %v2629_v36 = vld [vmem:[#allocation10 + $0x800] sm:$0xff]  ;;  %v2631_v0 = vld [vmem:[#allocation10 + $0x810] sm:$0xff] }
 0x6d1   :  { %7790 = vmatprep.subr.bf16.mxu1 %v10895_v19  ;;  %v2343_v19 = vpop.f32.mrb[170].mxu0  ;;  %v10919_v61 = vpack.c.bf16 %v2631_v0, %v2629_v36  ;;  %v2646_v0 = vld [vmem:[#allocation10 + $0x888] sm:$0xff] }
 0x6d2   :  { %12875 = vst [vmem:[#allocation124_spill] sm:$0xff] %v10907_v33  ;;  %v2345_v37 = vpop.f32.mrb[171].mxu0 }
 0x6d3   :  { %v2349_v22 = vpop.f32.mrb[172].mxu0  ;;  %12878 = vst [vmem:[#allocation127_spill] sm:$0xff] %v10919_v61 }
 0x6d8   :  { %7792 = vmatpush1.bf16.xpose.msra.mxu1 %v10899_v32  ;;  %v2632_v32 = vld [vmem:[#allocation10 + $0x818] sm:$0xff] }
 0x6d9   :  { %7794 = vmatprep.subr.bf16.mxu1 %v10901_v62  ;;  %v2351_v62 = vpop.f32.mrb[173].mxu0  ;;  %v10913_v38 = vpack.c.bf16 %v2632_v32, %v2630_v16  ;;  %v2633_v32 = vld [vmem:[#allocation10 + $0x820] sm:$0xff]  ;;  %v2640_v16 = vld [vmem:[#allocation10 + $0x858] sm:$0xff] }
 0x6da   :  { %v2355_v45 = vpop.f32.mrb[174].mxu0 }
 0x6db   :  { %12877 = vst [vmem:[#allocation126_spill] sm:$0xff] %v10913_v38  ;;  %v2357_v39 = vpop.f32.mrb[175].mxu0 }
 0x6e0   :  { %7796 = vmatpush1.bf16.xpose.msra.mxu1 %v10905_v5  ;;  %v10917_v5 = vpop.f32.mrb[176].mxu0 }
 0x6e1   :  { %7798 = vmatprep.subr.bf16.mxu1 %v10907_v33  ;;  %v2634_v33 = vld [vmem:[#allocation10 + $0x828] sm:$0xff]  ;;  %v2607_v8 = vpop.f32.mrb[177].mxu0 }
 0x6e2   :  { %v10921_v58 = vpack.c.bf16 %v2636_v14, %v2634_v33  ;;  %v2637_v14 = vld [vmem:[#allocation10 + $0x840] sm:$0xff]  ;;  %v2644_v33 = vld [vmem:[#allocation10 + $0x878] sm:$0xff] }
 0x6e4   :  { %12879 = vst [vmem:[#allocation128_spill] sm:$0xff] %v10921_v58 }
 0x6e8   :  { %7800 = vmatpush1.bf16.xpose.msra.mxu1 %v10911_v15  ;;  %v10928_v15 = vpack.c.bf16 %v2640_v16, %v2638_v42  ;;  %v2650_v42 = vld [vmem:[#allocation10 + $0x8a8] sm:$0xff]  ;;  %v2652_v16 = vld [vmem:[#allocation10 + $0x8b8] sm:$0xff] }
 0x6e9   :  { %7810 = vmatprep.subr.bf16.mxu1 %v10913_v38  ;;  %v10926_v38 = vpack.c.bf16 %v2635_v30, %v2633_v32 }
 0x6ea   :  { %12881 = vst [vmem:[#allocation130_spill] sm:$0xff] %v10928_v15 }
 0x6eb   :  { %12880 = vst [vmem:[#allocation129_spill] sm:$0xff] %v10926_v38 }
 0x6ef   :  { %2490 = vmatmul.mubr.f32.vlgmr.msra.gmra.mrb[32].mxu1 %v10833_v48  ;;  %v2642_v48 = vld [vmem:[#allocation10 + $0x868] sm:$0xff] }
 0x6f0   :  { %7812 = vmatpush1.bf16.xpose.msra.mxu1 %v10919_v61  ;;  %2495 = vmatprep.mubr.f32.mxu1 %v2345_v37  ;;  %v2639_v37 = vld [vmem:[#allocation10 + $0x850] sm:$0xff] }
 0x6f1   :  { %7814 = vmatprep.subr.bf16.mxu1 %v10921_v58  ;;  %v10932_v36 = vpack.c.bf16 %v2639_v37, %v2637_v14  ;;  %v10946_v37 = vpack.c.bf16 %v2652_v16, %v2650_v42  ;;  %v2658_v42 = vld [vmem:[#allocation10 + $0x8e8] sm:$0xff]  ;;  %v2660_v16 = vld [vmem:[#allocation10 + $0x8f8] sm:$0xff] }
 0x6f3   :  { %2496 = vmatmul.mubr.f32.gmra.mrb[34].mxu1 %v2343_v19  ;;  %12882 = vst [vmem:[#allocation131_spill] sm:$0xff] %v10932_v36  ;;  %v10934_v19 = vpack.c.bf16 %v2644_v33, %v2642_v48  ;;  %12887 = vst [vmem:[#allocation136_spill] sm:$0xff] %v10946_v37  ;;  %v2649_v48 = vld [vmem:[#allocation10 + $0x8a0] sm:$0xff]  ;;  %v2651_v33 = vld [vmem:[#allocation10 + $0x8b0] sm:$0xff] }
 0x6f4   :  { %2501 = vmatprep.mubr.f32.mxu1 %v2351_v62  ;;  %v2641_v62 = vld [vmem:[#allocation10 + $0x860] sm:$0xff] }
 0x6f5   :  { %12883 = vst [vmem:[#allocation132_spill] sm:$0xff] %v10934_v19 }
 0x6f7   :  { %2502 = vmatmul.mubr.f32.gmra.mrb[36].mxu1 %v2349_v22  ;;  %v2643_v22 = vld [vmem:[#allocation10 + $0x870] sm:$0xff] }
 0x6f8   :  { %7816 = vmatpush1.bf16.xpose.msra.mxu1 %v10926_v38  ;;  %2507 = vmatprep.mubr.f32.mxu1 %v2357_v39  ;;  %v2648_v39 = vld [vmem:[#allocation10 + $0x898] sm:$0xff]  ;;  %v10938_v32 = vpack.c.bf16 %v2643_v22, %v2641_v62  ;;  %v2654_v62 = vld [vmem:[#allocation10 + $0x8c8] sm:$0xff] }
 0x6f9   :  { %7818 = vmatprep.subr.bf16.mxu1 %v10928_v15  ;;  %v10940_v30 = vpack.c.bf16 %v2648_v39, %v2646_v0  ;;  %v2656_v22 = vld [vmem:[#allocation10 + $0x8d8] sm:$0xff]  ;;  %v10950_v0 = vpack.c.bf16 %v2651_v33, %v2649_v48  ;;  %v2657_v48 = vld [vmem:[#allocation10 + $0x8e0] sm:$0xff]  ;;  %v2659_v33 = vld [vmem:[#allocation10 + $0x8f0] sm:$0xff] }
 0x6fa   :  { %12884 = vst [vmem:[#allocation133_spill] sm:$0xff] %v10938_v32  ;;  %v10952_v39 = vpack.c.bf16 %v2656_v22, %v2654_v62  ;;  %v2662_v62 = vld [vmem:[#allocation10 + $0x908] sm:$0xff]  ;;  %v2664_v22 = vld [vmem:[#allocation10 + $0x918] sm:$0xff] }
 0x6fb   :  { %2508 = vmatmul.mubr.f32.gmra.mrb[38].mxu1 %v2355_v45  ;;  %12885 = vst [vmem:[#allocation134_spill] sm:$0xff] %v10940_v30  ;;  %v2645_v45 = vld [vmem:[#allocation10 + $0x880] sm:$0xff]  ;;  %12888 = vst [vmem:[#allocation137_spill] sm:$0xff] %v10950_v0  ;;  %v2904_v15 = vld [vmem:[#allocation10 + $0xa38] sm:$0xff] }
 0x6fc   :  { %2757 = vmatprep.mubr.f32.mxu1 %v2607_v8  ;;  %v2647_v8 = vld [vmem:[#allocation10 + $0x890] sm:$0xff]  ;;  %12889 = vst [vmem:[#allocation138_spill] sm:$0xff] %v10952_v39 }
 0x6fd   :  { %v10944_v14 = vpack.c.bf16 %v2647_v8, %v2645_v45  ;;  %v2653_v45 = vld [vmem:[#allocation10 + $0x8c0] sm:$0xff]  ;;  %v2655_v8 = vld [vmem:[#allocation10 + $0x8d0] sm:$0xff] }
 0x6ff   :  { %12886 = vst [vmem:[#allocation135_spill] sm:$0xff] %v10944_v14 }
 0x700   :  { %7820 = vmatpush1.bf16.xpose.msra.mxu1 %v10932_v36 }
 0x701   :  { %7822 = vmatprep.subr.bf16.mxu1 %v10934_v19 }
 0x708   :  { %7824 = vmatpush1.bf16.xpose.msra.mxu1 %v10938_v32 }
 0x709   :  { %7826 = vmatprep.subr.bf16.mxu1 %v10940_v30  ;;  %v10956_v30 = vpack.c.bf16 %v2655_v8, %v2653_v45  ;;  %v2661_v45 = vld [vmem:[#allocation10 + $0x900] sm:$0xff]  ;;  %v2663_v8 = vld [vmem:[#allocation10 + $0x910] sm:$0xff] }
 0x70b   :  { %12890 = vst [vmem:[#allocation139_spill] sm:$0xff] %v10956_v30 }
 0x710   :  { %7828 = vmatpush1.bf16.xpose.msra.mxu1 %v10944_v14  ;;  %v10958_v14 = vpack.c.bf16 %v2660_v16, %v2658_v42  ;;  %v2666_v42 = vld [vmem:[#allocation10 + $0x928] sm:$0xff]  ;;  %v2668_v16 = vld [vmem:[#allocation10 + $0x938] sm:$0xff] }
 0x711   :  { %7830 = vmatprep.subr.bf16.mxu1 %v10946_v37  ;;  %v10962_v37 = vpack.c.bf16 %v2659_v33, %v2657_v48  ;;  %v2665_v48 = vld [vmem:[#allocation10 + $0x920] sm:$0xff]  ;;  %v2667_v33 = vld [vmem:[#allocation10 + $0x930] sm:$0xff] }
 0x712   :  { %12891 = vst [vmem:[#allocation140_spill] sm:$0xff] %v10958_v14 }
 0x713   :  { %12892 = vst [vmem:[#allocation141_spill] sm:$0xff] %v10962_v37 }
 0x718   :  { %7832 = vmatpush1.bf16.xpose.msra.mxu1 %v10950_v0  ;;  %v10964_v0 = vpack.c.bf16 %v2664_v22, %v2662_v62  ;;  %v2670_v62 = vld [vmem:[#allocation10 + $0x948] sm:$0xff]  ;;  %v2672_v22 = vld [vmem:[#allocation10 + $0x958] sm:$0xff] }
 0x719   :  { %7834 = vmatprep.subr.bf16.mxu1 %v10952_v39  ;;  %v10968_v39 = vpack.c.bf16 %v2663_v8, %v2661_v45  ;;  %v2669_v45 = vld [vmem:[#allocation10 + $0x940] sm:$0xff]  ;;  %v2671_v8 = vld [vmem:[#allocation10 + $0x950] sm:$0xff] }
 0x71a   :  { %12893 = vst [vmem:[#allocation142_spill] sm:$0xff] %v10964_v0 }
 0x71b   :  { %12894 = vst [vmem:[#allocation143_spill] sm:$0xff] %v10968_v39 }
 0x720   :  { %7836 = vmatpush1.bf16.xpose.msra.mxu1 %v10956_v30  ;;  %v10970_v30 = vpack.c.bf16 %v2668_v16, %v2666_v42  ;;  %v2674_v42 = vld [vmem:[#allocation10 + $0x968] sm:$0xff]  ;;  %v2676_v16 = vld [vmem:[#allocation10 + $0x978] sm:$0xff] }
 0x721   :  { %7838 = vmatprep.subr.bf16.mxu1 %v10958_v14  ;;  %v10974_v14 = vpack.c.bf16 %v2667_v33, %v2665_v48  ;;  %v2673_v48 = vld [vmem:[#allocation10 + $0x960] sm:$0xff]  ;;  %v2675_v33 = vld [vmem:[#allocation10 + $0x970] sm:$0xff] }
 0x722   :  { %12895 = vst [vmem:[#allocation144_spill] sm:$0xff] %v10970_v30 }
 0x723   :  { %12896 = vst [vmem:[#allocation145_spill] sm:$0xff] %v10974_v14 }
 0x728   :  { %7840 = vmatpush1.bf16.xpose.msra.mxu1 %v10962_v37  ;;  %v10976_v37 = vpack.c.bf16 %v2672_v22, %v2670_v62  ;;  %v2678_v62 = vld [vmem:[#allocation10 + $0x988] sm:$0xff]  ;;  %v2680_v22 = vld [vmem:[#allocation10 + $0x998] sm:$0xff] }
 0x729   :  { %7842 = vmatprep.subr.bf16.mxu1 %v10964_v0  ;;  %v10980_v0 = vpack.c.bf16 %v2671_v8, %v2669_v45  ;;  %v2677_v45 = vld [vmem:[#allocation10 + $0x980] sm:$0xff]  ;;  %v2679_v8 = vld [vmem:[#allocation10 + $0x990] sm:$0xff] }
 0x72a   :  { %12897 = vst [vmem:[#allocation146_spill] sm:$0xff] %v10976_v37 }
 0x72b   :  { %12898 = vst [vmem:[#allocation147_spill] sm:$0xff] %v10980_v0 }
 0x730   :  { %7844 = vmatpush1.bf16.xpose.msra.mxu1 %v10968_v39  ;;  %v10982_v39 = vpack.c.bf16 %v2676_v16, %v2674_v42  ;;  %v2682_v42 = vld [vmem:[#allocation10 + $0x9a8] sm:$0xff]  ;;  %v2684_v16 = vld [vmem:[#allocation10 + $0x9b8] sm:$0xff] }
 0x731   :  { %7846 = vmatprep.subr.bf16.mxu1 %v10970_v30  ;;  %v10986_v30 = vpack.c.bf16 %v2675_v33, %v2673_v48  ;;  %v2681_v48 = vld [vmem:[#allocation10 + $0x9a0] sm:$0xff]  ;;  %v2683_v33 = vld [vmem:[#allocation10 + $0x9b0] sm:$0xff] }
 0x732   :  { %12899 = vst [vmem:[#allocation148_spill] sm:$0xff] %v10982_v39 }
 0x733   :  { %12900 = vst [vmem:[#allocation149_spill] sm:$0xff] %v10986_v30 }
 0x738   :  { %7848 = vmatpush1.bf16.xpose.msra.mxu1 %v10974_v14  ;;  %v10988_v14 = vpack.c.bf16 %v2680_v22, %v2678_v62  ;;  %v2686_v62 = vld [vmem:[#allocation10 + $0x9c8] sm:$0xff]  ;;  %v2688_v22 = vld [vmem:[#allocation10 + $0x9d8] sm:$0xff] }
 0x739   :  { %7850 = vmatprep.subr.bf16.mxu1 %v10976_v37  ;;  %v10992_v37 = vpack.c.bf16 %v2679_v8, %v2677_v45  ;;  %v2685_v45 = vld [vmem:[#allocation10 + $0x9c0] sm:$0xff]  ;;  %v2687_v8 = vld [vmem:[#allocation10 + $0x9d0] sm:$0xff] }
 0x73a   :  { %12901 = vst [vmem:[#allocation150_spill] sm:$0xff] %v10988_v14 }
 0x73b   :  { %12902 = vst [vmem:[#allocation151_spill] sm:$0xff] %v10992_v37 }
 0x740   :  { %7852 = vmatpush1.bf16.xpose.msra.mxu1 %v10980_v0  ;;  %v10994_v0 = vpack.c.bf16 %v2684_v16, %v2682_v42  ;;  %v2690_v42 = vld [vmem:[#allocation10 + $0x9e8] sm:$0xff]  ;;  %v2692_v16 = vld [vmem:[#allocation10 + $0x9f8] sm:$0xff] }
 0x741   :  { %7854 = vmatprep.subr.bf16.mxu1 %v10982_v39  ;;  %v10998_v39 = vpack.c.bf16 %v2683_v33, %v2681_v48  ;;  %v2689_v48 = vld [vmem:[#allocation10 + $0x9e0] sm:$0xff]  ;;  %v2691_v33 = vld [vmem:[#allocation10 + $0x9f0] sm:$0xff] }
 0x742   :  { %12903 = vst [vmem:[#allocation152_spill] sm:$0xff] %v10994_v0  ;;  %v11010_v19 = vpack.c.bf16 %v2691_v33, %v2689_v48  ;;  %v2903_v48 = vld [vmem:[#allocation10 + $0xa30] sm:$0xff]  ;;  %v2906_v33 = vld [vmem:[#allocation10 + $0xa48] sm:$0xff] }
 0x743   :  { %12904 = vst [vmem:[#allocation153_spill] sm:$0xff] %v10998_v39 }
 0x744   :  { %12908 = vst [vmem:[#allocation157_spill] sm:$0xff] %v11010_v19 }
 0x748   :  { %7856 = vmatpush1.bf16.xpose.msra.mxu1 %v10986_v30  ;;  %v11000_v30 = vpack.c.bf16 %v2688_v22, %v2686_v62  ;;  %v2898_v22 = vld [vmem:[#allocation10 + $0xa08] sm:$0xff] }
 0x749   :  { %7858 = vmatprep.subr.bf16.mxu1 %v10988_v14  ;;  %v11004_v14 = vpack.c.bf16 %v2687_v8, %v2685_v45 }
 0x74a   :  { %12905 = vst [vmem:[#allocation154_spill] sm:$0xff] %v11000_v30 }
 0x74b   :  { %12906 = vst [vmem:[#allocation155_spill] sm:$0xff] %v11004_v14 }
 0x750   :  { %7860 = vmatpush1.bf16.xpose.msra.mxu1 %v10992_v37  ;;  %v11006_v37 = vpack.c.bf16 %v2692_v16, %v2690_v42  ;;  %v2897_v42 = vld [vmem:[#allocation10 + $0xa00] sm:$0xff]  ;;  %v2899_v16 = vld [vmem:[#allocation10 + $0xa10] sm:$0xff] }
 0x751   :  { %7862 = vmatprep.subr.bf16.mxu1 %v10994_v0  ;;  %v2611_v0 = vpop.f32.mrb[178].mxu0  ;;  %v11018_v58 = vpack.c.bf16 %v2899_v16, %v2897_v42  ;;  %v2914_v16 = vld [vmem:[#allocation10 + $0xa88] sm:$0xff] }
 0x752   :  { %12907 = vst [vmem:[#allocation156_spill] sm:$0xff] %v11006_v37  ;;  %v2613_v32 = vpop.f32.mrb[179].mxu0 }
 0x753   :  { %v2617_v62 = vpop.f32.mrb[180].mxu0  ;;  %12910 = vst [vmem:[#allocation159_spill] sm:$0xff] %v11018_v58 }
 0x758   :  { %7864 = vmatpush1.bf16.xpose.msra.mxu1 %v10998_v39  ;;  %v2900_v39 = vld [vmem:[#allocation10 + $0xa18] sm:$0xff] }
 0x759   :  { %7866 = vmatprep.subr.bf16.mxu1 %v11000_v30  ;;  %v2619_v30 = vpop.f32.mrb[181].mxu0  ;;  %v11012_v36 = vpack.c.bf16 %v2900_v39, %v2898_v22  ;;  %v2901_v39 = vld [vmem:[#allocation10 + $0xa20] sm:$0xff]  ;;  %v2908_v22 = vld [vmem:[#allocation10 + $0xa58] sm:$0xff] }
 0x75a   :  { %v2623_v45 = vpop.f32.mrb[182].mxu0 }
 0x75b   :  { %12909 = vst [vmem:[#allocation158_spill] sm:$0xff] %v11012_v36  ;;  %v2625_v8 = vpop.f32.mrb[183].mxu0 }
 0x760   :  { %7868 = vmatpush1.bf16.xpose.msra.mxu1 %v11004_v14  ;;  %v11016_v14 = vpop.f32.mrb[184].mxu0 }
 0x761   :  { %7870 = vmatprep.subr.bf16.mxu1 %v11006_v37  ;;  %v2902_v37 = vld [vmem:[#allocation10 + $0xa28] sm:$0xff]  ;;  %v2875_v38 = vpop.f32.mrb[185].mxu0 }
 0x762   :  { %v11020_v61 = vpack.c.bf16 %v2904_v15, %v2902_v37  ;;  %v2905_v15 = vld [vmem:[#allocation10 + $0xa40] sm:$0xff]  ;;  %v2912_v37 = vld [vmem:[#allocation10 + $0xa78] sm:$0xff] }
 0x764   :  { %12911 = vst [vmem:[#allocation160_spill] sm:$0xff] %v11020_v61 }
 0x768   :  { %7872 = vmatpush1.bf16.xpose.msra.mxu1 %v11010_v19  ;;  %v11027_v19 = vpack.c.bf16 %v2908_v22, %v2906_v33  ;;  %v2918_v33 = vld [vmem:[#allocation10 + $0xaa8] sm:$0xff]  ;;  %v2920_v22 = vld [vmem:[#allocation10 + $0xab8] sm:$0xff] }
 0x769   :  { %7882 = vmatprep.subr.bf16.mxu1 %v11012_v36  ;;  %v11025_v36 = vpack.c.bf16 %v2903_v48, %v2901_v39 }
 0x76a   :  { %12913 = vst [vmem:[#allocation162_spill] sm:$0xff] %v11027_v19 }
 0x76b   :  { %12912 = vst [vmem:[#allocation161_spill] sm:$0xff] %v11025_v36 }
 0x76f   :  { %2758 = vmatmul.mubr.f32.vlgmr.msra.gmra.mrb[32].mxu1 %v10917_v5  ;;  %v2907_v5 = vld [vmem:[#allocation10 + $0xa50] sm:$0xff] }
 0x770   :  { %7884 = vmatpush1.bf16.xpose.msra.mxu1 %v11018_v58  ;;  %2763 = vmatprep.mubr.f32.mxu1 %v2613_v32  ;;  %v2910_v32 = vld [vmem:[#allocation10 + $0xa68] sm:$0xff]  ;;  %v11031_v42 = vpack.c.bf16 %v2907_v5, %v2905_v15  ;;  %v11045_v5 = vpack.c.bf16 %v2920_v22, %v2918_v33  ;;  %v2928_v22 = vld [vmem:[#allocation10 + $0xaf8] sm:$0xff] }
 0x771   :  { %7886 = vmatprep.subr.bf16.mxu1 %v11020_v61  ;;  %v2926_v33 = vld [vmem:[#allocation10 + $0xae8] sm:$0xff] }
 0x772   :  { %12914 = vst [vmem:[#allocation163_spill] sm:$0xff] %v11031_v42  ;;  %12919 = vst [vmem:[#allocation168_spill] sm:$0xff] %v11045_v5 }
 0x773   :  { %2764 = vmatmul.mubr.f32.gmra.mrb[34].mxu1 %v2611_v0  ;;  %v11033_v0 = vpack.c.bf16 %v2912_v37, %v2910_v32  ;;  %v2917_v32 = vld [vmem:[#allocation10 + $0xaa0] sm:$0xff]  ;;  %v2919_v37 = vld [vmem:[#allocation10 + $0xab0] sm:$0xff] }
 0x774   :  { %2769 = vmatprep.mubr.f32.mxu1 %v2619_v30  ;;  %v2909_v30 = vld [vmem:[#allocation10 + $0xa60] sm:$0xff] }
 0x775   :  { %12915 = vst [vmem:[#allocation164_spill] sm:$0xff] %v11033_v0 }
 0x777   :  { %2770 = vmatmul.mubr.f32.gmra.mrb[36].mxu1 %v2617_v62  ;;  %v2911_v62 = vld [vmem:[#allocation10 + $0xa70] sm:$0xff] }
 0x778   :  { %7888 = vmatpush1.bf16.xpose.msra.mxu1 %v11025_v36  ;;  %2775 = vmatprep.mubr.f32.mxu1 %v2625_v8  ;;  %v2916_v8 = vld [vmem:[#allocation10 + $0xa98] sm:$0xff]  ;;  %v11037_v39 = vpack.c.bf16 %v2911_v62, %v2909_v30  ;;  %v2922_v30 = vld [vmem:[#allocation10 + $0xac8] sm:$0xff] }
 0x779   :  { %7890 = vmatprep.subr.bf16.mxu1 %v11027_v19  ;;  %v11039_v48 = vpack.c.bf16 %v2916_v8, %v2914_v16  ;;  %v2924_v62 = vld [vmem:[#allocation10 + $0xad8] sm:$0xff]  ;;  %v11049_v16 = vpack.c.bf16 %v2919_v37, %v2917_v32  ;;  %v2925_v32 = vld [vmem:[#allocation10 + $0xae0] sm:$0xff]  ;;  %v2927_v37 = vld [vmem:[#allocation10 + $0xaf0] sm:$0xff] }
 0x77a   :  { %12916 = vst [vmem:[#allocation165_spill] sm:$0xff] %v11037_v39  ;;  %v11051_v8 = vpack.c.bf16 %v2924_v62, %v2922_v30  ;;  %v2930_v30 = vld [vmem:[#allocation10 + $0xb08] sm:$0xff]  ;;  %v2932_v62 = vld [vmem:[#allocation10 + $0xb18] sm:$0xff] }
 0x77b   :  { %2776 = vmatmul.mubr.f32.gmra.mrb[38].mxu1 %v2623_v45  ;;  %12917 = vst [vmem:[#allocation166_spill] sm:$0xff] %v11039_v48  ;;  %v2913_v45 = vld [vmem:[#allocation10 + $0xa80] sm:$0xff]  ;;  %12920 = vst [vmem:[#allocation169_spill] sm:$0xff] %v11049_v16  ;;  %v3172_v19 = vld [vmem:[#allocation10 + $0xc38] sm:$0xff] }
 0x77c   :  { %3025 = vmatprep.mubr.f32.mxu1 %v2875_v38  ;;  %v2915_v38 = vld [vmem:[#allocation10 + $0xa90] sm:$0xff]  ;;  %12921 = vst [vmem:[#allocation170_spill] sm:$0xff] %v11051_v8 }
 0x77d   :  { %v11043_v15 = vpack.c.bf16 %v2915_v38, %v2913_v45  ;;  %v2921_v45 = vld [vmem:[#allocation10 + $0xac0] sm:$0xff]  ;;  %v2923_v38 = vld [vmem:[#allocation10 + $0xad0] sm:$0xff] }
 0x77f   :  { %12918 = vst [vmem:[#allocation167_spill] sm:$0xff] %v11043_v15 }
 0x780   :  { %7892 = vmatpush1.bf16.xpose.msra.mxu1 %v11031_v42 }
 0x781   :  { %7894 = vmatprep.subr.bf16.mxu1 %v11033_v0 }
 0x788   :  { %7896 = vmatpush1.bf16.xpose.msra.mxu1 %v11037_v39 }
 0x789   :  { %7898 = vmatprep.subr.bf16.mxu1 %v11039_v48  ;;  %v11055_v48 = vpack.c.bf16 %v2923_v38, %v2921_v45  ;;  %v2929_v45 = vld [vmem:[#allocation10 + $0xb00] sm:$0xff]  ;;  %v2931_v38 = vld [vmem:[#allocation10 + $0xb10] sm:$0xff] }
 0x78b   :  { %12922 = vst [vmem:[#allocation171_spill] sm:$0xff] %v11055_v48 }
 0x790   :  { %7900 = vmatpush1.bf16.xpose.msra.mxu1 %v11043_v15  ;;  %v11057_v15 = vpack.c.bf16 %v2928_v22, %v2926_v33  ;;  %v2934_v33 = vld [vmem:[#allocation10 + $0xb28] sm:$0xff]  ;;  %v2936_v22 = vld [vmem:[#allocation10 + $0xb38] sm:$0xff] }
 0x791   :  { %7902 = vmatprep.subr.bf16.mxu1 %v11045_v5  ;;  %v11061_v5 = vpack.c.bf16 %v2927_v37, %v2925_v32  ;;  %v2933_v32 = vld [vmem:[#allocation10 + $0xb20] sm:$0xff]  ;;  %v2935_v37 = vld [vmem:[#allocation10 + $0xb30] sm:$0xff] }
 0x792   :  { %12923 = vst [vmem:[#allocation172_spill] sm:$0xff] %v11057_v15 }
 0x793   :  { %12924 = vst [vmem:[#allocation173_spill] sm:$0xff] %v11061_v5 }
 0x798   :  { %7904 = vmatpush1.bf16.xpose.msra.mxu1 %v11049_v16  ;;  %v11063_v16 = vpack.c.bf16 %v2932_v62, %v2930_v30  ;;  %v2938_v30 = vld [vmem:[#allocation10 + $0xb48] sm:$0xff]  ;;  %v2940_v62 = vld [vmem:[#allocation10 + $0xb58] sm:$0xff] }
 0x799   :  { %7906 = vmatprep.subr.bf16.mxu1 %v11051_v8  ;;  %v11067_v8 = vpack.c.bf16 %v2931_v38, %v2929_v45  ;;  %v2937_v45 = vld [vmem:[#allocation10 + $0xb40] sm:$0xff]  ;;  %v2939_v38 = vld [vmem:[#allocation10 + $0xb50] sm:$0xff] }
 0x79a   :  { %12925 = vst [vmem:[#allocation174_spill] sm:$0xff] %v11063_v16 }
 0x79b   :  { %12926 = vst [vmem:[#allocation175_spill] sm:$0xff] %v11067_v8 }
 0x7a0   :  { %7908 = vmatpush1.bf16.xpose.msra.mxu1 %v11055_v48  ;;  %v11069_v48 = vpack.c.bf16 %v2936_v22, %v2934_v33  ;;  %v2942_v33 = vld [vmem:[#allocation10 + $0xb68] sm:$0xff]  ;;  %v2944_v22 = vld [vmem:[#allocation10 + $0xb78] sm:$0xff] }
 0x7a1   :  { %7910 = vmatprep.subr.bf16.mxu1 %v11057_v15  ;;  %v11073_v15 = vpack.c.bf16 %v2935_v37, %v2933_v32  ;;  %v2941_v32 = vld [vmem:[#allocation10 + $0xb60] sm:$0xff]  ;;  %v2943_v37 = vld [vmem:[#allocation10 + $0xb70] sm:$0xff] }
 0x7a2   :  { %12927 = vst [vmem:[#allocation176_spill] sm:$0xff] %v11069_v48 }
 0x7a3   :  { %12928 = vst [vmem:[#allocation177_spill] sm:$0xff] %v11073_v15 }
 0x7a8   :  { %7912 = vmatpush1.bf16.xpose.msra.mxu1 %v11061_v5  ;;  %v11075_v5 = vpack.c.bf16 %v2940_v62, %v2938_v30  ;;  %v2946_v30 = vld [vmem:[#allocation10 + $0xb88] sm:$0xff]  ;;  %v2948_v62 = vld [vmem:[#allocation10 + $0xb98] sm:$0xff] }
 0x7a9   :  { %7914 = vmatprep.subr.bf16.mxu1 %v11063_v16  ;;  %v11079_v16 = vpack.c.bf16 %v2939_v38, %v2937_v45  ;;  %v2945_v45 = vld [vmem:[#allocation10 + $0xb80] sm:$0xff]  ;;  %v2947_v38 = vld [vmem:[#allocation10 + $0xb90] sm:$0xff] }
 0x7aa   :  { %12929 = vst [vmem:[#allocation178_spill] sm:$0xff] %v11075_v5 }
 0x7ab   :  { %12930 = vst [vmem:[#allocation179_spill] sm:$0xff] %v11079_v16 }
 0x7b0   :  { %7916 = vmatpush1.bf16.xpose.msra.mxu1 %v11067_v8  ;;  %v11081_v8 = vpack.c.bf16 %v2944_v22, %v2942_v33  ;;  %v2950_v33 = vld [vmem:[#allocation10 + $0xba8] sm:$0xff]  ;;  %v2952_v22 = vld [vmem:[#allocation10 + $0xbb8] sm:$0xff] }
 0x7b1   :  { %7918 = vmatprep.subr.bf16.mxu1 %v11069_v48  ;;  %v11085_v48 = vpack.c.bf16 %v2943_v37, %v2941_v32  ;;  %v2949_v32 = vld [vmem:[#allocation10 + $0xba0] sm:$0xff]  ;;  %v2951_v37 = vld [vmem:[#allocation10 + $0xbb0] sm:$0xff] }
 0x7b2   :  { %12931 = vst [vmem:[#allocation180_spill] sm:$0xff] %v11081_v8 }
 0x7b3   :  { %12932 = vst [vmem:[#allocation181_spill] sm:$0xff] %v11085_v48 }
 0x7b8   :  { %7920 = vmatpush1.bf16.xpose.msra.mxu1 %v11073_v15  ;;  %v11087_v15 = vpack.c.bf16 %v2948_v62, %v2946_v30  ;;  %v2954_v30 = vld [vmem:[#allocation10 + $0xbc8] sm:$0xff]  ;;  %v2956_v62 = vld [vmem:[#allocation10 + $0xbd8] sm:$0xff] }
 0x7b9   :  { %7922 = vmatprep.subr.bf16.mxu1 %v11075_v5  ;;  %v11091_v5 = vpack.c.bf16 %v2947_v38, %v2945_v45  ;;  %v2953_v45 = vld [vmem:[#allocation10 + $0xbc0] sm:$0xff]  ;;  %v2955_v38 = vld [vmem:[#allocation10 + $0xbd0] sm:$0xff] }
 0x7ba   :  { %12933 = vst [vmem:[#allocation182_spill] sm:$0xff] %v11087_v15 }
 0x7bb   :  { %12934 = vst [vmem:[#allocation183_spill] sm:$0xff] %v11091_v5 }
 0x7c0   :  { %7924 = vmatpush1.bf16.xpose.msra.mxu1 %v11079_v16  ;;  %v11093_v16 = vpack.c.bf16 %v2952_v22, %v2950_v33  ;;  %v2958_v33 = vld [vmem:[#allocation10 + $0xbe8] sm:$0xff]  ;;  %v2960_v22 = vld [vmem:[#allocation10 + $0xbf8] sm:$0xff] }
 0x7c1   :  { %7926 = vmatprep.subr.bf16.mxu1 %v11081_v8  ;;  %v11097_v8 = vpack.c.bf16 %v2951_v37, %v2949_v32  ;;  %v2957_v32 = vld [vmem:[#allocation10 + $0xbe0] sm:$0xff]  ;;  %v2959_v37 = vld [vmem:[#allocation10 + $0xbf0] sm:$0xff] }
 0x7c2   :  { %12935 = vst [vmem:[#allocation184_spill] sm:$0xff] %v11093_v16  ;;  %v11109_v0 = vpack.c.bf16 %v2959_v37, %v2957_v32  ;;  %v3171_v32 = vld [vmem:[#allocation10 + $0xc30] sm:$0xff]  ;;  %v3174_v37 = vld [vmem:[#allocation10 + $0xc48] sm:$0xff] }
 0x7c3   :  { %12936 = vst [vmem:[#allocation185_spill] sm:$0xff] %v11097_v8 }
 0x7c4   :  { %12940 = vst [vmem:[#allocation189_spill] sm:$0xff] %v11109_v0 }
 0x7c8   :  { %7928 = vmatpush1.bf16.xpose.msra.mxu1 %v11085_v48  ;;  %v11099_v48 = vpack.c.bf16 %v2956_v62, %v2954_v30  ;;  %v3166_v62 = vld [vmem:[#allocation10 + $0xc08] sm:$0xff] }
 0x7c9   :  { %7930 = vmatprep.subr.bf16.mxu1 %v11087_v15  ;;  %v11103_v15 = vpack.c.bf16 %v2955_v38, %v2953_v45 }
 0x7ca   :  { %12937 = vst [vmem:[#allocation186_spill] sm:$0xff] %v11099_v48 }
 0x7cb   :  { %12938 = vst [vmem:[#allocation187_spill] sm:$0xff] %v11103_v15 }
 0x7d0   :  { %7932 = vmatpush1.bf16.xpose.msra.mxu1 %v11091_v5  ;;  %v11105_v5 = vpack.c.bf16 %v2960_v22, %v2958_v33  ;;  %v3165_v33 = vld [vmem:[#allocation10 + $0xc00] sm:$0xff]  ;;  %v3167_v22 = vld [vmem:[#allocation10 + $0xc10] sm:$0xff] }
 0x7d1   :  { %7934 = vmatprep.subr.bf16.mxu1 %v11093_v16  ;;  %v2879_v16 = vpop.f32.mrb[186].mxu0  ;;  %v11117_v61 = vpack.c.bf16 %v3167_v22, %v3165_v33  ;;  %v3182_v22 = vld [vmem:[#allocation10 + $0xc88] sm:$0xff] }
 0x7d2   :  { %12939 = vst [vmem:[#allocation188_spill] sm:$0xff] %v11105_v5  ;;  %v2881_v39 = vpop.f32.mrb[187].mxu0 }
 0x7d3   :  { %v2885_v30 = vpop.f32.mrb[188].mxu0  ;;  %12942 = vst [vmem:[#allocation191_spill] sm:$0xff] %v11117_v61 }
 0x7d8   :  { %7936 = vmatpush1.bf16.xpose.msra.mxu1 %v11097_v8  ;;  %v3168_v8 = vld [vmem:[#allocation10 + $0xc18] sm:$0xff] }
 0x7d9   :  { %7938 = vmatprep.subr.bf16.mxu1 %v11099_v48  ;;  %v2887_v48 = vpop.f32.mrb[189].mxu0  ;;  %v11111_v42 = vpack.c.bf16 %v3168_v8, %v3166_v62  ;;  %v3169_v8 = vld [vmem:[#allocation10 + $0xc20] sm:$0xff]  ;;  %v3176_v62 = vld [vmem:[#allocation10 + $0xc58] sm:$0xff] }
 0x7da   :  { %v2891_v45 = vpop.f32.mrb[190].mxu0 }
 0x7db   :  { %12941 = vst [vmem:[#allocation190_spill] sm:$0xff] %v11111_v42  ;;  %v2893_v38 = vpop.f32.mrb[191].mxu0 }
 0x7e0   :  { %7940 = vmatpush1.bf16.xpose.msra.mxu1 %v11103_v15  ;;  %v11115_v15 = vpop.f32.mrb[192].mxu0 }
 0x7e1   :  { %7942 = vmatprep.subr.bf16.mxu1 %v11105_v5  ;;  %v3170_v5 = vld [vmem:[#allocation10 + $0xc28] sm:$0xff]  ;;  %v3143_v36 = vpop.f32.mrb[193].mxu0 }
 0x7e2   :  { %v11119_v58 = vpack.c.bf16 %v3172_v19, %v3170_v5  ;;  %v3173_v19 = vld [vmem:[#allocation10 + $0xc40] sm:$0xff]  ;;  %v3180_v5 = vld [vmem:[#allocation10 + $0xc78] sm:$0xff] }
 0x7e4   :  { %12943 = vst [vmem:[#allocation192_spill] sm:$0xff] %v11119_v58 }
 0x7e8   :  { %7944 = vmatpush1.bf16.xpose.msra.mxu1 %v11109_v0  ;;  %v11126_v0 = vpack.c.bf16 %v3176_v62, %v3174_v37  ;;  %v3183_v37 = vld [vmem:[#allocation10 + $0xc90] sm:$0xff]  ;;  %v3186_v62 = vld [vmem:[#allocation10 + $0xca8] sm:$0xff] }
 0x7e9   :  { %7954 = vmatprep.subr.bf16.mxu1 %v11111_v42  ;;  %v11124_v42 = vpack.c.bf16 %v3171_v32, %v3169_v8 }
 0x7ea   :  { %12945 = vst [vmem:[#allocation194_spill] sm:$0xff] %v11126_v0 }
 0x7eb   :  { %12944 = vst [vmem:[#allocation193_spill] sm:$0xff] %v11124_v42 }
 0x7ef   :  { %3026 = vmatmul.mubr.f32.vlgmr.msra.gmra.mrb[32].mxu1 %v11016_v14  ;;  %v3175_v14 = vld [vmem:[#allocation10 + $0xc50] sm:$0xff] }
 0x7f0   :  { %7956 = vmatpush1.bf16.xpose.msra.mxu1 %v11117_v61  ;;  %3031 = vmatprep.mubr.f32.mxu1 %v2881_v39  ;;  %v3178_v39 = vld [vmem:[#allocation10 + $0xc68] sm:$0xff]  ;;  %v11130_v33 = vpack.c.bf16 %v3175_v14, %v3173_v19  ;;  %v3188_v19 = vld [vmem:[#allocation10 + $0xcb8] sm:$0xff] }
 0x7f1   :  { %7958 = vmatprep.subr.bf16.mxu1 %v11119_v58 }
 0x7f2   :  { %12946 = vst [vmem:[#allocation195_spill] sm:$0xff] %v11130_v33 }
 0x7f3   :  { %3032 = vmatmul.mubr.f32.gmra.mrb[34].mxu1 %v2879_v16  ;;  %v11132_v16 = vpack.c.bf16 %v3180_v5, %v3178_v39  ;;  %v11146_v39 = vpack.c.bf16 %v3188_v19, %v3186_v62  ;;  %v3329_v5 = vld [vmem:[#allocation12 + $0xf0] sm:$0xff]  ;;  %v3595_v62 = vld [vmem:[#allocation12 + $0x100] sm:$0xff] }
 0x7f4   :  { %3037 = vmatprep.mubr.f32.mxu1 %v2887_v48  ;;  %v3177_v48 = vld [vmem:[#allocation10 + $0xc60] sm:$0xff] }
 0x7f5   :  { %12947 = vst [vmem:[#allocation196_spill] sm:$0xff] %v11132_v16  ;;  %12951 = vst [vmem:[#allocation200_spill] sm:$0xff] %v11146_v39  ;;  %v3189_v19 = vld [vmem:[#allocation10 + $0xcc0] sm:$0xff] }
 0x7f7   :  { %3038 = vmatmul.mubr.f32.gmra.mrb[36].mxu1 %v2885_v30  ;;  %v3179_v30 = vld [vmem:[#allocation10 + $0xc70] sm:$0xff] }
 0x7f8   :  { %7960 = vmatpush1.bf16.xpose.msra.mxu1 %v11124_v42  ;;  %3043 = vmatprep.mubr.f32.mxu1 %v2893_v38  ;;  %v3184_v38 = vld [vmem:[#allocation10 + $0xc98] sm:$0xff]  ;;  %v11136_v8 = vpack.c.bf16 %v3179_v30, %v3177_v48  ;;  %v3185_v30 = vld [vmem:[#allocation10 + $0xca0] sm:$0xff] }
 0x7f9   :  { %7962 = vmatprep.subr.bf16.mxu1 %v11126_v0  ;;  %v11138_v32 = vpack.c.bf16 %v3184_v38, %v3182_v22  ;;  %v3330_v48 = vld [vmem:[#allocation12 + $0xf8] sm:$0xff]  ;;  %v3187_v22 = vld [vmem:[#allocation10 + $0xcb0] sm:$0xff]  ;;  %v3190_v38 = vld [vmem:[#allocation10 + $0xcc8] sm:$0xff] }
 0x7fa   :  { %12948 = vst [vmem:[#allocation197_spill] sm:$0xff] %v11136_v8  ;;  %v3440_v0 = vld [vmem:[#allocation10 + $0xe38] sm:$0xff] }
 0x7fb   :  { %3044 = vmatmul.mubr.f32.gmra.mrb[38].mxu1 %v2891_v45  ;;  %12949 = vst [vmem:[#allocation198_spill] sm:$0xff] %v11138_v32  ;;  %v3328_v45 = vld [vmem:[#allocation12 + $0xe8] sm:$0xff] }
 0x7fc   :  { %3293 = vmatprep.mubr.f32.mxu1 %v3143_v36  ;;  %v3181_v36 = vld [vmem:[#allocation10 + $0xc80] sm:$0xff]  ;;  %7297 = vmatmul.mubr.msk.f32.gmra.mrb[202].mxu0 %vm1471_vm2, %v3328_v45  ;;  %v3192_v45 = vld [vmem:[#allocation10 + $0xcd8] sm:$0xff] }
 0x7fd   :  { %3419 = vmatprep.mubr.f32.mxu0 %v12821_v23  ;;  %v11144_v14 = vpack.c.bf16 %v3183_v37, %v3181_v36  ;;  %v11153_v36 = vpack.c.bf16 %v3187_v22, %v3185_v30  ;;  %v11156_v37 = vpack.c.bf16 %v3192_v45, %v3190_v38  ;;  %v3597_v38 = vld [vmem:[#allocation12 + $0x110] sm:$0xff]  ;;  %v3193_v45 = vld [vmem:[#allocation10 + $0xce0] sm:$0xff] }
 0x7ff   :  { %12950 = vst [vmem:[#allocation199_spill] sm:$0xff] %v11144_v14  ;;  %12952 = vst [vmem:[#allocation201_spill] sm:$0xff] %v11153_v36 }
 0x800   :  { %7964 = vmatpush1.bf16.xpose.msra.mxu1 %v11130_v33  ;;  %7298 = vmatmul.mubr.msk.f32.gmra.mrb[204].mxu0 %vm1471_vm2, %v3329_v5  ;;  %12953 = vst [vmem:[#allocation202_spill] sm:$0xff] %v11156_v37  ;;  %v3191_v5 = vld [vmem:[#allocation10 + $0xcd0] sm:$0xff] }
 0x801   :  { %7966 = vmatprep.subr.bf16.mxu1 %v11132_v16  ;;  %3425 = vmatprep.mubr.f32.mxu0 %v12821_v23  ;;  %v11162_v30 = vpack.c.bf16 %v3191_v5, %v3189_v19  ;;  %v3198_v19 = vld [vmem:[#allocation10 + $0xd08] sm:$0xff]  ;;  %v3200_v5 = vld [vmem:[#allocation10 + $0xd18] sm:$0xff] }
 0x803   :  { %12954 = vst [vmem:[#allocation203_spill] sm:$0xff] %v11162_v30 }
 0x804   :  { %7299 = vmatmul.mubr.msk.f32.gmra.mrb[206].mxu0 %vm1471_vm2, %v3330_v48  ;;  %v3196_v48 = vld [vmem:[#allocation10 + $0xcf8] sm:$0xff] }
 0x805   :  { %3675 = vmatprep.mubr.f32.mxu0 %v12821_v23 }
 0x808   :  { %7968 = vmatpush1.bf16.xpose.msra.mxu1 %v11136_v8  ;;  %7300 = vmatmul.mubr.msk.f32.vlgmr.msra.gmra.mrb[208].mxu0 %vm1471_vm2, %v3595_v62  ;;  %v3195_v62 = vld [vmem:[#allocation10 + $0xcf0] sm:$0xff] }
 0x809   :  { %7970 = vmatprep.subr.bf16.mxu1 %v11138_v32  ;;  %3681 = vmatprep.mubr.f32.mxu0 %v12821_v23 }
 0x810   :  { %7972 = vmatpush1.bf16.xpose.msra.mxu1 %v11144_v14  ;;  %v3194_v14 = vld [vmem:[#allocation10 + $0xce8] sm:$0xff] }
 0x811   :  { %7974 = vmatprep.subr.bf16.mxu1 %v11146_v39  ;;  %v3596_v39 = vld [vmem:[#allocation12 + $0x108] sm:$0xff]  ;;  %v11165_v22 = vpack.c.bf16 %v3196_v48, %v3194_v14  ;;  %v11175_v14 = vpack.c.bf16 %v3200_v5, %v3198_v19  ;;  %v3199_v48 = vld [vmem:[#allocation10 + $0xd10] sm:$0xff]  ;;  %v3208_v19 = vld [vmem:[#allocation10 + $0xd58] sm:$0xff] }
 0x812   :  { %7301 = vmatmul.mubr.msk.f32.gmra.mrb[210].mxu0 %vm1471_vm2, %v3596_v39  ;;  %v3197_v39 = vld [vmem:[#allocation10 + $0xd00] sm:$0xff] }
 0x813   :  { %12955 = vst [vmem:[#allocation204_spill] sm:$0xff] %v11165_v22  ;;  %3687 = vmatprep.mubr.f32.mxu0 %v12821_v23  ;;  %12957 = vst [vmem:[#allocation206_spill] sm:$0xff] %v11175_v14 }
 0x816   :  { %7302 = vmatmul.mubr.msk.f32.gmra.mrb[212].mxu0 %vm1471_vm2, %v3597_v38  ;;  %v3202_v38 = vld [vmem:[#allocation10 + $0xd28] sm:$0xff] }
 0x817   :  { %3693 = vmatprep.mubr.f32.mxu0 %v12821_v23 }
 0x818   :  { %7976 = vmatpush1.bf16.xpose.msra.mxu1 %v11153_v36  ;;  %v11172_v36 = vpack.c.bf16 %v3195_v62, %v3193_v45  ;;  %v3203_v45 = vld [vmem:[#allocation10 + $0xd30] sm:$0xff]  ;;  %v3206_v62 = vld [vmem:[#allocation10 + $0xd48] sm:$0xff] }
 0x819   :  { %7978 = vmatprep.subr.bf16.mxu1 %v11156_v37  ;;  %v3598_v37 = vld [vmem:[#allocation12 + $0x118] sm:$0xff] }
 0x81a   :  { %12956 = vst [vmem:[#allocation205_spill] sm:$0xff] %v11172_v36  ;;  %7303 = vmatmul.mubr.msk.f32.gmra.mrb[214].mxu0 %vm1471_vm2, %v3598_v37  ;;  %v3201_v37 = vld [vmem:[#allocation10 + $0xd20] sm:$0xff] }
 0x81b   :  { %3982 = vmatprep.mubr.f32.mxu0 %v12821_v23  ;;  %v11186_v5 = vpack.c.bf16 %v3203_v45, %v3201_v37  ;;  %v3209_v37 = vld [vmem:[#allocation10 + $0xd60] sm:$0xff]  ;;  %v3211_v45 = vld [vmem:[#allocation10 + $0xd70] sm:$0xff] }
 0x81d   :  { %12960 = vst [vmem:[#allocation209_spill] sm:$0xff] %v11186_v5 }
 0x820   :  { %7980 = vmatpush1.bf16.xpose.msra.mxu1 %v11162_v30  ;;  %v11180_v30 = vpack.c.bf16 %v3199_v48, %v3197_v39  ;;  %v3205_v39 = vld [vmem:[#allocation10 + $0xd40] sm:$0xff]  ;;  %v3207_v48 = vld [vmem:[#allocation10 + $0xd50] sm:$0xff] }
 0x821   :  { %7982 = vmatprep.subr.bf16.mxu1 %v11165_v22  ;;  %v3204_v22 = vld [vmem:[#allocation10 + $0xd38] sm:$0xff] }
 0x822   :  { %12958 = vst [vmem:[#allocation207_spill] sm:$0xff] %v11180_v30  ;;  %v11182_v32 = vpack.c.bf16 %v3204_v22, %v3202_v38  ;;  %v3210_v22 = vld [vmem:[#allocation10 + $0xd68] sm:$0xff]  ;;  %v3212_v38 = vld [vmem:[#allocation10 + $0xd78] sm:$0xff] }
 0x824   :  { %12959 = vst [vmem:[#allocation208_spill] sm:$0xff] %v11182_v32 }
 0x828   :  { %7984 = vmatpush1.bf16.xpose.msra.mxu1 %v11172_v36  ;;  %v11188_v36 = vpack.c.bf16 %v3208_v19, %v3206_v62  ;;  %v3214_v62 = vld [vmem:[#allocation10 + $0xd88] sm:$0xff]  ;;  %v3216_v19 = vld [vmem:[#allocation10 + $0xd98] sm:$0xff] }
 0x829   :  { %7986 = vmatprep.subr.bf16.mxu1 %v11175_v14  ;;  %v11192_v14 = vpack.c.bf16 %v3207_v48, %v3205_v39  ;;  %v3213_v39 = vld [vmem:[#allocation10 + $0xd80] sm:$0xff]  ;;  %v3215_v48 = vld [vmem:[#allocation10 + $0xd90] sm:$0xff] }
 0x82a   :  { %12961 = vst [vmem:[#allocation210_spill] sm:$0xff] %v11188_v36 }
 0x82b   :  { %12962 = vst [vmem:[#allocation211_spill] sm:$0xff] %v11192_v14 }
 0x830   :  { %7988 = vmatpush1.bf16.xpose.msra.mxu1 %v11180_v30  ;;  %v11194_v30 = vpack.c.bf16 %v3212_v38, %v3210_v22  ;;  %v3218_v22 = vld [vmem:[#allocation10 + $0xda8] sm:$0xff]  ;;  %v3220_v38 = vld [vmem:[#allocation10 + $0xdb8] sm:$0xff] }
 0x831   :  { %7990 = vmatprep.subr.bf16.mxu1 %v11182_v32  ;;  %v11198_v32 = vpack.c.bf16 %v3211_v45, %v3209_v37  ;;  %v3217_v37 = vld [vmem:[#allocation10 + $0xda0] sm:$0xff]  ;;  %v3219_v45 = vld [vmem:[#allocation10 + $0xdb0] sm:$0xff] }
 0x832   :  { %12963 = vst [vmem:[#allocation212_spill] sm:$0xff] %v11194_v30 }
 0x833   :  { %12964 = vst [vmem:[#allocation213_spill] sm:$0xff] %v11198_v32 }
 0x838   :  { %7992 = vmatpush1.bf16.xpose.msra.mxu1 %v11186_v5  ;;  %v11200_v5 = vpack.c.bf16 %v3216_v19, %v3214_v62  ;;  %v3222_v62 = vld [vmem:[#allocation10 + $0xdc8] sm:$0xff]  ;;  %v3224_v19 = vld [vmem:[#allocation10 + $0xdd8] sm:$0xff] }
 0x839   :  { %7994 = vmatprep.subr.bf16.mxu1 %v11188_v36  ;;  %v11204_v36 = vpack.c.bf16 %v3215_v48, %v3213_v39  ;;  %v3221_v39 = vld [vmem:[#allocation10 + $0xdc0] sm:$0xff]  ;;  %v3223_v48 = vld [vmem:[#allocation10 + $0xdd0] sm:$0xff] }
 0x83a   :  { %12965 = vst [vmem:[#allocation214_spill] sm:$0xff] %v11200_v5 }
 0x83b   :  { %12966 = vst [vmem:[#allocation215_spill] sm:$0xff] %v11204_v36 }
 0x840   :  { %7996 = vmatpush1.bf16.xpose.msra.mxu1 %v11192_v14  ;;  %v11206_v14 = vpack.c.bf16 %v3220_v38, %v3218_v22  ;;  %v3226_v22 = vld [vmem:[#allocation10 + $0xde8] sm:$0xff]  ;;  %v3228_v38 = vld [vmem:[#allocation10 + $0xdf8] sm:$0xff] }
 0x841   :  { %7998 = vmatprep.subr.bf16.mxu1 %v11194_v30  ;;  %v11210_v30 = vpack.c.bf16 %v3219_v45, %v3217_v37  ;;  %v3225_v37 = vld [vmem:[#allocation10 + $0xde0] sm:$0xff]  ;;  %v3227_v45 = vld [vmem:[#allocation10 + $0xdf0] sm:$0xff] }
 0x842   :  { %12967 = vst [vmem:[#allocation216_spill] sm:$0xff] %v11206_v14  ;;  %v11222_v16 = vpack.c.bf16 %v3227_v45, %v3225_v37  ;;  %v3439_v37 = vld [vmem:[#allocation10 + $0xe30] sm:$0xff]  ;;  %v3442_v45 = vld [vmem:[#allocation10 + $0xe48] sm:$0xff] }
 0x843   :  { %12968 = vst [vmem:[#allocation217_spill] sm:$0xff] %v11210_v30 }
 0x844   :  { %12972 = vst [vmem:[#allocation221_spill] sm:$0xff] %v11222_v16 }
 0x848   :  { %8000 = vmatpush1.bf16.xpose.msra.mxu1 %v11198_v32  ;;  %v11212_v32 = vpack.c.bf16 %v3224_v19, %v3222_v62  ;;  %v3434_v19 = vld [vmem:[#allocation10 + $0xe08] sm:$0xff] }
 0x849   :  { %8002 = vmatprep.subr.bf16.mxu1 %v11200_v5  ;;  %v11216_v5 = vpack.c.bf16 %v3223_v48, %v3221_v39 }
 0x84a   :  { %12969 = vst [vmem:[#allocation218_spill] sm:$0xff] %v11212_v32 }
 0x84b   :  { %12970 = vst [vmem:[#allocation219_spill] sm:$0xff] %v11216_v5 }
 0x850   :  { %8004 = vmatpush1.bf16.xpose.msra.mxu1 %v11204_v36  ;;  %v11218_v36 = vpack.c.bf16 %v3228_v38, %v3226_v22  ;;  %v3433_v22 = vld [vmem:[#allocation10 + $0xe00] sm:$0xff]  ;;  %v3435_v38 = vld [vmem:[#allocation10 + $0xe10] sm:$0xff] }
 0x851   :  { %8006 = vmatprep.subr.bf16.mxu1 %v11206_v14  ;;  %v3147_v14 = vpop.f32.mrb[194].mxu0  ;;  %v11230_v58 = vpack.c.bf16 %v3435_v38, %v3433_v22  ;;  %v3450_v38 = vld [vmem:[#allocation10 + $0xe88] sm:$0xff] }
 0x852   :  { %12971 = vst [vmem:[#allocation220_spill] sm:$0xff] %v11218_v36  ;;  %v3149_v8 = vpop.f32.mrb[195].mxu0 }
 0x853   :  { %v3153_v62 = vpop.f32.mrb[196].mxu0  ;;  %12974 = vst [vmem:[#allocation223_spill] sm:$0xff] %v11230_v58 }
 0x858   :  { %8008 = vmatpush1.bf16.xpose.msra.mxu1 %v11210_v30  ;;  %v3436_v30 = vld [vmem:[#allocation10 + $0xe18] sm:$0xff] }
 0x859   :  { %8010 = vmatprep.subr.bf16.mxu1 %v11212_v32  ;;  %v3155_v32 = vpop.f32.mrb[197].mxu0  ;;  %v11224_v33 = vpack.c.bf16 %v3436_v30, %v3434_v19  ;;  %v3437_v30 = vld [vmem:[#allocation10 + $0xe20] sm:$0xff]  ;;  %v3444_v19 = vld [vmem:[#allocation10 + $0xe58] sm:$0xff] }
 0x85a   :  { %v3159_v39 = vpop.f32.mrb[198].mxu0 }
 0x85b   :  { %12973 = vst [vmem:[#allocation222_spill] sm:$0xff] %v11224_v33  ;;  %v3161_v48 = vpop.f32.mrb[199].mxu0 }
 0x860   :  { %8012 = vmatpush1.bf16.xpose.msra.mxu1 %v11216_v5  ;;  %v11228_v5 = vpop.f32.mrb[200].mxu0 }
 0x861   :  { %8014 = vmatprep.subr.bf16.mxu1 %v11218_v36  ;;  %v3438_v36 = vld [vmem:[#allocation10 + $0xe28] sm:$0xff]  ;;  %v3411_v42 = vpop.f32.mrb[201].mxu0 }
 0x862   :  { %v11232_v61 = vpack.c.bf16 %v3440_v0, %v3438_v36  ;;  %v3441_v0 = vld [vmem:[#allocation10 + $0xe40] sm:$0xff]  ;;  %v3448_v36 = vld [vmem:[#allocation10 + $0xe78] sm:$0xff] }
 0x864   :  { %12975 = vst [vmem:[#allocation224_spill] sm:$0xff] %v11232_v61 }
 0x868   :  { %8016 = vmatpush1.bf16.xpose.msra.mxu1 %v11222_v16  ;;  %v11239_v16 = vpack.c.bf16 %v3444_v19, %v3442_v45  ;;  %v3454_v45 = vld [vmem:[#allocation10 + $0xea8] sm:$0xff]  ;;  %v3456_v19 = vld [vmem:[#allocation10 + $0xeb8] sm:$0xff] }
 0x869   :  { %8026 = vmatprep.subr.bf16.mxu1 %v11224_v33  ;;  %v11237_v33 = vpack.c.bf16 %v3439_v37, %v3437_v30 }
 0x86a   :  { %12977 = vst [vmem:[#allocation226_spill] sm:$0xff] %v11239_v16 }
 0x86b   :  { %12976 = vst [vmem:[#allocation225_spill] sm:$0xff] %v11237_v33 }
 0x86f   :  { %3294 = vmatmul.mubr.f32.vlgmr.msra.gmra.mrb[32].mxu1 %v11115_v15  ;;  %v3443_v15 = vld [vmem:[#allocation10 + $0xe50] sm:$0xff] }
 0x870   :  { %8028 = vmatpush1.bf16.xpose.msra.mxu1 %v11230_v58  ;;  %3299 = vmatprep.mubr.f32.mxu1 %v3149_v8  ;;  %v3446_v8 = vld [vmem:[#allocation10 + $0xe68] sm:$0xff]  ;;  %v11243_v22 = vpack.c.bf16 %v3443_v15, %v3441_v0  ;;  %v11257_v15 = vpack.c.bf16 %v3456_v19, %v3454_v45  ;;  %v3464_v19 = vld [vmem:[#allocation10 + $0xef8] sm:$0xff] }
 0x871   :  { %8030 = vmatprep.subr.bf16.mxu1 %v11232_v61  ;;  %v3462_v45 = vld [vmem:[#allocation10 + $0xee8] sm:$0xff] }
 0x872   :  { %12978 = vst [vmem:[#allocation227_spill] sm:$0xff] %v11243_v22  ;;  %12983 = vst [vmem:[#allocation232_spill] sm:$0xff] %v11257_v15 }
 0x873   :  { %3300 = vmatmul.mubr.f32.gmra.mrb[34].mxu1 %v3147_v14  ;;  %v11245_v14 = vpack.c.bf16 %v3448_v36, %v3446_v8  ;;  %v3453_v8 = vld [vmem:[#allocation10 + $0xea0] sm:$0xff]  ;;  %v3455_v36 = vld [vmem:[#allocation10 + $0xeb0] sm:$0xff] }
 0x874   :  { %3305 = vmatprep.mubr.f32.mxu1 %v3155_v32  ;;  %v3445_v32 = vld [vmem:[#allocation10 + $0xe60] sm:$0xff] }
 0x875   :  { %12979 = vst [vmem:[#allocation228_spill] sm:$0xff] %v11245_v14 }
 0x877   :  { %3306 = vmatmul.mubr.f32.gmra.mrb[36].mxu1 %v3153_v62  ;;  %v3447_v62 = vld [vmem:[#allocation10 + $0xe70] sm:$0xff] }
 0x878   :  { %8032 = vmatpush1.bf16.xpose.msra.mxu1 %v11237_v33  ;;  %3311 = vmatprep.mubr.f32.mxu1 %v3161_v48  ;;  %v3452_v48 = vld [vmem:[#allocation10 + $0xe98] sm:$0xff]  ;;  %v11249_v30 = vpack.c.bf16 %v3447_v62, %v3445_v32  ;;  %v3458_v32 = vld [vmem:[#allocation10 + $0xec8] sm:$0xff] }
 0x879   :  { %8034 = vmatprep.subr.bf16.mxu1 %v11239_v16  ;;  %v11251_v37 = vpack.c.bf16 %v3452_v48, %v3450_v38  ;;  %v3460_v62 = vld [vmem:[#allocation10 + $0xed8] sm:$0xff]  ;;  %v11261_v38 = vpack.c.bf16 %v3455_v36, %v3453_v8  ;;  %v3461_v8 = vld [vmem:[#allocation10 + $0xee0] sm:$0xff]  ;;  %v3463_v36 = vld [vmem:[#allocation10 + $0xef0] sm:$0xff] }
 0x87a   :  { %12980 = vst [vmem:[#allocation229_spill] sm:$0xff] %v11249_v30  ;;  %v11263_v48 = vpack.c.bf16 %v3460_v62, %v3458_v32  ;;  %v3466_v32 = vld [vmem:[#allocation10 + $0xf08] sm:$0xff]  ;;  %v3468_v62 = vld [vmem:[#allocation10 + $0xf18] sm:$0xff] }
 0x87b   :  { %3312 = vmatmul.mubr.f32.gmra.mrb[38].mxu1 %v3159_v39  ;;  %12981 = vst [vmem:[#allocation230_spill] sm:$0xff] %v11251_v37  ;;  %v3449_v39 = vld [vmem:[#allocation10 + $0xe80] sm:$0xff]  ;;  %12984 = vst [vmem:[#allocation233_spill] sm:$0xff] %v11261_v38 }
 0x87c   :  { %3561 = vmatprep.mubr.f32.mxu1 %v3411_v42  ;;  %v3451_v42 = vld [vmem:[#allocation10 + $0xe90] sm:$0xff]  ;;  %12985 = vst [vmem:[#allocation234_spill] sm:$0xff] %v11263_v48 }
 0x87d   :  { %v11255_v0 = vpack.c.bf16 %v3451_v42, %v3449_v39  ;;  %v3457_v39 = vld [vmem:[#allocation10 + $0xec0] sm:$0xff]  ;;  %v3459_v42 = vld [vmem:[#allocation10 + $0xed0] sm:$0xff] }
 0x87f   :  { %12982 = vst [vmem:[#allocation231_spill] sm:$0xff] %v11255_v0 }
 0x880   :  { %8036 = vmatpush1.bf16.xpose.msra.mxu1 %v11243_v22 }
 0x881   :  { %8038 = vmatprep.subr.bf16.mxu1 %v11245_v14 }
 0x888   :  { %8040 = vmatpush1.bf16.xpose.msra.mxu1 %v11249_v30 }
 0x889   :  { %8042 = vmatprep.subr.bf16.mxu1 %v11251_v37  ;;  %v11267_v37 = vpack.c.bf16 %v3459_v42, %v3457_v39  ;;  %v3465_v39 = vld [vmem:[#allocation10 + $0xf00] sm:$0xff]  ;;  %v3467_v42 = vld [vmem:[#allocation10 + $0xf10] sm:$0xff] }
 0x88b   :  { %12986 = vst [vmem:[#allocation235_spill] sm:$0xff] %v11267_v37 }
 0x890   :  { %8044 = vmatpush1.bf16.xpose.msra.mxu1 %v11255_v0  ;;  %v11269_v0 = vpack.c.bf16 %v3464_v19, %v3462_v45  ;;  %v3470_v45 = vld [vmem:[#allocation10 + $0xf28] sm:$0xff]  ;;  %v3472_v19 = vld [vmem:[#allocation10 + $0xf38] sm:$0xff] }
 0x891   :  { %8046 = vmatprep.subr.bf16.mxu1 %v11257_v15  ;;  %v11273_v15 = vpack.c.bf16 %v3463_v36, %v3461_v8  ;;  %v3469_v8 = vld [vmem:[#allocation10 + $0xf20] sm:$0xff]  ;;  %v3471_v36 = vld [vmem:[#allocation10 + $0xf30] sm:$0xff] }
 0x892   :  { %12987 = vst [vmem:[#allocation236_spill] sm:$0xff] %v11269_v0 }
 0x893   :  { %12988 = vst [vmem:[#allocation237_spill] sm:$0xff] %v11273_v15 }
 0x898   :  { %8048 = vmatpush1.bf16.xpose.msra.mxu1 %v11261_v38  ;;  %v11275_v38 = vpack.c.bf16 %v3468_v62, %v3466_v32  ;;  %v3474_v32 = vld [vmem:[#allocation10 + $0xf48] sm:$0xff]  ;;  %v3476_v62 = vld [vmem:[#allocation10 + $0xf58] sm:$0xff] }
 0x899   :  { %8050 = vmatprep.subr.bf16.mxu1 %v11263_v48  ;;  %v11279_v48 = vpack.c.bf16 %v3467_v42, %v3465_v39  ;;  %v3473_v39 = vld [vmem:[#allocation10 + $0xf40] sm:$0xff]  ;;  %v3475_v42 = vld [vmem:[#allocation10 + $0xf50] sm:$0xff] }
 0x89a   :  { %12989 = vst [vmem:[#allocation238_spill] sm:$0xff] %v11275_v38 }
 0x89b   :  { %12990 = vst [vmem:[#allocation239_spill] sm:$0xff] %v11279_v48 }
 0x8a0   :  { %8052 = vmatpush1.bf16.xpose.msra.mxu1 %v11267_v37  ;;  %v11281_v37 = vpack.c.bf16 %v3472_v19, %v3470_v45  ;;  %v3478_v45 = vld [vmem:[#allocation10 + $0xf68] sm:$0xff]  ;;  %v3480_v19 = vld [vmem:[#allocation10 + $0xf78] sm:$0xff] }
 0x8a1   :  { %8054 = vmatprep.subr.bf16.mxu1 %v11269_v0  ;;  %v11285_v0 = vpack.c.bf16 %v3471_v36, %v3469_v8  ;;  %v3477_v8 = vld [vmem:[#allocation10 + $0xf60] sm:$0xff]  ;;  %v3479_v36 = vld [vmem:[#allocation10 + $0xf70] sm:$0xff] }
 0x8a2   :  { %12991 = vst [vmem:[#allocation240_spill] sm:$0xff] %v11281_v37 }
 0x8a3   :  { %12992 = vst [vmem:[#allocation241_spill] sm:$0xff] %v11285_v0 }
 0x8a8   :  { %8056 = vmatpush1.bf16.xpose.msra.mxu1 %v11273_v15  ;;  %v11287_v15 = vpack.c.bf16 %v3476_v62, %v3474_v32  ;;  %v3482_v32 = vld [vmem:[#allocation10 + $0xf88] sm:$0xff]  ;;  %v3484_v62 = vld [vmem:[#allocation10 + $0xf98] sm:$0xff] }
 0x8a9   :  { %8058 = vmatprep.subr.bf16.mxu1 %v11275_v38  ;;  %v11291_v38 = vpack.c.bf16 %v3475_v42, %v3473_v39  ;;  %v3481_v39 = vld [vmem:[#allocation10 + $0xf80] sm:$0xff]  ;;  %v3483_v42 = vld [vmem:[#allocation10 + $0xf90] sm:$0xff] }
 0x8aa   :  { %12993 = vst [vmem:[#allocation242_spill] sm:$0xff] %v11287_v15 }
 0x8ab   :  { %12994 = vst [vmem:[#allocation243_spill] sm:$0xff] %v11291_v38 }
 0x8b0   :  { %8060 = vmatpush1.bf16.xpose.msra.mxu1 %v11279_v48  ;;  %v11293_v48 = vpack.c.bf16 %v3480_v19, %v3478_v45  ;;  %v3486_v45 = vld [vmem:[#allocation10 + $0xfa8] sm:$0xff]  ;;  %v3488_v19 = vld [vmem:[#allocation10 + $0xfb8] sm:$0xff] }
 0x8b1   :  { %8062 = vmatprep.subr.bf16.mxu1 %v11281_v37  ;;  %v11297_v37 = vpack.c.bf16 %v3479_v36, %v3477_v8  ;;  %v3485_v8 = vld [vmem:[#allocation10 + $0xfa0] sm:$0xff]  ;;  %v3487_v36 = vld [vmem:[#allocation10 + $0xfb0] sm:$0xff] }
 0x8b2   :  { %12995 = vst [vmem:[#allocation244_spill] sm:$0xff] %v11293_v48 }
 0x8b3   :  { %12996 = vst [vmem:[#allocation245_spill] sm:$0xff] %v11297_v37 }
 0x8b8   :  { %8064 = vmatpush1.bf16.xpose.msra.mxu1 %v11285_v0  ;;  %v11299_v0 = vpack.c.bf16 %v3484_v62, %v3482_v32  ;;  %v3490_v32 = vld [vmem:[#allocation10 + $0xfc8] sm:$0xff]  ;;  %v3492_v62 = vld [vmem:[#allocation10 + $0xfd8] sm:$0xff] }
 0x8b9   :  { %8066 = vmatprep.subr.bf16.mxu1 %v11287_v15  ;;  %v11303_v15 = vpack.c.bf16 %v3483_v42, %v3481_v39  ;;  %v3489_v39 = vld [vmem:[#allocation10 + $0xfc0] sm:$0xff]  ;;  %v3491_v42 = vld [vmem:[#allocation10 + $0xfd0] sm:$0xff] }
 0x8ba   :  { %12997 = vst [vmem:[#allocation246_spill] sm:$0xff] %v11299_v0 }
 0x8bb   :  { %12998 = vst [vmem:[#allocation247_spill] sm:$0xff] %v11303_v15 }
 0x8c0   :  { %8068 = vmatpush1.bf16.xpose.msra.mxu1 %v11291_v38  ;;  %v11305_v38 = vpack.c.bf16 %v3488_v19, %v3486_v45  ;;  %v3494_v45 = vld [vmem:[#allocation10 + $0xfe8] sm:$0xff]  ;;  %v3496_v19 = vld [vmem:[#allocation10 + $0xff8] sm:$0xff] }
 0x8c1   :  { %8070 = vmatprep.subr.bf16.mxu1 %v11293_v48  ;;  %v11309_v48 = vpack.c.bf16 %v3487_v36, %v3485_v8  ;;  %v3493_v8 = vld [vmem:[#allocation10 + $0xfe0] sm:$0xff]  ;;  %v3495_v36 = vld [vmem:[#allocation10 + $0xff0] sm:$0xff] }
 0x8c2   :  { %12999 = vst [vmem:[#allocation248_spill] sm:$0xff] %v11305_v38  ;;  %v11321_v14 = vpack.c.bf16 %v3495_v36, %v3493_v8 }
 0x8c3   :  { %13000 = vst [vmem:[#allocation249_spill] sm:$0xff] %v11309_v48 }
 0x8c4   :  { %13004 = vst [vmem:[#allocation253_spill] sm:$0xff] %v11321_v14 }
 0x8c8   :  { %8072 = vmatpush1.bf16.xpose.msra.mxu1 %v11297_v37  ;;  %v11311_v37 = vpack.c.bf16 %v3492_v62, %v3490_v32  ;;  %v3702_v32 = vld [vmem:[#allocation10 + $0x1008] sm:$0xff]  ;;  %v3704_v62 = vld [vmem:[#allocation10 + $0x1018] sm:$0xff] }
 0x8c9   :  { %8074 = vmatprep.subr.bf16.mxu1 %v11299_v0  ;;  %v11315_v0 = vpack.c.bf16 %v3491_v42, %v3489_v39  ;;  %v11323_v22 = vpack.c.bf16 %v3704_v62, %v3702_v32  ;;  %v3705_v32 = vld [vmem:[#allocation10 + $0x1020] sm:$0xff]  ;;  %v3707_v62 = vld [vmem:[#allocation10 + $0x1030] sm:$0xff] }
 0x8ca   :  { %13001 = vst [vmem:[#allocation250_spill] sm:$0xff] %v11311_v37 }
 0x8cb   :  { %13002 = vst [vmem:[#allocation251_spill] sm:$0xff] %v11315_v0  ;;  %13005 = vst [vmem:[#allocation254_spill] sm:$0xff] %v11323_v22 }
 0x8d0   :  { %8076 = vmatpush1.bf16.xpose.msra.mxu1 %v11303_v15  ;;  %v3415_v15 = vpop.f32.mrb[202].mxu0 }
 0x8d1   :  { %8078 = vmatprep.subr.bf16.mxu1 %v11305_v38  ;;  %v11317_v38 = vpack.c.bf16 %v3496_v19, %v3494_v45  ;;  %v3417_v30 = vpop.f32.mrb[203].mxu0  ;;  %v3701_v45 = vld [vmem:[#allocation10 + $0x1000] sm:$0xff]  ;;  %v3703_v19 = vld [vmem:[#allocation10 + $0x1010] sm:$0xff] }
 0x8d2   :  { %v11329_v33 = vpack.c.bf16 %v3703_v19, %v3701_v45 }
 0x8d3   :  { %13003 = vst [vmem:[#allocation252_spill] sm:$0xff] %v11317_v38 }
 0x8d4   :  { %13006 = vst [vmem:[#allocation255_spill] sm:$0xff] %v11329_v33 }
 0x8d8   :  { %8080 = vmatpush1.bf16.xpose.msra.mxu1 %v11309_v48  ;;  %v3421_v48 = vpop.f32.mrb[204].mxu0 }
 0x8d9   :  { %8082 = vmatprep.subr.bf16.mxu1 %v11311_v37  ;;  %v3423_v37 = vpop.f32.mrb[205].mxu0 }
 0x8da   :  { %v3427_v39 = vpop.f32.mrb[206].mxu0 }
 0x8db   :  { %v3429_v42 = vpop.f32.mrb[207].mxu0 }
 0x8dc   :  { %v11327_v16 = vpop.f32.mrb[208].mxu0 }
 0x8dd   :  { %v3679_v61 = vpop.f32.mrb[209].mxu0 }
 0x8e0   :  { %8084 = vmatpush1.bf16.xpose.msra.mxu1 %v11315_v0  ;;  %v3706_v0 = vld [vmem:[#allocation10 + $0x1028] sm:$0xff] }
 0x8e1   :  { %8086 = vmatprep.subr.bf16.mxu1 %v11317_v38  ;;  %v3708_v38 = vld [vmem:[#allocation10 + $0x1038] sm:$0xff] }
 0x8e2   :  { %v11331_v58 = vpack.c.bf16 %v3708_v38, %v3706_v0  ;;  %v11342_v0 = vpack.c.bf16 %v3707_v62, %v3705_v32  ;;  %v3716_v32 = vld [vmem:[#allocation10 + $0x1078] sm:$0xff] }
 0x8e3   :  { %v3720_v62 = vld [vmem:[#allocation10 + $0x1098] sm:$0xff] }
 0x8e4   :  { %13007 = vst [vmem:[#allocation256_spill] sm:$0xff] %v11331_v58  ;;  %13008 = vst [vmem:[#allocation257_spill] sm:$0xff] %v11342_v0 }
 0x8e5   :  { %v11334_v8 = vpop.f32.mrb[210].mxu0 }
 0x8e6   :  { %v11337_v36 = vpop.f32.mrb[211].mxu0 }
 0x8e8   :  { %8088 = vmatpush1.bf16.xpose.msra.mxu1 %v11321_v14  ;;  %v3712_v14 = vld [vmem:[#allocation10 + $0x1058] sm:$0xff] }
 0x8e9   :  { %8098 = vmatprep.subr.bf16.mxu1 %v11323_v22  ;;  %v3710_v22 = vld [vmem:[#allocation10 + $0x1048] sm:$0xff]  ;;  %v11340_v45 = vpop.f32.mrb[212].mxu0 }
 0x8ea   :  { %v11346_v38 = vpack.c.bf16 %v3712_v14, %v3710_v22  ;;  %v3713_v14 = vld [vmem:[#allocation10 + $0x1060] sm:$0xff] }
 0x8ec   :  { %13009 = vst [vmem:[#allocation258_spill] sm:$0xff] %v11346_v38 }
 0x8ef   :  { %3562 = vmatmul.mubr.f32.vlgmr.msra.gmra.mrb[32].mxu1 %v11228_v5  ;;  %v11344_v5 = vpop.f32.mrb[213].mxu0 }
 0x8f0   :  { %8100 = vmatpush1.bf16.xpose.msra.mxu1 %v11329_v33  ;;  %3567 = vmatprep.mubr.f32.mxu1 %v3417_v30  ;;  %v11348_v30 = vpop.f32.mrb[214].mxu0  ;;  %v3714_v33 = vld [vmem:[#allocation10 + $0x1068] sm:$0xff] }
 0x8f1   :  { %8102 = vmatprep.subr.bf16.mxu1 %v11331_v58  ;;  %v11351_v19 = vpop.f32.mrb[215].mxu0  ;;  %v3711_v58 = vld [vmem:[#allocation10 + $0x1050] sm:$0xff]  ;;  %v11356_v22 = vpack.c.bf16 %v3716_v32, %v3714_v33  ;;  %v3722_v33 = vld [vmem:[#allocation10 + $0x10a8] sm:$0xff] }
 0x8f3   :  { %3568 = vmatmul.mubr.f32.gmra.mrb[34].mxu1 %v3415_v15  ;;  %v3709_v15 = vld [vmem:[#allocation10 + $0x1040] sm:$0xff]  ;;  %13010 = vst [vmem:[#allocation259_spill] sm:$0xff] %v11356_v22 }
 0x8f4   :  { %3573 = vmatprep.mubr.f32.mxu1 %v3423_v37  ;;  %v11354_v37 = vpack.c.bf16 %v3711_v58, %v3709_v15  ;;  %v3717_v58 = vld [vmem:[#allocation10 + $0x1080] sm:$0xff] }
 0x8f7   :  { %3574 = vmatmul.mubr.f32.gmra.mrb[36].mxu1 %v3421_v48  ;;  %v3715_v48 = vld [vmem:[#allocation10 + $0x1070] sm:$0xff] }
 0x8f8   :  { %8104 = vmatpush1.bf16.xpose.msra.mxu1 %v11342_v0  ;;  %3579 = vmatprep.mubr.f32.mxu1 %v3429_v42  ;;  %v3718_v42 = vld [vmem:[#allocation10 + $0x1088] sm:$0xff]  ;;  %v11360_v0 = vpack.c.bf16 %v3715_v48, %v3713_v14  ;;  %v3721_v14 = vld [vmem:[#allocation10 + $0x10a0] sm:$0xff]  ;;  %v3723_v48 = vld [vmem:[#allocation10 + $0x10b0] sm:$0xff] }
 0x8f9   :  { %8106 = vmatprep.subr.bf16.mxu1 %v11346_v38  ;;  %v11362_v38 = vpack.c.bf16 %v3720_v62, %v3718_v42  ;;  %v3726_v42 = vld [vmem:[#allocation10 + $0x10c8] sm:$0xff]  ;;  %v3728_v62 = vld [vmem:[#allocation10 + $0x10d8] sm:$0xff] }
 0x8fa   :  { %13011 = vst [vmem:[#allocation260_spill] sm:$0xff] %v11360_v0 }
 0x8fb   :  { %3580 = vmatmul.mubr.f32.gmra.mrb[38].mxu1 %v3427_v39  ;;  %13012 = vst [vmem:[#allocation261_spill] sm:$0xff] %v11362_v38  ;;  %v3724_v39 = vld [vmem:[#allocation10 + $0x10b8] sm:$0xff] }
 0x8fc   :  { %3829 = vmatprep.mubr.f32.mxu1 %v3679_v61  ;;  %v3719_v61 = vld [vmem:[#allocation10 + $0x1090] sm:$0xff]  ;;  %v11368_v32 = vpack.c.bf16 %v3724_v39, %v3722_v33  ;;  %v3730_v33 = vld [vmem:[#allocation10 + $0x10e8] sm:$0xff]  ;;  %v3732_v39 = vld [vmem:[#allocation10 + $0x10f8] sm:$0xff] }
 0x8fd   :  { %v11366_v15 = vpack.c.bf16 %v3719_v61, %v3717_v58  ;;  %v3725_v58 = vld [vmem:[#allocation10 + $0x10c0] sm:$0xff]  ;;  %v3727_v61 = vld [vmem:[#allocation10 + $0x10d0] sm:$0xff] }
 0x8fe   :  { %13014 = vst [vmem:[#allocation263_spill] sm:$0xff] %v11368_v32 }
 0x8ff   :  { %13013 = vst [vmem:[#allocation262_spill] sm:$0xff] %v11366_v15 }
 0x900   :  { %8108 = vmatpush1.bf16.xpose.msra.mxu1 %v11354_v37 }
 0x901   :  { %8110 = vmatprep.subr.bf16.mxu1 %v11356_v22  ;;  %v11372_v22 = vpack.c.bf16 %v3723_v48, %v3721_v14  ;;  %v3729_v14 = vld [vmem:[#allocation10 + $0x10e0] sm:$0xff]  ;;  %v3731_v48 = vld [vmem:[#allocation10 + $0x10f0] sm:$0xff] }
 0x903   :  { %13015 = vst [vmem:[#allocation264_spill] sm:$0xff] %v11372_v22 }
 0x908   :  { %8112 = vmatpush1.bf16.xpose.msra.mxu1 %v11360_v0  ;;  %v11374_v0 = vpack.c.bf16 %v3728_v62, %v3726_v42  ;;  %v3734_v42 = vld [vmem:[#allocation10 + $0x1108] sm:$0xff]  ;;  %v3736_v62 = vld [vmem:[#allocation10 + $0x1118] sm:$0xff] }
 0x909   :  { %8114 = vmatprep.subr.bf16.mxu1 %v11362_v38  ;;  %v11378_v38 = vpack.c.bf16 %v3727_v61, %v3725_v58  ;;  %v3733_v58 = vld [vmem:[#allocation10 + $0x1100] sm:$0xff]  ;;  %v3735_v61 = vld [vmem:[#allocation10 + $0x1110] sm:$0xff] }
 0x90a   :  { %13016 = vst [vmem:[#allocation265_spill] sm:$0xff] %v11374_v0 }
 0x90b   :  { %13017 = vst [vmem:[#allocation266_spill] sm:$0xff] %v11378_v38 }
 0x910   :  { %8116 = vmatpush1.bf16.xpose.msra.mxu1 %v11366_v15  ;;  %v11380_v15 = vpack.c.bf16 %v3732_v39, %v3730_v33  ;;  %v3738_v33 = vld [vmem:[#allocation10 + $0x1128] sm:$0xff]  ;;  %v3740_v39 = vld [vmem:[#allocation10 + $0x1138] sm:$0xff] }
 0x911   :  { %8118 = vmatprep.subr.bf16.mxu1 %v11368_v32  ;;  %v11384_v32 = vpack.c.bf16 %v3731_v48, %v3729_v14  ;;  %v3737_v14 = vld [vmem:[#allocation10 + $0x1120] sm:$0xff]  ;;  %v3739_v48 = vld [vmem:[#allocation10 + $0x1130] sm:$0xff] }
 0x912   :  { %13018 = vst [vmem:[#allocation267_spill] sm:$0xff] %v11380_v15 }
 0x913   :  { %13019 = vst [vmem:[#allocation268_spill] sm:$0xff] %v11384_v32 }
 0x918   :  { %8120 = vmatpush1.bf16.xpose.msra.mxu1 %v11372_v22  ;;  %v11386_v22 = vpack.c.bf16 %v3736_v62, %v3734_v42  ;;  %v3742_v42 = vld [vmem:[#allocation10 + $0x1148] sm:$0xff]  ;;  %v3744_v62 = vld [vmem:[#allocation10 + $0x1158] sm:$0xff] }
 0x919   :  { %8122 = vmatprep.subr.bf16.mxu1 %v11374_v0  ;;  %v11390_v0 = vpack.c.bf16 %v3735_v61, %v3733_v58  ;;  %v3741_v58 = vld [vmem:[#allocation10 + $0x1140] sm:$0xff]  ;;  %v3743_v61 = vld [vmem:[#allocation10 + $0x1150] sm:$0xff] }
 0x91a   :  { %13020 = vst [vmem:[#allocation269_spill] sm:$0xff] %v11386_v22 }
 0x91b   :  { %13021 = vst [vmem:[#allocation270_spill] sm:$0xff] %v11390_v0 }
 0x920   :  { %8124 = vmatpush1.bf16.xpose.msra.mxu1 %v11378_v38  ;;  %v11392_v38 = vpack.c.bf16 %v3740_v39, %v3738_v33  ;;  %v3746_v33 = vld [vmem:[#allocation10 + $0x1168] sm:$0xff]  ;;  %v3748_v39 = vld [vmem:[#allocation10 + $0x1178] sm:$0xff] }
 0x921   :  { %8126 = vmatprep.subr.bf16.mxu1 %v11380_v15  ;;  %v11396_v15 = vpack.c.bf16 %v3739_v48, %v3737_v14  ;;  %v3745_v14 = vld [vmem:[#allocation10 + $0x1160] sm:$0xff]  ;;  %v3747_v48 = vld [vmem:[#allocation10 + $0x1170] sm:$0xff] }
 0x922   :  { %13022 = vst [vmem:[#allocation271_spill] sm:$0xff] %v11392_v38 }
 0x923   :  { %13023 = vst [vmem:[#allocation272_spill] sm:$0xff] %v11396_v15 }
 0x928   :  { %8128 = vmatpush1.bf16.xpose.msra.mxu1 %v11384_v32  ;;  %v11398_v32 = vpack.c.bf16 %v3744_v62, %v3742_v42  ;;  %v3750_v42 = vld [vmem:[#allocation10 + $0x1188] sm:$0xff]  ;;  %v3752_v62 = vld [vmem:[#allocation10 + $0x1198] sm:$0xff] }
 0x929   :  { %8130 = vmatprep.subr.bf16.mxu1 %v11386_v22  ;;  %v11402_v22 = vpack.c.bf16 %v3743_v61, %v3741_v58  ;;  %v3749_v58 = vld [vmem:[#allocation10 + $0x1180] sm:$0xff]  ;;  %v3751_v61 = vld [vmem:[#allocation10 + $0x1190] sm:$0xff] }
 0x92a   :  { %13024 = vst [vmem:[#allocation273_spill] sm:$0xff] %v11398_v32 }
 0x92b   :  { %13025 = vst [vmem:[#allocation274_spill] sm:$0xff] %v11402_v22 }
 0x930   :  { %8132 = vmatpush1.bf16.xpose.msra.mxu1 %v11390_v0  ;;  %v11404_v0 = vpack.c.bf16 %v3748_v39, %v3746_v33  ;;  %v3754_v33 = vld [vmem:[#allocation10 + $0x11a8] sm:$0xff]  ;;  %v3756_v39 = vld [vmem:[#allocation10 + $0x11b8] sm:$0xff] }
 0x931   :  { %8134 = vmatprep.subr.bf16.mxu1 %v11392_v38  ;;  %v11408_v38 = vpack.c.bf16 %v3747_v48, %v3745_v14  ;;  %v3753_v14 = vld [vmem:[#allocation10 + $0x11a0] sm:$0xff]  ;;  %v3755_v48 = vld [vmem:[#allocation10 + $0x11b0] sm:$0xff] }
 0x932   :  { %13026 = vst [vmem:[#allocation275_spill] sm:$0xff] %v11404_v0 }
 0x933   :  { %13027 = vst [vmem:[#allocation276_spill] sm:$0xff] %v11408_v38 }
 0x938   :  { %8136 = vmatpush1.bf16.xpose.msra.mxu1 %v11396_v15  ;;  %v11410_v15 = vpack.c.bf16 %v3752_v62, %v3750_v42  ;;  %v3758_v42 = vld [vmem:[#allocation10 + $0x11c8] sm:$0xff]  ;;  %v3760_v62 = vld [vmem:[#allocation10 + $0x11d8] sm:$0xff] }
 0x939   :  { %8138 = vmatprep.subr.bf16.mxu1 %v11398_v32  ;;  %v11414_v32 = vpack.c.bf16 %v3751_v61, %v3749_v58  ;;  %v3757_v58 = vld [vmem:[#allocation10 + $0x11c0] sm:$0xff]  ;;  %v3759_v61 = vld [vmem:[#allocation10 + $0x11d0] sm:$0xff] }
 0x93a   :  { %13028 = vst [vmem:[#allocation277_spill] sm:$0xff] %v11410_v15 }
 0x93b   :  { %13029 = vst [vmem:[#allocation278_spill] sm:$0xff] %v11414_v32 }
 0x940   :  { %8140 = vmatpush1.bf16.xpose.msra.mxu1 %v11402_v22  ;;  %v11416_v22 = vpack.c.bf16 %v3756_v39, %v3754_v33  ;;  %v3762_v33 = vld [vmem:[#allocation10 + $0x11e8] sm:$0xff]  ;;  %v3764_v39 = vld [vmem:[#allocation10 + $0x11f8] sm:$0xff] }
 0x941   :  { %8142 = vmatprep.subr.bf16.mxu1 %v11404_v0  ;;  %v11420_v0 = vpack.c.bf16 %v3755_v48, %v3753_v14  ;;  %v3761_v14 = vld [vmem:[#allocation10 + $0x11e0] sm:$0xff]  ;;  %v3763_v48 = vld [vmem:[#allocation10 + $0x11f0] sm:$0xff] }
 0x942   :  { %13030 = vst [vmem:[#allocation279_spill] sm:$0xff] %v11416_v22 }
 0x943   :  { %13031 = vst [vmem:[#allocation280_spill] sm:$0xff] %v11420_v0 }
 0x948   :  { %8144 = vmatpush1.bf16.xpose.msra.mxu1 %v11408_v38  ;;  %v11422_v38 = vpack.c.bf16 %v3760_v62, %v3758_v42  ;;  %v11432_v42 = vpack.c.bf16 %v3763_v48, %v3761_v14  ;;  %v3874_v14 = vpop.permute.xlu1 %3873 }
 0x949   :  { %8146 = vmatprep.subr.bf16.mxu1 %v11410_v15  ;;  %v11426_v15 = vpack.c.bf16 %v3759_v61, %v3757_v58 }
 0x94a   :  { %13032 = vst [vmem:[#allocation281_spill] sm:$0xff] %v11422_v38  ;;  %13035 = vst [vmem:[#allocation284_spill] sm:$0xff] %v11432_v42 }
 0x94b   :  { %13033 = vst [vmem:[#allocation282_spill] sm:$0xff] %v11426_v15 }
 0x950   :  { %8148 = vmatpush1.bf16.xpose.msra.mxu1 %v11414_v32  ;;  %v11428_v32 = vpack.c.bf16 %v3764_v39, %v3762_v33  ;;  %v3869_v33 = vpop.permute.xlu0 %3868 }
 0x951   :  { %8150 = vmatprep.subr.bf16.mxu1 %v11416_v22 }
 0x952   :  { %13034 = vst [vmem:[#allocation283_spill] sm:$0xff] %v11428_v32 }
 0x958   :  { %8152 = vmatpush1.bf16.xpose.msra.mxu1 %v11420_v0 }
 0x959   :  { %8154 = vmatprep.subr.bf16.mxu1 %v11422_v38 }
 0x960   :  { %8156 = vmatpush1.bf16.xpose.msra.mxu1 %v11426_v15 }
 0x961   :  { %8158 = vmatprep.subr.bf16.mxu1 %v11428_v32 }
 0x968   :  { %8160 = vmatpush1.bf16.xpose.msra.mxu1 %v11432_v42 }
 0x96f   :  { %3830 = vmatmul.mubr.f32.vlgmr.msra.gmra.mrb[32].mxu1 %v11327_v16 }
 0x970   :  { %3835 = vmatprep.mubr.f32.mxu1 %v11337_v36 }
 0x973   :  { %3836 = vmatmul.mubr.f32.gmra.mrb[34].mxu1 %v11334_v8 }
 0x974   :  { %3841 = vmatprep.mubr.f32.mxu1 %v11344_v5 }
 0x977   :  { %3842 = vmatmul.mubr.f32.gmra.mrb[36].mxu1 %v11340_v45 }
 0x978   :  { %3847 = vmatprep.mubr.f32.mxu1 %v11351_v19 }
 0x97b   :  { %3848 = vmatmul.mubr.f32.gmra.mrb[38].mxu1 %v11348_v30 }
 0x97c   :  { %3994 = vmatprep.mubr.f32.mxu1 %v12821_v23 }
 0xa42   :  { %v3831_v62 = vpop.f32.mrb[32].mxu1 }
 0xa43   :  { %v9477_v58 = vadd.f32 %v3831_v62, %v10803_v56  ;;  %v3833_v61 = vpop.f32.mrb[33].mxu1 }
 0xa44   :  { %v9478_v16 = vadd.f32 %v3833_v61, %v10805_v28 }
 0xa45   :  { %v3886_v39 = vadd.f32 %v9477_v58, %v3869_v33 }
 0xa46   :  { %v3837_v36 = vpop.f32.mrb[34].mxu1  ;;  %v3887_v45 = vadd.f32 %v9478_v16, %v3869_v33 }
 0xa47   :  { %v9479_v8 = vadd.f32 %v3837_v36, %v10807_v51  ;;  %v3839_v5 = vpop.f32.mrb[35].mxu1  ;;  %v3894_v32 = vmax.f32 %v3886_v39, 0.0  ;;  %v3879_v51 = vpop.permute.xlu0 %3878 }
 0xa48   :  { %v9480_v19 = vadd.f32 %v3839_v5, %v10809_v2  ;;  %v3895_v38 = vmax.f32 %v3887_v45, 0.0  ;;  %v3884_v5 = vpop.permute.xlu1 %3883 }
 0xa49   :  { %v3888_v48 = vadd.f32 %v9479_v8, %v3874_v14 }
 0xa4a   :  { %v3889_v30 = vadd.f32 %v9480_v19, %v3874_v14  ;;  %v3843_v42 = vpop.f32.mrb[36].mxu1  ;;  %v3904_v19 = vld [vmem:[#allocation13 + $0x10] sm:$0xff] }
 0xa4b   :  { %v3896_v15 = vmax.f32 %v3888_v48, 0.0  ;;  %v9481_v56 = vadd.f32 %v3843_v42, %v10811_v60  ;;  %v3845_v62 = vpop.f32.mrb[37].mxu1  ;;  %v3903_v48 = vld [vmem:[#allocation13 + $0x8] sm:$0xff] }
 0xa4c   :  { %v3897_v28 = vmax.f32 %v3889_v30, 0.0  ;;  %v9482_v61 = vadd.f32 %v3845_v62, %v10813_v9  ;;  %v3905_v30 = vld [vmem:[#allocation13 + $0x18] sm:$0xff]  ;;  %v4009_v62 = vld [vmem:[#allocation13 + $0x28] sm:$0xff] }
 0xa4d   :  { %v11449_v58 = vpack.c.bf16 %v3896_v15, %v3894_v32  ;;  %v3890_v33 = vadd.f32 %v9481_v56, %v3879_v51  ;;  %v4008_v56 = vld [vmem:[#allocation13 + $0x20] sm:$0xff] }
 0xa4e   :  { %v11451_v36 = vpack.c.bf16 %v3897_v28, %v3895_v38  ;;  %v3849_v16 = vpop.f32.mrb[38].mxu1  ;;  %v3891_v39 = vadd.f32 %v9482_v61, %v3879_v51  ;;  %v4010_v28 = vld [vmem:[#allocation13 + $0x30] sm:$0xff]  ;;  %v4011_v61 = vld [vmem:[#allocation13 + $0x38] sm:$0xff] }
 0xa4f   :  { %v9483_v2 = vadd.f32 %v3849_v16, %v10815_v27  ;;  %v3851_v8 = vpop.f32.mrb[39].mxu1  ;;  %v3898_v38 = vmax.f32 %v3890_v33, 0.0 }
 0xa50   :  { %v9484_v14 = vadd.f32 %v3851_v8, %v10817_v10  ;;  %8162 = vmatprep.subr.bf16.mxu0 %v11451_v36  ;;  %9465 = vmatprep.subr.bf16.mxu1 %v11451_v36  ;;  %v3899_v32 = vmax.f32 %v3891_v39, 0.0  ;;  %v3902_v10 = vld [vmem:[#allocation13] sm:$0xff] }
 0xa51   :  { %v3892_v60 = vadd.f32 %v9483_v2, %v3884_v5  ;;  %8164 = vmatpush1.bf16.msra.mxu0 %v11449_v58  ;;  %9467 = vmatpush1.bf16.msra.mxu1 %v11449_v58 }
 0xa52   :  { %v3893_v9 = vadd.f32 %v9484_v14, %v3884_v5  ;;  %v13036_v14 = vld [vmem:[#allocation24_spill] sm:$0xff] }
 0xa53   :  { %v3900_v15 = vmax.f32 %v3892_v60, 0.0 }
 0xa54   :  { %v3901_v42 = vmax.f32 %v3893_v9, 0.0 }
 0xa55   :  { %v11459_v27 = vpack.c.bf16 %v3900_v15, %v3898_v38 }
 0xa56   :  { %v11461_v45 = vpack.c.bf16 %v3901_v42, %v3899_v32 }
 0xa58   :  { %8166 = vmatprep.subr.bf16.mxu0 %v11461_v45  ;;  %9466 = vmatprep.subr.bf16.mxu1 %v11461_v45 }
 0xa59   :  { %8168 = vmatpush1.bf16.msra.mxu0 %v11459_v27  ;;  %9468 = vmatpush1.bf16.msra.mxu1 %v11459_v27 }
 0xa5a   :  { %8170 = vmatprep.subr.bf16.mxu0 %v11451_v36  ;;  %8738 = vmatprep.subr.bf16.mxu1 %v11451_v36 }
 0xa5c   :  { %7304 = vmatmul.mubr.msk.f32.vlgmr.msra.gmra.mrb[216].mxu0 %vm1471_vm2, %v3902_v10  ;;  %7306 = vmatmul.mubr.msk.f32.vlgmr.msra.gmra.mrb[40].mxu1 %vm1471_vm2, %v3904_v19  ;;  %v13037_v10 = vld [vmem:[#allocation25_spill] sm:$0xff] }
 0xa5d   :  { %8172 = vmatpush1.bf16.msra.mxu0 %v11449_v58  ;;  %8740 = vmatpush1.bf16.msra.mxu1 %v11449_v58 }
 0xa5e   :  { %8174 = vmatprep.subr.bf16.mxu0 %v11461_v45  ;;  %8742 = vmatprep.subr.bf16.mxu1 %v11461_v45 }
 0xa5f   :  { %3988 = vmatprep.mubr.f32.mxu0 %v12821_v23  ;;  %4000 = vmatprep.mubr.f32.mxu1 %v12821_v23 }
 0xa60   :  { %7305 = vmatmul.mubr.msk.f32.gmra.mrb[218].mxu0 %vm1471_vm2, %v3903_v48  ;;  %7307 = vmatmul.mubr.msk.f32.gmra.mrb[42].mxu1 %vm1471_vm2, %v3905_v30  ;;  %v13038_v30 = vld [vmem:[#allocation27_spill] sm:$0xff] }
 0xa61   :  { %8176 = vmatpush1.bf16.msra.mxu0 %v11459_v27  ;;  %8744 = vmatpush1.bf16.msra.mxu1 %v11459_v27 }
 0xa62   :  { %4088 = vmatprep.mubr.f32.mxu0 %v12821_v23  ;;  %8178 = vmatprep.subr.bf16.mxu0 %v10463_v43 }
 0xa63   :  { %5590 = vmatprep.mubr.f32.mxu1 %v12821_v23 }
 0xa64   :  { %7308 = vmatmul.mubr.msk.f32.vlgmr.msra.gmra.mrb[220].mxu0 %vm1471_vm2, %v4008_v56 }
 0xa65   :  { %4094 = vmatprep.mubr.f32.mxu0 %v12821_v23 }
 0xa68   :  { %7309 = vmatmul.mubr.msk.f32.gmra.mrb[222].mxu0 %vm1471_vm2, %v4009_v62  ;;  %v13039_v62 = vld [vmem:[#allocation29_spill] sm:$0xff] }
 0xa69   :  { %4100 = vmatprep.mubr.f32.mxu0 %v12821_v23 }
 0xa6a   :  { %8180 = vmatpush1.bf16.xpose.msra.mxu0 %v10483_v18 }
 0xa6b   :  { %8182 = vmatprep.subr.bf16.mxu0 %v10486_v21 }
 0xa6c   :  { %7310 = vmatmul.mubr.msk.f32.gmra.mrb[224].mxu0 %vm1471_vm2, %v4010_v28  ;;  %v13040_v28 = vld [vmem:[#allocation33_spill] sm:$0xff] }
 0xa6d   :  { %4106 = vmatprep.mubr.f32.mxu0 %v12821_v23 }
 0xa70   :  { %7311 = vmatmul.mubr.msk.f32.gmra.mrb[226].mxu0 %vm1471_vm2, %v4011_v61  ;;  %v13041_v61 = vld [vmem:[#allocation35_spill] sm:$0xff] }
 0xa72   :  { %8184 = vmatpush1.bf16.xpose.msra.mxu0 %v10500_v41 }
 0xa73   :  { %8186 = vmatprep.subr.bf16.mxu0 %v10502_v44 }
 0xa7a   :  { %8188 = vmatpush1.bf16.xpose.msra.mxu0 %v10510_v63 }
 0xa7b   :  { %8190 = vmatprep.subr.bf16.mxu0 %v10514_v7 }
 0xa82   :  { %8192 = vmatpush1.bf16.xpose.msra.mxu0 %v10522_v31 }
 0xa83   :  { %8194 = vmatprep.subr.bf16.mxu0 %v10526_v40 }
 0xa8a   :  { %8196 = vmatpush1.bf16.xpose.msra.mxu0 %v10534_v3 }
 0xa8b   :  { %8198 = vmatprep.subr.bf16.mxu0 %v10538_v17 }
 0xa92   :  { %8200 = vmatpush1.bf16.xpose.msra.mxu0 %v10546_v54 }
 0xa93   :  { %8202 = vmatprep.subr.bf16.mxu0 %v10550_v12 }
 0xa9a   :  { %8204 = vmatpush1.bf16.xpose.msra.mxu0 %v10558_v25 }
 0xa9b   :  { %8206 = vmatprep.subr.bf16.mxu0 %v10562_v59 }
 0xaa2   :  { %8208 = vmatpush1.bf16.xpose.msra.mxu0 %v10570_v57 }
 0xaa3   :  { %8210 = vmatprep.subr.bf16.mxu0 %v10574_v53 }
 0xaaa   :  { %8212 = vmatpush1.bf16.xpose.msra.mxu0 %v10582_v20 }
 0xaab   :  { %8214 = vmatprep.subr.bf16.mxu0 %v10586_v35 }
 0xab2   :  { %8216 = vmatpush1.bf16.xpose.msra.mxu0 %v10594_v47 }
 0xab3   :  { %8218 = vmatprep.subr.bf16.mxu0 %v10596_v49 }
 0xaba   :  { %8220 = vmatpush1.bf16.xpose.msra.mxu0 %v10600_v11 }
 0xabb   :  { %8222 = vmatprep.subr.bf16.mxu0 %v10602_v1 }
 0xac2   :  { %8224 = vmatpush1.bf16.xpose.msra.mxu0 %v10606_v26 }
 0xac3   :  { %8226 = vmatprep.subr.bf16.mxu0 %v10608_v29 }
 0xaca   :  { %8228 = vmatpush1.bf16.xpose.msra.mxu0 %v10612_v34 }
 0xacb   :  { %8230 = vmatprep.subr.bf16.mxu0 %v10614_v13 }
 0xad2   :  { %8232 = vmatpush1.bf16.xpose.msra.mxu0 %v10618_v50 }
 0xad3   :  { %8234 = vmatprep.subr.bf16.mxu0 %v10620_v24 }
 0xada   :  { %8236 = vmatpush1.bf16.xpose.msra.mxu0 %v10624_v4 }
 0xadb   :  { %8238 = vmatprep.subr.bf16.mxu0 %v10626_v46 }
 0xae2   :  { %8240 = vmatpush1.bf16.xpose.msra.mxu0 %v10630_v6 }
 0xae3   :  { %8242 = vmatprep.subr.bf16.mxu0 %v10378_v52 }
 0xb2f   :  { %v3984_v51 = vpop.f32.mrb[216].mxu0  ;;  %v3996_v9 = vpop.f32.mrb[40].mxu1 }
 0xb30   :  { %v3986_v16 = vpop.f32.mrb[217].mxu0  ;;  %v3998_v15 = vpop.f32.mrb[41].mxu1 }
 0xb33   :  { %v3990_v33 = vpop.f32.mrb[218].mxu0  ;;  %v4002_v42 = vpop.f32.mrb[42].mxu1 }
 0xb34   :  { %v3992_v2 = vpop.f32.mrb[219].mxu0  ;;  %v4004_v48 = vpop.f32.mrb[43].mxu1 }
 0xb37   :  { %v4090_v8 = vpop.f32.mrb[220].mxu0 }
 0xb38   :  { %v4092_v5 = vpop.f32.mrb[221].mxu0 }
 0xb39   :  { %4177 = vmatprep.mubr.f32.mxu0 %v4092_v5  ;;  %v13043_v5 = vld [vmem:[#allocation39_spill] sm:$0xff] }
 0xb3a   :  { %4178 = vmatmul.mubr.f32.vlgmr.msra.gmra.mrb[228].mxu0 %v4090_v8  ;;  %v13042_v8 = vld [vmem:[#allocation38_spill] sm:$0xff] }
 0xb3b   :  { %8244 = vmatpush1.bf16.xpose.msra.mxu0 %v10380_v55  ;;  %v4096_v39 = vpop.f32.mrb[222].mxu0 }
 0xb3c   :  { %8246 = vmatprep.subr.bf16.mxu0 %v13036_v14  ;;  %v4098_v60 = vpop.f32.mrb[223].mxu0 }
 0xb3d   :  { %4183 = vmatprep.mubr.f32.mxu0 %v4098_v60  ;;  %v13045_v60 = vld [vmem:[#allocation41_spill] sm:$0xff] }
 0xb3e   :  { %4184 = vmatmul.mubr.f32.gmra.mrb[230].mxu0 %v4096_v39  ;;  %v13044_v39 = vld [vmem:[#allocation40_spill] sm:$0xff] }
 0xb3f   :  { %v4102_v38 = vpop.f32.mrb[224].mxu0 }
 0xb40   :  { %v4104_v32 = vpop.f32.mrb[225].mxu0 }
 0xb41   :  { %4189 = vmatprep.mubr.f32.mxu0 %v4104_v32  ;;  %v13047_v32 = vld [vmem:[#allocation43_spill] sm:$0xff] }
 0xb42   :  { %4190 = vmatmul.mubr.f32.gmra.mrb[232].mxu0 %v4102_v38  ;;  %v13046_v38 = vld [vmem:[#allocation42_spill] sm:$0xff] }
 0xb43   :  { %8248 = vmatpush1.bf16.xpose.msra.mxu0 %v13037_v10  ;;  %v4108_v19 = vpop.f32.mrb[226].mxu0 }
 0xb44   :  { %8250 = vmatprep.subr.bf16.mxu0 %v13038_v30  ;;  %v4110_v56 = vpop.f32.mrb[227].mxu0 }
 0xb45   :  { %4195 = vmatprep.mubr.f32.mxu0 %v4110_v56  ;;  %v13050_v56 = vld [vmem:[#allocation46_spill] sm:$0xff] }
 0xb46   :  { %4196 = vmatmul.mubr.f32.gmra.mrb[234].mxu0 %v4108_v19  ;;  %v13048_v19 = vld [vmem:[#allocation44_spill] sm:$0xff] }
 0xb47   :  { %4266 = vmatprep.mubr.f32.mxu0 %v3986_v16  ;;  %v13049_v16 = vld [vmem:[#allocation45_spill] sm:$0xff] }
 0xb4b   :  { %8252 = vmatpush1.bf16.xpose.msra.mxu0 %v13039_v62 }
 0xb4c   :  { %8254 = vmatprep.subr.bf16.mxu0 %v13040_v28  ;;  %v13051_v28 = vld [vmem:[#allocation47_spill] sm:$0xff] }
 0xb53   :  { %8256 = vmatpush1.bf16.xpose.msra.mxu0 %v13041_v61  ;;  %v13052_v61 = vld [vmem:[#allocation48_spill] sm:$0xff] }
 0xb54   :  { %8258 = vmatprep.subr.bf16.mxu0 %v13042_v8  ;;  %v13053_v8 = vld [vmem:[#allocation49_spill] sm:$0xff] }
 0xb5b   :  { %8260 = vmatpush1.bf16.xpose.msra.mxu0 %v13043_v5  ;;  %v13054_v5 = vld [vmem:[#allocation50_spill] sm:$0xff] }
 0xb5c   :  { %8262 = vmatprep.subr.bf16.mxu0 %v13044_v39  ;;  %v13055_v39 = vld [vmem:[#allocation51_spill] sm:$0xff] }
 0xb63   :  { %8264 = vmatpush1.bf16.xpose.msra.mxu0 %v13045_v60  ;;  %v13056_v60 = vld [vmem:[#allocation52_spill] sm:$0xff] }
 0xb64   :  { %8266 = vmatprep.subr.bf16.mxu0 %v13046_v38  ;;  %v13057_v38 = vld [vmem:[#allocation53_spill] sm:$0xff] }
 0xb6b   :  { %8268 = vmatpush1.bf16.xpose.msra.mxu0 %v13047_v32  ;;  %v13058_v32 = vld [vmem:[#allocation54_spill] sm:$0xff] }
 0xb6c   :  { %8270 = vmatprep.subr.bf16.mxu0 %v13048_v19  ;;  %v13059_v19 = vld [vmem:[#allocation55_spill] sm:$0xff] }
 0xb73   :  { %8272 = vmatpush1.bf16.xpose.msra.mxu0 %v13049_v16  ;;  %v13060_v16 = vld [vmem:[#allocation56_spill] sm:$0xff] }
 0xb74   :  { %8274 = vmatprep.subr.bf16.mxu0 %v13050_v56  ;;  %v13061_v56 = vld [vmem:[#allocation57_spill] sm:$0xff] }
 0xb7b   :  { %8276 = vmatpush1.bf16.xpose.msra.mxu0 %v13051_v28  ;;  %v13062_v28 = vld [vmem:[#allocation58_spill] sm:$0xff] }
 0xb7c   :  { %8278 = vmatprep.subr.bf16.mxu0 %v13052_v61  ;;  %v13063_v61 = vld [vmem:[#allocation59_spill] sm:$0xff] }
 0xb83   :  { %8280 = vmatpush1.bf16.xpose.msra.mxu0 %v13053_v8  ;;  %v13064_v8 = vld [vmem:[#allocation60_spill] sm:$0xff] }
 0xb84   :  { %8282 = vmatprep.subr.bf16.mxu0 %v13054_v5  ;;  %v13065_v5 = vld [vmem:[#allocation61_spill] sm:$0xff] }
 0xb8b   :  { %8284 = vmatpush1.bf16.xpose.msra.mxu0 %v13055_v39 }
 0xb8c   :  { %8286 = vmatprep.subr.bf16.mxu0 %v13056_v60 }
 0xb93   :  { %8288 = vmatpush1.bf16.xpose.msra.mxu0 %v13057_v38 }
 0xb94   :  { %8290 = vmatprep.subr.bf16.mxu0 %v13058_v32 }
 0xb9b   :  { %8292 = vmatpush1.bf16.xpose.msra.mxu0 %v13059_v19  ;;  %v13269_v19 = vld [vmem:[#allocation265_spill] sm:$0xff] }
 0xb9c   :  { %8294 = vmatprep.subr.bf16.mxu0 %v13060_v16  ;;  %v13262_v16 = vld [vmem:[#allocation258_spill] sm:$0xff] }
 0xba3   :  { %8296 = vmatpush1.bf16.xpose.msra.mxu0 %v13061_v56  ;;  %v13066_v56 = vld [vmem:[#allocation62_spill] sm:$0xff] }
 0xba4   :  { %8298 = vmatprep.subr.bf16.mxu0 %v13062_v28  ;;  %v13261_v28 = vld [vmem:[#allocation257_spill] sm:$0xff] }
 0xbab   :  { %8300 = vmatpush1.bf16.xpose.msra.mxu0 %v13063_v61  ;;  %v13079_v61 = vld [vmem:[#allocation75_spill] sm:$0xff] }
 0xbac   :  { %8302 = vmatprep.subr.bf16.mxu0 %v13064_v8  ;;  %v13068_v8 = vld [vmem:[#allocation64_spill] sm:$0xff] }
 0xbb3   :  { %8304 = vmatpush1.bf16.xpose.msra.mxu0 %v13065_v5  ;;  %v4292_v5 = vld [vmem:[#allocation13 + $0x40] sm:$0xff] }
 0xbb4   :  { %8306 = vmatprep.subr.bf16.mxu0 %v11451_v36 }
 0xbba   :  { %4267 = vmatmul.mubr.f32.vlgmr.msra.gmra.mrb[228].mxu0 %v3984_v51  ;;  %v13067_v51 = vld [vmem:[#allocation63_spill] sm:$0xff] }
 0xbbb   :  { %4272 = vmatprep.mubr.f32.mxu0 %v3992_v2  ;;  %8308 = vmatpush1.bf16.msra.mxu0 %v11449_v58  ;;  %v4293_v2 = vld [vmem:[#allocation13 + $0x48] sm:$0xff] }
 0xbbc   :  { %8310 = vmatprep.subr.bf16.mxu0 %v11461_v45 }
 0xbbe   :  { %4273 = vmatmul.mubr.f32.gmra.mrb[230].mxu0 %v3990_v33  ;;  %v4294_v33 = vld [vmem:[#allocation13 + $0x50] sm:$0xff] }
 0xbbf   :  { %8312 = vmatpush1.bf16.msra.mxu0 %v11459_v27  ;;  %4278 = vmatprep.mubr.f32.mxu0 %v3998_v15  ;;  %v4295_v15 = vld [vmem:[#allocation13 + $0x58] sm:$0xff] }
 0xbc0   :  { %8314 = vmatprep.subr.bf16.mxu0 %v13066_v56  ;;  %v13078_v56 = vld [vmem:[#allocation74_spill] sm:$0xff] }
 0xbc2   :  { %4279 = vmatmul.mubr.f32.gmra.mrb[232].mxu0 %v3996_v9  ;;  %v13069_v9 = vld [vmem:[#allocation65_spill] sm:$0xff] }
 0xbc3   :  { %4284 = vmatprep.mubr.f32.mxu0 %v4004_v48  ;;  %v13071_v48 = vld [vmem:[#allocation67_spill] sm:$0xff] }
 0xbc6   :  { %4285 = vmatmul.mubr.f32.gmra.mrb[234].mxu0 %v4002_v42  ;;  %v13070_v42 = vld [vmem:[#allocation66_spill] sm:$0xff] }
 0xbc7   :  { %4372 = vmatprep.mubr.f32.mxu0 %v12821_v23 }
 0xbca   :  { %7312 = vmatmul.mubr.msk.f32.vlgmr.msra.gmra.mrb[236].mxu0 %vm1471_vm2, %v4292_v5  ;;  %v13072_v5 = vld [vmem:[#allocation68_spill] sm:$0xff] }
 0xbcb   :  { %8316 = vmatpush1.bf16.xpose.msra.mxu0 %v13067_v51  ;;  %4378 = vmatprep.mubr.f32.mxu0 %v12821_v23  ;;  %v13075_v51 = vld [vmem:[#allocation71_spill] sm:$0xff] }
 0xbcc   :  { %8318 = vmatprep.subr.bf16.mxu0 %v13068_v8  ;;  %v13073_v8 = vld [vmem:[#allocation69_spill] sm:$0xff] }
 0xbce   :  { %7313 = vmatmul.mubr.msk.f32.gmra.mrb[238].mxu0 %vm1471_vm2, %v4293_v2  ;;  %v13074_v2 = vld [vmem:[#allocation70_spill] sm:$0xff] }
 0xbcf   :  { %4384 = vmatprep.mubr.f32.mxu0 %v12821_v23 }
 0xbd2   :  { %7314 = vmatmul.mubr.msk.f32.gmra.mrb[240].mxu0 %vm1471_vm2, %v4294_v33  ;;  %v13076_v33 = vld [vmem:[#allocation72_spill] sm:$0xff] }
 0xbd3   :  { %8320 = vmatpush1.bf16.xpose.msra.mxu0 %v13069_v9  ;;  %4390 = vmatprep.mubr.f32.mxu0 %v12821_v23  ;;  %v13077_v9 = vld [vmem:[#allocation73_spill] sm:$0xff] }
 0xbd4   :  { %8322 = vmatprep.subr.bf16.mxu0 %v13070_v42  ;;  %v13080_v42 = vld [vmem:[#allocation76_spill] sm:$0xff] }
 0xbd6   :  { %7315 = vmatmul.mubr.msk.f32.gmra.mrb[242].mxu0 %vm1471_vm2, %v4295_v15  ;;  %v13081_v15 = vld [vmem:[#allocation77_spill] sm:$0xff] }
 0xbdb   :  { %8324 = vmatpush1.bf16.xpose.msra.mxu0 %v13071_v48  ;;  %v13082_v48 = vld [vmem:[#allocation78_spill] sm:$0xff] }
 0xbdc   :  { %8326 = vmatprep.subr.bf16.mxu0 %v13072_v5  ;;  %v13083_v5 = vld [vmem:[#allocation79_spill] sm:$0xff] }
 0xbe3   :  { %8328 = vmatpush1.bf16.xpose.msra.mxu0 %v13073_v8  ;;  %v13084_v8 = vld [vmem:[#allocation80_spill] sm:$0xff] }
 0xbe4   :  { %8330 = vmatprep.subr.bf16.mxu0 %v13074_v2  ;;  %v13085_v2 = vld [vmem:[#allocation81_spill] sm:$0xff] }
 0xbeb   :  { %8332 = vmatpush1.bf16.xpose.msra.mxu0 %v13075_v51  ;;  %v13086_v51 = vld [vmem:[#allocation82_spill] sm:$0xff] }
 0xbec   :  { %8334 = vmatprep.subr.bf16.mxu0 %v13076_v33  ;;  %v13087_v33 = vld [vmem:[#allocation83_spill] sm:$0xff] }
 0xbf3   :  { %8336 = vmatpush1.bf16.xpose.msra.mxu0 %v13077_v9  ;;  %v13088_v9 = vld [vmem:[#allocation84_spill] sm:$0xff] }
 0xbf4   :  { %8338 = vmatprep.subr.bf16.mxu0 %v13078_v56  ;;  %v13089_v56 = vld [vmem:[#allocation85_spill] sm:$0xff] }
 0xbfb   :  { %8340 = vmatpush1.bf16.xpose.msra.mxu0 %v13079_v61  ;;  %v13090_v61 = vld [vmem:[#allocation86_spill] sm:$0xff] }
 0xbfc   :  { %8342 = vmatprep.subr.bf16.mxu0 %v13080_v42  ;;  %v13091_v42 = vld [vmem:[#allocation87_spill] sm:$0xff] }
 0xc03   :  { %8344 = vmatpush1.bf16.xpose.msra.mxu0 %v13081_v15  ;;  %v13092_v15 = vld [vmem:[#allocation88_spill] sm:$0xff] }
 0xc04   :  { %8346 = vmatprep.subr.bf16.mxu0 %v13082_v48  ;;  %v13093_v48 = vld [vmem:[#allocation89_spill] sm:$0xff] }
 0xc0b   :  { %8348 = vmatpush1.bf16.xpose.msra.mxu0 %v13083_v5  ;;  %v13094_v5 = vld [vmem:[#allocation90_spill] sm:$0xff] }
 0xc0c   :  { %8350 = vmatprep.subr.bf16.mxu0 %v13084_v8  ;;  %v13095_v8 = vld [vmem:[#allocation91_spill] sm:$0xff] }
 0xc13   :  { %8352 = vmatpush1.bf16.xpose.msra.mxu0 %v13085_v2  ;;  %v13096_v2 = vld [vmem:[#allocation92_spill] sm:$0xff] }
 0xc14   :  { %8354 = vmatprep.subr.bf16.mxu0 %v13086_v51  ;;  %v13097_v51 = vld [vmem:[#allocation93_spill] sm:$0xff] }
 0xc1b   :  { %8356 = vmatpush1.bf16.xpose.msra.mxu0 %v13087_v33  ;;  %v13111_v33 = vld [vmem:[#allocation107_spill] sm:$0xff] }
 0xc1c   :  { %8358 = vmatprep.subr.bf16.mxu0 %v13088_v9 }
 0xc23   :  { %8360 = vmatpush1.bf16.xpose.msra.mxu0 %v13089_v56 }
 0xc24   :  { %8362 = vmatprep.subr.bf16.mxu0 %v13090_v61  ;;  %v13110_v61 = vld [vmem:[#allocation106_spill] sm:$0xff] }
 0xc2b   :  { %8364 = vmatpush1.bf16.xpose.msra.mxu0 %v13091_v42 }
 0xc2c   :  { %8366 = vmatprep.subr.bf16.mxu0 %v13092_v15 }
 0xc33   :  { %8368 = vmatpush1.bf16.xpose.msra.mxu0 %v13093_v48 }
 0xc34   :  { %8370 = vmatprep.subr.bf16.mxu0 %v13094_v5  ;;  %v13098_v5 = vld [vmem:[#allocation94_spill] sm:$0xff] }
 0xc3b   :  { %8372 = vmatpush1.bf16.xpose.msra.mxu0 %v13095_v8 }
 0xc3c   :  { %8374 = vmatprep.subr.bf16.mxu0 %v13096_v2 }
 0xc43   :  { %8376 = vmatpush1.bf16.xpose.msra.mxu0 %v13097_v51 }
 0xc44   :  { %8378 = vmatprep.subr.bf16.mxu0 %v11451_v36 }
 0xc9d   :  { %v4374_v9 = vpop.f32.mrb[236].mxu0 }
 0xc9e   :  { %v4376_v56 = vpop.f32.mrb[237].mxu0 }
 0xc9f   :  { %4461 = vmatprep.mubr.f32.mxu0 %v4376_v56  ;;  %v4495_v56 = vld [vmem:[#allocation13 + $0x60] sm:$0xff] }
 0xca0   :  { %4462 = vmatmul.mubr.f32.vlgmr.msra.gmra.mrb[228].mxu0 %v4374_v9  ;;  %v13099_v9 = vld [vmem:[#allocation95_spill] sm:$0xff] }
 0xca1   :  { %8380 = vmatpush1.bf16.msra.mxu0 %v11449_v58  ;;  %v4380_v42 = vpop.f32.mrb[238].mxu0 }
 0xca2   :  { %8382 = vmatprep.subr.bf16.mxu0 %v11461_v45  ;;  %v4382_v48 = vpop.f32.mrb[239].mxu0 }
 0xca3   :  { %4467 = vmatprep.mubr.f32.mxu0 %v4382_v48  ;;  %v13100_v48 = vld [vmem:[#allocation96_spill] sm:$0xff] }
 0xca4   :  { %4468 = vmatmul.mubr.f32.gmra.mrb[230].mxu0 %v4380_v42  ;;  %v4496_v42 = vld [vmem:[#allocation13 + $0x68] sm:$0xff] }
 0xca5   :  { %8384 = vmatpush1.bf16.msra.mxu0 %v11459_v27  ;;  %v4386_v8 = vpop.f32.mrb[240].mxu0 }
 0xca6   :  { %v4388_v2 = vpop.f32.mrb[241].mxu0  ;;  %8386 = vmatprep.subr.bf16.mxu0 %v13098_v5  ;;  %v13107_v5 = vld [vmem:[#allocation103_spill] sm:$0xff] }
 0xca7   :  { %4473 = vmatprep.mubr.f32.mxu0 %v4388_v2  ;;  %v4498_v2 = vld [vmem:[#allocation13 + $0x78] sm:$0xff] }
 0xca8   :  { %4474 = vmatmul.mubr.f32.gmra.mrb[232].mxu0 %v4386_v8  ;;  %v4497_v8 = vld [vmem:[#allocation13 + $0x70] sm:$0xff] }
 0xca9   :  { %v4392_v51 = vpop.f32.mrb[242].mxu0 }
 0xcaa   :  { %v4394_v15 = vpop.f32.mrb[243].mxu0 }
 0xcab   :  { %4479 = vmatprep.mubr.f32.mxu0 %v4394_v15  ;;  %v13102_v15 = vld [vmem:[#allocation98_spill] sm:$0xff] }
 0xcac   :  { %4480 = vmatmul.mubr.f32.gmra.mrb[234].mxu0 %v4392_v51  ;;  %v13101_v51 = vld [vmem:[#allocation97_spill] sm:$0xff] }
 0xcad   :  { %4575 = vmatprep.mubr.f32.mxu0 %v12821_v23 }
 0xcb0   :  { %7316 = vmatmul.mubr.msk.f32.vlgmr.msra.gmra.mrb[244].mxu0 %vm1471_vm2, %v4495_v56  ;;  %v13103_v56 = vld [vmem:[#allocation99_spill] sm:$0xff] }
 0xcb1   :  { %8388 = vmatpush1.bf16.xpose.msra.mxu0 %v13099_v9  ;;  %4581 = vmatprep.mubr.f32.mxu0 %v12821_v23  ;;  %v13104_v9 = vld [vmem:[#allocation100_spill] sm:$0xff] }
 0xcb2   :  { %8390 = vmatprep.subr.bf16.mxu0 %v13100_v48  ;;  %v13105_v48 = vld [vmem:[#allocation101_spill] sm:$0xff] }
 0xcb4   :  { %7317 = vmatmul.mubr.msk.f32.gmra.mrb[246].mxu0 %vm1471_vm2, %v4496_v42  ;;  %v13106_v42 = vld [vmem:[#allocation102_spill] sm:$0xff] }
 0xcb5   :  { %4587 = vmatprep.mubr.f32.mxu0 %v12821_v23 }
 0xcb8   :  { %7318 = vmatmul.mubr.msk.f32.gmra.mrb[248].mxu0 %vm1471_vm2, %v4497_v8  ;;  %v13108_v8 = vld [vmem:[#allocation104_spill] sm:$0xff] }
 0xcb9   :  { %8392 = vmatpush1.bf16.xpose.msra.mxu0 %v13101_v51  ;;  %4593 = vmatprep.mubr.f32.mxu0 %v12821_v23  ;;  %v13109_v51 = vld [vmem:[#allocation105_spill] sm:$0xff] }
 0xcba   :  { %8394 = vmatprep.subr.bf16.mxu0 %v13102_v15  ;;  %v13112_v15 = vld [vmem:[#allocation108_spill] sm:$0xff] }
 0xcbc   :  { %7319 = vmatmul.mubr.msk.f32.gmra.mrb[250].mxu0 %vm1471_vm2, %v4498_v2  ;;  %v13113_v2 = vld [vmem:[#allocation109_spill] sm:$0xff] }
 0xcc1   :  { %8396 = vmatpush1.bf16.xpose.msra.mxu0 %v13103_v56  ;;  %v13114_v56 = vld [vmem:[#allocation110_spill] sm:$0xff] }
 0xcc2   :  { %8398 = vmatprep.subr.bf16.mxu0 %v13104_v9  ;;  %v13115_v9 = vld [vmem:[#allocation111_spill] sm:$0xff] }
 0xcc9   :  { %8400 = vmatpush1.bf16.xpose.msra.mxu0 %v13105_v48  ;;  %v13116_v48 = vld [vmem:[#allocation112_spill] sm:$0xff] }
 0xcca   :  { %8402 = vmatprep.subr.bf16.mxu0 %v13106_v42  ;;  %v13117_v42 = vld [vmem:[#allocation113_spill] sm:$0xff] }
 0xcd1   :  { %8404 = vmatpush1.bf16.xpose.msra.mxu0 %v13107_v5  ;;  %v13118_v5 = vld [vmem:[#allocation114_spill] sm:$0xff] }
 0xcd2   :  { %8406 = vmatprep.subr.bf16.mxu0 %v13108_v8  ;;  %v13119_v8 = vld [vmem:[#allocation115_spill] sm:$0xff] }
 0xcd9   :  { %8408 = vmatpush1.bf16.xpose.msra.mxu0 %v13109_v51  ;;  %v13120_v51 = vld [vmem:[#allocation116_spill] sm:$0xff] }
 0xcda   :  { %8410 = vmatprep.subr.bf16.mxu0 %v13110_v61  ;;  %v13121_v61 = vld [vmem:[#allocation117_spill] sm:$0xff] }
 0xce1   :  { %8412 = vmatpush1.bf16.xpose.msra.mxu0 %v13111_v33  ;;  %v13122_v33 = vld [vmem:[#allocation118_spill] sm:$0xff] }
 0xce2   :  { %8414 = vmatprep.subr.bf16.mxu0 %v13112_v15  ;;  %v13123_v15 = vld [vmem:[#allocation119_spill] sm:$0xff] }
 0xce9   :  { %8416 = vmatpush1.bf16.xpose.msra.mxu0 %v13113_v2  ;;  %v13124_v2 = vld [vmem:[#allocation120_spill] sm:$0xff] }
 0xcea   :  { %8418 = vmatprep.subr.bf16.mxu0 %v13114_v56  ;;  %v13125_v56 = vld [vmem:[#allocation121_spill] sm:$0xff] }
 0xcf1   :  { %8420 = vmatpush1.bf16.xpose.msra.mxu0 %v13115_v9  ;;  %v13126_v9 = vld [vmem:[#allocation122_spill] sm:$0xff] }
 0xcf2   :  { %8422 = vmatprep.subr.bf16.mxu0 %v13116_v48  ;;  %v13127_v48 = vld [vmem:[#allocation123_spill] sm:$0xff] }
 0xcf9   :  { %8424 = vmatpush1.bf16.xpose.msra.mxu0 %v13117_v42  ;;  %v13128_v42 = vld [vmem:[#allocation124_spill] sm:$0xff] }
 0xcfa   :  { %8426 = vmatprep.subr.bf16.mxu0 %v13118_v5  ;;  %v13129_v5 = vld [vmem:[#allocation125_spill] sm:$0xff] }
 0xd01   :  { %8428 = vmatpush1.bf16.xpose.msra.mxu0 %v13119_v8  ;;  %v13143_v8 = vld [vmem:[#allocation139_spill] sm:$0xff] }
 0xd02   :  { %8430 = vmatprep.subr.bf16.mxu0 %v13120_v51 }
 0xd09   :  { %8432 = vmatpush1.bf16.xpose.msra.mxu0 %v13121_v61 }
 0xd0a   :  { %8434 = vmatprep.subr.bf16.mxu0 %v13122_v33  ;;  %v13142_v33 = vld [vmem:[#allocation138_spill] sm:$0xff] }
 0xd11   :  { %8436 = vmatpush1.bf16.xpose.msra.mxu0 %v13123_v15 }
 0xd12   :  { %8438 = vmatprep.subr.bf16.mxu0 %v13124_v2 }
 0xd19   :  { %8440 = vmatpush1.bf16.xpose.msra.mxu0 %v13125_v56 }
 0xd1a   :  { %8442 = vmatprep.subr.bf16.mxu0 %v13126_v9  ;;  %v13130_v9 = vld [vmem:[#allocation126_spill] sm:$0xff] }
 0xd21   :  { %8444 = vmatpush1.bf16.xpose.msra.mxu0 %v13127_v48 }
 0xd22   :  { %8446 = vmatprep.subr.bf16.mxu0 %v13128_v42 }
 0xd29   :  { %8448 = vmatpush1.bf16.xpose.msra.mxu0 %v13129_v5 }
 0xd2a   :  { %8450 = vmatprep.subr.bf16.mxu0 %v11451_v36 }
 0xd83   :  { %v4577_v51 = vpop.f32.mrb[244].mxu0 }
 0xd84   :  { %v4579_v61 = vpop.f32.mrb[245].mxu0 }
 0xd85   :  { %4664 = vmatprep.mubr.f32.mxu0 %v4579_v61  ;;  %v4698_v61 = vld [vmem:[#allocation13 + $0x80] sm:$0xff] }
 0xd86   :  { %4665 = vmatmul.mubr.f32.vlgmr.msra.gmra.mrb[228].mxu0 %v4577_v51  ;;  %v13131_v51 = vld [vmem:[#allocation127_spill] sm:$0xff] }
 0xd87   :  { %8452 = vmatpush1.bf16.msra.mxu0 %v11449_v58  ;;  %v4583_v15 = vpop.f32.mrb[246].mxu0 }
 0xd88   :  { %8454 = vmatprep.subr.bf16.mxu0 %v11461_v45  ;;  %v4585_v56 = vpop.f32.mrb[247].mxu0 }
 0xd89   :  { %4670 = vmatprep.mubr.f32.mxu0 %v4585_v56  ;;  %v13132_v56 = vld [vmem:[#allocation128_spill] sm:$0xff] }
 0xd8a   :  { %4671 = vmatmul.mubr.f32.gmra.mrb[230].mxu0 %v4583_v15  ;;  %v4699_v15 = vld [vmem:[#allocation13 + $0x88] sm:$0xff] }
 0xd8b   :  { %8456 = vmatpush1.bf16.msra.mxu0 %v11459_v27  ;;  %v4589_v48 = vpop.f32.mrb[248].mxu0 }
 0xd8c   :  { %v4591_v42 = vpop.f32.mrb[249].mxu0  ;;  %8458 = vmatprep.subr.bf16.mxu0 %v13130_v9  ;;  %v13139_v9 = vld [vmem:[#allocation135_spill] sm:$0xff] }
 0xd8d   :  { %4676 = vmatprep.mubr.f32.mxu0 %v4591_v42  ;;  %v4701_v42 = vld [vmem:[#allocation13 + $0x98] sm:$0xff] }
 0xd8e   :  { %4677 = vmatmul.mubr.f32.gmra.mrb[232].mxu0 %v4589_v48  ;;  %v4700_v48 = vld [vmem:[#allocation13 + $0x90] sm:$0xff] }
 0xd8f   :  { %v4595_v5 = vpop.f32.mrb[250].mxu0 }
 0xd90   :  { %v4597_v2 = vpop.f32.mrb[251].mxu0 }
 0xd91   :  { %4682 = vmatprep.mubr.f32.mxu0 %v4597_v2  ;;  %v13134_v2 = vld [vmem:[#allocation130_spill] sm:$0xff] }
 0xd92   :  { %4683 = vmatmul.mubr.f32.gmra.mrb[234].mxu0 %v4595_v5  ;;  %v13133_v5 = vld [vmem:[#allocation129_spill] sm:$0xff] }
 0xd93   :  { %4778 = vmatprep.mubr.f32.mxu0 %v12821_v23 }
 0xd96   :  { %7320 = vmatmul.mubr.msk.f32.vlgmr.msra.gmra.mrb[252].mxu0 %vm1471_vm2, %v4698_v61  ;;  %v13135_v61 = vld [vmem:[#allocation131_spill] sm:$0xff] }
 0xd97   :  { %8460 = vmatpush1.bf16.xpose.msra.mxu0 %v13131_v51  ;;  %4784 = vmatprep.mubr.f32.mxu0 %v12821_v23  ;;  %v13136_v51 = vld [vmem:[#allocation132_spill] sm:$0xff] }
 0xd98   :  { %8462 = vmatprep.subr.bf16.mxu0 %v13132_v56  ;;  %v13137_v56 = vld [vmem:[#allocation133_spill] sm:$0xff] }
 0xd9a   :  { %7321 = vmatmul.mubr.msk.f32.gmra.mrb[254].mxu0 %vm1471_vm2, %v4699_v15  ;;  %v13138_v15 = vld [vmem:[#allocation134_spill] sm:$0xff] }
 0xd9b   :  { %4790 = vmatprep.mubr.f32.mxu0 %v12821_v23 }
 0xd9e   :  { %7322 = vmatmul.mubr.msk.f32.gmra.mrb[0].mxu0 %vm1471_vm2, %v4700_v48  ;;  %v13140_v48 = vld [vmem:[#allocation136_spill] sm:$0xff] }
 0xd9f   :  { %8464 = vmatpush1.bf16.xpose.msra.mxu0 %v13133_v5  ;;  %4796 = vmatprep.mubr.f32.mxu0 %v12821_v23  ;;  %v13141_v5 = vld [vmem:[#allocation137_spill] sm:$0xff] }
 0xda0   :  { %8466 = vmatprep.subr.bf16.mxu0 %v13134_v2  ;;  %v13144_v2 = vld [vmem:[#allocation140_spill] sm:$0xff] }
 0xda2   :  { %7323 = vmatmul.mubr.msk.f32.gmra.mrb[2].mxu0 %vm1471_vm2, %v4701_v42  ;;  %v13145_v42 = vld [vmem:[#allocation141_spill] sm:$0xff] }
 0xda7   :  { %8468 = vmatpush1.bf16.xpose.msra.mxu0 %v13135_v61  ;;  %v13146_v61 = vld [vmem:[#allocation142_spill] sm:$0xff] }
 0xda8   :  { %8470 = vmatprep.subr.bf16.mxu0 %v13136_v51  ;;  %v13147_v51 = vld [vmem:[#allocation143_spill] sm:$0xff] }
 0xdaf   :  { %8472 = vmatpush1.bf16.xpose.msra.mxu0 %v13137_v56  ;;  %v13148_v56 = vld [vmem:[#allocation144_spill] sm:$0xff] }
 0xdb0   :  { %8474 = vmatprep.subr.bf16.mxu0 %v13138_v15  ;;  %v13149_v15 = vld [vmem:[#allocation145_spill] sm:$0xff] }
 0xdb7   :  { %8476 = vmatpush1.bf16.xpose.msra.mxu0 %v13139_v9  ;;  %v13150_v9 = vld [vmem:[#allocation146_spill] sm:$0xff] }
 0xdb8   :  { %8478 = vmatprep.subr.bf16.mxu0 %v13140_v48  ;;  %v13151_v48 = vld [vmem:[#allocation147_spill] sm:$0xff] }
 0xdbf   :  { %8480 = vmatpush1.bf16.xpose.msra.mxu0 %v13141_v5  ;;  %v13152_v5 = vld [vmem:[#allocation148_spill] sm:$0xff] }
 0xdc0   :  { %8482 = vmatprep.subr.bf16.mxu0 %v13142_v33  ;;  %v13153_v33 = vld [vmem:[#allocation149_spill] sm:$0xff] }
 0xdc7   :  { %8484 = vmatpush1.bf16.xpose.msra.mxu0 %v13143_v8  ;;  %v13154_v8 = vld [vmem:[#allocation150_spill] sm:$0xff] }
 0xdc8   :  { %8486 = vmatprep.subr.bf16.mxu0 %v13144_v2  ;;  %v13155_v2 = vld [vmem:[#allocation151_spill] sm:$0xff] }
 0xdcf   :  { %8488 = vmatpush1.bf16.xpose.msra.mxu0 %v13145_v42  ;;  %v13156_v42 = vld [vmem:[#allocation152_spill] sm:$0xff] }
 0xdd0   :  { %8490 = vmatprep.subr.bf16.mxu0 %v13146_v61  ;;  %v13157_v61 = vld [vmem:[#allocation153_spill] sm:$0xff] }
 0xdd7   :  { %8492 = vmatpush1.bf16.xpose.msra.mxu0 %v13147_v51  ;;  %v13158_v51 = vld [vmem:[#allocation154_spill] sm:$0xff] }
 0xdd8   :  { %8494 = vmatprep.subr.bf16.mxu0 %v13148_v56  ;;  %v13159_v56 = vld [vmem:[#allocation155_spill] sm:$0xff] }
 0xddf   :  { %8496 = vmatpush1.bf16.xpose.msra.mxu0 %v13149_v15  ;;  %v13160_v15 = vld [vmem:[#allocation156_spill] sm:$0xff] }
 0xde0   :  { %8498 = vmatprep.subr.bf16.mxu0 %v13150_v9  ;;  %v13161_v9 = vld [vmem:[#allocation157_spill] sm:$0xff] }
 0xde7   :  { %8500 = vmatpush1.bf16.xpose.msra.mxu0 %v13151_v48  ;;  %v13175_v48 = vld [vmem:[#allocation171_spill] sm:$0xff] }
 0xde8   :  { %8502 = vmatprep.subr.bf16.mxu0 %v13152_v5 }
 0xdef   :  { %8504 = vmatpush1.bf16.xpose.msra.mxu0 %v13153_v33 }
 0xdf0   :  { %8506 = vmatprep.subr.bf16.mxu0 %v13154_v8  ;;  %v13174_v8 = vld [vmem:[#allocation170_spill] sm:$0xff] }
 0xdf7   :  { %8508 = vmatpush1.bf16.xpose.msra.mxu0 %v13155_v2 }
 0xdf8   :  { %8510 = vmatprep.subr.bf16.mxu0 %v13156_v42 }
 0xdff   :  { %8512 = vmatpush1.bf16.xpose.msra.mxu0 %v13157_v61 }
 0xe00   :  { %8514 = vmatprep.subr.bf16.mxu0 %v13158_v51  ;;  %v13162_v51 = vld [vmem:[#allocation158_spill] sm:$0xff] }
 0xe07   :  { %8516 = vmatpush1.bf16.xpose.msra.mxu0 %v13159_v56 }
 0xe08   :  { %8518 = vmatprep.subr.bf16.mxu0 %v13160_v15 }
 0xe0f   :  { %8520 = vmatpush1.bf16.xpose.msra.mxu0 %v13161_v9 }
 0xe10   :  { %8522 = vmatprep.subr.bf16.mxu0 %v11451_v36 }
 0xe69   :  { %v4780_v5 = vpop.f32.mrb[252].mxu0 }
 0xe6a   :  { %v4782_v33 = vpop.f32.mrb[253].mxu0 }
 0xe6b   :  { %4867 = vmatprep.mubr.f32.mxu0 %v4782_v33  ;;  %v4901_v33 = vld [vmem:[#allocation13 + $0xa0] sm:$0xff] }
 0xe6c   :  { %4868 = vmatmul.mubr.f32.vlgmr.msra.gmra.mrb[228].mxu0 %v4780_v5  ;;  %v13163_v5 = vld [vmem:[#allocation159_spill] sm:$0xff] }
 0xe6d   :  { %8524 = vmatpush1.bf16.msra.mxu0 %v11449_v58  ;;  %v4786_v2 = vpop.f32.mrb[254].mxu0 }
 0xe6e   :  { %8526 = vmatprep.subr.bf16.mxu0 %v11461_v45  ;;  %v4788_v61 = vpop.f32.mrb[255].mxu0 }
 0xe6f   :  { %4873 = vmatprep.mubr.f32.mxu0 %v4788_v61  ;;  %v13164_v61 = vld [vmem:[#allocation160_spill] sm:$0xff] }
 0xe70   :  { %4874 = vmatmul.mubr.f32.gmra.mrb[230].mxu0 %v4786_v2  ;;  %v4902_v2 = vld [vmem:[#allocation13 + $0xa8] sm:$0xff] }
 0xe71   :  { %8528 = vmatpush1.bf16.msra.mxu0 %v11459_v27  ;;  %v4792_v56 = vpop.f32.mrb[0].mxu0 }
 0xe72   :  { %v4794_v15 = vpop.f32.mrb[1].mxu0  ;;  %8530 = vmatprep.subr.bf16.mxu0 %v13162_v51  ;;  %v13171_v51 = vld [vmem:[#allocation167_spill] sm:$0xff] }
 0xe73   :  { %4879 = vmatprep.mubr.f32.mxu0 %v4794_v15  ;;  %v4904_v15 = vld [vmem:[#allocation13 + $0xb8] sm:$0xff] }
 0xe74   :  { %4880 = vmatmul.mubr.f32.gmra.mrb[232].mxu0 %v4792_v56  ;;  %v4903_v56 = vld [vmem:[#allocation13 + $0xb0] sm:$0xff] }
 0xe75   :  { %v4798_v9 = vpop.f32.mrb[2].mxu0 }
 0xe76   :  { %v4800_v42 = vpop.f32.mrb[3].mxu0 }
 0xe77   :  { %4885 = vmatprep.mubr.f32.mxu0 %v4800_v42  ;;  %v13166_v42 = vld [vmem:[#allocation162_spill] sm:$0xff] }
 0xe78   :  { %4886 = vmatmul.mubr.f32.gmra.mrb[234].mxu0 %v4798_v9  ;;  %v13165_v9 = vld [vmem:[#allocation161_spill] sm:$0xff] }
 0xe79   :  { %4981 = vmatprep.mubr.f32.mxu0 %v12821_v23 }
 0xe7c   :  { %7324 = vmatmul.mubr.msk.f32.vlgmr.msra.gmra.mrb[4].mxu0 %vm1471_vm2, %v4901_v33  ;;  %v13167_v33 = vld [vmem:[#allocation163_spill] sm:$0xff] }
 0xe7d   :  { %8532 = vmatpush1.bf16.xpose.msra.mxu0 %v13163_v5  ;;  %4987 = vmatprep.mubr.f32.mxu0 %v12821_v23  ;;  %v13168_v5 = vld [vmem:[#allocation164_spill] sm:$0xff] }
 0xe7e   :  { %8534 = vmatprep.subr.bf16.mxu0 %v13164_v61  ;;  %v13169_v61 = vld [vmem:[#allocation165_spill] sm:$0xff] }
 0xe80   :  { %7325 = vmatmul.mubr.msk.f32.gmra.mrb[6].mxu0 %vm1471_vm2, %v4902_v2  ;;  %v13170_v2 = vld [vmem:[#allocation166_spill] sm:$0xff] }
 0xe81   :  { %4993 = vmatprep.mubr.f32.mxu0 %v12821_v23 }
 0xe84   :  { %7326 = vmatmul.mubr.msk.f32.gmra.mrb[8].mxu0 %vm1471_vm2, %v4903_v56  ;;  %v13172_v56 = vld [vmem:[#allocation168_spill] sm:$0xff] }
 0xe85   :  { %8536 = vmatpush1.bf16.xpose.msra.mxu0 %v13165_v9  ;;  %4999 = vmatprep.mubr.f32.mxu0 %v12821_v23  ;;  %v13173_v9 = vld [vmem:[#allocation169_spill] sm:$0xff] }
 0xe86   :  { %8538 = vmatprep.subr.bf16.mxu0 %v13166_v42  ;;  %v13176_v42 = vld [vmem:[#allocation172_spill] sm:$0xff] }
 0xe88   :  { %7327 = vmatmul.mubr.msk.f32.gmra.mrb[10].mxu0 %vm1471_vm2, %v4904_v15  ;;  %v13177_v15 = vld [vmem:[#allocation173_spill] sm:$0xff] }
 0xe8d   :  { %8540 = vmatpush1.bf16.xpose.msra.mxu0 %v13167_v33  ;;  %v13178_v33 = vld [vmem:[#allocation174_spill] sm:$0xff] }
 0xe8e   :  { %8542 = vmatprep.subr.bf16.mxu0 %v13168_v5  ;;  %v13179_v5 = vld [vmem:[#allocation175_spill] sm:$0xff] }
 0xe95   :  { %8544 = vmatpush1.bf16.xpose.msra.mxu0 %v13169_v61  ;;  %v13180_v61 = vld [vmem:[#allocation176_spill] sm:$0xff] }
 0xe96   :  { %8546 = vmatprep.subr.bf16.mxu0 %v13170_v2  ;;  %v13181_v2 = vld [vmem:[#allocation177_spill] sm:$0xff] }
 0xe9d   :  { %8548 = vmatpush1.bf16.xpose.msra.mxu0 %v13171_v51  ;;  %v13182_v51 = vld [vmem:[#allocation178_spill] sm:$0xff] }
 0xe9e   :  { %8550 = vmatprep.subr.bf16.mxu0 %v13172_v56  ;;  %v13183_v56 = vld [vmem:[#allocation179_spill] sm:$0xff] }
 0xea5   :  { %8552 = vmatpush1.bf16.xpose.msra.mxu0 %v13173_v9  ;;  %v13184_v9 = vld [vmem:[#allocation180_spill] sm:$0xff] }
 0xea6   :  { %8554 = vmatprep.subr.bf16.mxu0 %v13174_v8  ;;  %v13185_v8 = vld [vmem:[#allocation181_spill] sm:$0xff] }
 0xead   :  { %8556 = vmatpush1.bf16.xpose.msra.mxu0 %v13175_v48  ;;  %v13186_v48 = vld [vmem:[#allocation182_spill] sm:$0xff] }
 0xeae   :  { %8558 = vmatprep.subr.bf16.mxu0 %v13176_v42  ;;  %v13187_v42 = vld [vmem:[#allocation183_spill] sm:$0xff] }
 0xeb5   :  { %8560 = vmatpush1.bf16.xpose.msra.mxu0 %v13177_v15  ;;  %v13188_v15 = vld [vmem:[#allocation184_spill] sm:$0xff] }
 0xeb6   :  { %8562 = vmatprep.subr.bf16.mxu0 %v13178_v33  ;;  %v13189_v33 = vld [vmem:[#allocation185_spill] sm:$0xff] }
 0xebd   :  { %8564 = vmatpush1.bf16.xpose.msra.mxu0 %v13179_v5  ;;  %v13190_v5 = vld [vmem:[#allocation186_spill] sm:$0xff] }
 0xebe   :  { %8566 = vmatprep.subr.bf16.mxu0 %v13180_v61  ;;  %v13191_v61 = vld [vmem:[#allocation187_spill] sm:$0xff] }
 0xec5   :  { %8568 = vmatpush1.bf16.xpose.msra.mxu0 %v13181_v2  ;;  %v13192_v2 = vld [vmem:[#allocation188_spill] sm:$0xff] }
 0xec6   :  { %8570 = vmatprep.subr.bf16.mxu0 %v13182_v51  ;;  %v13193_v51 = vld [vmem:[#allocation189_spill] sm:$0xff] }
 0xecd   :  { %8572 = vmatpush1.bf16.xpose.msra.mxu0 %v13183_v56  ;;  %v13207_v56 = vld [vmem:[#allocation203_spill] sm:$0xff] }
 0xece   :  { %8574 = vmatprep.subr.bf16.mxu0 %v13184_v9 }
 0xed5   :  { %8576 = vmatpush1.bf16.xpose.msra.mxu0 %v13185_v8 }
 0xed6   :  { %8578 = vmatprep.subr.bf16.mxu0 %v13186_v48  ;;  %v13206_v48 = vld [vmem:[#allocation202_spill] sm:$0xff] }
 0xedd   :  { %8580 = vmatpush1.bf16.xpose.msra.mxu0 %v13187_v42 }
 0xede   :  { %8582 = vmatprep.subr.bf16.mxu0 %v13188_v15 }
 0xee5   :  { %8584 = vmatpush1.bf16.xpose.msra.mxu0 %v13189_v33 }
 0xee6   :  { %8586 = vmatprep.subr.bf16.mxu0 %v13190_v5  ;;  %v13194_v5 = vld [vmem:[#allocation190_spill] sm:$0xff] }
 0xeed   :  { %8588 = vmatpush1.bf16.xpose.msra.mxu0 %v13191_v61 }
 0xeee   :  { %8590 = vmatprep.subr.bf16.mxu0 %v13192_v2 }
 0xef5   :  { %8592 = vmatpush1.bf16.xpose.msra.mxu0 %v13193_v51 }
 0xef6   :  { %8594 = vmatprep.subr.bf16.mxu0 %v11451_v36 }
 0xf4f   :  { %v4983_v9 = vpop.f32.mrb[4].mxu0 }
 0xf50   :  { %v4985_v8 = vpop.f32.mrb[5].mxu0 }
 0xf51   :  { %5070 = vmatprep.mubr.f32.mxu0 %v4985_v8  ;;  %v5104_v8 = vld [vmem:[#allocation13 + $0xc0] sm:$0xff] }
 0xf52   :  { %5071 = vmatmul.mubr.f32.vlgmr.msra.gmra.mrb[228].mxu0 %v4983_v9  ;;  %v13195_v9 = vld [vmem:[#allocation191_spill] sm:$0xff] }
 0xf53   :  { %8596 = vmatpush1.bf16.msra.mxu0 %v11449_v58  ;;  %v4989_v42 = vpop.f32.mrb[6].mxu0 }
 0xf54   :  { %8598 = vmatprep.subr.bf16.mxu0 %v11461_v45  ;;  %v4991_v33 = vpop.f32.mrb[7].mxu0 }
 0xf55   :  { %5076 = vmatprep.mubr.f32.mxu0 %v4991_v33  ;;  %v13196_v33 = vld [vmem:[#allocation192_spill] sm:$0xff] }
 0xf56   :  { %5077 = vmatmul.mubr.f32.gmra.mrb[230].mxu0 %v4989_v42  ;;  %v5105_v42 = vld [vmem:[#allocation13 + $0xc8] sm:$0xff] }
 0xf57   :  { %8600 = vmatpush1.bf16.msra.mxu0 %v11459_v27  ;;  %v4995_v61 = vpop.f32.mrb[8].mxu0 }
 0xf58   :  { %v4997_v2 = vpop.f32.mrb[9].mxu0  ;;  %8602 = vmatprep.subr.bf16.mxu0 %v13194_v5  ;;  %v13203_v5 = vld [vmem:[#allocation199_spill] sm:$0xff] }
 0xf59   :  { %5082 = vmatprep.mubr.f32.mxu0 %v4997_v2  ;;  %v5107_v2 = vld [vmem:[#allocation13 + $0xd8] sm:$0xff] }
 0xf5a   :  { %5083 = vmatmul.mubr.f32.gmra.mrb[232].mxu0 %v4995_v61  ;;  %v5106_v61 = vld [vmem:[#allocation13 + $0xd0] sm:$0xff] }
 0xf5b   :  { %v5001_v51 = vpop.f32.mrb[10].mxu0 }
 0xf5c   :  { %v5003_v15 = vpop.f32.mrb[11].mxu0 }
 0xf5d   :  { %5088 = vmatprep.mubr.f32.mxu0 %v5003_v15  ;;  %v13198_v15 = vld [vmem:[#allocation194_spill] sm:$0xff] }
 0xf5e   :  { %5089 = vmatmul.mubr.f32.gmra.mrb[234].mxu0 %v5001_v51  ;;  %v13197_v51 = vld [vmem:[#allocation193_spill] sm:$0xff] }
 0xf5f   :  { %5184 = vmatprep.mubr.f32.mxu0 %v12821_v23 }
 0xf62   :  { %7328 = vmatmul.mubr.msk.f32.vlgmr.msra.gmra.mrb[12].mxu0 %vm1471_vm2, %v5104_v8  ;;  %v13199_v8 = vld [vmem:[#allocation195_spill] sm:$0xff] }
 0xf63   :  { %8604 = vmatpush1.bf16.xpose.msra.mxu0 %v13195_v9  ;;  %5190 = vmatprep.mubr.f32.mxu0 %v12821_v23  ;;  %v13200_v9 = vld [vmem:[#allocation196_spill] sm:$0xff] }
 0xf64   :  { %8606 = vmatprep.subr.bf16.mxu0 %v13196_v33  ;;  %v13201_v33 = vld [vmem:[#allocation197_spill] sm:$0xff] }
 0xf66   :  { %7329 = vmatmul.mubr.msk.f32.gmra.mrb[14].mxu0 %vm1471_vm2, %v5105_v42  ;;  %v13202_v42 = vld [vmem:[#allocation198_spill] sm:$0xff] }
 0xf67   :  { %5196 = vmatprep.mubr.f32.mxu0 %v12821_v23 }
 0xf6a   :  { %7330 = vmatmul.mubr.msk.f32.gmra.mrb[16].mxu0 %vm1471_vm2, %v5106_v61  ;;  %v13204_v61 = vld [vmem:[#allocation200_spill] sm:$0xff] }
 0xf6b   :  { %8608 = vmatpush1.bf16.xpose.msra.mxu0 %v13197_v51  ;;  %5202 = vmatprep.mubr.f32.mxu0 %v12821_v23  ;;  %v13205_v51 = vld [vmem:[#allocation201_spill] sm:$0xff] }
 0xf6c   :  { %8610 = vmatprep.subr.bf16.mxu0 %v13198_v15  ;;  %v13208_v15 = vld [vmem:[#allocation204_spill] sm:$0xff] }
 0xf6e   :  { %7331 = vmatmul.mubr.msk.f32.gmra.mrb[18].mxu0 %vm1471_vm2, %v5107_v2  ;;  %v13209_v2 = vld [vmem:[#allocation205_spill] sm:$0xff] }
 0xf73   :  { %8612 = vmatpush1.bf16.xpose.msra.mxu0 %v13199_v8  ;;  %v13210_v8 = vld [vmem:[#allocation206_spill] sm:$0xff] }
 0xf74   :  { %8614 = vmatprep.subr.bf16.mxu0 %v13200_v9  ;;  %v13211_v9 = vld [vmem:[#allocation207_spill] sm:$0xff] }
 0xf7b   :  { %8616 = vmatpush1.bf16.xpose.msra.mxu0 %v13201_v33  ;;  %v13212_v33 = vld [vmem:[#allocation208_spill] sm:$0xff] }
 0xf7c   :  { %8618 = vmatprep.subr.bf16.mxu0 %v13202_v42  ;;  %v13213_v42 = vld [vmem:[#allocation209_spill] sm:$0xff] }
 0xf83   :  { %8620 = vmatpush1.bf16.xpose.msra.mxu0 %v13203_v5  ;;  %v13214_v5 = vld [vmem:[#allocation210_spill] sm:$0xff] }
 0xf84   :  { %8622 = vmatprep.subr.bf16.mxu0 %v13204_v61  ;;  %v13215_v61 = vld [vmem:[#allocation211_spill] sm:$0xff] }
 0xf8b   :  { %8624 = vmatpush1.bf16.xpose.msra.mxu0 %v13205_v51  ;;  %v13216_v51 = vld [vmem:[#allocation212_spill] sm:$0xff] }
 0xf8c   :  { %8626 = vmatprep.subr.bf16.mxu0 %v13206_v48  ;;  %v13217_v48 = vld [vmem:[#allocation213_spill] sm:$0xff] }
 0xf93   :  { %8628 = vmatpush1.bf16.xpose.msra.mxu0 %v13207_v56  ;;  %v13218_v56 = vld [vmem:[#allocation214_spill] sm:$0xff] }
 0xf94   :  { %8630 = vmatprep.subr.bf16.mxu0 %v13208_v15  ;;  %v13219_v15 = vld [vmem:[#allocation215_spill] sm:$0xff] }
 0xf9b   :  { %8632 = vmatpush1.bf16.xpose.msra.mxu0 %v13209_v2  ;;  %v13220_v2 = vld [vmem:[#allocation216_spill] sm:$0xff] }
 0xf9c   :  { %8634 = vmatprep.subr.bf16.mxu0 %v13210_v8  ;;  %v13221_v8 = vld [vmem:[#allocation217_spill] sm:$0xff] }
 0xfa3   :  { %8636 = vmatpush1.bf16.xpose.msra.mxu0 %v13211_v9  ;;  %v13222_v9 = vld [vmem:[#allocation218_spill] sm:$0xff] }
 0xfa4   :  { %8638 = vmatprep.subr.bf16.mxu0 %v13212_v33  ;;  %v13223_v33 = vld [vmem:[#allocation219_spill] sm:$0xff] }
 0xfab   :  { %8640 = vmatpush1.bf16.xpose.msra.mxu0 %v13213_v42  ;;  %v13224_v42 = vld [vmem:[#allocation220_spill] sm:$0xff] }
 0xfac   :  { %8642 = vmatprep.subr.bf16.mxu0 %v13214_v5  ;;  %v13225_v5 = vld [vmem:[#allocation221_spill] sm:$0xff] }
 0xfb3   :  { %8644 = vmatpush1.bf16.xpose.msra.mxu0 %v13215_v61 }
 0xfb4   :  { %8646 = vmatprep.subr.bf16.mxu0 %v13216_v51  ;;  %v5510_v51 = vld [vmem:[#allocation13 + $0x100] sm:$0xff] }
 0xfb5   :  { %7336 = vmatmul.mubr.msk.f32.vlgmr.msra.gmra.mrb[44].mxu1 %vm1471_vm2, %v5510_v51 }
 0xfb6   :  { %5596 = vmatprep.mubr.f32.mxu1 %v12821_v23 }
 0xfbb   :  { %8648 = vmatpush1.bf16.xpose.msra.mxu0 %v13217_v48 }
 0xfbc   :  { %8650 = vmatprep.subr.bf16.mxu0 %v13218_v56 }
 0xfc3   :  { %8652 = vmatpush1.bf16.xpose.msra.mxu0 %v13219_v15  ;;  %v5511_v15 = vld [vmem:[#allocation13 + $0x108] sm:$0xff] }
 0xfc4   :  { %8654 = vmatprep.subr.bf16.mxu0 %v13220_v2  ;;  %7337 = vmatmul.mubr.msk.f32.gmra.mrb[46].mxu1 %vm1471_vm2, %v5511_v15 }
 0xfc5   :  { %5602 = vmatprep.mubr.f32.mxu1 %v12821_v23 }
 0xfcb   :  { %8656 = vmatpush1.bf16.xpose.msra.mxu0 %v13221_v8  ;;  %v5512_v8 = vld [vmem:[#allocation13 + $0x110] sm:$0xff] }
 0xfcc   :  { %8658 = vmatprep.subr.bf16.mxu0 %v13222_v9  ;;  %7338 = vmatmul.mubr.msk.f32.gmra.mrb[48].mxu1 %vm1471_vm2, %v5512_v8  ;;  %v13226_v9 = vld [vmem:[#allocation222_spill] sm:$0xff] }
 0xfcd   :  { %5608 = vmatprep.mubr.f32.mxu1 %v12821_v23 }
 0xfd3   :  { %8660 = vmatpush1.bf16.xpose.msra.mxu0 %v13223_v33 }
 0xfd4   :  { %8662 = vmatprep.subr.bf16.mxu0 %v13224_v42  ;;  %v5513_v42 = vld [vmem:[#allocation13 + $0x118] sm:$0xff] }
 0xfd5   :  { %7339 = vmatmul.mubr.msk.f32.gmra.mrb[50].mxu1 %vm1471_vm2, %v5513_v42 }
 0xfd6   :  { %5957 = vmatprep.mubr.f32.mxu1 %v12821_v23 }
 0xfdb   :  { %8664 = vmatpush1.bf16.xpose.msra.mxu0 %v13225_v5 }
 0xfdc   :  { %8666 = vmatprep.subr.bf16.mxu0 %v11451_v36 }
0x1035   :  { %v5186_v36 = vpop.f32.mrb[12].mxu0 }
0x1036   :  { %v5188_v5 = vpop.f32.mrb[13].mxu0 }
0x1037   :  { %5273 = vmatprep.mubr.f32.mxu0 %v5188_v5  ;;  %v13228_v5 = vld [vmem:[#allocation224_spill] sm:$0xff] }
0x1038   :  { %5274 = vmatmul.mubr.f32.vlgmr.msra.gmra.mrb[228].mxu0 %v5186_v36  ;;  %v5310_v36 = vld [vmem:[#allocation13 + $0xf8] sm:$0xff] }
0x1039   :  { %8668 = vmatpush1.bf16.msra.mxu0 %v11449_v58  ;;  %v5192_v51 = vpop.f32.mrb[14].mxu0  ;;  %v5307_v58 = vld [vmem:[#allocation13 + $0xe0] sm:$0xff] }
0x103a   :  { %8670 = vmatprep.subr.bf16.mxu0 %v11461_v45  ;;  %v5194_v15 = vpop.f32.mrb[15].mxu0  ;;  %v13227_v45 = vld [vmem:[#allocation223_spill] sm:$0xff] }
0x103b   :  { %5279 = vmatprep.mubr.f32.mxu0 %v5194_v15  ;;  %v13231_v15 = vld [vmem:[#allocation227_spill] sm:$0xff] }
0x103c   :  { %5280 = vmatmul.mubr.f32.gmra.mrb[230].mxu0 %v5192_v51  ;;  %v13230_v51 = vld [vmem:[#allocation226_spill] sm:$0xff] }
0x103d   :  { %8672 = vmatpush1.bf16.msra.mxu0 %v11459_v27  ;;  %v5198_v8 = vpop.f32.mrb[16].mxu0  ;;  %v5308_v27 = vld [vmem:[#allocation13 + $0xe8] sm:$0xff] }
0x103e   :  { %v5200_v33 = vpop.f32.mrb[17].mxu0  ;;  %8674 = vmatprep.subr.bf16.mxu0 %v13226_v9 }
0x103f   :  { %5285 = vmatprep.mubr.f32.mxu0 %v5200_v33  ;;  %v5309_v33 = vld [vmem:[#allocation13 + $0xf0] sm:$0xff] }
0x1040   :  { %5286 = vmatmul.mubr.f32.gmra.mrb[232].mxu0 %v5198_v8  ;;  %v13232_v8 = vld [vmem:[#allocation228_spill] sm:$0xff] }
0x1041   :  { %v5204_v42 = vpop.f32.mrb[18].mxu0 }
0x1042   :  { %v5206_v2 = vpop.f32.mrb[19].mxu0 }
0x1043   :  { %5291 = vmatprep.mubr.f32.mxu0 %v5206_v2  ;;  %v13229_v2 = vld [vmem:[#allocation225_spill] sm:$0xff] }
0x1044   :  { %5292 = vmatmul.mubr.f32.gmra.mrb[234].mxu0 %v5204_v42  ;;  %v13233_v42 = vld [vmem:[#allocation229_spill] sm:$0xff] }
0x1045   :  { %5387 = vmatprep.mubr.f32.mxu0 %v12821_v23 }
0x1048   :  { %7332 = vmatmul.mubr.msk.f32.vlgmr.msra.gmra.mrb[20].mxu0 %vm1471_vm2, %v5307_v58  ;;  %v13234_v58 = vld [vmem:[#allocation230_spill] sm:$0xff] }
0x1049   :  { %8676 = vmatpush1.bf16.xpose.msra.mxu0 %v13227_v45  ;;  %5393 = vmatprep.mubr.f32.mxu0 %v12821_v23  ;;  %v13239_v45 = vld [vmem:[#allocation235_spill] sm:$0xff] }
0x104a   :  { %8678 = vmatprep.subr.bf16.mxu0 %v13228_v5  ;;  %v13238_v5 = vld [vmem:[#allocation234_spill] sm:$0xff] }
0x104c   :  { %7333 = vmatmul.mubr.msk.f32.gmra.mrb[22].mxu0 %vm1471_vm2, %v5308_v27  ;;  %v13235_v27 = vld [vmem:[#allocation231_spill] sm:$0xff] }
0x104d   :  { %5399 = vmatprep.mubr.f32.mxu0 %v12821_v23 }
0x1050   :  { %7334 = vmatmul.mubr.msk.f32.gmra.mrb[24].mxu0 %vm1471_vm2, %v5309_v33  ;;  %v13236_v33 = vld [vmem:[#allocation232_spill] sm:$0xff] }
0x1051   :  { %8680 = vmatpush1.bf16.xpose.msra.mxu0 %v13229_v2  ;;  %5405 = vmatprep.mubr.f32.mxu0 %v12821_v23  ;;  %v13237_v2 = vld [vmem:[#allocation233_spill] sm:$0xff] }
0x1052   :  { %8682 = vmatprep.subr.bf16.mxu0 %v13230_v51  ;;  %v13240_v51 = vld [vmem:[#allocation236_spill] sm:$0xff] }
0x1054   :  { %7335 = vmatmul.mubr.msk.f32.gmra.mrb[26].mxu0 %vm1471_vm2, %v5310_v36  ;;  %v13241_v36 = vld [vmem:[#allocation237_spill] sm:$0xff] }
0x1059   :  { %8684 = vmatpush1.bf16.xpose.msra.mxu0 %v13231_v15  ;;  %v13242_v15 = vld [vmem:[#allocation238_spill] sm:$0xff] }
0x105a   :  { %8686 = vmatprep.subr.bf16.mxu0 %v13232_v8  ;;  %v13243_v8 = vld [vmem:[#allocation239_spill] sm:$0xff] }
0x1061   :  { %8688 = vmatpush1.bf16.xpose.msra.mxu0 %v13233_v42  ;;  %v13244_v42 = vld [vmem:[#allocation240_spill] sm:$0xff] }
0x1062   :  { %8690 = vmatprep.subr.bf16.mxu0 %v13234_v58  ;;  %v13245_v58 = vld [vmem:[#allocation241_spill] sm:$0xff] }
0x1069   :  { %8692 = vmatpush1.bf16.xpose.msra.mxu0 %v13235_v27  ;;  %v13246_v27 = vld [vmem:[#allocation242_spill] sm:$0xff] }
0x106a   :  { %8694 = vmatprep.subr.bf16.mxu0 %v13236_v33  ;;  %v13247_v33 = vld [vmem:[#allocation243_spill] sm:$0xff] }
0x1071   :  { %8696 = vmatpush1.bf16.xpose.msra.mxu0 %v13237_v2  ;;  %v13248_v2 = vld [vmem:[#allocation244_spill] sm:$0xff] }
0x1072   :  { %8698 = vmatprep.subr.bf16.mxu0 %v13238_v5  ;;  %v13249_v5 = vld [vmem:[#allocation245_spill] sm:$0xff] }
0x1079   :  { %8700 = vmatpush1.bf16.xpose.msra.mxu0 %v13239_v45  ;;  %v13250_v45 = vld [vmem:[#allocation246_spill] sm:$0xff] }
0x107a   :  { %8702 = vmatprep.subr.bf16.mxu0 %v13240_v51  ;;  %v13251_v51 = vld [vmem:[#allocation247_spill] sm:$0xff] }
0x1081   :  { %8704 = vmatpush1.bf16.xpose.msra.mxu0 %v13241_v36  ;;  %v13252_v36 = vld [vmem:[#allocation248_spill] sm:$0xff] }
0x1082   :  { %8706 = vmatprep.subr.bf16.mxu0 %v13242_v15  ;;  %v13253_v15 = vld [vmem:[#allocation249_spill] sm:$0xff] }
0x1089   :  { %8708 = vmatpush1.bf16.xpose.msra.mxu0 %v13243_v8  ;;  %v13254_v8 = vld [vmem:[#allocation250_spill] sm:$0xff] }
0x108a   :  { %8710 = vmatprep.subr.bf16.mxu0 %v13244_v42  ;;  %v13255_v42 = vld [vmem:[#allocation251_spill] sm:$0xff] }
0x1091   :  { %8712 = vmatpush1.bf16.xpose.msra.mxu0 %v13245_v58  ;;  %v13256_v58 = vld [vmem:[#allocation252_spill] sm:$0xff] }
0x1092   :  { %8714 = vmatprep.subr.bf16.mxu0 %v13246_v27  ;;  %v13257_v27 = vld [vmem:[#allocation253_spill] sm:$0xff] }
0x1099   :  { %8716 = vmatpush1.bf16.xpose.msra.mxu0 %v13247_v33  ;;  %v13258_v33 = vld [vmem:[#allocation254_spill] sm:$0xff] }
0x109a   :  { %8718 = vmatprep.subr.bf16.mxu0 %v13248_v2  ;;  %v5592_v2 = vpop.f32.mrb[44].mxu1 }
0x10a1   :  { %8720 = vmatpush1.bf16.xpose.msra.mxu0 %v13249_v5  ;;  %v5594_v5 = vpop.f32.mrb[45].mxu1 }
0x10a2   :  { %8722 = vmatprep.subr.bf16.mxu0 %v13250_v45 }
0x10a9   :  { %8724 = vmatpush1.bf16.xpose.msra.mxu0 %v13251_v51  ;;  %v5598_v51 = vpop.f32.mrb[46].mxu1 }
0x10aa   :  { %8726 = vmatprep.subr.bf16.mxu0 %v13252_v36  ;;  %v13259_v36 = vld [vmem:[#allocation255_spill] sm:$0xff]  ;;  %v5600_v56 = vpop.f32.mrb[47].mxu1 }
0x10b1   :  { %8728 = vmatpush1.bf16.xpose.msra.mxu0 %v13253_v15 }
0x10b2   :  { %8730 = vmatprep.subr.bf16.mxu0 %v13254_v8  ;;  %v13260_v8 = vld [vmem:[#allocation256_spill] sm:$0xff] }
0x10b9   :  { %8732 = vmatpush1.bf16.xpose.msra.mxu0 %v13255_v42 }
0x10ba   :  { %8734 = vmatprep.subr.bf16.mxu0 %v13256_v58  ;;  %v5604_v58 = vpop.f32.mrb[48].mxu1 }
0x10bb   :  { %v5606_v48 = vpop.f32.mrb[49].mxu1 }
0x10bc   :  { %v5610_v61 = vpop.f32.mrb[50].mxu1 }
0x10c1   :  { %8736 = vmatpush1.bf16.xpose.msra.mxu0 %v13257_v27 }
0x10c2   :  { %8746 = vmatprep.subr.bf16.mxu0 %v13258_v33 }
0x111b   :  { %v5389_v9 = vpop.f32.mrb[20].mxu0 }
0x111c   :  { %v5391_v45 = vpop.f32.mrb[21].mxu0 }
0x111d   :  { %5476 = vmatprep.mubr.f32.mxu0 %v5391_v45  ;;  %v5612_v45 = vpop.f32.mrb[51].mxu1 }
0x111e   :  { %5477 = vmatmul.mubr.f32.vlgmr.msra.gmra.mrb[228].mxu0 %v5389_v9 }
0x111f   :  { %8748 = vmatpush1.bf16.xpose.msra.mxu0 %v13259_v36  ;;  %v5395_v15 = vpop.f32.mrb[22].mxu0 }
0x1120   :  { %8750 = vmatprep.subr.bf16.mxu0 %v13260_v8  ;;  %v5397_v42 = vpop.f32.mrb[23].mxu0  ;;  %v13265_v8 = vld [vmem:[#allocation261_spill] sm:$0xff] }
0x1121   :  { %5482 = vmatprep.mubr.f32.mxu0 %v5397_v42  ;;  %v13264_v42 = vld [vmem:[#allocation260_spill] sm:$0xff] }
0x1122   :  { %5483 = vmatmul.mubr.f32.gmra.mrb[230].mxu0 %v5395_v15  ;;  %v13263_v15 = vld [vmem:[#allocation259_spill] sm:$0xff] }
0x1123   :  { %v5401_v27 = vpop.f32.mrb[24].mxu0 }
0x1124   :  { %v5403_v33 = vpop.f32.mrb[25].mxu0 }
0x1125   :  { %5488 = vmatprep.mubr.f32.mxu0 %v5403_v33  ;;  %v13267_v33 = vld [vmem:[#allocation263_spill] sm:$0xff] }
0x1126   :  { %5489 = vmatmul.mubr.f32.gmra.mrb[232].mxu0 %v5401_v27  ;;  %v13266_v27 = vld [vmem:[#allocation262_spill] sm:$0xff] }
0x1127   :  { %8752 = vmatpush1.bf16.xpose.msra.mxu0 %v13261_v28  ;;  %v5407_v9 = vpop.f32.mrb[26].mxu0  ;;  %v13268_v28 = vld [vmem:[#allocation264_spill] sm:$0xff] }
0x1128   :  { %8754 = vmatprep.subr.bf16.mxu0 %v13262_v16  ;;  %v5409_v36 = vpop.f32.mrb[27].mxu0  ;;  %v13270_v16 = vld [vmem:[#allocation266_spill] sm:$0xff] }
0x1129   :  { %5494 = vmatprep.mubr.f32.mxu0 %v5409_v36  ;;  %v13271_v36 = vld [vmem:[#allocation267_spill] sm:$0xff] }
0x112a   :  { %5495 = vmatmul.mubr.f32.gmra.mrb[234].mxu0 %v5407_v9  ;;  %v13273_v9 = vld [vmem:[#allocation269_spill] sm:$0xff] }
0x112b   :  { %5679 = vmatprep.mubr.f32.mxu0 %v5594_v5  ;;  %v13272_v5 = vld [vmem:[#allocation268_spill] sm:$0xff] }
0x112f   :  { %8756 = vmatpush1.bf16.xpose.msra.mxu0 %v11354_v37 }
0x1130   :  { %8758 = vmatprep.subr.bf16.mxu0 %v13263_v15  ;;  %v13274_v15 = vld [vmem:[#allocation270_spill] sm:$0xff] }
0x1137   :  { %8760 = vmatpush1.bf16.xpose.msra.mxu0 %v13264_v42  ;;  %v13275_v42 = vld [vmem:[#allocation271_spill] sm:$0xff] }
0x1138   :  { %8762 = vmatprep.subr.bf16.mxu0 %v13265_v8  ;;  %v13276_v8 = vld [vmem:[#allocation272_spill] sm:$0xff] }
0x113f   :  { %8764 = vmatpush1.bf16.xpose.msra.mxu0 %v13266_v27  ;;  %v13277_v27 = vld [vmem:[#allocation273_spill] sm:$0xff] }
0x1140   :  { %8766 = vmatprep.subr.bf16.mxu0 %v13267_v33  ;;  %v13278_v33 = vld [vmem:[#allocation274_spill] sm:$0xff] }
0x1147   :  { %8768 = vmatpush1.bf16.xpose.msra.mxu0 %v13268_v28  ;;  %v13279_v28 = vld [vmem:[#allocation275_spill] sm:$0xff] }
0x1148   :  { %8770 = vmatprep.subr.bf16.mxu0 %v13269_v19  ;;  %v13280_v19 = vld [vmem:[#allocation276_spill] sm:$0xff] }
0x114f   :  { %8772 = vmatpush1.bf16.xpose.msra.mxu0 %v13270_v16  ;;  %v13281_v16 = vld [vmem:[#allocation277_spill] sm:$0xff] }
0x1150   :  { %8774 = vmatprep.subr.bf16.mxu0 %v13271_v36  ;;  %v13282_v36 = vld [vmem:[#allocation278_spill] sm:$0xff] }
0x1157   :  { %8776 = vmatpush1.bf16.xpose.msra.mxu0 %v13272_v5 }
0x1158   :  { %8778 = vmatprep.subr.bf16.mxu0 %v13273_v9 }
0x115f   :  { %8780 = vmatpush1.bf16.xpose.msra.mxu0 %v13274_v15  ;;  %v13283_v15 = vld [vmem:[#allocation281_spill] sm:$0xff] }
0x1160   :  { %8782 = vmatprep.subr.bf16.mxu0 %v13275_v42  ;;  %v13284_v42 = vld [vmem:[#allocation282_spill] sm:$0xff] }
0x1167   :  { %8784 = vmatpush1.bf16.xpose.msra.mxu0 %v13276_v8  ;;  %v13285_v8 = vld [vmem:[#allocation283_spill] sm:$0xff] }
0x1168   :  { %8786 = vmatprep.subr.bf16.mxu0 %v13277_v27  ;;  %v13286_v27 = vld [vmem:[#allocation284_spill] sm:$0xff] }
0x116f   :  { %8788 = vmatpush1.bf16.xpose.msra.mxu0 %v13278_v33  ;;  %v13287_v33 = vld [vmem:[#allocation31_spill] sm:$0xff] }
0x1170   :  { %8790 = vmatprep.subr.bf16.mxu0 %v13279_v28  ;;  %v13288_v28 = vld [vmem:[#allocation28_spill] sm:$0xff] }
0x1171   :  { %v13289_v9 = vpack.c.bf16 %v13287_v33, %v13288_v28  ;;  %v5712_v28 = vld [vmem:[#allocation15] sm:$0xff] }
0x1177   :  { %8792 = vmatpush1.bf16.xpose.msra.mxu0 %v13280_v19  ;;  %v13291_v19 = vld [vmem:[#allocation26_spill] sm:$0xff] }
0x1178   :  { %8794 = vmatprep.subr.bf16.mxu0 %v13281_v16  ;;  %v13290_v16 = vld [vmem:[#allocation30_spill] sm:$0xff] }
0x117f   :  { %8796 = vmatpush1.bf16.xpose.msra.mxu0 %v13282_v36  ;;  %v13292_v36 = vpack.c.bf16 %v13290_v16, %v13291_v19 }
0x1180   :  { %8798 = vmatprep.subr.bf16.mxu0 %v11416_v22  ;;  %v13293_v22 = vld [vmem:[#allocation37_spill] sm:$0xff] }
0x1187   :  { %8800 = vmatpush1.bf16.xpose.msra.mxu0 %v11420_v0  ;;  %v13294_v0 = vld [vmem:[#allocation34_spill] sm:$0xff] }
0x1188   :  { %8802 = vmatprep.subr.bf16.mxu0 %v13283_v15  ;;  %v13295_v5 = vpack.c.bf16 %v13293_v22, %v13294_v0  ;;  %v13297_v15 = vld [vmem:[#allocation32_spill] sm:$0xff]  ;;  %v5715_v22 = vld [vmem:[#allocation15 + $0x18] sm:$0xff] }
0x1189   :  { %v5713_v0 = vld [vmem:[#allocation15 + $0x8] sm:$0xff] }
0x118f   :  { %8804 = vmatpush1.bf16.xpose.msra.mxu0 %v13284_v42  ;;  %v13296_v42 = vld [vmem:[#allocation36_spill] sm:$0xff] }
0x1190   :  { %8806 = vmatprep.subr.bf16.mxu0 %v13285_v8  ;;  %v13298_v8 = vpack.c.bf16 %v13296_v42, %v13297_v15 }
0x1197   :  { %8808 = vmatpush1.bf16.xpose.msra.mxu0 %v13286_v27 }
0x1198   :  { %8810 = vmatprep.subr.bf16.mxu0 %v13289_v9  ;;  %v13299_v9 = vld [vmem:[#allocation33_spill] sm:$0xff] }
0x119e   :  { %5680 = vmatmul.mubr.f32.vlgmr.msra.gmra.mrb[228].mxu0 %v5592_v2 }
0x119f   :  { %8812 = vmatpush1.bf16.msra.mxu0 %v13292_v36  ;;  %5685 = vmatprep.mubr.f32.mxu0 %v5600_v56  ;;  %v5889_v36 = vld [vmem:[#allocation16] sm:$0x7] }
0x11a0   :  { %8814 = vmatprep.subr.bf16.mxu0 %v13295_v5  ;;  %v5965_v5 = vld [vmem:[#allocation16 + $0x4] sm:$0x7] }
0x11a2   :  { %5686 = vmatmul.mubr.f32.gmra.mrb[230].mxu0 %v5598_v51 }
0x11a3   :  { %8816 = vmatpush1.bf16.msra.mxu0 %v13298_v8  ;;  %5691 = vmatprep.mubr.f32.mxu0 %v5606_v48 }
0x11a4   :  { %8834 = vmatprep.subr.bf16.mxu0 %v10463_v43  ;;  %v5714_v43 = vld [vmem:[#allocation15 + $0x10] sm:$0xff] }
0x11a6   :  { %5692 = vmatmul.mubr.f32.gmra.mrb[232].mxu0 %v5604_v58 }
0x11a7   :  { %5697 = vmatprep.mubr.f32.mxu0 %v5612_v45 }
0x11aa   :  { %5698 = vmatmul.mubr.f32.gmra.mrb[234].mxu0 %v5610_v61 }
0x11ab   :  { %5816 = vmatprep.mubr.f32.mxu0 %v12821_v23 }
0x11ae   :  { %7340 = vmatmul.mubr.msk.f32.vlgmr.msra.gmra.mrb[228].mxu0 %vm1471_vm2, %v5712_v28  ;;  %v13300_v28 = vld [vmem:[#allocation35_spill] sm:$0xff] }
0x11af   :  { %5822 = vmatprep.mubr.f32.mxu0 %v12821_v23  ;;  %8836 = vmatpush1.bf16.xpose.msra.mxu0 %v10483_v18 }
0x11b0   :  { %8838 = vmatprep.subr.bf16.mxu0 %v10486_v21 }
0x11b2   :  { %7341 = vmatmul.mubr.msk.f32.gmra.mrb[230].mxu0 %vm1471_vm2, %v5713_v0  ;;  %v13301_v0 = vld [vmem:[#allocation38_spill] sm:$0xff] }
0x11b3   :  { %5828 = vmatprep.mubr.f32.mxu0 %v12821_v23 }
0x11b6   :  { %7342 = vmatmul.mubr.msk.f32.gmra.mrb[232].mxu0 %vm1471_vm2, %v5714_v43  ;;  %v13302_v43 = vld [vmem:[#allocation39_spill] sm:$0xff] }
0x11b7   :  { %5834 = vmatprep.mubr.f32.mxu0 %v12821_v23  ;;  %8840 = vmatpush1.bf16.xpose.msra.mxu0 %v10500_v41 }
0x11b8   :  { %8842 = vmatprep.subr.bf16.mxu0 %v10502_v44 }
0x11ba   :  { %7343 = vmatmul.mubr.msk.f32.gmra.mrb[234].mxu0 %vm1471_vm2, %v5715_v22  ;;  %v13304_v22 = vld [vmem:[#allocation41_spill] sm:$0xff] }
0x11bf   :  { %8844 = vmatpush1.bf16.xpose.msra.mxu0 %v10510_v63 }
0x11c0   :  { %8846 = vmatprep.subr.bf16.mxu0 %v10514_v7 }
0x11c7   :  { %8848 = vmatpush1.bf16.xpose.msra.mxu0 %v10522_v31 }
0x11c8   :  { %8850 = vmatprep.subr.bf16.mxu0 %v10526_v40 }
0x11cf   :  { %8852 = vmatpush1.bf16.xpose.msra.mxu0 %v10534_v3 }
0x11d0   :  { %8854 = vmatprep.subr.bf16.mxu0 %v10538_v17 }
0x11d7   :  { %8856 = vmatpush1.bf16.xpose.msra.mxu0 %v10546_v54 }
0x11d8   :  { %8858 = vmatprep.subr.bf16.mxu0 %v10550_v12 }
0x11df   :  { %8860 = vmatpush1.bf16.xpose.msra.mxu0 %v10558_v25 }
0x11e0   :  { %8862 = vmatprep.subr.bf16.mxu0 %v10562_v59 }
0x11e7   :  { %8864 = vmatpush1.bf16.xpose.msra.mxu0 %v10570_v57 }
0x11e8   :  { %8866 = vmatprep.subr.bf16.mxu0 %v10574_v53 }
0x11ef   :  { %8868 = vmatpush1.bf16.xpose.msra.mxu0 %v10582_v20  ;;  %v5728_v20 = vpop.permute.xlu1 %5727 }
0x11f0   :  { %8870 = vmatprep.subr.bf16.mxu0 %v10586_v35 }
0x11f3   :  { %v5853_v21 = vpop.permute.xlu1 %5852 }
0x11f7   :  { %8872 = vmatpush1.bf16.xpose.msra.mxu0 %v10594_v47 }
0x11f8   :  { %8874 = vmatprep.subr.bf16.mxu0 %v10596_v49 }
0x11ff   :  { %8876 = vmatpush1.bf16.xpose.msra.mxu0 %v10600_v11  ;;  %v5723_v11 = vpop.permute.xlu0 %5722 }
0x1200   :  { %8878 = vmatprep.subr.bf16.mxu0 %v10602_v1 }
0x1203   :  { %v5848_v25 = vpop.permute.xlu0 %5847 }
0x1207   :  { %8880 = vmatpush1.bf16.xpose.msra.mxu0 %v10606_v26  ;;  %v5733_v40 = vpop.permute.xlu0 %5732 }
0x1208   :  { %8882 = vmatprep.subr.bf16.mxu0 %v10608_v29 }
0x120b   :  { %v5858_v35 = vpop.permute.xlu0 %5857 }
0x120f   :  { %8884 = vmatpush1.bf16.xpose.msra.mxu0 %v10612_v34 }
0x1210   :  { %8886 = vmatprep.subr.bf16.mxu0 %v10614_v13 }
0x1217   :  { %8888 = vmatpush1.bf16.xpose.msra.mxu0 %v10618_v50 }
0x1218   :  { %8890 = vmatprep.subr.bf16.mxu0 %v10620_v24  ;;  %v5738_v24 = vpop.permute.xlu1 %5737 }
0x121c   :  { %v5863_v48 = vpop.permute.xlu1 %5862 }
0x121f   :  { %8892 = vmatpush1.bf16.xpose.msra.mxu0 %v10624_v4 }
0x1220   :  { %8894 = vmatprep.subr.bf16.mxu0 %v10626_v46 }
0x1227   :  { %8896 = vmatpush1.bf16.xpose.msra.mxu0 %v10630_v6 }
0x1281   :  { %v5818_v57 = vpop.f32.mrb[228].mxu0 }
0x1282   :  { %v5819_v18 = vadd.f32 %v5818_v57, %v5723_v11  ;;  %v5820_v29 = vpop.f32.mrb[229].mxu0  ;;  %v13313_v57 = vld [vmem:[#allocation50_spill] sm:$0xff] }
0x1283   :  { %v5821_v41 = vadd.f32 %v5820_v29, %v5723_v11  ;;  %v13310_v11 = vld [vmem:[#allocation47_spill] sm:$0xff]  ;;  %v13315_v29 = vld [vmem:[#allocation56_spill] sm:$0xff] }
0x1284   :  { %v9486_v63 = vadd.f32 %v5848_v25, %v5819_v18  ;;  %v13314_v18 = vld [vmem:[#allocation55_spill] sm:$0xff] }
0x1285   :  { %v5824_v44 = vpop.f32.mrb[230].mxu0  ;;  %v9488_v3 = vadd.f32 %v5848_v25, %v5821_v41  ;;  %v13312_v25 = vld [vmem:[#allocation49_spill] sm:$0xff]  ;;  %v13317_v41 = vld [vmem:[#allocation58_spill] sm:$0xff] }
0x1286   :  { %v5825_v7 = vadd.f32 %v5824_v44, %v5728_v20  ;;  %v5826_v31 = vpop.f32.mrb[231].mxu0  ;;  %v5881_v50 = vmax.f32 %v9486_v63, 0.0  ;;  %v13318_v44 = vld [vmem:[#allocation59_spill] sm:$0xff]  ;;  %v13319_v63 = vld [vmem:[#allocation60_spill] sm:$0xff] }
0x1287   :  { %v5827_v17 = vadd.f32 %v5826_v31, %v5728_v20  ;;  %v5882_v59 = vmax.f32 %v9488_v3, 0.0  ;;  %v13311_v20 = vld [vmem:[#allocation48_spill] sm:$0xff] }
0x1288   :  { %v9490_v4 = vadd.f32 %v5853_v21, %v5825_v7  ;;  %v13320_v7 = vld [vmem:[#allocation61_spill] sm:$0xff]  ;;  %v13323_v31 = vld [vmem:[#allocation64_spill] sm:$0xff] }
0x1289   :  { %v9492_v46 = vadd.f32 %v5853_v21, %v5827_v17  ;;  %v5830_v54 = vpop.f32.mrb[232].mxu0  ;;  %v13316_v21 = vld [vmem:[#allocation57_spill] sm:$0xff] }
0x128a   :  { %v5883_v12 = vmax.f32 %v9490_v4, 0.0  ;;  %v5831_v13 = vadd.f32 %v5830_v54, %v5733_v40  ;;  %v5832_v34 = vpop.f32.mrb[233].mxu0  ;;  %v13324_v17 = vld [vmem:[#allocation65_spill] sm:$0xff]  ;;  %v13325_v4 = vld [vmem:[#allocation66_spill] sm:$0xff]  ;;  %v13327_v54 = vld [vmem:[#allocation68_spill] sm:$0xff] }
0x128b   :  { %v5884_v26 = vmax.f32 %v9492_v46, 0.0  ;;  %v5833_v53 = vadd.f32 %v5832_v34, %v5733_v40  ;;  %v13326_v46 = vld [vmem:[#allocation67_spill] sm:$0xff]  ;;  %v6481_v34 = vld [vmem:[#allocation16 + $0x10] sm:$0x7] }
0x128c   :  { %v11910_v1 = vpack.c.bf16 %v5883_v12, %v5881_v50  ;;  %v9494_v6 = vadd.f32 %v5858_v35, %v5831_v13  ;;  %v6332_v50 = vld [vmem:[#allocation16 + $0xc] sm:$0x7]  ;;  %v13329_v13 = vld [vmem:[#allocation70_spill] sm:$0xff] }
0x128d   :  { %v11912_v47 = vpack.c.bf16 %v5884_v26, %v5882_v59  ;;  %v5836_v49 = vpop.f32.mrb[234].mxu0  ;;  %v9496_v56 = vadd.f32 %v5858_v35, %v5833_v53  ;;  %v13328_v12 = vld [vmem:[#allocation69_spill] sm:$0xff]  ;;  %v13330_v59 = vld [vmem:[#allocation71_spill] sm:$0xff]  ;;  %v13331_v26 = vld [vmem:[#allocation72_spill] sm:$0xff] }
0x128e   :  { %v5837_v19 = vadd.f32 %v5836_v49, %v5738_v24  ;;  %v5838_v16 = vpop.f32.mrb[235].mxu0  ;;  %v5885_v8 = vmax.f32 %v9494_v6, 0.0  ;;  %v6630_v53 = vld [vmem:[#allocation16 + $0x14] sm:$0x7]  ;;  %v13332_v35 = vld [vmem:[#allocation73_spill] sm:$0xff] }
0x128f   :  { %v5839_v61 = vadd.f32 %v5838_v16, %v5738_v24  ;;  %8818 = vmatprep.subr.bf16.mxu1 %v11912_v47  ;;  %8962 = vmatprep.subr.bf16.mxu0 %v11912_v47  ;;  %v5886_v45 = vmax.f32 %v9496_v56, 0.0  ;;  %v6183_v24 = vld [vmem:[#allocation16 + $0x8] sm:$0x7]  ;;  %v13333_v49 = vld [vmem:[#allocation74_spill] sm:$0xff]  ;;  %v13336_v56 = vld [vmem:[#allocation77_spill] sm:$0xff] }
0x1290   :  { %v9498_v2 = vadd.f32 %v5863_v48, %v5837_v19  ;;  %8820 = vmatpush1.bf16.msra.mxu1 %v11910_v1  ;;  %v6779_v6 = vld [vmem:[#allocation16 + $0x18] sm:$0x7]  ;;  %v13334_v19 = vld [vmem:[#allocation75_spill] sm:$0xff]  ;;  %v13335_v16 = vld [vmem:[#allocation76_spill] sm:$0xff] }
0x1291   :  { %v9500_v51 = vadd.f32 %v5863_v48, %v5839_v61  ;;  %v6928_v48 = vld [vmem:[#allocation16 + $0x1c] sm:$0x7]  ;;  %v13337_v61 = vld [vmem:[#allocation78_spill] sm:$0xff] }
0x1292   :  { %v5887_v58 = vmax.f32 %v9498_v2, 0.0  ;;  %v13338_v2 = vld [vmem:[#allocation79_spill] sm:$0xff] }
0x1293   :  { %v5888_v15 = vmax.f32 %v9500_v51, 0.0  ;;  %v13339_v51 = vld [vmem:[#allocation80_spill] sm:$0xff] }
0x1294   :  { %v11917_v42 = vpack.c.bf16 %v5887_v58, %v5885_v8  ;;  %v13340_v8 = vld [vmem:[#allocation81_spill] sm:$0xff]  ;;  %v13342_v58 = vld [vmem:[#allocation83_spill] sm:$0xff] }
0x1295   :  { %v11919_v33 = vpack.c.bf16 %v5888_v15, %v5886_v45  ;;  %v13345_v45 = vld [vmem:[#allocation86_spill] sm:$0xff]  ;;  %v13346_v15 = vld [vmem:[#allocation87_spill] sm:$0xff] }
0x1297   :  { %8822 = vmatprep.subr.bf16.mxu1 %v11919_v33 }
0x1298   :  { %8824 = vmatpush1.bf16.msra.mxu1 %v11917_v42 }
0x1299   :  { %8826 = vmatprep.subr.bf16.mxu1 %v11912_v47 }
0x129b   :  { %7344 = vmatmul.mubr.msk.f32.vlgmr.msra.gmra.mrb[52].mxu1 %vm1471_vm2, %v5889_v36  ;;  %v13349_v36 = vld [vmem:[#allocation90_spill] sm:$0xff] }
0x129c   :  { %8828 = vmatpush1.bf16.msra.mxu1 %v11910_v1  ;;  %6033 = vmatprep.mubr.f32.mxu1 %v12821_v23 }
0x129d   :  { %8830 = vmatprep.subr.bf16.mxu1 %v11919_v33 }
0x12a0   :  { %8832 = vmatpush1.bf16.msra.mxu1 %v11917_v42 }
0x12a1   :  { %8898 = vmatprep.subr.bf16.mxu1 %v10378_v52  ;;  %v13303_v52 = vld [vmem:[#allocation40_spill] sm:$0xff] }
0x12a3   :  { %7345 = vmatmul.mubr.msk.f32.vlgmr.msra.gmra.mrb[54].mxu1 %vm1471_vm2, %v5965_v5  ;;  %v13350_v5 = vld [vmem:[#allocation91_spill] sm:$0xff] }
0x12a9   :  { %8900 = vmatpush1.bf16.xpose.msra.mxu1 %v10380_v55  ;;  %v13305_v55 = vld [vmem:[#allocation42_spill] sm:$0xff] }
0x12aa   :  { %8902 = vmatprep.subr.bf16.mxu1 %v13036_v14  ;;  %v13306_v14 = vld [vmem:[#allocation43_spill] sm:$0xff] }
0x12b1   :  { %8904 = vmatpush1.bf16.xpose.msra.mxu1 %v13037_v10  ;;  %v13307_v10 = vld [vmem:[#allocation44_spill] sm:$0xff] }
0x12b2   :  { %8906 = vmatprep.subr.bf16.mxu1 %v13038_v30  ;;  %v13308_v30 = vld [vmem:[#allocation45_spill] sm:$0xff] }
0x12b9   :  { %8908 = vmatpush1.bf16.xpose.msra.mxu1 %v13039_v62  ;;  %v13309_v62 = vld [vmem:[#allocation46_spill] sm:$0xff] }
0x12ba   :  { %8910 = vmatprep.subr.bf16.mxu1 %v13299_v9  ;;  %v13351_v9 = vld [vmem:[#allocation92_spill] sm:$0xff] }
0x12c1   :  { %8912 = vmatpush1.bf16.xpose.msra.mxu1 %v13300_v28  ;;  %v13352_v28 = vld [vmem:[#allocation93_spill] sm:$0xff] }
0x12c2   :  { %8914 = vmatprep.subr.bf16.mxu1 %v13301_v0  ;;  %v13353_v0 = vld [vmem:[#allocation94_spill] sm:$0xff] }
0x12c9   :  { %8916 = vmatpush1.bf16.xpose.msra.mxu1 %v13302_v43 }
0x12ca   :  { %8918 = vmatprep.subr.bf16.mxu1 %v13303_v52 }
0x12d1   :  { %8920 = vmatpush1.bf16.xpose.msra.mxu1 %v13304_v22 }
0x12d2   :  { %8922 = vmatprep.subr.bf16.mxu1 %v13305_v55 }
0x12d9   :  { %8924 = vmatpush1.bf16.xpose.msra.mxu1 %v13306_v14  ;;  %v13354_v14 = vld [vmem:[#allocation95_spill] sm:$0xff] }
0x12da   :  { %8926 = vmatprep.subr.bf16.mxu1 %v13307_v10  ;;  %v13355_v10 = vld [vmem:[#allocation96_spill] sm:$0xff] }
0x12e1   :  { %8928 = vmatpush1.bf16.xpose.msra.mxu1 %v13308_v30 }
0x12e2   :  { %8930 = vmatprep.subr.bf16.mxu1 %v13309_v62 }
0x12e9   :  { %8932 = vmatpush1.bf16.xpose.msra.mxu1 %v13310_v11  ;;  %v13356_v11 = vld [vmem:[#allocation97_spill] sm:$0xff] }
0x12ea   :  { %8934 = vmatprep.subr.bf16.mxu1 %v13311_v20  ;;  %v13357_v20 = vld [vmem:[#allocation98_spill] sm:$0xff] }
0x12f1   :  { %8936 = vmatpush1.bf16.xpose.msra.mxu1 %v13312_v25  ;;  %v13358_v25 = vld [vmem:[#allocation99_spill] sm:$0xff] }
0x12f2   :  { %8938 = vmatprep.subr.bf16.mxu1 %v13313_v57  ;;  %v13359_v57 = vld [vmem:[#allocation100_spill] sm:$0xff] }
0x12f9   :  { %8940 = vmatpush1.bf16.xpose.msra.mxu1 %v13055_v39  ;;  %v13321_v39 = vld [vmem:[#allocation62_spill] sm:$0xff] }
0x12fa   :  { %8942 = vmatprep.subr.bf16.mxu1 %v13056_v60 }
0x1301   :  { %8944 = vmatpush1.bf16.xpose.msra.mxu1 %v13057_v38 }
0x1302   :  { %8946 = vmatprep.subr.bf16.mxu1 %v13058_v32  ;;  %v13322_v32 = vld [vmem:[#allocation63_spill] sm:$0xff] }
0x1309   :  { %8948 = vmatpush1.bf16.xpose.msra.mxu1 %v13314_v18  ;;  %v13360_v18 = vld [vmem:[#allocation101_spill] sm:$0xff] }
0x130a   :  { %8950 = vmatprep.subr.bf16.mxu1 %v13315_v29  ;;  %v13361_v29 = vld [vmem:[#allocation102_spill] sm:$0xff] }
0x1311   :  { %8952 = vmatpush1.bf16.xpose.msra.mxu1 %v13316_v21  ;;  %v13362_v21 = vld [vmem:[#allocation103_spill] sm:$0xff] }
0x1312   :  { %8954 = vmatprep.subr.bf16.mxu1 %v13317_v41  ;;  %v13363_v41 = vld [vmem:[#allocation104_spill] sm:$0xff] }
0x1319   :  { %8956 = vmatpush1.bf16.xpose.msra.mxu1 %v13318_v44  ;;  %v13364_v44 = vld [vmem:[#allocation105_spill] sm:$0xff] }
0x131a   :  { %8958 = vmatprep.subr.bf16.mxu1 %v13319_v63  ;;  %v13365_v63 = vld [vmem:[#allocation106_spill] sm:$0xff] }
0x1321   :  { %8960 = vmatpush1.bf16.xpose.msra.mxu1 %v13320_v7  ;;  %v13366_v7 = vld [vmem:[#allocation107_spill] sm:$0xff] }
0x1322   :  { %8970 = vmatprep.subr.bf16.mxu1 %v13321_v39  ;;  %v13367_v39 = vld [vmem:[#allocation108_spill] sm:$0xff] }
0x136e   :  { %v5959_v60 = vpop.f32.mrb[52].mxu1 }
0x136f   :  { %v5961_v38 = vpop.f32.mrb[53].mxu1 }
0x1370   :  { %6175 = vmatprep.mubr.f32.mxu1 %v5961_v38  ;;  %v13369_v38 = vld [vmem:[#allocation110_spill] sm:$0xff] }
0x1371   :  { %6176 = vmatmul.mubr.f32.vlgmr.msra.gmra.mrb[56].mxu1 %v5959_v60  ;;  %v13368_v60 = vld [vmem:[#allocation109_spill] sm:$0xff] }
0x1372   :  { %8972 = vmatpush1.bf16.xpose.msra.mxu1 %v13322_v32  ;;  %v13370_v32 = vld [vmem:[#allocation111_spill] sm:$0xff] }
0x1373   :  { %8974 = vmatprep.subr.bf16.mxu1 %v13323_v31  ;;  %v13371_v31 = vld [vmem:[#allocation112_spill] sm:$0xff] }
0x1376   :  { %v6035_v40 = vpop.f32.mrb[54].mxu1 }
0x1377   :  { %v6037_v3 = vpop.f32.mrb[55].mxu1 }
0x1378   :  { %6104 = vmatprep.mubr.f32.mxu0 %v6037_v3  ;;  %v13373_v3 = vld [vmem:[#allocation114_spill] sm:$0xff] }
0x1379   :  { %6105 = vmatmul.mubr.f32.vlgmr.msra.gmra.mrb[28].mxu0 %v6035_v40  ;;  %v13372_v40 = vld [vmem:[#allocation113_spill] sm:$0xff] }
0x137a   :  { %8964 = vmatpush1.bf16.msra.mxu0 %v11910_v1  ;;  %6251 = vmatprep.mubr.f32.mxu0 %v12821_v23 }
0x137b   :  { %8966 = vmatprep.subr.bf16.mxu0 %v11919_v33  ;;  %8976 = vmatpush1.bf16.xpose.msra.mxu1 %v13324_v17  ;;  %v13374_v17 = vld [vmem:[#allocation115_spill] sm:$0xff] }
0x137c   :  { %8978 = vmatprep.subr.bf16.mxu1 %v13325_v4  ;;  %v13375_v4 = vld [vmem:[#allocation116_spill] sm:$0xff] }
0x137e   :  { %8968 = vmatpush1.bf16.msra.mxu0 %v11917_v42 }
0x137f   :  { %9034 = vmatprep.subr.bf16.mxu0 %v11912_v47 }
0x1381   :  { %7346 = vmatmul.mubr.msk.f32.vlgmr.msra.gmra.mrb[30].mxu0 %vm1471_vm2, %v6183_v24  ;;  %v13376_v24 = vld [vmem:[#allocation117_spill] sm:$0xff] }
0x1382   :  { %9036 = vmatpush1.bf16.msra.mxu0 %v11910_v1  ;;  %6400 = vmatprep.mubr.f32.mxu0 %v12821_v23 }
0x1383   :  { %9038 = vmatprep.subr.bf16.mxu0 %v11919_v33  ;;  %8980 = vmatpush1.bf16.xpose.msra.mxu1 %v13326_v46  ;;  %v13377_v46 = vld [vmem:[#allocation118_spill] sm:$0xff] }
0x1384   :  { %8982 = vmatprep.subr.bf16.mxu1 %v13327_v54  ;;  %v13378_v54 = vld [vmem:[#allocation119_spill] sm:$0xff] }
0x1386   :  { %9040 = vmatpush1.bf16.msra.mxu0 %v11917_v42 }
0x1387   :  { %9106 = vmatprep.subr.bf16.mxu0 %v11912_v47 }
0x1389   :  { %7347 = vmatmul.mubr.msk.f32.vlgmr.msra.gmra.mrb[32].mxu0 %vm1471_vm2, %v6332_v50  ;;  %v13379_v50 = vld [vmem:[#allocation120_spill] sm:$0xff] }
0x138a   :  { %9108 = vmatpush1.bf16.msra.mxu0 %v11910_v1  ;;  %6549 = vmatprep.mubr.f32.mxu0 %v12821_v23 }
0x138b   :  { %9110 = vmatprep.subr.bf16.mxu0 %v11919_v33  ;;  %8984 = vmatpush1.bf16.xpose.msra.mxu1 %v13328_v12  ;;  %v13380_v12 = vld [vmem:[#allocation121_spill] sm:$0xff] }
0x138c   :  { %8986 = vmatprep.subr.bf16.mxu1 %v13329_v13  ;;  %v13381_v13 = vld [vmem:[#allocation122_spill] sm:$0xff] }
0x138e   :  { %9112 = vmatpush1.bf16.msra.mxu0 %v11917_v42 }
0x138f   :  { %9178 = vmatprep.subr.bf16.mxu0 %v11912_v47 }
0x1391   :  { %7348 = vmatmul.mubr.msk.f32.vlgmr.msra.gmra.mrb[34].mxu0 %vm1471_vm2, %v6481_v34  ;;  %v13382_v34 = vld [vmem:[#allocation123_spill] sm:$0xff] }
0x1392   :  { %9180 = vmatpush1.bf16.msra.mxu0 %v11910_v1  ;;  %6698 = vmatprep.mubr.f32.mxu0 %v12821_v23 }
0x1393   :  { %9182 = vmatprep.subr.bf16.mxu0 %v11919_v33  ;;  %8988 = vmatpush1.bf16.xpose.msra.mxu1 %v13330_v59  ;;  %v13383_v59 = vld [vmem:[#allocation124_spill] sm:$0xff] }
0x1394   :  { %8990 = vmatprep.subr.bf16.mxu1 %v13331_v26  ;;  %v13384_v26 = vld [vmem:[#allocation125_spill] sm:$0xff] }
0x1396   :  { %9184 = vmatpush1.bf16.msra.mxu0 %v11917_v42 }
0x1397   :  { %9250 = vmatprep.subr.bf16.mxu0 %v11912_v47 }
0x1399   :  { %7349 = vmatmul.mubr.msk.f32.vlgmr.msra.gmra.mrb[36].mxu0 %vm1471_vm2, %v6630_v53 }
0x139a   :  { %9252 = vmatpush1.bf16.msra.mxu0 %v11910_v1  ;;  %6847 = vmatprep.mubr.f32.mxu0 %v12821_v23 }
0x139b   :  { %9254 = vmatprep.subr.bf16.mxu0 %v11919_v33  ;;  %8992 = vmatpush1.bf16.xpose.msra.mxu1 %v13332_v35  ;;  %v13385_v35 = vld [vmem:[#allocation126_spill] sm:$0xff] }
0x139c   :  { %8994 = vmatprep.subr.bf16.mxu1 %v13333_v49 }
0x139e   :  { %9256 = vmatpush1.bf16.msra.mxu0 %v11917_v42 }
0x139f   :  { %9322 = vmatprep.subr.bf16.mxu0 %v11912_v47 }
0x13a1   :  { %7350 = vmatmul.mubr.msk.f32.vlgmr.msra.gmra.mrb[38].mxu0 %vm1471_vm2, %v6779_v6  ;;  %v13386_v6 = vld [vmem:[#allocation127_spill] sm:$0xff] }
0x13a2   :  { %9324 = vmatpush1.bf16.msra.mxu0 %v11910_v1  ;;  %6996 = vmatprep.mubr.f32.mxu0 %v12821_v23 }
0x13a3   :  { %9326 = vmatprep.subr.bf16.mxu0 %v11919_v33  ;;  %8996 = vmatpush1.bf16.xpose.msra.mxu1 %v13334_v19  ;;  %v13387_v19 = vld [vmem:[#allocation128_spill] sm:$0xff] }
0x13a4   :  { %8998 = vmatprep.subr.bf16.mxu1 %v13335_v16  ;;  %v13388_v16 = vld [vmem:[#allocation129_spill] sm:$0xff] }
0x13a6   :  { %9328 = vmatpush1.bf16.msra.mxu0 %v11917_v42 }
0x13a7   :  { %9394 = vmatprep.subr.bf16.mxu0 %v11912_v47  ;;  %v13341_v47 = vld [vmem:[#allocation82_spill] sm:$0xff] }
0x13a9   :  { %7351 = vmatmul.mubr.msk.f32.vlgmr.msra.gmra.mrb[40].mxu0 %vm1471_vm2, %v6928_v48  ;;  %v13389_v48 = vld [vmem:[#allocation130_spill] sm:$0xff] }
0x13aa   :  { %9396 = vmatpush1.bf16.msra.mxu0 %v11910_v1  ;;  %7145 = vmatprep.mubr.f32.mxu0 %v12821_v23  ;;  %v13343_v1 = vld [vmem:[#allocation84_spill] sm:$0xff]  ;;  %v13344_v23 = vld [vmem:[#allocation85_spill] sm:$0xff] }
0x13ab   :  { %9398 = vmatprep.subr.bf16.mxu0 %v11919_v33  ;;  %9000 = vmatpush1.bf16.xpose.msra.mxu1 %v13336_v56  ;;  %v13347_v33 = vld [vmem:[#allocation88_spill] sm:$0xff]  ;;  %v13390_v56 = vld [vmem:[#allocation131_spill] sm:$0xff] }
0x13ac   :  { %9002 = vmatprep.subr.bf16.mxu1 %v13337_v61  ;;  %v13391_v61 = vld [vmem:[#allocation132_spill] sm:$0xff] }
0x13ae   :  { %9400 = vmatpush1.bf16.msra.mxu0 %v11917_v42  ;;  %v13348_v42 = vld [vmem:[#allocation89_spill] sm:$0xff] }
0x13b3   :  { %9004 = vmatpush1.bf16.xpose.msra.mxu1 %v13338_v2  ;;  %v13392_v2 = vld [vmem:[#allocation133_spill] sm:$0xff] }
0x13b4   :  { %9006 = vmatprep.subr.bf16.mxu1 %v13339_v51  ;;  %v13393_v51 = vld [vmem:[#allocation134_spill] sm:$0xff] }
0x13bb   :  { %9008 = vmatpush1.bf16.xpose.msra.mxu1 %v13340_v8  ;;  %v13394_v8 = vld [vmem:[#allocation135_spill] sm:$0xff] }
0x13bc   :  { %9010 = vmatprep.subr.bf16.mxu1 %v13341_v47  ;;  %v13395_v47 = vld [vmem:[#allocation136_spill] sm:$0xff] }
0x13c3   :  { %9012 = vmatpush1.bf16.xpose.msra.mxu1 %v13342_v58  ;;  %v13396_v58 = vld [vmem:[#allocation137_spill] sm:$0xff] }
0x13c4   :  { %9014 = vmatprep.subr.bf16.mxu1 %v13343_v1  ;;  %v13397_v1 = vld [vmem:[#allocation138_spill] sm:$0xff] }
0x13cb   :  { %9016 = vmatpush1.bf16.xpose.msra.mxu1 %v13344_v23  ;;  %v13398_v23 = vld [vmem:[#allocation139_spill] sm:$0xff] }
0x13cc   :  { %9018 = vmatprep.subr.bf16.mxu1 %v13345_v45  ;;  %v13399_v45 = vld [vmem:[#allocation140_spill] sm:$0xff] }
0x13d3   :  { %9020 = vmatpush1.bf16.xpose.msra.mxu1 %v13346_v15  ;;  %v13400_v15 = vld [vmem:[#allocation141_spill] sm:$0xff] }
0x13d4   :  { %9022 = vmatprep.subr.bf16.mxu1 %v13347_v33  ;;  %v13401_v33 = vld [vmem:[#allocation142_spill] sm:$0xff] }
0x13db   :  { %9024 = vmatpush1.bf16.xpose.msra.mxu1 %v13348_v42  ;;  %v13402_v42 = vld [vmem:[#allocation143_spill] sm:$0xff] }
0x13dc   :  { %9026 = vmatprep.subr.bf16.mxu1 %v13349_v36  ;;  %v13403_v36 = vld [vmem:[#allocation144_spill] sm:$0xff] }
0x13e3   :  { %9028 = vmatpush1.bf16.xpose.msra.mxu1 %v13350_v5  ;;  %v13404_v5 = vld [vmem:[#allocation145_spill] sm:$0xff] }
0x13e4   :  { %9030 = vmatprep.subr.bf16.mxu1 %v13351_v9  ;;  %v13405_v9 = vld [vmem:[#allocation146_spill] sm:$0xff] }
0x13eb   :  { %9032 = vmatpush1.bf16.xpose.msra.mxu1 %v13352_v28  ;;  %v13406_v28 = vld [vmem:[#allocation147_spill] sm:$0xff] }
0x13ec   :  { %9042 = vmatprep.subr.bf16.mxu1 %v13353_v0  ;;  %v13407_v0 = vld [vmem:[#allocation148_spill] sm:$0xff] }
0x144c   :  { %v12035_v43 = vpop.f32.mrb[28].mxu0 }
0x144d   :  { %v12037_v52 = vpop.f32.mrb[29].mxu0 }
0x1454   :  { %v6253_v22 = vpop.f32.mrb[30].mxu0 }
0x1455   :  { %v6255_v55 = vpop.f32.mrb[31].mxu0 }
0x1456   :  { %6322 = vmatprep.mubr.f32.mxu1 %v6255_v55  ;;  %v13409_v55 = vld [vmem:[#allocation150_spill] sm:$0xff] }
0x1457   :  { %6323 = vmatmul.mubr.f32.vlgmr.msra.gmra.mrb[56].mxu1 %v6253_v22  ;;  %v13408_v22 = vld [vmem:[#allocation149_spill] sm:$0xff] }
0x1458   :  { %9044 = vmatpush1.bf16.xpose.msra.mxu1 %v13354_v14  ;;  %v13410_v14 = vld [vmem:[#allocation151_spill] sm:$0xff] }
0x1459   :  { %9046 = vmatprep.subr.bf16.mxu1 %v13355_v10  ;;  %v13411_v10 = vld [vmem:[#allocation152_spill] sm:$0xff] }
0x145c   :  { %v6402_v30 = vpop.f32.mrb[32].mxu0 }
0x145d   :  { %v6404_v62 = vpop.f32.mrb[33].mxu0 }
0x145e   :  { %6471 = vmatprep.mubr.f32.mxu1 %v6404_v62  ;;  %v13413_v62 = vld [vmem:[#allocation154_spill] sm:$0xff] }
0x1460   :  { %9048 = vmatpush1.bf16.xpose.msra.mxu1 %v13356_v11  ;;  %v13414_v11 = vld [vmem:[#allocation155_spill] sm:$0xff] }
0x1461   :  { %9050 = vmatprep.subr.bf16.mxu1 %v13357_v20  ;;  %v13415_v20 = vld [vmem:[#allocation156_spill] sm:$0xff] }
0x1464   :  { %v6551_v53 = vpop.f32.mrb[34].mxu0 }
0x1465   :  { %v6553_v49 = vpop.f32.mrb[35].mxu0 }
0x1468   :  { %9052 = vmatpush1.bf16.xpose.msra.mxu1 %v13358_v25  ;;  %v13416_v25 = vld [vmem:[#allocation157_spill] sm:$0xff] }
0x1469   :  { %9054 = vmatprep.subr.bf16.mxu1 %v13359_v57 }
0x146c   :  { %v6700_v57 = vpop.f32.mrb[36].mxu0 }
0x1470   :  { %9056 = vmatpush1.bf16.xpose.msra.mxu1 %v13360_v18  ;;  %v13417_v18 = vld [vmem:[#allocation158_spill] sm:$0xff] }
0x1471   :  { %9058 = vmatprep.subr.bf16.mxu1 %v13361_v29  ;;  %v6702_v29 = vpop.f32.mrb[37].mxu0 }
0x1478   :  { %9060 = vmatpush1.bf16.xpose.msra.mxu1 %v13362_v21  ;;  %v13418_v21 = vld [vmem:[#allocation159_spill] sm:$0xff] }
0x1479   :  { %9062 = vmatprep.subr.bf16.mxu1 %v13363_v41  ;;  %v13419_v41 = vld [vmem:[#allocation160_spill] sm:$0xff] }
0x1480   :  { %9064 = vmatpush1.bf16.xpose.msra.mxu1 %v13364_v44  ;;  %v13420_v44 = vld [vmem:[#allocation161_spill] sm:$0xff] }
0x1481   :  { %9066 = vmatprep.subr.bf16.mxu1 %v13365_v63  ;;  %v13421_v63 = vld [vmem:[#allocation162_spill] sm:$0xff] }
0x1488   :  { %9068 = vmatpush1.bf16.xpose.msra.mxu1 %v13366_v7  ;;  %v13422_v7 = vld [vmem:[#allocation163_spill] sm:$0xff] }
0x1489   :  { %9070 = vmatprep.subr.bf16.mxu1 %v13367_v39  ;;  %v13423_v39 = vld [vmem:[#allocation164_spill] sm:$0xff] }
0x1490   :  { %9072 = vmatpush1.bf16.xpose.msra.mxu1 %v13368_v60  ;;  %v13424_v60 = vld [vmem:[#allocation165_spill] sm:$0xff] }
0x1491   :  { %9074 = vmatprep.subr.bf16.mxu1 %v13369_v38  ;;  %v13425_v38 = vld [vmem:[#allocation166_spill] sm:$0xff] }
0x1498   :  { %9076 = vmatpush1.bf16.xpose.msra.mxu1 %v13370_v32  ;;  %v13426_v32 = vld [vmem:[#allocation167_spill] sm:$0xff] }
0x1499   :  { %9078 = vmatprep.subr.bf16.mxu1 %v13371_v31  ;;  %v13427_v31 = vld [vmem:[#allocation168_spill] sm:$0xff] }
0x14a0   :  { %9080 = vmatpush1.bf16.xpose.msra.mxu1 %v13372_v40  ;;  %v13428_v40 = vld [vmem:[#allocation169_spill] sm:$0xff] }
0x14a1   :  { %9082 = vmatprep.subr.bf16.mxu1 %v13373_v3  ;;  %v13429_v3 = vld [vmem:[#allocation170_spill] sm:$0xff] }
0x14a8   :  { %9084 = vmatpush1.bf16.xpose.msra.mxu1 %v13374_v17  ;;  %v13430_v17 = vld [vmem:[#allocation171_spill] sm:$0xff] }
0x14a9   :  { %9086 = vmatprep.subr.bf16.mxu1 %v13375_v4  ;;  %v13431_v4 = vld [vmem:[#allocation172_spill] sm:$0xff] }
0x14b0   :  { %9088 = vmatpush1.bf16.xpose.msra.mxu1 %v13376_v24  ;;  %v13432_v24 = vld [vmem:[#allocation173_spill] sm:$0xff] }
0x14b1   :  { %9090 = vmatprep.subr.bf16.mxu1 %v13377_v46  ;;  %v13433_v46 = vld [vmem:[#allocation174_spill] sm:$0xff] }
0x14b8   :  { %9092 = vmatpush1.bf16.xpose.msra.mxu1 %v13378_v54  ;;  %v13434_v54 = vld [vmem:[#allocation175_spill] sm:$0xff] }
0x14b9   :  { %9094 = vmatprep.subr.bf16.mxu1 %v13379_v50  ;;  %v13435_v50 = vld [vmem:[#allocation176_spill] sm:$0xff] }
0x14c0   :  { %9096 = vmatpush1.bf16.xpose.msra.mxu1 %v13380_v12  ;;  %v13436_v12 = vld [vmem:[#allocation177_spill] sm:$0xff] }
0x14c1   :  { %9098 = vmatprep.subr.bf16.mxu1 %v13381_v13  ;;  %v13437_v13 = vld [vmem:[#allocation178_spill] sm:$0xff] }
0x14c8   :  { %9100 = vmatpush1.bf16.xpose.msra.mxu1 %v13382_v34  ;;  %v13438_v34 = vld [vmem:[#allocation179_spill] sm:$0xff] }
0x14c9   :  { %9102 = vmatprep.subr.bf16.mxu1 %v13383_v59  ;;  %v13439_v59 = vld [vmem:[#allocation180_spill] sm:$0xff] }
0x14d0   :  { %9104 = vmatpush1.bf16.xpose.msra.mxu1 %v13384_v26  ;;  %v13440_v26 = vld [vmem:[#allocation181_spill] sm:$0xff] }
0x14d1   :  { %9114 = vmatprep.subr.bf16.mxu1 %v13385_v35  ;;  %v13442_v35 = vld [vmem:[#allocation183_spill] sm:$0xff] }
0x14d7   :  { %6472 = vmatmul.mubr.f32.vlgmr.msra.gmra.mrb[56].mxu1 %v6402_v30  ;;  %v13412_v30 = vld [vmem:[#allocation153_spill] sm:$0xff] }
0x14d8   :  { %9116 = vmatpush1.bf16.xpose.msra.mxu1 %v13386_v6  ;;  %6620 = vmatprep.mubr.f32.mxu1 %v6553_v49  ;;  %v13443_v49 = vld [vmem:[#allocation184_spill] sm:$0xff]  ;;  %v13444_v6 = vld [vmem:[#allocation185_spill] sm:$0xff] }
0x14d9   :  { %9118 = vmatprep.subr.bf16.mxu1 %v13387_v19  ;;  %v13445_v19 = vld [vmem:[#allocation186_spill] sm:$0xff] }
0x14e0   :  { %9120 = vmatpush1.bf16.xpose.msra.mxu1 %v13388_v16  ;;  %v13446_v16 = vld [vmem:[#allocation187_spill] sm:$0xff] }
0x14e1   :  { %9122 = vmatprep.subr.bf16.mxu1 %v13389_v48  ;;  %v13447_v48 = vld [vmem:[#allocation188_spill] sm:$0xff] }
0x14e8   :  { %9124 = vmatpush1.bf16.xpose.msra.mxu1 %v13390_v56  ;;  %v13448_v56 = vld [vmem:[#allocation189_spill] sm:$0xff] }
0x14e9   :  { %9126 = vmatprep.subr.bf16.mxu1 %v13391_v61  ;;  %v6849_v61 = vpop.f32.mrb[38].mxu0 }
0x14f0   :  { %9128 = vmatpush1.bf16.xpose.msra.mxu1 %v13392_v2  ;;  %v13449_v2 = vld [vmem:[#allocation190_spill] sm:$0xff] }
0x14f1   :  { %9130 = vmatprep.subr.bf16.mxu1 %v13393_v51  ;;  %v6851_v51 = vpop.f32.mrb[39].mxu0 }
0x14f8   :  { %9132 = vmatpush1.bf16.xpose.msra.mxu1 %v13394_v8  ;;  %v13450_v8 = vld [vmem:[#allocation191_spill] sm:$0xff] }
0x14f9   :  { %9134 = vmatprep.subr.bf16.mxu1 %v13395_v47  ;;  %v13451_v47 = vld [vmem:[#allocation192_spill] sm:$0xff] }
0x1500   :  { %9136 = vmatpush1.bf16.xpose.msra.mxu1 %v13396_v58  ;;  %v13452_v58 = vld [vmem:[#allocation193_spill] sm:$0xff] }
0x1501   :  { %9138 = vmatprep.subr.bf16.mxu1 %v13397_v1  ;;  %v13453_v1 = vld [vmem:[#allocation194_spill] sm:$0xff] }
0x1508   :  { %9140 = vmatpush1.bf16.xpose.msra.mxu1 %v13398_v23  ;;  %v13454_v23 = vld [vmem:[#allocation195_spill] sm:$0xff] }
0x1509   :  { %9142 = vmatprep.subr.bf16.mxu1 %v13399_v45  ;;  %v13455_v45 = vld [vmem:[#allocation196_spill] sm:$0xff] }
0x1510   :  { %9144 = vmatpush1.bf16.xpose.msra.mxu1 %v13400_v15  ;;  %v13456_v15 = vld [vmem:[#allocation197_spill] sm:$0xff] }
0x1511   :  { %9146 = vmatprep.subr.bf16.mxu1 %v13401_v33  ;;  %v13457_v33 = vld [vmem:[#allocation198_spill] sm:$0xff] }
0x1518   :  { %9148 = vmatpush1.bf16.xpose.msra.mxu1 %v13402_v42  ;;  %v13458_v42 = vld [vmem:[#allocation199_spill] sm:$0xff] }
0x1519   :  { %9150 = vmatprep.subr.bf16.mxu1 %v13403_v36  ;;  %v13459_v36 = vld [vmem:[#allocation200_spill] sm:$0xff] }
0x1520   :  { %9152 = vmatpush1.bf16.xpose.msra.mxu1 %v13404_v5  ;;  %v7077_v5 = vld [vmem:[#allocation16 + $0x20] sm:$0x7] }
0x1521   :  { %9154 = vmatprep.subr.bf16.mxu1 %v13405_v9  ;;  %v13460_v9 = vld [vmem:[#allocation201_spill] sm:$0xff]  ;;  %7352 = vmatmul.mubr.msk.f32.vlgmr.msra.gmra.mrb[42].mxu0 %vm1471_vm2, %v7077_v5  ;;  %v13515_v5 = vld [vmem:[#allocation256_spill] sm:$0xff] }
0x1528   :  { %9156 = vmatpush1.bf16.xpose.msra.mxu1 %v13406_v28  ;;  %v13461_v28 = vld [vmem:[#allocation202_spill] sm:$0xff] }
0x1529   :  { %9158 = vmatprep.subr.bf16.mxu1 %v13407_v0  ;;  %v13462_v0 = vld [vmem:[#allocation203_spill] sm:$0xff] }
0x1530   :  { %9160 = vmatpush1.bf16.xpose.msra.mxu1 %v13408_v22  ;;  %v13463_v22 = vld [vmem:[#allocation204_spill] sm:$0xff] }
0x1531   :  { %9162 = vmatprep.subr.bf16.mxu1 %v13409_v55  ;;  %v13464_v55 = vld [vmem:[#allocation205_spill] sm:$0xff] }
0x1538   :  { %9164 = vmatpush1.bf16.xpose.msra.mxu1 %v13410_v14  ;;  %v13465_v14 = vld [vmem:[#allocation206_spill] sm:$0xff] }
0x1539   :  { %9166 = vmatprep.subr.bf16.mxu1 %v13411_v10  ;;  %v13466_v10 = vld [vmem:[#allocation207_spill] sm:$0xff] }
0x1540   :  { %9168 = vmatpush1.bf16.xpose.msra.mxu1 %v13412_v30  ;;  %v13467_v30 = vld [vmem:[#allocation208_spill] sm:$0xff] }
0x1541   :  { %9170 = vmatprep.subr.bf16.mxu1 %v13413_v62  ;;  %v13468_v62 = vld [vmem:[#allocation209_spill] sm:$0xff] }
0x1548   :  { %9172 = vmatpush1.bf16.xpose.msra.mxu1 %v13414_v11  ;;  %v13469_v11 = vld [vmem:[#allocation210_spill] sm:$0xff] }
0x1549   :  { %9174 = vmatprep.subr.bf16.mxu1 %v13415_v20  ;;  %v13470_v20 = vld [vmem:[#allocation211_spill] sm:$0xff] }
0x1550   :  { %9176 = vmatpush1.bf16.xpose.msra.mxu1 %v13416_v25  ;;  %v13471_v25 = vld [vmem:[#allocation212_spill] sm:$0xff] }
0x1551   :  { %9186 = vmatprep.subr.bf16.mxu1 %v13417_v18  ;;  %v13473_v18 = vld [vmem:[#allocation214_spill] sm:$0xff] }
0x1557   :  { %6621 = vmatmul.mubr.f32.vlgmr.msra.gmra.mrb[56].mxu1 %v6551_v53  ;;  %v13441_v53 = vld [vmem:[#allocation182_spill] sm:$0xff] }
0x1558   :  { %9188 = vmatpush1.bf16.xpose.msra.mxu1 %v13418_v21  ;;  %6769 = vmatprep.mubr.f32.mxu1 %v6702_v29  ;;  %v13474_v29 = vld [vmem:[#allocation215_spill] sm:$0xff]  ;;  %v13475_v21 = vld [vmem:[#allocation216_spill] sm:$0xff] }
0x1559   :  { %9190 = vmatprep.subr.bf16.mxu1 %v13419_v41  ;;  %v13476_v41 = vld [vmem:[#allocation217_spill] sm:$0xff] }
0x1560   :  { %9192 = vmatpush1.bf16.xpose.msra.mxu1 %v13420_v44  ;;  %v13477_v44 = vld [vmem:[#allocation218_spill] sm:$0xff] }
0x1561   :  { %9194 = vmatprep.subr.bf16.mxu1 %v13421_v63  ;;  %v13478_v63 = vld [vmem:[#allocation219_spill] sm:$0xff] }
0x1568   :  { %9196 = vmatpush1.bf16.xpose.msra.mxu1 %v13422_v7  ;;  %v13479_v7 = vld [vmem:[#allocation220_spill] sm:$0xff] }
0x1569   :  { %9198 = vmatprep.subr.bf16.mxu1 %v13423_v39  ;;  %v13480_v39 = vld [vmem:[#allocation221_spill] sm:$0xff] }
0x1570   :  { %9200 = vmatpush1.bf16.xpose.msra.mxu1 %v13424_v60  ;;  %v6998_v60 = vpop.f32.mrb[40].mxu0 }
0x1571   :  { %9202 = vmatprep.subr.bf16.mxu1 %v13425_v38  ;;  %v13481_v38 = vld [vmem:[#allocation222_spill] sm:$0xff] }
0x1578   :  { %9204 = vmatpush1.bf16.xpose.msra.mxu1 %v13426_v32  ;;  %v7000_v32 = vpop.f32.mrb[41].mxu0 }
0x1579   :  { %9206 = vmatprep.subr.bf16.mxu1 %v13427_v31  ;;  %v13482_v31 = vld [vmem:[#allocation223_spill] sm:$0xff] }
0x1580   :  { %9208 = vmatpush1.bf16.xpose.msra.mxu1 %v13428_v40  ;;  %v13483_v40 = vld [vmem:[#allocation224_spill] sm:$0xff] }
0x1581   :  { %9210 = vmatprep.subr.bf16.mxu1 %v13429_v3  ;;  %v13484_v3 = vld [vmem:[#allocation225_spill] sm:$0xff] }
0x1588   :  { %9212 = vmatpush1.bf16.xpose.msra.mxu1 %v13430_v17  ;;  %v13485_v17 = vld [vmem:[#allocation226_spill] sm:$0xff] }
0x1589   :  { %9214 = vmatprep.subr.bf16.mxu1 %v13431_v4  ;;  %v13486_v4 = vld [vmem:[#allocation227_spill] sm:$0xff] }
0x1590   :  { %9216 = vmatpush1.bf16.xpose.msra.mxu1 %v13432_v24  ;;  %v13487_v24 = vld [vmem:[#allocation228_spill] sm:$0xff] }
0x1591   :  { %9218 = vmatprep.subr.bf16.mxu1 %v13433_v46  ;;  %v13488_v46 = vld [vmem:[#allocation229_spill] sm:$0xff] }
0x1598   :  { %9220 = vmatpush1.bf16.xpose.msra.mxu1 %v13434_v54  ;;  %v13489_v54 = vld [vmem:[#allocation230_spill] sm:$0xff] }
0x1599   :  { %9222 = vmatprep.subr.bf16.mxu1 %v13435_v50  ;;  %v13490_v50 = vld [vmem:[#allocation231_spill] sm:$0xff] }
0x15a0   :  { %9224 = vmatpush1.bf16.xpose.msra.mxu1 %v13436_v12  ;;  %v13491_v12 = vld [vmem:[#allocation232_spill] sm:$0xff] }
0x15a1   :  { %9226 = vmatprep.subr.bf16.mxu1 %v13437_v13  ;;  %v13492_v13 = vld [vmem:[#allocation233_spill] sm:$0xff] }
0x15a8   :  { %9228 = vmatpush1.bf16.xpose.msra.mxu1 %v13438_v34  ;;  %v13493_v34 = vld [vmem:[#allocation234_spill] sm:$0xff] }
0x15a9   :  { %9230 = vmatprep.subr.bf16.mxu1 %v13439_v59  ;;  %v13494_v59 = vld [vmem:[#allocation235_spill] sm:$0xff] }
0x15b0   :  { %9232 = vmatpush1.bf16.xpose.msra.mxu1 %v13440_v26  ;;  %v13495_v26 = vld [vmem:[#allocation236_spill] sm:$0xff] }
0x15b1   :  { %9234 = vmatprep.subr.bf16.mxu1 %v13441_v53  ;;  %v13496_v53 = vld [vmem:[#allocation237_spill] sm:$0xff] }
0x15b8   :  { %9236 = vmatpush1.bf16.xpose.msra.mxu1 %v13442_v35  ;;  %v13497_v35 = vld [vmem:[#allocation238_spill] sm:$0xff] }
0x15b9   :  { %9238 = vmatprep.subr.bf16.mxu1 %v13443_v49  ;;  %v13498_v49 = vld [vmem:[#allocation239_spill] sm:$0xff] }
0x15c0   :  { %9240 = vmatpush1.bf16.xpose.msra.mxu1 %v13444_v6  ;;  %v13499_v6 = vld [vmem:[#allocation240_spill] sm:$0xff] }
0x15c1   :  { %9242 = vmatprep.subr.bf16.mxu1 %v13445_v19  ;;  %v13500_v19 = vld [vmem:[#allocation241_spill] sm:$0xff] }
0x15c8   :  { %9244 = vmatpush1.bf16.xpose.msra.mxu1 %v13446_v16  ;;  %v13501_v16 = vld [vmem:[#allocation242_spill] sm:$0xff] }
0x15c9   :  { %9246 = vmatprep.subr.bf16.mxu1 %v13447_v48  ;;  %v13502_v48 = vld [vmem:[#allocation243_spill] sm:$0xff] }
0x15d0   :  { %9248 = vmatpush1.bf16.xpose.msra.mxu1 %v13448_v56  ;;  %v13503_v56 = vld [vmem:[#allocation244_spill] sm:$0xff] }
0x15d1   :  { %9258 = vmatprep.subr.bf16.mxu1 %v13449_v2  ;;  %v13505_v2 = vld [vmem:[#allocation246_spill] sm:$0xff] }
0x15d7   :  { %6770 = vmatmul.mubr.f32.vlgmr.msra.gmra.mrb[56].mxu1 %v6700_v57  ;;  %v13472_v57 = vld [vmem:[#allocation213_spill] sm:$0xff] }
0x15d8   :  { %9260 = vmatpush1.bf16.xpose.msra.mxu1 %v13450_v8  ;;  %6918 = vmatprep.mubr.f32.mxu1 %v6851_v51  ;;  %v13506_v51 = vld [vmem:[#allocation247_spill] sm:$0xff]  ;;  %v13507_v8 = vld [vmem:[#allocation248_spill] sm:$0xff] }
0x15d9   :  { %9262 = vmatprep.subr.bf16.mxu1 %v13451_v47  ;;  %v13508_v47 = vld [vmem:[#allocation249_spill] sm:$0xff] }
0x15e0   :  { %9264 = vmatpush1.bf16.xpose.msra.mxu1 %v13452_v58  ;;  %v13509_v58 = vld [vmem:[#allocation250_spill] sm:$0xff] }
0x15e1   :  { %9266 = vmatprep.subr.bf16.mxu1 %v13453_v1  ;;  %v13510_v1 = vld [vmem:[#allocation251_spill] sm:$0xff] }
0x15e8   :  { %9268 = vmatpush1.bf16.xpose.msra.mxu1 %v13454_v23  ;;  %v13511_v23 = vld [vmem:[#allocation252_spill] sm:$0xff] }
0x15e9   :  { %9270 = vmatprep.subr.bf16.mxu1 %v13455_v45  ;;  %v13512_v45 = vld [vmem:[#allocation253_spill] sm:$0xff] }
0x15f0   :  { %9272 = vmatpush1.bf16.xpose.msra.mxu1 %v13456_v15  ;;  %v13513_v15 = vld [vmem:[#allocation254_spill] sm:$0xff] }
0x15f1   :  { %9274 = vmatprep.subr.bf16.mxu1 %v13457_v33 }
0x15f4   :  { %v7147_v33 = vpop.f32.mrb[42].mxu0 }
0x15f8   :  { %9276 = vmatpush1.bf16.xpose.msra.mxu1 %v13458_v42  ;;  %v7149_v42 = vpop.f32.mrb[43].mxu0 }
0x15f9   :  { %9278 = vmatprep.subr.bf16.mxu1 %v13459_v36  ;;  %v13514_v36 = vld [vmem:[#allocation255_spill] sm:$0xff] }
0x1600   :  { %9280 = vmatpush1.bf16.xpose.msra.mxu1 %v13460_v9  ;;  %v13516_v9 = vld [vmem:[#allocation257_spill] sm:$0xff] }
0x1601   :  { %9282 = vmatprep.subr.bf16.mxu1 %v13461_v28  ;;  %v13517_v28 = vld [vmem:[#allocation258_spill] sm:$0xff] }
0x1608   :  { %9284 = vmatpush1.bf16.xpose.msra.mxu1 %v13462_v0  ;;  %v13518_v0 = vld [vmem:[#allocation259_spill] sm:$0xff] }
0x1609   :  { %9286 = vmatprep.subr.bf16.mxu1 %v13463_v22  ;;  %v13519_v22 = vld [vmem:[#allocation260_spill] sm:$0xff] }
0x1610   :  { %9288 = vmatpush1.bf16.xpose.msra.mxu1 %v13464_v55  ;;  %v13520_v55 = vld [vmem:[#allocation261_spill] sm:$0xff] }
0x1611   :  { %9290 = vmatprep.subr.bf16.mxu1 %v13465_v14  ;;  %v13521_v14 = vld [vmem:[#allocation262_spill] sm:$0xff] }
0x1618   :  { %9292 = vmatpush1.bf16.xpose.msra.mxu1 %v13466_v10  ;;  %v13522_v10 = vld [vmem:[#allocation263_spill] sm:$0xff] }
0x1619   :  { %9294 = vmatprep.subr.bf16.mxu1 %v13467_v30  ;;  %v13523_v30 = vld [vmem:[#allocation264_spill] sm:$0xff] }
0x1620   :  { %9296 = vmatpush1.bf16.xpose.msra.mxu1 %v13468_v62  ;;  %v13524_v62 = vld [vmem:[#allocation265_spill] sm:$0xff] }
0x1621   :  { %9298 = vmatprep.subr.bf16.mxu1 %v13469_v11  ;;  %v13525_v11 = vld [vmem:[#allocation266_spill] sm:$0xff] }
0x1628   :  { %9300 = vmatpush1.bf16.xpose.msra.mxu1 %v13470_v20  ;;  %v13526_v20 = vld [vmem:[#allocation267_spill] sm:$0xff] }
0x1629   :  { %9302 = vmatprep.subr.bf16.mxu1 %v13471_v25  ;;  %v13527_v25 = vld [vmem:[#allocation268_spill] sm:$0xff] }
0x1630   :  { %9304 = vmatpush1.bf16.xpose.msra.mxu1 %v13472_v57  ;;  %v13529_v57 = vld [vmem:[#allocation270_spill] sm:$0xff] }
0x1631   :  { %9306 = vmatprep.subr.bf16.mxu1 %v13473_v18  ;;  %v13530_v18 = vld [vmem:[#allocation271_spill] sm:$0xff] }
0x1638   :  { %9308 = vmatpush1.bf16.xpose.msra.mxu1 %v13474_v29  ;;  %v13531_v29 = vld [vmem:[#allocation272_spill] sm:$0xff] }
0x1639   :  { %9310 = vmatprep.subr.bf16.mxu1 %v13475_v21  ;;  %v13532_v21 = vld [vmem:[#allocation273_spill] sm:$0xff] }
0x1640   :  { %9312 = vmatpush1.bf16.xpose.msra.mxu1 %v13476_v41  ;;  %v13533_v41 = vld [vmem:[#allocation274_spill] sm:$0xff] }
0x1641   :  { %9314 = vmatprep.subr.bf16.mxu1 %v13477_v44  ;;  %v13534_v44 = vld [vmem:[#allocation275_spill] sm:$0xff] }
0x1648   :  { %9316 = vmatpush1.bf16.xpose.msra.mxu1 %v13478_v63  ;;  %v13535_v63 = vld [vmem:[#allocation276_spill] sm:$0xff] }
0x1649   :  { %9318 = vmatprep.subr.bf16.mxu1 %v13479_v7  ;;  %v13536_v7 = vld [vmem:[#allocation277_spill] sm:$0xff] }
0x1650   :  { %9320 = vmatpush1.bf16.xpose.msra.mxu1 %v13480_v39  ;;  %v13537_v39 = vld [vmem:[#allocation278_spill] sm:$0xff] }
0x1651   :  { %9330 = vmatprep.subr.bf16.mxu1 %v13481_v38  ;;  %v13539_v38 = vld [vmem:[#allocation280_spill] sm:$0xff] }
0x1657   :  { %6919 = vmatmul.mubr.f32.vlgmr.msra.gmra.mrb[56].mxu1 %v6849_v61  ;;  %v13504_v61 = vld [vmem:[#allocation245_spill] sm:$0xff] }
0x1658   :  { %9332 = vmatpush1.bf16.xpose.msra.mxu1 %v13482_v31  ;;  %7067 = vmatprep.mubr.f32.mxu1 %v7000_v32  ;;  %v13540_v32 = vld [vmem:[#allocation281_spill] sm:$0xff]  ;;  %v13541_v31 = vld [vmem:[#allocation282_spill] sm:$0xff] }
0x1659   :  { %9334 = vmatprep.subr.bf16.mxu1 %v13483_v40  ;;  %v13542_v40 = vld [vmem:[#allocation283_spill] sm:$0xff] }
0x1660   :  { %9336 = vmatpush1.bf16.xpose.msra.mxu1 %v13484_v3 }
0x1661   :  { %9338 = vmatprep.subr.bf16.mxu1 %v13485_v17 }
0x1668   :  { %9340 = vmatpush1.bf16.xpose.msra.mxu1 %v13486_v4 }
0x1669   :  { %9342 = vmatprep.subr.bf16.mxu1 %v13487_v24  ;;  %v7229_v24 = vpop.permute.xlu0 %7228 }
0x1670   :  { %9344 = vmatpush1.bf16.xpose.msra.mxu1 %v13488_v46 }
0x1671   :  { %9346 = vmatprep.subr.bf16.mxu1 %v13489_v54 }
0x1678   :  { %9348 = vmatpush1.bf16.xpose.msra.mxu1 %v13490_v50 }
0x1679   :  { %9350 = vmatprep.subr.bf16.mxu1 %v13491_v12 }
0x1680   :  { %9352 = vmatpush1.bf16.xpose.msra.mxu1 %v13492_v13 }
0x1681   :  { %9354 = vmatprep.subr.bf16.mxu1 %v13493_v34 }
0x1688   :  { %9356 = vmatpush1.bf16.xpose.msra.mxu1 %v13494_v59 }
0x1689   :  { %9358 = vmatprep.subr.bf16.mxu1 %v13495_v26 }
0x1690   :  { %9360 = vmatpush1.bf16.xpose.msra.mxu1 %v13496_v53 }
0x1691   :  { %9362 = vmatprep.subr.bf16.mxu1 %v13497_v35 }
0x1698   :  { %9364 = vmatpush1.bf16.xpose.msra.mxu1 %v13498_v49 }
0x1699   :  { %9366 = vmatprep.subr.bf16.mxu1 %v13499_v6 }
0x16a0   :  { %9368 = vmatpush1.bf16.xpose.msra.mxu1 %v13500_v19 }
0x16a1   :  { %9370 = vmatprep.subr.bf16.mxu1 %v13501_v16 }
0x16a8   :  { %9372 = vmatpush1.bf16.xpose.msra.mxu1 %v13502_v48 }
0x16a9   :  { %9374 = vmatprep.subr.bf16.mxu1 %v13503_v56 }
0x16b0   :  { %9376 = vmatpush1.bf16.xpose.msra.mxu1 %v13504_v61 }
0x16b1   :  { %9378 = vmatprep.subr.bf16.mxu1 %v13505_v2 }
0x16b8   :  { %9380 = vmatpush1.bf16.xpose.msra.mxu1 %v13506_v51 }
0x16b9   :  { %9382 = vmatprep.subr.bf16.mxu1 %v13507_v8 }
0x16c0   :  { %9384 = vmatpush1.bf16.xpose.msra.mxu1 %v13508_v47 }
0x16c1   :  { %9386 = vmatprep.subr.bf16.mxu1 %v13509_v58 }
0x16c8   :  { %9388 = vmatpush1.bf16.xpose.msra.mxu1 %v13510_v1 }
0x16c9   :  { %9390 = vmatprep.subr.bf16.mxu1 %v13511_v23 }
0x16d0   :  { %9392 = vmatpush1.bf16.xpose.msra.mxu1 %v13512_v45 }
0x16d1   :  { %9402 = vmatprep.subr.bf16.mxu1 %v13513_v15 }
0x16d7   :  { %7068 = vmatmul.mubr.f32.vlgmr.msra.gmra.mrb[56].mxu1 %v6998_v60  ;;  %v13538_v60 = vld [vmem:[#allocation279_spill] sm:$0xff] }
0x16d8   :  { %9404 = vmatpush1.bf16.xpose.msra.mxu1 %v13514_v36  ;;  %7216 = vmatprep.mubr.f32.mxu1 %v7149_v42 }
0x16d9   :  { %9406 = vmatprep.subr.bf16.mxu1 %v13515_v5 }
0x16e0   :  { %9408 = vmatpush1.bf16.xpose.msra.mxu1 %v13516_v9 }
0x16e1   :  { %9410 = vmatprep.subr.bf16.mxu1 %v13517_v28 }
0x16e8   :  { %9412 = vmatpush1.bf16.xpose.msra.mxu1 %v11354_v37  ;;  %v13528_v37 = vld [vmem:[#allocation269_spill] sm:$0xff] }
0x16e9   :  { %9414 = vmatprep.subr.bf16.mxu1 %v13518_v0 }
0x16f0   :  { %9416 = vmatpush1.bf16.xpose.msra.mxu1 %v13519_v22 }
0x16f1   :  { %9418 = vmatprep.subr.bf16.mxu1 %v13520_v55 }
0x16f8   :  { %9420 = vmatpush1.bf16.xpose.msra.mxu1 %v13521_v14 }
0x16f9   :  { %9422 = vmatprep.subr.bf16.mxu1 %v13522_v10 }
0x1700   :  { %9424 = vmatpush1.bf16.xpose.msra.mxu1 %v13523_v30 }
0x1701   :  { %9426 = vmatprep.subr.bf16.mxu1 %v13524_v62 }
0x1708   :  { %9428 = vmatpush1.bf16.xpose.msra.mxu1 %v13525_v11 }
0x1709   :  { %9430 = vmatprep.subr.bf16.mxu1 %v13526_v20 }
0x1710   :  { %9432 = vmatpush1.bf16.xpose.msra.mxu1 %v13527_v25 }
0x1711   :  { %9434 = vmatprep.subr.bf16.mxu1 %v13528_v37 }
0x1718   :  { %9436 = vmatpush1.bf16.xpose.msra.mxu1 %v13529_v57 }
0x1719   :  { %9438 = vmatprep.subr.bf16.mxu1 %v13530_v18 }
0x1720   :  { %9440 = vmatpush1.bf16.xpose.msra.mxu1 %v13531_v29 }
0x1721   :  { %9442 = vmatprep.subr.bf16.mxu1 %v13532_v21 }
0x1728   :  { %9444 = vmatpush1.bf16.xpose.msra.mxu1 %v13533_v41 }
0x1729   :  { %9446 = vmatprep.subr.bf16.mxu1 %v13534_v44 }
0x1730   :  { %9448 = vmatpush1.bf16.xpose.msra.mxu1 %v13535_v63 }
0x1731   :  { %9450 = vmatprep.subr.bf16.mxu1 %v13536_v7 }
0x1738   :  { %9452 = vmatpush1.bf16.xpose.msra.mxu1 %v13537_v39 }
0x1739   :  { %9454 = vmatprep.subr.bf16.mxu1 %v13538_v60 }
0x1740   :  { %9456 = vmatpush1.bf16.xpose.msra.mxu1 %v13539_v38 }
0x1741   :  { %9458 = vmatprep.subr.bf16.mxu1 %v13540_v32 }
0x1748   :  { %9460 = vmatpush1.bf16.xpose.msra.mxu1 %v13541_v31 }
0x1749   :  { %9462 = vmatprep.subr.bf16.mxu1 %v13542_v40 }
0x1750   :  { %9464 = vmatpush1.bf16.xpose.msra.mxu1 %v13286_v27 }
0x1757   :  { %7217 = vmatmul.mubr.f32.vlgmr.msra.gmra.mrb[56].mxu1 %v7147_v33 }
0x182a   :  { %v7218_v3 = vpop.f32.mrb[56].mxu1 }
0x182b   :  { %v9501_v17 = vadd.f32 %v7218_v3, %v12035_v43  ;;  %v7220_v4 = vpop.f32.mrb[57].mxu1 }
0x182c   :  { %v9502_v46 = vadd.f32 %v7220_v4, %v12037_v52 }
0x182d   :  { %v7231_v54 = vadd.f32 %v9501_v17, %v7229_v24 }
0x182e   :  { %v7232_v50 = vadd.f32 %v9502_v46, %v7229_v24 }
0x182f   :  { %9676 = vtanh.f32 %v7231_v54 }
0x1830   :  { %9678 = vtanh.f32 %v7232_v50 }
0x1839   :  { %v9677_v12 = vpop.eup %9676 }
0x183a   :  { %v9679_v13 = vpop.eup %9678 }
0x183b   :  { %v7237_v34 = vcombine.low %v9677_v12, %v9679_v13 }
0x183d   :  { %7239 = vst [vmem:[%s12253_s17] sm:$0x77] %v7237_v34 }
0x183e   :  { %7244 = vsyncpa [#allocation3], 1 }
0x183f   :  { %7245 = vsyncpa [#allocation5], 1 }
0x1840   :  { %7246 = vsyncpa [#allocation8], 1 }
0x1841   :  { %7247 = vsyncpa [#allocation11], 1 }
0x1842   :  { %7248 = vsyncpa [#allocation14], 1 }
0x1843   :  { %7249 = vsyncpa [#allocation17], 1 }

</bundles_post_ra>
